<compile_context>
chip_gen: v7x
topology: tpu7x:2x2x1
jax: 0.10.0
libtpu: 0.0.40
codegen_flags: <defaults>
</compile_context>

<pallas_src>
import functools

import jax
import jax.numpy as jnp
from jax import lax
from jax.experimental import pallas as pl
from jax.experimental.pallas import tpu as pltpu


def _gc_fused_kernel(xh_ref, xw_ref, wl1_ref, bl1_ref, wl2_ref, bl2_ref,
                     wr1_ref, br1_ref, wr2_ref, br2_ref, o_ref,
                     *, H, kh, kw, compute_dtype):
    """Fused GC forward for one (batch, H-tile) grid step.

    xh_ref : (1, th, Wp, kh*cin)      im2col'd input for the (kh,1) conv
    xw_ref : (1, 1, rows, W, kw*cin)  im2col'd, H-haloed input for the (1,kw) conv
    wl1_ref: (kh*cin, 256)   bl1_ref: (1, 256)
    wl2_ref: (kw, 256, P)    bl2_ref: (1, P)
    wr1_ref: (kw*cin, 256)   br1_ref: (1, 256)
    wr2_ref: (kh, 256, P)    br2_ref: (1, P)
    o_ref  : (1, th, W, P)
    """
    i = pl.program_id(1)
    ph, pw = kh // 2, kw // 2

    _, th, W, planes = o_ref.shape
    Wp = xh_ref.shape[2]
    rows = xw_ref.shape[2]            # th + 2*ph
    mid = wl1_ref.shape[1]            # 256

    f32 = jnp.float32

    # ---------------- stage 1, left branch: (kh,1) conv over H --------------
    xh = xh_ref[0].astype(compute_dtype)                       # (th, Wp, kh*cin)
    t_l = jnp.dot(xh.reshape(th * Wp, kh * (Wp and xh.shape[-1] // kh) if False else xh.shape[-1]),
                  wl1_ref[...].astype(compute_dtype),
                  preferred_element_type=f32).reshape(th, Wp, mid)
    # conv_l2 zero-pads its input along W.  The W-halo columns of xh are zero,
    # so only the bias has to be masked out there.
    col = lax.broadcasted_iota(jnp.int32, (1, Wp, 1), 1)
    wmask = jnp.logical_and(col >= pw, col < pw + W).astype(f32)
    t_l = (t_l + bl1_ref[...].reshape(1, 1, mid) * wmask).astype(compute_dtype)

    # ---------------- stage 1, right branch: (1,kw) conv over W -------------
    xw = xw_ref[0, 0].astype(compute_dtype)                    # (rows, W, kw*cin)
    t_r = jnp.dot(xw.reshape(rows * W, xw.shape[-1]),
                  wr1_ref[...].astype(compute_dtype),
                  preferred_element_type=f32).reshape(rows, W, mid)
    # conv_r2 zero-pads along H: halo rows outside the image must be exactly 0.
    row = lax.broadcasted_iota(jnp.int32, (rows, 1, 1), 0)
    g = i * th + row - ph                                      # global H index
    hmask = jnp.logical_and(g >= 0, g < H).astype(f32)
    t_r = (t_r + br1_ref[...].reshape(1, 1, mid) * hmask).astype(compute_dtype)

    # --------- stage 2: both second convs into one f32 accumulator ----------
    acc = jnp.zeros((th * W, planes), f32)
    for dw in range(kw):              # left branch: (1,kw) conv over W
        acc = acc + jnp.dot(t_l[:, dw:dw + W, :].reshape(th * W, mid),
                            wl2_ref[dw].astype(compute_dtype),
                            preferred_element_type=f32)
    for dh in range(kh):              # right branch: (kh,1) conv over H
        acc = acc + jnp.dot(t_r[dh:dh + th, :, :].reshape(th * W, mid),
                            wr2_ref[dh].astype(compute_dtype),
                            preferred_element_type=f32)
    acc = acc + (bl2_ref[...] + br2_ref[...])                  # (1, P) broadcast
    o_ref[...] = acc.reshape(1, th, W, planes).astype(o_ref.dtype)


def _torch_w_to_taps(w):
    """PyTorch conv weight (Cout, Cin, k, 1) or (Cout, Cin, 1, k) -> (k, Cin, Cout)."""
    cout, cin, kh, kw = w.shape
    if kw == 1:
        return jnp.transpose(w[:, :, :, 0], (2, 1, 0))
    assert kh == 1
    return jnp.transpose(w[:, :, 0, :], (2, 1, 0))


def gc_forward(params, x_nchw, *, tile_h=None, compute_dtype=jnp.float32):
    """GC forward.  Input/output NCHW (PyTorch convention)."""
    kh, kw = params.kh, params.kw
    ph, pw = kh // 2, kw // 2
    n, cin, H, W = x_nchw.shape
    mid = params.w_l1.shape[0]        # 256
    planes = params.w_l2.shape[0]

    if tile_h is None:                # largest "nice" H tile that divides H
        tile_h = H
        for cand in (32, 16, 8):
            if H % cand == 0:
                tile_h = cand
                break
    th = tile_h
    assert H % th == 0, (H, th)
    n_h = H // th
    rows = th + 2 * ph
    Wp = W + 2 * pw

    # ---- wrapper-side prep: all on the small cin-channel input -------------
    x = jnp.transpose(x_nchw, (0, 2, 3, 1))                      # NHWC
    x_pad = jnp.pad(x, ((0, 0), (ph, ph), (pw, pw), (0, 0)))     # (n, Hp, Wp, cin)

    # im2col over the kh taps of the (kh,1) conv -> (n, H, Wp, kh*cin)
    xh_col = jnp.concatenate([x_pad[:, d:d + H, :, :] for d in range(kh)], axis=-1)
    # im2col over the kw taps of the (1,kw) conv -> (n, Hp, W, kw*cin)
    xw_col = jnp.concatenate([x_pad[:, :, d:d + W, :] for d in range(kw)], axis=-1)
    # pre-tile xw_col into H slabs with +-ph halo so each grid step gets a
    # plain, non-overlapping block: (n, n_h, rows, W, kw*cin)
    idx = ((jnp.arange(n_h) * th)[:, None] + jnp.arange(rows)[None, :]).reshape(-1)
    xw_tiles = xw_col[:, idx, :, :].reshape(n, n_h, rows, W, kw * cin)

    # weights: taps flattened so the contraction matches the im2col ordering
    wl1 = _torch_w_to_taps(params.w_l1).reshape(kh * cin, mid)   # (kh*cin, 256)
    wl2 = _torch_w_to_taps(params.w_l2)                          # (kw, 256, P)
    wr1 = _torch_w_to_taps(params.w_r1).reshape(kw * cin, mid)   # (kw*cin, 256)
    wr2 = _torch_w_to_taps(params.w_r2)                          # (kh, 256, P)
    bl1 = params.b_l1.reshape(1, mid)
    bl2 = params.b_l2.reshape(1, planes)
    br1 = params.b_r1.reshape(1, mid)
    br2 = params.b_r2.reshape(1, planes)

    kernel = functools.partial(_gc_fused_kernel, H=H, kh=kh, kw=kw,
                               compute_dtype=compute_dtype)

    out_nhwc = pl.pallas_call(
        kernel,
        out_shape=jax.ShapeDtypeStruct((n, H, W, planes), jnp.float32),
        grid_spec=pltpu.PrefetchScalarGridSpec(
            num_scalar_prefetch=0,
            grid=(n, n_h),
            in_specs=[
                pl.BlockSpec((1, th, Wp, kh * cin), lambda b, i: (b, i, 0, 0)),
                pl.BlockSpec((1, 1, rows, W, kw * cin),
                             lambda b, i: (b, i, 0, 0, 0)),
                pl.BlockSpec((kh * cin, mid), lambda b, i: (0, 0)),
                pl.BlockSpec((1, mid), lambda b, i: (0, 0)),
                pl.BlockSpec((kw, mid, planes), lambda b, i: (0, 0, 0)),
                pl.BlockSpec((1, planes), lambda b, i: (0, 0)),
                pl.BlockSpec((kw * cin, mid), lambda b, i: (0, 0)),
                pl.BlockSpec((1, mid), lambda b, i: (0, 0)),
                pl.BlockSpec((kh, mid, planes), lambda b, i: (0, 0, 0)),
                pl.BlockSpec((1, planes), lambda b, i: (0, 0)),
            ],
            out_specs=pl.BlockSpec((1, th, W, planes),
                                   lambda b, i: (b, i, 0, 0)),
        ),
        compiler_params=pltpu.CompilerParams(
            dimension_semantics=("parallel", "parallel"),
            vmem_limit_bytes=32 * 1024 * 1024),
    )(xh_col, xw_tiles, wl1, bl1, wl2, bl2, wr1, br1, wr2, br2)

    # NHWC -> NCHW (small planes-channel tensor)
    return jnp.transpose(out_nhwc, (0, 3, 1, 2))


class GCParams:
    """Deterministic parameter container mirroring the PyTorch GC.__init__."""

    def __init__(self, key, inplanes, planes, kh=7, kw=7):
        self.kh, self.kw = kh, kw
        ks = jax.random.split(key, 8)
        scale = 0.05

        def w(k, shape):
            return scale * jax.random.normal(k, shape, jnp.float32)

        # PyTorch Conv2d weight layout: (out_ch, in_ch, kH, kW)
        self.w_l1 = w(ks[0], (256, inplanes, kh, 1))
        self.b_l1 = w(ks[1], (256,))
        self.w_l2 = w(ks[2], (planes, 256, 1, kw))
        self.b_l2 = w(ks[3], (planes,))
        self.w_r1 = w(ks[4], (256, inplanes, 1, kw))
        self.b_r1 = w(ks[5], (256,))
        self.w_r2 = w(ks[6], (planes, 256, kh, 1))
        self.b_r2 = w(ks[7], (planes,))


def _reference_gc(params, x_nchw):
    """Plain-JAX reference (lax conv) for correctness checking."""
    dn = lax.conv_dimension_numbers(x_nchw.shape, params.w_l1.shape,
                                    ("NCHW", "OIHW", "NCHW"))

    def conv(y, w, b, pad):
        o = lax.conv_general_dilated(y, w, (1, 1), [pad[0], pad[1]],
                                     dimension_numbers=dn)
        return o + b.reshape(1, -1, 1, 1)

    kh, kw = params.kh, params.kw
    ph, pw = kh // 2, kw // 2
    xl = conv(conv(x_nchw, params.w_l1, params.b_l1, ((ph, ph), (0, 0))),
              params.w_l2, params.b_l2, ((0, 0), (pw, pw)))
    xr = conv(conv(x_nchw, params.w_r1, params.b_r1, ((0, 0), (pw, pw))),
              params.w_r2, params.b_r2, ((ph, ph), (0, 0)))
    return xl + xr


if __name__ == "__main__":
    key = jax.random.PRNGKey(0)
    k_param, k_x = jax.random.split(key)

    N, INPLANES, PLANES, H, W = 2, 4, 8, 16, 16
    params = GCParams(k_param, INPLANES, PLANES, kh=7, kw=7)
    x = jax.random.normal(k_x, (N, INPLANES, H, W), jnp.float32)

    # tile_h=8 -> 2 H-tiles per image: exercises the tiled grid + halo masking.
    fwd = jax.jit(lambda xx: gc_forward(params, xx, tile_h=8))
    out = jax.block_until_ready(fwd(x))
    ref = jax.block_until_ready(_reference_gc(params, x))

    assert out.shape == (N, PLANES, H, W), out.shape
    max_err = float(jnp.max(jnp.abs(out - ref)))
    assert jnp.allclose(out, ref, atol=1e-4, rtol=1e-4), max_err
    print("KERNEL_OK")
</pallas_src>

<mosaic_0001>
module attributes {stable_mosaic.version = 11 : i64} {
  func.func @_gc_fused_kernel(%arg0: i32, %arg1: i32, %arg2: memref<1x8x22x28xf32, #tpu.memory_space<vmem>>, %arg3: memref<1x1x14x16x28xf32, #tpu.memory_space<vmem>>, %arg4: memref<28x256xf32, #tpu.memory_space<vmem>>, %arg5: memref<1x256xf32, #tpu.memory_space<vmem>>, %arg6: memref<7x256x8xf32, #tpu.memory_space<vmem>>, %arg7: memref<1x8xf32, #tpu.memory_space<vmem>>, %arg8: memref<28x256xf32, #tpu.memory_space<vmem>>, %arg9: memref<1x256xf32, #tpu.memory_space<vmem>>, %arg10: memref<7x256x8xf32, #tpu.memory_space<vmem>>, %arg11: memref<1x8xf32, #tpu.memory_space<vmem>>, %arg12: memref<1x8x16x8xf32, #tpu.memory_space<vmem>>) attributes {dimension_semantics = [#tpu.dimension_semantics<parallel>, #tpu.dimension_semantics<parallel>], iteration_bounds = array<i64: 2, 2>, scalar_prefetch = 0 : i64, scratch_operands = 0 : i64, tpu.core_type = #tpu.core_type<tc>, window_params = [{transform_indices = @transform_0, window_bounds = array<i64: 1, 8, 22, 28>}, {transform_indices = @transform_1, window_bounds = array<i64: 1, 1, 14, 16, 28>}, {pipeline_mode = #tpu.pipeline_mode<synchronous>, transform_indices = @transform_2, window_bounds = array<i64: 28, 256>}, {pipeline_mode = #tpu.pipeline_mode<synchronous>, transform_indices = @transform_3, window_bounds = array<i64: 1, 256>}, {pipeline_mode = #tpu.pipeline_mode<synchronous>, transform_indices = @transform_4, window_bounds = array<i64: 7, 256, 8>}, {pipeline_mode = #tpu.pipeline_mode<synchronous>, transform_indices = @transform_5, window_bounds = array<i64: 1, 8>}, {pipeline_mode = #tpu.pipeline_mode<synchronous>, transform_indices = @transform_6, window_bounds = array<i64: 28, 256>}, {pipeline_mode = #tpu.pipeline_mode<synchronous>, transform_indices = @transform_7, window_bounds = array<i64: 1, 256>}, {pipeline_mode = #tpu.pipeline_mode<synchronous>, transform_indices = @transform_8, window_bounds = array<i64: 7, 256, 8>}, {pipeline_mode = #tpu.pipeline_mode<synchronous>, transform_indices = @transform_9, window_bounds = array<i64: 1, 8>}, {transform_indices = @transform_10, window_bounds = array<i64: 1, 8, 16, 8>}]} {
    %c0 = arith.constant 0 : index
    %c0_0 = arith.constant 0 : index
    %c0_1 = arith.constant 0 : index
    %c0_2 = arith.constant 0 : index
    %0 = vector.load %arg2[%c0, %c0_0, %c0_1, %c0_2] : memref<1x8x22x28xf32, #tpu.memory_space<vmem>>, vector<1x8x22x28xf32>
    %1 = vector.shape_cast %0 : vector<1x8x22x28xf32> to vector<8x22x28xf32>
    %2 = vector.shape_cast %1 : vector<8x22x28xf32> to vector<176x28xf32>
    %c0_3 = arith.constant 0 : index
    %c0_4 = arith.constant 0 : index
    %3 = vector.load %arg4[%c0_3, %c0_4] : memref<28x256xf32, #tpu.memory_space<vmem>>, vector<28x256xf32>
    %cst = arith.constant dense<0.000000e+00> : vector<176x256xf32>
    %4 = tpu.matmul %2, %3, %cst {dimension_numbers = #tpu.dot_dimension_numbers<[1], [0], [0], [1], [0, 0, 1, 1], [], []>} : vector<176x28xf32>, vector<28x256xf32>, vector<176x256xf32> -> vector<176x256xf32>
    %5 = vector.shape_cast %4 : vector<176x256xf32> to vector<8x22x256xf32>
    %6 = tpu.iota {dimensions = array<i32: 1>} : vector<1x22x1xi32>
    %c3_i32 = arith.constant 3 : i32
    %7 = vector.broadcast %c3_i32 : i32 to vector<1x22x1xi32>
    %8 = arith.cmpi sge, %6, %7 : vector<1x22x1xi32>
    %c19_i32 = arith.constant 19 : i32
    %9 = vector.broadcast %c19_i32 : i32 to vector<1x22x1xi32>
    %10 = arith.cmpi slt, %6, %9 : vector<1x22x1xi32>
    %11 = arith.andi %8, %10 : vector<1x22x1xi1>
    %12 = arith.extui %11 : vector<1x22x1xi1> to vector<1x22x1xi32>
    %13 = arith.sitofp %12 : vector<1x22x1xi32> to vector<1x22x1xf32>
    %c0_5 = arith.constant 0 : index
    %c0_6 = arith.constant 0 : index
    %14 = vector.load %arg5[%c0_5, %c0_6] : memref<1x256xf32, #tpu.memory_space<vmem>>, vector<1x256xf32>
    %15 = vector.shape_cast %14 : vector<1x256xf32> to vector<1x1x256xf32>
    %16 = vector.broadcast %15 : vector<1x1x256xf32> to vector<1x22x256xf32>
    %17 = vector.broadcast %13 : vector<1x22x1xf32> to vector<1x22x256xf32>
    %18 = arith.mulf %16, %17 : vector<1x22x256xf32>
    %19 = vector.broadcast %18 : vector<1x22x256xf32> to vector<8x22x256xf32>
    %20 = arith.addf %5, %19 : vector<8x22x256xf32>
    %c0_7 = arith.constant 0 : index
    %c0_8 = arith.constant 0 : index
    %c0_9 = arith.constant 0 : index
    %c0_10 = arith.constant 0 : index
    %c0_11 = arith.constant 0 : index
    %21 = vector.load %arg3[%c0_7, %c0_8, %c0_9, %c0_10, %c0_11] : memref<1x1x14x16x28xf32, #tpu.memory_space<vmem>>, vector<1x1x14x16x28xf32>
    %22 = vector.shape_cast %21 : vector<1x1x14x16x28xf32> to vector<14x16x28xf32>
    %23 = vector.shape_cast %22 : vector<14x16x28xf32> to vector<224x28xf32>
    %c0_12 = arith.constant 0 : index
    %c0_13 = arith.constant 0 : index
    %24 = vector.load %arg8[%c0_12, %c0_13] : memref<28x256xf32, #tpu.memory_space<vmem>>, vector<28x256xf32>
    %cst_14 = arith.constant dense<0.000000e+00> : vector<224x256xf32>
    %25 = tpu.matmul %23, %24, %cst_14 {dimension_numbers = #tpu.dot_dimension_numbers<[1], [0], [0], [1], [0, 0, 1, 1], [], []>} : vector<224x28xf32>, vector<28x256xf32>, vector<224x256xf32> -> vector<224x256xf32>
    %26 = vector.shape_cast %25 : vector<224x256xf32> to vector<14x16x256xf32>
    %27 = tpu.iota {dimensions = array<i32: 0>} : vector<14x1x1xi32>
    %c8_i32 = arith.constant 8 : i32
    %28 = arith.muli %arg1, %c8_i32 : i32
    %29 = vector.broadcast %28 : i32 to vector<14x1x1xi32>
    %30 = arith.addi %29, %27 : vector<14x1x1xi32>
    %c3_i32_15 = arith.constant 3 : i32
    %31 = vector.broadcast %c3_i32_15 : i32 to vector<14x1x1xi32>
    %32 = arith.subi %30, %31 : vector<14x1x1xi32>
    %c0_i32 = arith.constant 0 : i32
    %33 = vector.broadcast %c0_i32 : i32 to vector<14x1x1xi32>
    %34 = arith.cmpi sge, %32, %33 : vector<14x1x1xi32>
    %c16_i32 = arith.constant 16 : i32
    %35 = vector.broadcast %c16_i32 : i32 to vector<14x1x1xi32>
    %36 = arith.cmpi slt, %32, %35 : vector<14x1x1xi32>
    %37 = arith.andi %34, %36 : vector<14x1x1xi1>
    %38 = arith.extui %37 : vector<14x1x1xi1> to vector<14x1x1xi32>
    %39 = arith.sitofp %38 : vector<14x1x1xi32> to vector<14x1x1xf32>
    %c0_16 = arith.constant 0 : index
    %c0_17 = arith.constant 0 : index
    %40 = vector.load %arg9[%c0_16, %c0_17] : memref<1x256xf32, #tpu.memory_space<vmem>>, vector<1x256xf32>
    %41 = vector.shape_cast %40 : vector<1x256xf32> to vector<1x1x256xf32>
    %42 = vector.broadcast %41 : vector<1x1x256xf32> to vector<14x1x256xf32>
    %43 = vector.broadcast %39 : vector<14x1x1xf32> to vector<14x1x256xf32>
    %44 = arith.mulf %42, %43 : vector<14x1x256xf32>
    %45 = vector.broadcast %44 : vector<14x1x256xf32> to vector<14x16x256xf32>
    %46 = arith.addf %26, %45 : vector<14x16x256xf32>
    %cst_18 = arith.constant 0.000000e+00 : f32
    %47 = vector.broadcast %cst_18 : f32 to vector<128x8xf32>
    %48 = vector.extract_strided_slice %20 {offsets = [0, 0, 0], sizes = [8, 16, 256], strides = [1, 1, 1]} : vector<8x22x256xf32> to vector<8x16x256xf32>
    %49 = vector.shape_cast %48 : vector<8x16x256xf32> to vector<128x256xf32>
    %c0_19 = arith.constant 0 : index
    %c0_20 = arith.constant 0 : index
    %c0_21 = arith.constant 0 : index
    %50 = vector.load %arg6[%c0_19, %c0_20, %c0_21] : memref<7x256x8xf32, #tpu.memory_space<vmem>>, vector<1x256x8xf32>
    %51 = vector.shape_cast %50 : vector<1x256x8xf32> to vector<256x8xf32>
    %cst_22 = arith.constant dense<0.000000e+00> : vector<128x8xf32>
    %52 = tpu.matmul %49, %51, %cst_22 {dimension_numbers = #tpu.dot_dimension_numbers<[1], [0], [0], [1], [0, 0, 1, 1], [], []>} : vector<128x256xf32>, vector<256x8xf32>, vector<128x8xf32> -> vector<128x8xf32>
    %53 = arith.addf %47, %52 : vector<128x8xf32>
    %54 = vector.extract_strided_slice %20 {offsets = [0, 1, 0], sizes = [8, 16, 256], strides = [1, 1, 1]} : vector<8x22x256xf32> to vector<8x16x256xf32>
    %55 = vector.shape_cast %54 : vector<8x16x256xf32> to vector<128x256xf32>
    %c1 = arith.constant 1 : index
    %c0_23 = arith.constant 0 : index
    %c0_24 = arith.constant 0 : index
    %56 = vector.load %arg6[%c1, %c0_23, %c0_24] : memref<7x256x8xf32, #tpu.memory_space<vmem>>, vector<1x256x8xf32>
    %57 = vector.shape_cast %56 : vector<1x256x8xf32> to vector<256x8xf32>
    %cst_25 = arith.constant dense<0.000000e+00> : vector<128x8xf32>
    %58 = tpu.matmul %55, %57, %cst_25 {dimension_numbers = #tpu.dot_dimension_numbers<[1], [0], [0], [1], [0, 0, 1, 1], [], []>} : vector<128x256xf32>, vector<256x8xf32>, vector<128x8xf32> -> vector<128x8xf32>
    %59 = arith.addf %53, %58 : vector<128x8xf32>
    %60 = vector.extract_strided_slice %20 {offsets = [0, 2, 0], sizes = [8, 16, 256], strides = [1, 1, 1]} : vector<8x22x256xf32> to vector<8x16x256xf32>
    %61 = vector.shape_cast %60 : vector<8x16x256xf32> to vector<128x256xf32>
    %c2 = arith.constant 2 : index
    %c0_26 = arith.constant 0 : index
    %c0_27 = arith.constant 0 : index
    %62 = vector.load %arg6[%c2, %c0_26, %c0_27] : memref<7x256x8xf32, #tpu.memory_space<vmem>>, vector<1x256x8xf32>
    %63 = vector.shape_cast %62 : vector<1x256x8xf32> to vector<256x8xf32>
    %cst_28 = arith.constant dense<0.000000e+00> : vector<128x8xf32>
    %64 = tpu.matmul %61, %63, %cst_28 {dimension_numbers = #tpu.dot_dimension_numbers<[1], [0], [0], [1], [0, 0, 1, 1], [], []>} : vector<128x256xf32>, vector<256x8xf32>, vector<128x8xf32> -> vector<128x8xf32>
    %65 = arith.addf %59, %64 : vector<128x8xf32>
    %66 = vector.extract_strided_slice %20 {offsets = [0, 3, 0], sizes = [8, 16, 256], strides = [1, 1, 1]} : vector<8x22x256xf32> to vector<8x16x256xf32>
    %67 = vector.shape_cast %66 : vector<8x16x256xf32> to vector<128x256xf32>
    %c3 = arith.constant 3 : index
    %c0_29 = arith.constant 0 : index
    %c0_30 = arith.constant 0 : index
    %68 = vector.load %arg6[%c3, %c0_29, %c0_30] : memref<7x256x8xf32, #tpu.memory_space<vmem>>, vector<1x256x8xf32>
    %69 = vector.shape_cast %68 : vector<1x256x8xf32> to vector<256x8xf32>
    %cst_31 = arith.constant dense<0.000000e+00> : vector<128x8xf32>
    %70 = tpu.matmul %67, %69, %cst_31 {dimension_numbers = #tpu.dot_dimension_numbers<[1], [0], [0], [1], [0, 0, 1, 1], [], []>} : vector<128x256xf32>, vector<256x8xf32>, vector<128x8xf32> -> vector<128x8xf32>
    %71 = arith.addf %65, %70 : vector<128x8xf32>
    %72 = vector.extract_strided_slice %20 {offsets = [0, 4, 0], sizes = [8, 16, 256], strides = [1, 1, 1]} : vector<8x22x256xf32> to vector<8x16x256xf32>
    %73 = vector.shape_cast %72 : vector<8x16x256xf32> to vector<128x256xf32>
    %c4 = arith.constant 4 : index
    %c0_32 = arith.constant 0 : index
    %c0_33 = arith.constant 0 : index
    %74 = vector.load %arg6[%c4, %c0_32, %c0_33] : memref<7x256x8xf32, #tpu.memory_space<vmem>>, vector<1x256x8xf32>
    %75 = vector.shape_cast %74 : vector<1x256x8xf32> to vector<256x8xf32>
    %cst_34 = arith.constant dense<0.000000e+00> : vector<128x8xf32>
    %76 = tpu.matmul %73, %75, %cst_34 {dimension_numbers = #tpu.dot_dimension_numbers<[1], [0], [0], [1], [0, 0, 1, 1], [], []>} : vector<128x256xf32>, vector<256x8xf32>, vector<128x8xf32> -> vector<128x8xf32>
    %77 = arith.addf %71, %76 : vector<128x8xf32>
    %78 = vector.extract_strided_slice %20 {offsets = [0, 5, 0], sizes = [8, 16, 256], strides = [1, 1, 1]} : vector<8x22x256xf32> to vector<8x16x256xf32>
    %79 = vector.shape_cast %78 : vector<8x16x256xf32> to vector<128x256xf32>
    %c5 = arith.constant 5 : index
    %c0_35 = arith.constant 0 : index
    %c0_36 = arith.constant 0 : index
    %80 = vector.load %arg6[%c5, %c0_35, %c0_36] : memref<7x256x8xf32, #tpu.memory_space<vmem>>, vector<1x256x8xf32>
    %81 = vector.shape_cast %80 : vector<1x256x8xf32> to vector<256x8xf32>
    %cst_37 = arith.constant dense<0.000000e+00> : vector<128x8xf32>
    %82 = tpu.matmul %79, %81, %cst_37 {dimension_numbers = #tpu.dot_dimension_numbers<[1], [0], [0], [1], [0, 0, 1, 1], [], []>} : vector<128x256xf32>, vector<256x8xf32>, vector<128x8xf32> -> vector<128x8xf32>
    %83 = arith.addf %77, %82 : vector<128x8xf32>
    %84 = vector.extract_strided_slice %20 {offsets = [0, 6, 0], sizes = [8, 16, 256], strides = [1, 1, 1]} : vector<8x22x256xf32> to vector<8x16x256xf32>
    %85 = vector.shape_cast %84 : vector<8x16x256xf32> to vector<128x256xf32>
    %c6 = arith.constant 6 : index
    %c0_38 = arith.constant 0 : index
    %c0_39 = arith.constant 0 : index
    %86 = vector.load %arg6[%c6, %c0_38, %c0_39] : memref<7x256x8xf32, #tpu.memory_space<vmem>>, vector<1x256x8xf32>
    %87 = vector.shape_cast %86 : vector<1x256x8xf32> to vector<256x8xf32>
    %cst_40 = arith.constant dense<0.000000e+00> : vector<128x8xf32>
    %88 = tpu.matmul %85, %87, %cst_40 {dimension_numbers = #tpu.dot_dimension_numbers<[1], [0], [0], [1], [0, 0, 1, 1], [], []>} : vector<128x256xf32>, vector<256x8xf32>, vector<128x8xf32> -> vector<128x8xf32>
    %89 = arith.addf %83, %88 : vector<128x8xf32>
    %90 = vector.extract_strided_slice %46 {offsets = [0, 0, 0], sizes = [8, 16, 256], strides = [1, 1, 1]} : vector<14x16x256xf32> to vector<8x16x256xf32>
    %91 = vector.shape_cast %90 : vector<8x16x256xf32> to vector<128x256xf32>
    %c0_41 = arith.constant 0 : index
    %c0_42 = arith.constant 0 : index
    %c0_43 = arith.constant 0 : index
    %92 = vector.load %arg10[%c0_41, %c0_42, %c0_43] : memref<7x256x8xf32, #tpu.memory_space<vmem>>, vector<1x256x8xf32>
    %93 = vector.shape_cast %92 : vector<1x256x8xf32> to vector<256x8xf32>
    %cst_44 = arith.constant dense<0.000000e+00> : vector<128x8xf32>
    %94 = tpu.matmul %91, %93, %cst_44 {dimension_numbers = #tpu.dot_dimension_numbers<[1], [0], [0], [1], [0, 0, 1, 1], [], []>} : vector<128x256xf32>, vector<256x8xf32>, vector<128x8xf32> -> vector<128x8xf32>
    %95 = arith.addf %89, %94 : vector<128x8xf32>
    %96 = vector.extract_strided_slice %46 {offsets = [1, 0, 0], sizes = [8, 16, 256], strides = [1, 1, 1]} : vector<14x16x256xf32> to vector<8x16x256xf32>
    %97 = vector.shape_cast %96 : vector<8x16x256xf32> to vector<128x256xf32>
    %c1_45 = arith.constant 1 : index
    %c0_46 = arith.constant 0 : index
    %c0_47 = arith.constant 0 : index
    %98 = vector.load %arg10[%c1_45, %c0_46, %c0_47] : memref<7x256x8xf32, #tpu.memory_space<vmem>>, vector<1x256x8xf32>
    %99 = vector.shape_cast %98 : vector<1x256x8xf32> to vector<256x8xf32>
    %cst_48 = arith.constant dense<0.000000e+00> : vector<128x8xf32>
    %100 = tpu.matmul %97, %99, %cst_48 {dimension_numbers = #tpu.dot_dimension_numbers<[1], [0], [0], [1], [0, 0, 1, 1], [], []>} : vector<128x256xf32>, vector<256x8xf32>, vector<128x8xf32> -> vector<128x8xf32>
    %101 = arith.addf %95, %100 : vector<128x8xf32>
    %102 = vector.extract_strided_slice %46 {offsets = [2, 0, 0], sizes = [8, 16, 256], strides = [1, 1, 1]} : vector<14x16x256xf32> to vector<8x16x256xf32>
    %103 = vector.shape_cast %102 : vector<8x16x256xf32> to vector<128x256xf32>
    %c2_49 = arith.constant 2 : index
    %c0_50 = arith.constant 0 : index
    %c0_51 = arith.constant 0 : index
    %104 = vector.load %arg10[%c2_49, %c0_50, %c0_51] : memref<7x256x8xf32, #tpu.memory_space<vmem>>, vector<1x256x8xf32>
    %105 = vector.shape_cast %104 : vector<1x256x8xf32> to vector<256x8xf32>
    %cst_52 = arith.constant dense<0.000000e+00> : vector<128x8xf32>
    %106 = tpu.matmul %103, %105, %cst_52 {dimension_numbers = #tpu.dot_dimension_numbers<[1], [0], [0], [1], [0, 0, 1, 1], [], []>} : vector<128x256xf32>, vector<256x8xf32>, vector<128x8xf32> -> vector<128x8xf32>
    %107 = arith.addf %101, %106 : vector<128x8xf32>
    %108 = vector.extract_strided_slice %46 {offsets = [3, 0, 0], sizes = [8, 16, 256], strides = [1, 1, 1]} : vector<14x16x256xf32> to vector<8x16x256xf32>
    %109 = vector.shape_cast %108 : vector<8x16x256xf32> to vector<128x256xf32>
    %c3_53 = arith.constant 3 : index
    %c0_54 = arith.constant 0 : index
    %c0_55 = arith.constant 0 : index
    %110 = vector.load %arg10[%c3_53, %c0_54, %c0_55] : memref<7x256x8xf32, #tpu.memory_space<vmem>>, vector<1x256x8xf32>
    %111 = vector.shape_cast %110 : vector<1x256x8xf32> to vector<256x8xf32>
    %cst_56 = arith.constant dense<0.000000e+00> : vector<128x8xf32>
    %112 = tpu.matmul %109, %111, %cst_56 {dimension_numbers = #tpu.dot_dimension_numbers<[1], [0], [0], [1], [0, 0, 1, 1], [], []>} : vector<128x256xf32>, vector<256x8xf32>, vector<128x8xf32> -> vector<128x8xf32>
    %113 = arith.addf %107, %112 : vector<128x8xf32>
    %114 = vector.extract_strided_slice %46 {offsets = [4, 0, 0], sizes = [8, 16, 256], strides = [1, 1, 1]} : vector<14x16x256xf32> to vector<8x16x256xf32>
    %115 = vector.shape_cast %114 : vector<8x16x256xf32> to vector<128x256xf32>
    %c4_57 = arith.constant 4 : index
    %c0_58 = arith.constant 0 : index
    %c0_59 = arith.constant 0 : index
    %116 = vector.load %arg10[%c4_57, %c0_58, %c0_59] : memref<7x256x8xf32, #tpu.memory_space<vmem>>, vector<1x256x8xf32>
    %117 = vector.shape_cast %116 : vector<1x256x8xf32> to vector<256x8xf32>
    %cst_60 = arith.constant dense<0.000000e+00> : vector<128x8xf32>
    %118 = tpu.matmul %115, %117, %cst_60 {dimension_numbers = #tpu.dot_dimension_numbers<[1], [0], [0], [1], [0, 0, 1, 1], [], []>} : vector<128x256xf32>, vector<256x8xf32>, vector<128x8xf32> -> vector<128x8xf32>
    %119 = arith.addf %113, %118 : vector<128x8xf32>
    %120 = vector.extract_strided_slice %46 {offsets = [5, 0, 0], sizes = [8, 16, 256], strides = [1, 1, 1]} : vector<14x16x256xf32> to vector<8x16x256xf32>
    %121 = vector.shape_cast %120 : vector<8x16x256xf32> to vector<128x256xf32>
    %c5_61 = arith.constant 5 : index
    %c0_62 = arith.constant 0 : index
    %c0_63 = arith.constant 0 : index
    %122 = vector.load %arg10[%c5_61, %c0_62, %c0_63] : memref<7x256x8xf32, #tpu.memory_space<vmem>>, vector<1x256x8xf32>
    %123 = vector.shape_cast %122 : vector<1x256x8xf32> to vector<256x8xf32>
    %cst_64 = arith.constant dense<0.000000e+00> : vector<128x8xf32>
    %124 = tpu.matmul %121, %123, %cst_64 {dimension_numbers = #tpu.dot_dimension_numbers<[1], [0], [0], [1], [0, 0, 1, 1], [], []>} : vector<128x256xf32>, vector<256x8xf32>, vector<128x8xf32> -> vector<128x8xf32>
    %125 = arith.addf %119, %124 : vector<128x8xf32>
    %126 = vector.extract_strided_slice %46 {offsets = [6, 0, 0], sizes = [8, 16, 256], strides = [1, 1, 1]} : vector<14x16x256xf32> to vector<8x16x256xf32>
    %127 = vector.shape_cast %126 : vector<8x16x256xf32> to vector<128x256xf32>
    %c6_65 = arith.constant 6 : index
    %c0_66 = arith.constant 0 : index
    %c0_67 = arith.constant 0 : index
    %128 = vector.load %arg10[%c6_65, %c0_66, %c0_67] : memref<7x256x8xf32, #tpu.memory_space<vmem>>, vector<1x256x8xf32>
    %129 = vector.shape_cast %128 : vector<1x256x8xf32> to vector<256x8xf32>
    %cst_68 = arith.constant dense<0.000000e+00> : vector<128x8xf32>
    %130 = tpu.matmul %127, %129, %cst_68 {dimension_numbers = #tpu.dot_dimension_numbers<[1], [0], [0], [1], [0, 0, 1, 1], [], []>} : vector<128x256xf32>, vector<256x8xf32>, vector<128x8xf32> -> vector<128x8xf32>
    %131 = arith.addf %125, %130 : vector<128x8xf32>
    %c0_69 = arith.constant 0 : index
    %c0_70 = arith.constant 0 : index
    %132 = vector.load %arg7[%c0_69, %c0_70] : memref<1x8xf32, #tpu.memory_space<vmem>>, vector<1x8xf32>
    %c0_71 = arith.constant 0 : index
    %c0_72 = arith.constant 0 : index
    %133 = vector.load %arg11[%c0_71, %c0_72] : memref<1x8xf32, #tpu.memory_space<vmem>>, vector<1x8xf32>
    %134 = arith.addf %132, %133 : vector<1x8xf32>
    %135 = vector.broadcast %134 : vector<1x8xf32> to vector<128x8xf32>
    %136 = arith.addf %131, %135 : vector<128x8xf32>
    %137 = vector.shape_cast %136 : vector<128x8xf32> to vector<1x8x16x8xf32>
    %c0_73 = arith.constant 0 : index
    %c0_74 = arith.constant 0 : index
    %c0_75 = arith.constant 0 : index
    %c0_76 = arith.constant 0 : index
    %138 = vector.load %arg12[%c0_73, %c0_74, %c0_75, %c0_76] : memref<1x8x16x8xf32, #tpu.memory_space<vmem>>, vector<1x8x16x8xf32>
    tpu.vector_store %arg12[%c0_73, %c0_74, %c0_75, %c0_76], %137 {strides = array<i32>} : memref<1x8x16x8xf32, #tpu.memory_space<vmem>>, vector<1x8x16x8xf32>,
    return
  }
  func.func @transform_0(%arg0: i32, %arg1: i32) -> (i32, i32, i32, i32) {
    %c0_i32 = arith.constant 0 : i32
    %c0_i32_0 = arith.constant 0 : i32
    %c0_i32_1 = arith.constant 0 : i32
    return %arg0, %arg1, %c0_i32, %c0_i32_0 : i32, i32, i32, i32
  }
  func.func @transform_1(%arg0: i32, %arg1: i32) -> (i32, i32, i32, i32, i32) {
    %c0_i32 = arith.constant 0 : i32
    %c0_i32_0 = arith.constant 0 : i32
    %c0_i32_1 = arith.constant 0 : i32
    %c0_i32_2 = arith.constant 0 : i32
    return %arg0, %arg1, %c0_i32, %c0_i32_0, %c0_i32_1 : i32, i32, i32, i32, i32
  }
  func.func @transform_2(%arg0: i32, %arg1: i32) -> (i32, i32) {
    %c0_i32 = arith.constant 0 : i32
    %c0_i32_0 = arith.constant 0 : i32
    %c0_i32_1 = arith.constant 0 : i32
    return %c0_i32, %c0_i32_0 : i32, i32
  }
  func.func @transform_3(%arg0: i32, %arg1: i32) -> (i32, i32) {
    %c0_i32 = arith.constant 0 : i32
    %c0_i32_0 = arith.constant 0 : i32
    %c0_i32_1 = arith.constant 0 : i32
    return %c0_i32, %c0_i32_0 : i32, i32
  }
  func.func @transform_4(%arg0: i32, %arg1: i32) -> (i32, i32, i32) {
    %c0_i32 = arith.constant 0 : i32
    %c0_i32_0 = arith.constant 0 : i32
    %c0_i32_1 = arith.constant 0 : i32
    %c0_i32_2 = arith.constant 0 : i32
    return %c0_i32, %c0_i32_0, %c0_i32_1 : i32, i32, i32
  }
  func.func @transform_5(%arg0: i32, %arg1: i32) -> (i32, i32) {
    %c0_i32 = arith.constant 0 : i32
    %c0_i32_0 = arith.constant 0 : i32
    %c0_i32_1 = arith.constant 0 : i32
    return %c0_i32, %c0_i32_0 : i32, i32
  }
  func.func @transform_6(%arg0: i32, %arg1: i32) -> (i32, i32) {
    %c0_i32 = arith.constant 0 : i32
    %c0_i32_0 = arith.constant 0 : i32
    %c0_i32_1 = arith.constant 0 : i32
    return %c0_i32, %c0_i32_0 : i32, i32
  }
  func.func @transform_7(%arg0: i32, %arg1: i32) -> (i32, i32) {
    %c0_i32 = arith.constant 0 : i32
    %c0_i32_0 = arith.constant 0 : i32
    %c0_i32_1 = arith.constant 0 : i32
    return %c0_i32, %c0_i32_0 : i32, i32
  }
  func.func @transform_8(%arg0: i32, %arg1: i32) -> (i32, i32, i32) {
    %c0_i32 = arith.constant 0 : i32
    %c0_i32_0 = arith.constant 0 : i32
    %c0_i32_1 = arith.constant 0 : i32
    %c0_i32_2 = arith.constant 0 : i32
    return %c0_i32, %c0_i32_0, %c0_i32_1 : i32, i32, i32
  }
  func.func @transform_9(%arg0: i32, %arg1: i32) -> (i32, i32) {
    %c0_i32 = arith.constant 0 : i32
    %c0_i32_0 = arith.constant 0 : i32
    %c0_i32_1 = arith.constant 0 : i32
    return %c0_i32, %c0_i32_0 : i32, i32
  }
  func.func @transform_10(%arg0: i32, %arg1: i32) -> (i32, i32, i32, i32) {
    %c0_i32 = arith.constant 0 : i32
    %c0_i32_0 = arith.constant 0 : i32
    %c0_i32_1 = arith.constant 0 : i32
    return %arg0, %arg1, %c0_i32, %c0_i32_0 : i32, i32, i32, i32
  }
}

</mosaic_0001>

<bundles_post_ra>
// kernel: _lambda_.1
= control target key start
LH: loop header
LB: loop body
LE: loop exit
PB: predicated region body
PF: predicated region fallthrough
CT: control target
= control target key end

     0   :  { %s10036_s13 = smov 0   ;;  %s10038_s14 = smov 0   ;;  %s15361_s0 = inlined_call_operand.vmem [shape: f32[2,16,22,28], index: 0, kind: input, shape index: {}]   ;;  %s15362_s1 = inlined_call_operand.vmem [shape: f32[2,2,14,16,28], index: 1, kind: input, shape index: {}]   ;;  %s15363_s2 = inlined_call_operand.vmem [shape: f32[28,256], index: 2, kind: input, shape index: {}]   ;;  %s15364_s3 = inlined_call_operand.vmem [shape: f32[1,256], index: 3, kind: input, shape index: {}]   ;;  %s15365_s4 = inlined_call_operand.vmem [shape: f32[7,256,8], index: 4, kind: input, shape index: {}]   ;;  %s15366_s5 = inlined_call_operand.vmem [shape: f32[1,8], index: 5, kind: input, shape index: {}]   ;;  %s15367_s6 = inlined_call_operand.vmem [shape: f32[28,256], index: 6, kind: input, shape index: {}]   ;;  %s15368_s7 = inlined_call_operand.vmem [shape: f32[1,256], index: 7, kind: input, shape index: {}]   ;;  %s15369_s8 = inlined_call_operand.vmem [shape: f32[7,256,8], index: 8, kind: input, shape index: {}]   ;;  %s15370_s9 = inlined_call_operand.vmem [shape: f32[1,8], index: 9, kind: input, shape index: {}]   ;;  %s15371_s10 = inlined_call_operand.vmem [shape: f32[2,16,16,8], index: 10, kind: output, shape index: {}]  }
   0x1   :  { %s10040_s15 = smov 0   ;;  %s10042_s16 = smov 0  }
   0x2   :  { %s10044_s17 = smov 0  }
   0x3 LB: > { %s29_s18 = sadd.s32 1, %s9968_s15  ;;  %s32_s19 = sadd.s32 1, %s9972_s16  ;;  %s9976_s17 = sphi %s10044_s17, %s20_s17   ;;  %s9972_s16 = sphi %s10042_s16, %s16458_s16   ;;  %s9968_s15 = sphi %s10040_s15, %s16457_s15   ;;  %s9964_s14 = sphi %s10038_s14, %s16456_s14   ;;  %s9960_s13 = sphi %s10036_s13, %s16455_s13  }
   0x4   : > { %p30_p0 = scmp.ge.s32.totalorder %s29_s18, 2  ;;  %p7776_p1 = scmp.ge.s32.totalorder %s9976_s17, 1 }
   0x5   : > { %p350_p2 = scmp.lt.s32.totalorder %s9976_s17, 5 }
   0x6   : > { %s16460_s18 = smov (%p30_p0, %s29_s18), 0  ;;  %s16462_s19 = smov (!%p30_p0, %s32_s19), %s9972_s16 }
   0x7   : > { %p351_p3 = pnand %p7776_p1, %p350_p2  ;;  %p34_p4 = scmp.ge.s32.totalorder %s16462_s19, 2 }
   0x9   : > { %s16464_s19 = smov (%p34_p4, %s16462_s19), 0  ;;  %354 = sbr.rel (%p351_p3) target bundleno = 1073 (0x431), region = 60 }
  0x10   : > { %v887_v0 = vld [vmem:[%s15363_s2 + $0x8] sm:$0xff]  ;;  %v889_v1 = vld [vmem:[%s15363_s2 + $0x18] sm:$0xff]  ;;  %v886_v2 = vld [vmem:[%s15363_s2] sm:$0xff]  ;;  %vm1313_vm0 = vcmask 1043456   ;;  %v490_v3 = vlaneseq  ;;  %v15372_v8 = vmov 0.0   ;;  %s10090_s12 = sshll.u32 %s9960_s13, 3 }
  0x11   : > { %v9382_v4 = vpack.c.bf16 %v889_v1, %v887_v0  ;;  %v888_v5 = vld [vmem:[%s15363_s2 + $0x10] sm:$0xff]  ;;  %v891_v6 = vld [vmem:[%s15363_s2 + $0x28] sm:$0xff]  ;;  %v893_v7 = vld [vmem:[%s15363_s2 + $0x38] sm:$0xf]  ;;  %1384 = vmatprep.mubr.f32.mxu0 %v15372_v8  ;;  %p408_p5 = scmp.lt.s32.totalorder %s9964_s14, 1  ;;  %2430 = vmatprep.mubr.f32.mxu1 %v15372_v8  ;;  %vm9979_vm1 = vmmov 1  }
  0x12   : > { %v9384_v9 = vpack.c.bf16 %v888_v5, %v886_v2  ;;  %v9386_v10 = vpack.c.bf16 %v893_v7, %v891_v6  ;;  %vm10094_vm2 = vmpackc.low %vm1313_vm0, %vm9979_vm1  ;;  %v890_v12 = vld [vmem:[%s15363_s2 + $0x20] sm:$0xff]  ;;  %v892_v13 = vld [vmem:[%s15363_s2 + $0x30] sm:$0xf]  ;;  %p410_p6 = scmp.lt.s32.totalorder %s10090_s12, 15  ;;  %p420_p7 = scmp.lt.s32.totalorder %s9960_s13, 1  ;;  %v10118_v19 = vshrl.u32 %v490_v3, 7 }
  0x13   : > { %9383 = vmatprep.subr.bf16.mxu0 %v9382_v4  ;;  %s16466_s14 = smov (!%p408_p5, %s9964_s14), 1  ;;  %v2269_v14 = vld [vmem:[%s15367_s6 + $0x8] sm:$0xff]  ;;  %v2271_v15 = vld [vmem:[%s15367_s6 + $0x18] sm:$0xff]  ;;  %v9389_v16 = vpack.c.bf16 %v892_v13, %v890_v12  ;;  %v9980_v17 = vmov 1983009808   ;;  %v2268_v21 = vld [vmem:[%s15367_s6] sm:$0xff] }
  0x14   : > { %9385 = vmatpush1.bf16.msra.mxu0 %v9384_v9  ;;  %s10116_s28 = scalar_select %p410_p6, %s10090_s12, 15  ;;  %v488_v18 = vunpack.c.l.s4 %v9980_v17  ;;  %v9392_v20 = vpack.c.bf16 %v2271_v15, %v2269_v14  ;;  %v2270_v22 = vld [vmem:[%s15367_s6 + $0x10] sm:$0xff]  ;;  %v2273_v23 = vld [vmem:[%s15367_s6 + $0x28] sm:$0xff]  ;;  %v2275_v25 = vld [vmem:[%s15367_s6 + $0x38] sm:$0xf]  ;;  %vm1268_vm3 = vcmask 228352  }
  0x15   : > { %9388 = vmatprep.subr.msk.bf16.mxu0 %vm10094_vm2, %v9386_v10  ;;  %s9867_s23 = smul.u32 48, %s16466_s14  ;;  %v9394_v24 = vpack.c.bf16 %v2270_v22, %v2268_v21  ;;  %v2272_v26 = vld [vmem:[%s15367_s6 + $0x20] sm:$0xff]  ;;  %v2274_v27 = vld [vmem:[%s15367_s6 + $0x30] sm:$0xf]  ;;  %v9396_v29 = vpack.c.bf16 %v2275_v25, %v2273_v23  ;;  %v7893_v31 = vld [vmem:[%s15365_s4 + $0x188] sm:$0xff]  ;;  %s16468_s13 = smov (!%p420_p7, %s9960_s13), 1 }
  0x16   : > { %s9866_s11 = smul.u32 3, %s10116_s28  ;;  %v489_v28 = vunpack.c.0.s8 %v488_v18  ;;  %9393 = vmatprep.subr.bf16.mxu1 %v9392_v20  ;;  %v7892_v30 = vld [vmem:[%s15365_s4 + $0x180] sm:$0xff]  ;;  %v9399_v33 = vpack.c.bf16 %v2274_v27, %v2272_v26  ;;  %v2938_v35 = vld [vmem:[%s15365_s4 + $0x88] sm:$0xff]  ;;  %v2939_v0 = vld [vmem:[%s15365_s4 + $0x90] sm:$0xff]  ;;  %vm2049_vm5 = vcmp.ge.s32.totalorder %v10118_v19, 3  ;;  %vm3025_vm6 = vcmask 1040384  }
  0x17   : > { %v2937_v32 = vld [vmem:[%s15365_s4 + $0x80] sm:$0xff]  ;;  %9395 = vmatpush1.bf16.msra.mxu1 %v9394_v24  ;;  %v9402_v34 = vpack.c.bf16 %v7893_v31, %v7892_v30  ;;  %s9869_s20 = smul.u32 56, %s16466_s14  ;;  %v2922_v55 = vld [vmem:[%s15365_s4 + $0x8] sm:$0xff]  ;;  %v2940_v1 = vld [vmem:[%s15365_s4 + $0x98] sm:$0xff]  ;;  %vm3026_vm7 = vcmask 1042434   ;;  %vm3028_vm8 = vcmask 1044484  }
  0x18   : > { %9391 = vmatpush1.bf16.msk.msra.mxu0 %vm10094_vm2, %v9389_v16  ;;  %s414_s30 = sadd.s32 %s9867_s23, %s9866_s11  ;;  %v10161_v36 = vsub.s32 %v489_v28, %v10118_v19  ;;  %9398 = vmatprep.subr.msk.bf16.mxu1 %vm10094_vm2, %v9396_v29  ;;  %v9434_v37 = vpack.c.bf16 %v2938_v35, %v2937_v32  ;;  %s9868_s22 = smul.u32 28, %s16468_s13  ;;  %v2921_v54 = vld [vmem:[%s15365_s4] sm:$0xff]  ;;  %v9438_v13 = vpack.c.bf16 %v2940_v1, %v2939_v0  ;;  %vm3030_vm9 = vcmask 1046534   ;;  %vm3027_vm10 = vmor %vm3025_vm6, %vm3026_vm7 }
  0x19   : > { %s7778_s21 = sshll.u32 %s414_s30, 3  ;;  %9403 = vmatprep.subr.bf16.mxu0 %v9402_v34  ;;  %v9436_v3 = vpack.c.bf16 %v2922_v55, %v2921_v54  ;;  %vm10908_vm11 = vmor %vm3027_vm10, %vm3028_vm8  ;;  %s7781_s27 = sshll.u32 %s10116_s28, 1 }
  0x1a   : > { %s10168_s26 = scalar_lea.vmem %s15361_s0, %s7778_s21  ;;  %s424_s23 = sadd.s32 %s9869_s20, %s9868_s22  ;;  %vm10931_vm12 = vmor %vm10908_vm11, %vm3030_vm9 }
  0x1b   : > { %v438_v38 = vld [vmem:[%s10168_s26] sm:$0xff]  ;;  %v439_v39 = vld [vmem:[%s10168_s26 + $0x8] sm:$0xff]  ;;  %v440_v40 = vld [vmem:[%s10168_s26 + $0x10] sm:$0x3f]  ;;  %9401 = vmatpush1.bf16.msk.msra.mxu1 %vm10094_vm2, %v9399_v33  ;;  %s7779_s13 = sshll.u32 %s424_s23, 3 }
  0x1c   : > { %v486_v41 = vcombine.high %v438_v38, %v438_v38  ;;  %v493_v42 = vrot.slane %v438_v38, %v10161_v36  ;;  %v503_v43 = vcombine.high %v439_v39, %v439_v39  ;;  %v510_v44 = vrot.slane %v439_v39, %v10161_v36  ;;  %v441_v45 = vld [vmem:[%s10168_s26 + $0x18] sm:$0xff]  ;;  %9435 = vmatprep.subr.bf16.mxu1 %v9434_v37  ;;  %s10193_s22 = scalar_lea.vmem %s15362_s1, %s7779_s13  ;;  %v442_v63 = vld [vmem:[%s10168_s26 + $0x20] sm:$0xff]  ;;  %v444_v18 = vld [vmem:[%s10168_s26 + $0x30] sm:$0xff] }
  0x1d   : > { %v520_v46 = vcombine.high %v440_v40, %v440_v40  ;;  %v527_v47 = vrot.slane %v440_v40, %v10161_v36  ;;  %v543_v48 = vrot.slane %v441_v45, %v10161_v36  ;;  %v536_v49 = vcombine.high %v441_v45, %v441_v45  ;;  %v2240_v12 = vld [vmem:[%s10193_s22] sm:$0xff]  ;;  %v443_v21 = vld [vmem:[%s10168_s26 + $0x28] sm:$0x3f]  ;;  %v445_v35 = vld [vmem:[%s10168_s26 + $0x38] sm:$0xff] }
  0x1e   : > { %v500_v50 = vrot.slane %v486_v41, %v10161_v36  ;;  %v501_v51 = vcombine.high %v493_v42, %v493_v42  ;;  %v517_v52 = vrot.slane %v503_v43, %v10161_v36  ;;  %v518_v53 = vcombine.high %v510_v44, %v510_v44  ;;  %7812 = vmatmul.mubr.msk.f32.vlgmr.msra.gmra.mrb[0].mxu1 %vm1268_vm3, %v2240_v12  ;;  %v2241_v30 = vld [vmem:[%s10193_s22 + $0x8] sm:$0xff]  ;;  %v2242_v45 = vld [vmem:[%s10193_s22 + $0x10] sm:$0xff] }
  0x1f   : > { %v534_v56 = vrot.slane %v520_v46, %v10161_v36  ;;  %v535_v57 = vcombine.high %v527_v47, %v527_v47  ;;  %v550_v58 = vrot.slane %v536_v49, %v10161_v36  ;;  %v551_v9 = vcombine.high %v543_v48, %v543_v48  ;;  %2436 = vmatprep.mubr.f32.mxu1 %v15372_v8 }
  0x20   : > { %v502_v59 = vcombine.high %v500_v50, %v500_v50  ;;  %v894_v60 = vcombine.low %v493_v42, %v501_v51  ;;  %v519_v61 = vcombine.high %v517_v52, %v517_v52  ;;  %v911_v62 = vcombine.low %v510_v44, %v518_v53  ;;  %9437 = vmatpush3.bf16.msra.mxu1 %v9436_v3  ;;  %v446_v44 = vld [vmem:[%s10168_s26 + $0x40] sm:$0x3f] }
  0x21   : > { %v928_v2 = vcombine.low %v527_v47, %v535_v57  ;;  %v929_v7 = vcombine.low %v534_v56, %v543_v48  ;;  %v552_v10 = vcombine.high %v550_v58, %v550_v58  ;;  %v560_v11 = vrot.slane %v442_v63, %v10161_v36  ;;  %9439 = vmatprep.subr.bf16.mxu1 %v9438_v13  ;;  %v2243_v56 = vld [vmem:[%s10193_s22 + $0x18] sm:$0xff] }
  0x22   : > { %v895_v4 = vcombine.low %v500_v50, %v502_v59  ;;  %v902_v5 = vrot.slane %v894_v60, %v10161_v36  ;;  %v912_v6 = vcombine.low %v517_v52, %v519_v61  ;;  %v919_v15 = vrot.slane %v911_v62, %v10161_v36  ;;  %7813 = vmatmul.mubr.msk.f32.gmra.mrb[2].mxu1 %vm1268_vm3, %v2241_v30  ;;  %v447_v60 = vld [vmem:[%s10168_s26 + $0x48] sm:$0xff] }
  0x23   : > { %v553_v17 = vcombine.high %v442_v63, %v442_v63  ;;  %v936_v20 = vrot.slane %v928_v2, %v10161_v36  ;;  %v943_v23 = vrot.slane %v929_v7, %v10161_v36  ;;  %v570_v25 = vcombine.high %v443_v21, %v443_v21  ;;  %2442 = vmatprep.mubr.f32.mxu1 %v15372_v8 }
  0x24   : > { %v909_v14 = vrot.slane %v895_v4, %v10161_v36  ;;  %v926_v16 = vrot.slane %v912_v6, %v10161_v36  ;;  %v945_v26 = vcombine.low %v551_v9, %v550_v58  ;;  %v946_v27 = vcombine.low %v552_v10, %v560_v11  ;;  %v2244_v4 = vld [vmem:[%s10193_s22 + $0x20] sm:$0xff]  ;;  %v448_v9 = vld [vmem:[%s10168_s26 + $0x50] sm:$0xff] }
  0x25   : > { %v567_v24 = vrot.slane %v553_v17, %v10161_v36  ;;  %v593_v28 = vrot.slane %v444_v18, %v10161_v36  ;;  %v586_v29 = vcombine.high %v444_v18, %v444_v18  ;;  %v568_v32 = vcombine.high %v560_v11, %v560_v11  ;;  %v2245_v17 = vld [vmem:[%s10193_s22 + $0x28] sm:$0xff] }
  0x26   : > { %v910_v22 = vcombine.low %v902_v5, %v909_v14  ;;  %v927_v31 = vcombine.low %v919_v15, %v926_v16  ;;  %v577_v34 = vrot.slane %v443_v21, %v10161_v36  ;;  %v584_v37 = vrot.slane %v570_v25, %v10161_v36  ;;  %7814 = vmatmul.mubr.msk.f32.gmra.mrb[4].mxu1 %vm1268_vm3, %v2242_v45  ;;  %v449_v16 = vld [vmem:[%s10168_s26 + $0x58] sm:$0x3f]  ;;  %v452_v45 = vld [vmem:[%s10168_s26 + $0x70] sm:$0x3f] }
  0x27   : > { %v569_v33 = vcombine.high %v567_v24, %v567_v24  ;;  %v603_v39 = vcombine.high %v445_v35, %v445_v35  ;;  %v944_v40 = vcombine.low %v936_v20, %v943_v23  ;;  %v601_v41 = vcombine.high %v593_v28, %v593_v28  ;;  %2448 = vmatprep.mubr.f32.mxu1 %v15372_v8  ;;  %v450_v23 = vld [vmem:[%s10168_s26 + $0x60] sm:$0xff] }
  0x28   : > { %7786 = vmatmul.mubr.msk.f32.vlgmr.msra.gmra.mrb[0].mxu0 %vm1268_vm3, %v910_v22  ;;  %v585_v38 = vcombine.high %v577_v34, %v577_v34  ;;  %v600_v42 = vrot.slane %v586_v29, %v10161_v36  ;;  %v610_v43 = vrot.slane %v445_v35, %v10161_v36  ;;  %v953_v46 = vrot.slane %v945_v26, %v10161_v36 }
  0x29   : > { %1390 = vmatprep.mubr.f32.mxu0 %v15372_v8  ;;  %v960_v47 = vrot.slane %v946_v27, %v10161_v36  ;;  %v962_v48 = vcombine.low %v568_v32, %v567_v24  ;;  %v963_v49 = vcombine.low %v569_v33, %v577_v34  ;;  %v617_v51 = vrot.slane %v603_v39, %v10161_v36  ;;  %v451_v27 = vld [vmem:[%s10168_s26 + $0x68] sm:$0xff]  ;;  %v2246_v32 = vld [vmem:[%s10193_s22 + $0x30] sm:$0xff] }
  0x2a   : > { %v979_v50 = vcombine.low %v585_v38, %v584_v37  ;;  %v627_v52 = vrot.slane %v446_v44, %v10161_v36  ;;  %v980_v53 = vcombine.low %v593_v28, %v601_v41  ;;  %v602_v54 = vcombine.high %v600_v42, %v600_v42  ;;  %7815 = vmatmul.mubr.msk.f32.gmra.mrb[6].mxu1 %vm1268_vm3, %v2243_v56 }
  0x2b   : > { %v618_v55 = vcombine.high %v610_v43, %v610_v43  ;;  %v961_v57 = vcombine.low %v953_v46, %v960_v47  ;;  %v970_v58 = vrot.slane %v962_v48, %v10161_v36  ;;  %v977_v59 = vrot.slane %v963_v49, %v10161_v36  ;;  %2454 = vmatprep.mubr.f32.mxu1 %v15372_v8  ;;  %v2247_v46 = vld [vmem:[%s10193_s22 + $0x38] sm:$0xff] }
  0x2c   : > { %7787 = vmatmul.mubr.msk.f32.gmra.mrb[2].mxu0 %vm1268_vm3, %v927_v31  ;;  %v987_v61 = vrot.slane %v979_v50, %v10161_v36  ;;  %v619_v62 = vcombine.high %v617_v51, %v617_v51  ;;  %v635_v63 = vcombine.high %v627_v52, %v627_v52  ;;  %v994_v0 = vrot.slane %v980_v53, %v10161_v36 }
  0x2d   : > { %1396 = vmatprep.mubr.f32.mxu0 %v15372_v8  ;;  %v996_v1 = vcombine.low %v600_v42, %v602_v54  ;;  %v997_v2 = vcombine.low %v610_v43, %v618_v55  ;;  %v620_v3 = vcombine.high %v446_v44, %v446_v44  ;;  %v978_v5 = vcombine.low %v970_v58, %v977_v59  ;;  %v453_v58 = vld [vmem:[%s10168_s26 + $0x78] sm:$0xff]  ;;  %v2248_v59 = vld [vmem:[%s10193_s22 + $0x40] sm:$0xff] }
  0x2e   : > { %v636_v6 = vcombine.high %v447_v60, %v447_v60  ;;  %v643_v7 = vrot.slane %v447_v60, %v10161_v36  ;;  %v1013_v10 = vcombine.low %v617_v51, %v619_v62  ;;  %v1014_v11 = vcombine.low %v627_v52, %v635_v63  ;;  %7816 = vmatmul.mubr.msk.f32.gmra.mrb[8].mxu1 %vm1268_vm3, %v2244_v4 }
  0x2f   : > { %v995_v12 = vcombine.low %v987_v61, %v994_v0  ;;  %v1004_v13 = vrot.slane %v996_v1, %v10161_v36  ;;  %v1011_v14 = vrot.slane %v997_v2, %v10161_v36  ;;  %v634_v15 = vrot.slane %v620_v3, %v10161_v36  ;;  %2460 = vmatprep.mubr.f32.mxu1 %v15372_v8 }
  0x30   : > { %7788 = vmatmul.mubr.msk.f32.gmra.mrb[4].mxu0 %vm1268_vm3, %v944_v40  ;;  %v650_v18 = vrot.slane %v636_v6, %v10161_v36  ;;  %v651_v20 = vcombine.high %v643_v7, %v643_v7  ;;  %v653_v21 = vcombine.high %v448_v9, %v448_v9  ;;  %v660_v22 = vrot.slane %v448_v9, %v10161_v36 }
  0x31   : > { %1402 = vmatprep.mubr.f32.mxu0 %v15372_v8  ;;  %v1021_v24 = vrot.slane %v1013_v10, %v10161_v36  ;;  %v1028_v25 = vrot.slane %v1014_v11, %v10161_v36  ;;  %v670_v26 = vcombine.high %v449_v16, %v449_v16  ;;  %v1012_v28 = vcombine.low %v1004_v13, %v1011_v14 }
  0x32   : > { %7817 = vmatmul.mubr.msk.f32.gmra.mrb[10].mxu1 %vm1268_vm3, %v2245_v17  ;;  %v1030_v29 = vcombine.low %v634_v15, %v643_v7  ;;  %v652_v30 = vcombine.high %v650_v18, %v650_v18  ;;  %v677_v31 = vrot.slane %v449_v16, %v10161_v36  ;;  %v1031_v33 = vcombine.low %v651_v20, %v650_v18  ;;  %v2249_v7 = vld [vmem:[%s10193_s22 + $0x48] sm:$0xff]  ;;  %v454_v15 = vld [vmem:[%s10168_s26 + $0x80] sm:$0xff] }
  0x33   : > { %2466 = vmatprep.mubr.f32.mxu1 %v15372_v8  ;;  %v667_v34 = vrot.slane %v653_v21, %v10161_v36  ;;  %v668_v35 = vcombine.high %v660_v22, %v660_v22  ;;  %v686_v37 = vcombine.high %v450_v23, %v450_v23  ;;  %v703_v38 = vcombine.high %v451_v27, %v451_v27  ;;  %v7876_v18 = vld [vmem:[%s15365_s4 + $0x100] sm:$0xff]  ;;  %v7877_v20 = vld [vmem:[%s15365_s4 + $0x108] sm:$0xff] }
  0x34   : > { %7789 = vmatmul.mubr.msk.f32.gmra.mrb[6].mxu0 %vm1268_vm3, %v961_v57  ;;  %v1029_v39 = vcombine.low %v1021_v24, %v1028_v25  ;;  %v684_v40 = vrot.slane %v670_v26, %v10161_v36  ;;  %v1038_v41 = vrot.slane %v1030_v29, %v10161_v36  ;;  %v1047_v42 = vcombine.low %v652_v30, %v660_v22  ;;  %v7894_v24 = vld [vmem:[%s15365_s4 + $0x190] sm:$0xff]  ;;  %v7895_v29 = vld [vmem:[%s15365_s4 + $0x198] sm:$0xff] }
  0x35   : > { %1408 = vmatprep.mubr.f32.mxu0 %v15372_v8  ;;  %v669_v43 = vcombine.high %v667_v34, %v667_v34  ;;  %v685_v44 = vcombine.high %v677_v31, %v677_v31  ;;  %v1045_v47 = vrot.slane %v1031_v33, %v10161_v36  ;;  %v1048_v48 = vcombine.low %v668_v35, %v667_v34  ;;  %v7878_v30 = vld [vmem:[%s15365_s4 + $0x110] sm:$0xff] }
  0x36   : > { %7818 = vmatmul.mubr.msk.f32.gmra.mrb[12].mxu1 %vm1268_vm3, %v2246_v32  ;;  %v693_v49 = vrot.slane %v450_v23, %v10161_v36  ;;  %v700_v50 = vrot.slane %v686_v37, %v10161_v36  ;;  %v710_v51 = vrot.slane %v451_v27, %v10161_v36  ;;  %v717_v52 = vrot.slane %v703_v38, %v10161_v36  ;;  %v2250_v23 = vld [vmem:[%s10193_s22 + $0x50] sm:$0xff] }
  0x37   : > { %2472 = vmatprep.mubr.f32.mxu1 %v15372_v8  ;;  %v720_v53 = vcombine.high %v452_v45, %v452_v45  ;;  %v727_v54 = vrot.slane %v452_v45, %v10161_v36  ;;  %v1055_v55 = vrot.slane %v1047_v42, %v10161_v36  ;;  %v1064_v56 = vcombine.low %v669_v43, %v677_v31  ;;  %v7879_v31 = vld [vmem:[%s15365_s4 + $0x118] sm:$0xff]  ;;  %v2923_v35 = vld [vmem:[%s15365_s4 + $0x10] sm:$0xff] }
  0x38   : > { %7790 = vmatmul.mubr.msk.f32.gmra.mrb[8].mxu0 %vm1268_vm3, %v978_v5  ;;  %v1065_v57 = vcombine.low %v685_v44, %v684_v40  ;;  %v1046_v60 = vcombine.low %v1038_v41, %v1045_v47  ;;  %v1062_v61 = vrot.slane %v1048_v48, %v10161_v36  ;;  %v701_v62 = vcombine.high %v693_v49, %v693_v49  ;;  %v455_v40 = vld [vmem:[%s10168_s26 + $0x88] sm:$0x3f]  ;;  %v456_v41 = vld [vmem:[%s10168_s26 + $0x90] sm:$0xff]  ;;  %v2924_v42 = vld [vmem:[%s15365_s4 + $0x18] sm:$0xff] }
  0x39   : > { %1414 = vmatprep.mubr.f32.mxu0 %v15372_v8  ;;  %v702_v63 = vcombine.high %v700_v50, %v700_v50  ;;  %v718_v0 = vcombine.high %v710_v51, %v710_v51  ;;  %v719_v1 = vcombine.high %v717_v52, %v717_v52  ;;  %v734_v2 = vrot.slane %v720_v53, %v10161_v36  ;;  %v2251_v45 = vld [vmem:[%s10193_s22 + $0x58] sm:$0xff]  ;;  %v7896_v48 = vld [vmem:[%s15365_s4 + $0x1a0] sm:$0xff] }
  0x3a   : > { %7819 = vmatmul.mubr.msk.f32.gmra.mrb[14].mxu1 %vm1268_vm3, %v2247_v46  ;;  %v735_v3 = vcombine.high %v727_v54, %v727_v54  ;;  %v743_v4 = vrot.slane %v453_v58, %v10161_v36  ;;  %v1079_v5 = vrot.slane %v1065_v57, %v10161_v36  ;;  %v736_v6 = vcombine.high %v453_v58, %v453_v58  ;;  %v10366_v58 = vld [vmem:[%s10168_s26 + $0x98] sm:$0xff] }
  0x3b   : > { %2478 = vmatprep.mubr.f32.mxu1 %v15372_v8  ;;  %v1063_v9 = vcombine.low %v1055_v55, %v1062_v61  ;;  %v1072_v10 = vrot.slane %v1064_v56, %v10161_v36  ;;  %v1081_v11 = vcombine.low %v693_v49, %v701_v62  ;;  %v1098_v13 = vcombine.low %v710_v51, %v718_v0  ;;  %v7897_v49 = vld [vmem:[%s15365_s4 + $0x1a8] sm:$0xff] }
  0x3c   : > { %7791 = vmatmul.mubr.msk.f32.gmra.mrb[10].mxu0 %vm1268_vm3, %v995_v12  ;;  %v1082_v12 = vcombine.low %v700_v50, %v702_v63  ;;  %v1099_v14 = vcombine.low %v717_v52, %v719_v1  ;;  %v1115_v16 = vcombine.low %v727_v54, %v735_v3  ;;  %v1116_v17 = vcombine.low %v734_v2, %v743_v4  ;;  %v2941_v54 = vld [vmem:[%s15365_s4 + $0xa0] sm:$0xff]  ;;  %v2942_v55 = vld [vmem:[%s15365_s4 + $0xa8] sm:$0xff] }
  0x3d   : > { %1420 = vmatprep.mubr.f32.mxu0 %v15372_v8  ;;  %v750_v21 = vrot.slane %v736_v6, %v10161_v36  ;;  %v751_v22 = vcombine.high %v743_v4, %v743_v4  ;;  %v1080_v25 = vcombine.low %v1072_v10, %v1079_v5  ;;  %v1089_v26 = vrot.slane %v1081_v11, %v10161_v36  ;;  %v7881_v1 = vld [vmem:[%s15365_s4 + $0x128] sm:$0xff]  ;;  %v2925_v2 = vld [vmem:[%s15365_s4 + $0x20] sm:$0xff]  ;;  %v7899_v10 = vld [vmem:[%s15365_s4 + $0x1b8] sm:$0xff] }
  0x3e   : > { %7820 = vmatmul.mubr.msk.f32.gmra.mrb[16].mxu1 %vm1268_vm3, %v2248_v59  ;;  %v1096_v27 = vrot.slane %v1082_v12, %v10161_v36  ;;  %v1106_v32 = vrot.slane %v1098_v13, %v10161_v36  ;;  %v1113_v33 = vrot.slane %v1099_v14, %v10161_v36  ;;  %v9404_v34 = vpack.c.bf16 %v7877_v20, %v7876_v18  ;;  %v2926_v3 = vld [vmem:[%s15365_s4 + $0x28] sm:$0xff]  ;;  %v2252_v6 = vld [vmem:[%s10193_s22 + $0x60] sm:$0xff]  ;;  %v2943_v14 = vld [vmem:[%s15365_s4 + $0xb0] sm:$0xff] }
  0x3f   : > { %2484 = vmatprep.mubr.f32.mxu1 %v15372_v8  ;;  %v1123_v37 = vrot.slane %v1115_v16, %v10161_v36  ;;  %v1130_v38 = vrot.slane %v1116_v17, %v10161_v36  ;;  %v752_v43 = vcombine.high %v750_v21, %v750_v21  ;;  %v10345_v44 = vcombine.low %v751_v22, %v750_v21  ;;  %v2927_v20 = vld [vmem:[%s15365_s4 + $0x30] sm:$0xff]  ;;  %v2928_v21 = vld [vmem:[%s15365_s4 + $0x38] sm:$0xff] }
  0x40   : > { %7792 = vmatmul.mubr.msk.f32.gmra.mrb[12].mxu0 %vm1268_vm3, %v1012_v28  ;;  %v753_v28 = vcombine.high %v454_v15, %v454_v15  ;;  %v9406_v46 = vpack.c.bf16 %v7895_v29, %v7894_v24  ;;  %v9408_v47 = vpack.c.bf16 %v7879_v31, %v7878_v30  ;;  %v1097_v50 = vcombine.low %v1089_v26, %v1096_v27  ;;  %v7883_v26 = vld [vmem:[%s15365_s4 + $0x138] sm:$0xff]  ;;  %v2253_v29 = vld [vmem:[%s10193_s22 + $0x68] sm:$0xff]  ;;  %v7900_v31 = vld [vmem:[%s15365_s4 + $0x1c0] sm:$0xff] }
  0x41   : > { %1426 = vmatprep.mubr.f32.mxu0 %v15372_v8  ;;  %v770_v53 = vcombine.high %v455_v40, %v455_v40  ;;  %v1114_v56 = vcombine.low %v1106_v32, %v1113_v33  ;;  %v777_v57 = vrot.slane %v455_v40, %v10161_v36  ;;  %9405 = vmatpush3.bf16.msra.mxu0 %v9404_v34  ;;  %v7901_v32 = vld [vmem:[%s15365_s4 + $0x1c8] sm:$0xff] }
  0x42   : > { %7821 = vmatmul.mubr.msk.f32.gmra.mrb[18].mxu1 %vm1268_vm3, %v2249_v7  ;;  %v767_v51 = vrot.slane %v753_v28, %v10161_v36  ;;  %v9440_v59 = vpack.c.bf16 %v2924_v42, %v2923_v35  ;;  %v10371_v61 = vcombine.low %v1123_v37, %v1130_v38  ;;  %v793_v62 = vrot.slane %v456_v41, %v10161_v36  ;;  %v458_v35 = vld [vmem:[%s10168_s26 + $0xa0] sm:$0x3f] }
  0x43   : > { %2490 = vmatprep.mubr.f32.mxu1 %v15372_v8  ;;  %v786_v63 = vcombine.high %v456_v41, %v456_v41  ;;  %v9410_v0 = vpack.c.bf16 %v7897_v49, %v7896_v48  ;;  %v1140_v5 = vrot.slane %v10345_v44, %v10161_v36  ;;  %9407 = vmatprep.subr.bf16.mxu0 %v9406_v46  ;;  %v2254_v46 = vld [vmem:[%s10193_s22 + $0x70] sm:$0xff] }
  0x44   : > { %7793 = vmatmul.mubr.msk.f32.gmra.mrb[14].mxu0 %vm1268_vm3, %v1029_v39  ;;  %v760_v39 = vrot.slane %v454_v15, %v10161_v36  ;;  %v9442_v7 = vpack.c.bf16 %v2942_v55, %v2941_v54  ;;  %v769_v11 = vcombine.high %v767_v51, %v767_v51  ;;  %v784_v13 = vrot.slane %v770_v53, %v10161_v36  ;;  %v2944_v15 = vld [vmem:[%s15365_s4 + $0xb8] sm:$0xff] }
  0x45   : > { %1432 = vmatprep.mubr.f32.mxu0 %v15372_v8  ;;  %9441 = vmatpush3.bf16.msra.mxu1 %v9440_v59  ;;  %v785_v16 = vcombine.high %v777_v57, %v777_v57  ;;  %v9444_v18 = vpack.c.bf16 %v2926_v3, %v2925_v2  ;;  %v800_v22 = vrot.slane %v786_v63, %v10161_v36 }
  0x46   : > { %7822 = vmatmul.mubr.msk.f32.gmra.mrb[20].mxu1 %vm1268_vm3, %v2250_v23  ;;  %v768_v52 = vcombine.high %v760_v39, %v760_v39  ;;  %v1133_v4 = vcombine.low %v752_v43, %v760_v39  ;;  %9409 = vmatpush3.bf16.msra.mxu0 %v9408_v47  ;;  %v810_v23 = vrot.slane %v10366_v58, %v10161_v36 }
  0x47   : > { %2496 = vmatprep.mubr.f32.mxu1 %v15372_v8  ;;  %9411 = vmatprep.subr.bf16.mxu0 %v9410_v0  ;;  %v801_v27 = vcombine.high %v793_v62, %v793_v62  ;;  %v803_v28 = vcombine.high %v10366_v58, %v10366_v58  ;;  %v9446_v30 = vpack.c.bf16 %v2944_v15, %v2943_v14  ;;  %v2255_v58 = vld [vmem:[%s10193_s22 + $0x78] sm:$0xff] }
  0x48   : > { %7794 = vmatmul.mubr.msk.f32.gmra.mrb[16].mxu0 %vm1268_vm3, %v1046_v60  ;;  %v7880_v60 = vld [vmem:[%s15365_s4 + $0x120] sm:$0xff]  ;;  %v10395_v12 = vcombine.low %v768_v52, %v767_v51  ;;  %9443 = vmatprep.subr.bf16.mxu1 %v9442_v7  ;;  %v1147_v33 = vrot.slane %v1133_v4, %v10161_v36  ;;  %v1150_v34 = vcombine.low %v769_v11, %v777_v57 }
  0x49   : > { %1438 = vmatprep.mubr.f32.mxu0 %v15372_v8  ;;  %v9412_v17 = vpack.c.bf16 %v7881_v1, %v7880_v60  ;;  %9445 = vmatpush3.bf16.msra.mxu1 %v9444_v18  ;;  %v9448_v37 = vpack.c.bf16 %v2928_v21, %v2927_v20  ;;  %v1166_v38 = vcombine.low %v785_v16, %v784_v13  ;;  %v2257_v18 = vld [vmem:[%s10193_s22 + $0x88] sm:$0xff] }
  0x4a   : > { %7823 = vmatmul.mubr.msk.f32.gmra.mrb[22].mxu1 %vm1268_vm3, %v2251_v45  ;;  %v802_v40 = vcombine.high %v800_v22, %v800_v22  ;;  %v818_v41 = vcombine.high %v810_v23, %v810_v23  ;;  %v9418_v42 = vpack.c.bf16 %v7901_v32, %v7900_v31  ;;  %v1167_v43 = vcombine.low %v793_v62, %v801_v27  ;;  %v460_v62 = vld [vmem:[%s10168_s26 + $0xb0] sm:$0xff] }
  0x4b   : > { %2502 = vmatprep.mubr.f32.mxu1 %v15372_v8  ;;  %9413 = vmatpush3.bf16.msra.mxu0 %v9412_v17  ;;  %v817_v44 = vrot.slane %v803_v28, %v10161_v36  ;;  %v827_v45 = vrot.slane %v458_v35, %v10161_v36  ;;  %v1148_v47 = vcombine.low %v1140_v5, %v1147_v33  ;;  %v461_v5 = vld [vmem:[%s10168_s26 + $0xb8] sm:$0x3f]  ;;  %v2258_v28 = vld [vmem:[%s10193_s22 + $0x90] sm:$0xff] }
  0x4c   : > { %7795 = vmatmul.mubr.msk.f32.gmra.mrb[18].mxu0 %vm1268_vm3, %v1063_v9  ;;  %v7898_v9 = vld [vmem:[%s15365_s4 + $0x1b0] sm:$0xff]  ;;  %9447 = vmatprep.subr.bf16.mxu1 %v9446_v30  ;;  %v1157_v48 = vrot.slane %v10395_v12, %v10161_v36  ;;  %v1164_v49 = vrot.slane %v1150_v34, %v10161_v36  ;;  %v1174_v51 = vrot.slane %v1166_v38, %v10161_v36  ;;  %v2259_v34 = vld [vmem:[%s10193_s22 + $0x98] sm:$0xff] }
  0x4d   : > { %1444 = vmatprep.mubr.f32.mxu0 %v15372_v8  ;;  %v9414_v24 = vpack.c.bf16 %v7899_v10, %v7898_v9  ;;  %9449 = vmatpush3.bf16.msra.mxu1 %v9448_v37  ;;  %v1183_v52 = vcombine.low %v800_v22, %v802_v40  ;;  %v1184_v53 = vcombine.low %v810_v23, %v818_v41  ;;  %v2260_v40 = vld [vmem:[%s10193_s22 + $0xa0] sm:$0xff] }
  0x4e   : > { %7824 = vmatmul.mubr.msk.f32.gmra.mrb[24].mxu1 %vm1268_vm3, %v2252_v6  ;;  %v1181_v54 = vrot.slane %v1167_v43, %v10161_v36  ;;  %v819_v55 = vcombine.high %v817_v44, %v817_v44  ;;  %v820_v57 = vcombine.high %v458_v35, %v458_v35  ;;  %v1165_v59 = vcombine.low %v1157_v48, %v1164_v49  ;;  %v2256_v6 = vld [vmem:[%s10193_s22 + $0x80] sm:$0xff] }
  0x4f   : > { %2508 = vmatprep.mubr.f32.mxu1 %v15372_v8  ;;  %9415 = vmatprep.subr.bf16.mxu0 %v9414_v24  ;;  %v1191_v63 = vrot.slane %v1183_v52, %v10161_v36  ;;  %v1198_v0 = vrot.slane %v1184_v53, %v10161_v36  ;;  %v853_v10 = vcombine.high %v460_v62, %v460_v62  ;;  %v2929_v49 = vld [vmem:[%s15365_s4 + $0x40] sm:$0xff]  ;;  %v7885_v53 = vld [vmem:[%s15365_s4 + $0x148] sm:$0xff] }
  0x50   : > { %7796 = vmatmul.mubr.msk.f32.gmra.mrb[20].mxu0 %vm1268_vm3, %v1080_v25  ;;  %v7882_v25 = vld [vmem:[%s15365_s4 + $0x130] sm:$0xff]  ;;  %v1182_v1 = vcombine.low %v1174_v51, %v1181_v54  ;;  %v1200_v2 = vcombine.low %v817_v44, %v819_v55  ;;  %v834_v4 = vrot.slane %v820_v57, %v10161_v36  ;;  %v860_v11 = vrot.slane %v460_v62, %v10161_v36  ;;  %v2261_v44 = vld [vmem:[%s10193_s22 + $0xa8] sm:$0xff]  ;;  %v7884_v52 = vld [vmem:[%s15365_s4 + $0x140] sm:$0xff] }
  0x51   : > { %1450 = vmatprep.mubr.f32.mxu0 %v15372_v8  ;;  %v9416_v39 = vpack.c.bf16 %v7883_v26, %v7882_v25  ;;  %v1199_v12 = vcombine.low %v1191_v63, %v1198_v0  ;;  %v870_v13 = vcombine.high %v461_v5, %v461_v5  ;;  %v867_v21 = vrot.slane %v853_v10, %v10161_v36  ;;  %v2262_v51 = vld [vmem:[%s10193_s22 + $0xb0] sm:$0xff]  ;;  %v2932_v0 = vld [vmem:[%s15365_s4 + $0x58] sm:$0xff] }
  0x52   : > { %7825 = vmatmul.mubr.msk.f32.gmra.mrb[26].mxu1 %vm1268_vm3, %v2253_v29  ;;  %v1208_v14 = vrot.slane %v1200_v2, %v10161_v36  ;;  %v868_v22 = vcombine.high %v860_v11, %v860_v11  ;;  %v877_v23 = vrot.slane %v461_v5, %v10161_v36  ;;  %v9420_v55 = vpack.c.bf16 %v7885_v53, %v7884_v52  ;;  %v2931_v63 = vld [vmem:[%s15365_s4 + $0x50] sm:$0xff]  ;;  %v2264_v5 = vld [vmem:[%s10193_s22 + $0xc0] sm:$0xff]  ;;  %v7957_v53 = vld [vmem:[%s15365_s4 + $0x388] sm:$0xff] }
  0x53   : > { %2514 = vmatprep.mubr.f32.mxu1 %v15372_v8  ;;  %9417 = vmatpush3.bf16.msra.mxu0 %v9416_v39  ;;  %v884_v27 = vrot.slane %v870_v13, %v10161_v36  ;;  %v869_v31 = vcombine.high %v867_v21, %v867_v21  ;;  %v10528_v57 = vsub.s32 0, %v10118_v19  ;;  %v2048_v2 = vadd.s32 16, %v10118_v19  ;;  %v2933_v13 = vld [vmem:[%s15365_s4 + $0x60] sm:$0xff] }
  0x54   : > { %7797 = vmatmul.mubr.msk.f32.gmra.mrb[22].mxu0 %vm1268_vm3, %v1097_v50  ;;  %v459_v50 = vld [vmem:[%s10168_s26 + $0xa8] sm:$0xff]  ;;  %9419 = vmatprep.subr.bf16.mxu0 %v9418_v42  ;;  %v1235_v30 = vcombine.low %v868_v22, %v867_v21  ;;  %v885_v32 = vcombine.high %v877_v23, %v877_v23  ;;  %v7887_v21 = vld [vmem:[%s15365_s4 + $0x158] sm:$0xff]  ;;  %v7956_v52 = vld [vmem:[%s15365_s4 + $0x380] sm:$0xff]  ;;  %s7782_s26 = sshll.u32 %s16466_s14, 5 }
  0x55   : > { %1456 = vmatprep.mubr.f32.mxu0 %v15372_v8  ;;  %v836_v60 = vcombine.high %v459_v50, %v459_v50  ;;  %v1251_v38 = vcombine.low %v869_v31, %v877_v23  ;;  %15698 = vst [vmem:[#allocation2_spill] sm:$0xff] %v10528_v57  ;;  %vm2054_vm4 = vcmp.lt.s32.totalorder %v2048_v2, 19  ;;  %v2265_v23 = vld [vmem:[%s10193_s22 + $0xc8] sm:$0xff]  ;;  %s434_s29 = sadd.s32 %s7782_s26, %s7781_s27 }
  0x56   : > { %7826 = vmatmul.mubr.msk.f32.gmra.mrb[28].mxu1 %vm1268_vm3, %v2254_v46  ;;  %v1249_v37 = vrot.slane %v1235_v30, %v10161_v36  ;;  %v1252_v39 = vcombine.low %v885_v32, %v884_v27  ;;  %v2945_v46 = vld [vmem:[%s15365_s4 + $0xc0] sm:$0xff]  ;;  %v2935_v30 = vld [vmem:[%s15365_s4 + $0x70] sm:$0xff]  ;;  %v2936_v32 = vld [vmem:[%s15365_s4 + $0x78] sm:$0xff]  ;;  %s7783_s30 = sshll.u32 %s434_s29, 3 }
  0x57   : > { %2520 = vmatprep.mubr.f32.mxu1 %v15372_v8  ;;  %v850_v7 = vrot.slane %v836_v60, %v10161_v36  ;;  %v1259_v42 = vrot.slane %v1251_v38, %v10161_v36  ;;  %9421 = vmatpush3.bf16.msra.mxu0 %v9420_v55  ;;  %v2948_v60 = vld [vmem:[%s15365_s4 + $0xd8] sm:$0xff] }
  0x58   : > { %7798 = vmatmul.mubr.msk.f32.gmra.mrb[24].mxu0 %vm1268_vm3, %v1114_v56  ;;  %v835_v56 = vcombine.high %v827_v45, %v827_v45  ;;  %v1266_v43 = vrot.slane %v1252_v39, %v10161_v36  ;;  %v2267_v39 = vld [vmem:[%s10193_s22 + $0xd8] sm:$0xff] }
  0x59   : > { %1462 = vmatprep.mubr.f32.mxu0 %v15372_v8  ;;  %v852_v17 = vcombine.high %v850_v7, %v850_v7 }
  0x5a   : > { %7827 = vmatmul.mubr.msk.f32.gmra.mrb[30].mxu1 %vm1268_vm3, %v2255_v58  ;;  %v1201_v3 = vcombine.low %v827_v45, %v835_v56  ;;  %v1267_v45 = vcombine.low %v1259_v42, %v1266_v43  ;;  %v2263_v56 = vld [vmem:[%s10193_s22 + $0xb8] sm:$0xff]  ;;  %v10531_v58 = vsub.s32 1, %v10118_v19  ;;  %v7890_v43 = vld [vmem:[%s15365_s4 + $0x170] sm:$0xff] }
  0x5b   : > { %2526 = vmatprep.mubr.f32.mxu1 %v15372_v8  ;;  %v1234_v26 = vcombine.low %v852_v17, %v860_v11  ;;  %v7902_v11 = vld [vmem:[%s15365_s4 + $0x1d0] sm:$0xff] }
  0x5c   : > { %7799 = vmatmul.mubr.msk.f32.gmra.mrb[26].mxu0 %vm1268_vm3, %v10371_v61  ;;  %v843_v61 = vrot.slane %v459_v50, %v10161_v36  ;;  %v1215_v15 = vrot.slane %v1201_v3, %v10161_v36  ;;  %v2930_v50 = vld [vmem:[%s15365_s4 + $0x48] sm:$0xff]  ;;  %15699 = vst [vmem:[#allocation3_spill] sm:$0xff] %v10531_v58  ;;  %v7886_v17 = vld [vmem:[%s15365_s4 + $0x150] sm:$0xff] }
  0x5d   : > { %1468 = vmatprep.mubr.f32.mxu0 %v15372_v8  ;;  %v1242_v33 = vrot.slane %v1234_v26, %v10161_v36  ;;  %v9452_v54 = vpack.c.bf16 %v2930_v50, %v2929_v49  ;;  %v2952_v26 = vld [vmem:[%s15365_s4 + $0xf8] sm:$0xff]  ;;  %v7808_v49 = vsel %vm2049_vm5, 1.0, %v15372_v8 }
  0x5e   : > { %v851_v9 = vcombine.high %v843_v61, %v843_v61  ;;  %7828 = vmatmul.mubr.msk.f32.gmra.mrb[32].mxu1 %vm1268_vm3, %v2256_v6  ;;  %v1217_v16 = vcombine.low %v834_v4, %v843_v61  ;;  %v1216_v24 = vcombine.low %v1208_v14, %v1215_v15  ;;  %v2064_v61 = vld [vmem:[%s15364_s3] sm:$0x3] }
  0x5f   : > { %2532 = vmatprep.mubr.f32.mxu1 %v15372_v8  ;;  %v1250_v41 = vcombine.low %v1242_v33, %v1249_v37  ;;  %v10552_v3 = vrot.slane %v2064_v61, %v10528_v57  ;;  %v10555_v4 = vrot.slane %v2064_v61, %v10531_v58  ;;  %v2949_v6 = vld [vmem:[%s15365_s4 + $0xe0] sm:$0xff]  ;;  %v7889_v37 = vld [vmem:[%s15365_s4 + $0x168] sm:$0xff] }
  0x60   : > { %7800 = vmatmul.mubr.msk.f32.gmra.mrb[28].mxu0 %vm1268_vm3, %v1148_v47  ;;  %v1218_v20 = vcombine.low %v851_v9, %v850_v7  ;;  %v1225_v25 = vrot.slane %v1217_v16, %v10161_v36  ;;  %v2946_v47 = vld [vmem:[%s15365_s4 + $0xc8] sm:$0xff]  ;;  %v7809_v9 = vsel %vm2054_vm4, 1.0, %v15372_v8  ;;  %v7888_v33 = vld [vmem:[%s15365_s4 + $0x160] sm:$0xff] }
  0x61   : > { %1474 = vmatprep.mubr.f32.mxu0 %v15372_v8  ;;  %v9450_v48 = vpack.c.bf16 %v2946_v47, %v2945_v46  ;;  %v2950_v7 = vld [vmem:[%s15365_s4 + $0xe8] sm:$0xff]  ;;  %v10576_v14 = vmul.f32 %v7809_v9, %v10552_v3  ;;  %v10579_v15 = vmul.f32 %v7809_v9, %v10555_v4  ;;  %v9428_v38 = vpack.c.bf16 %v7889_v37, %v7888_v33  ;;  %v7924_v46 = vld [vmem:[%s15365_s4 + $0x280] sm:$0xff] }
  0x62   : > { %7829 = vmatmul.mubr.msk.f32.gmra.mrb[34].mxu1 %vm1268_vm3, %v2257_v18  ;;  %v1232_v29 = vrot.slane %v1218_v20, %v10161_v36  ;;  %v9458_v10 = vpack.c.bf16 %v2950_v7, %v2949_v6  ;;  %v2934_v16 = vld [vmem:[%s15365_s4 + $0x68] sm:$0xff]  ;;  %v2076_v50 = vmul.f32 %v7808_v49, %v10552_v3  ;;  %v2106_v19 = vcombine.low %v10552_v3, %v10555_v4 }
  0x63   : > { %2538 = vmatprep.mubr.f32.mxu1 %v15372_v8  ;;  %9451 = vmatprep.subr.bf16.mxu1 %v9450_v48  ;;  %v9460_v20 = vpack.c.bf16 %v2934_v16, %v2933_v13  ;;  %v2125_v22 = vcombine.high %v10576_v14, %v10579_v15  ;;  %v7925_v47 = vld [vmem:[%s15365_s4 + $0x288] sm:$0xff] }
  0x64   : > { %7801 = vmatmul.mubr.msk.f32.gmra.mrb[30].mxu0 %vm1268_vm3, %v1165_v59  ;;  %v1233_v35 = vcombine.low %v1225_v25, %v1232_v29  ;;  %9453 = vmatpush3.bf16.msra.mxu1 %v9452_v54  ;;  %v2947_v59 = vld [vmem:[%s15365_s4 + $0xd0] sm:$0xff]  ;;  %v7905_v29 = vld [vmem:[%s15365_s4 + $0x1e8] sm:$0xff]  ;;  %v9466_v48 = vpack.c.bf16 %v7925_v47, %v7924_v46  ;;  %v9498_v54 = vpack.c.bf16 %v7957_v53, %v7956_v52  ;;  %v10765_v46 = vld [vmem:[%s15365_s4 + $0x2a0] sm:$0xff] }
  0x65   : > { %1480 = vmatprep.mubr.f32.mxu0 %v15372_v8  ;;  %v9454_v62 = vpack.c.bf16 %v2948_v60, %v2947_v59  ;;  %v2951_v25 = vld [vmem:[%s15365_s4 + $0xf0] sm:$0xff]  ;;  %v10667_v7 = vrot.slane %v2106_v19, %v10161_v36  ;;  %v10770_v47 = vld [vmem:[%s15365_s4 + $0x2a8] sm:$0xff] }
  0x66   : > { %7830 = vmatmul.mubr.msk.f32.gmra.mrb[36].mxu1 %vm1268_vm3, %v2258_v28  ;;  %v9462_v27 = vpack.c.bf16 %v2952_v26, %v2951_v25  ;;  %v7904_v28 = vld [vmem:[%s15365_s4 + $0x1e0] sm:$0xff]  ;;  %v10790_v52 = vld [vmem:[%s15365_s4 + $0x228] sm:$0xff]  ;;  %v10795_v53 = vld [vmem:[%s15365_s4 + $0x2b0] sm:$0xff] }
  0x67   : > { %2544 = vmatprep.mubr.f32.mxu1 %v15372_v8  ;;  %9455 = vmatprep.subr.bf16.mxu1 %v9454_v62  ;;  %v9426_v31 = vpack.c.bf16 %v7905_v29, %v7904_v28  ;;  %v2107_v62 = vcombine.high %v10552_v3, %v10555_v4 }
  0x68   : > { %7802 = vmatmul.mubr.msk.f32.gmra.mrb[32].mxu0 %vm1268_vm3, %v1182_v1  ;;  %v9456_v1 = vpack.c.bf16 %v2932_v0, %v2931_v63 }
  0x69   : > { %1486 = vmatprep.mubr.f32.mxu0 %v15372_v8  ;;  %v10674_v3 = vrot.slane %v2107_v62, %v10161_v36  ;;  %v10815_v62 = vld [vmem:[%s15365_s4 + $0x230] sm:$0xff] }
  0x6a   : > { %7831 = vmatmul.mubr.msk.f32.gmra.mrb[38].mxu1 %vm1268_vm3, %v2259_v34  ;;  %v2266_v34 = vld [vmem:[%s10193_s22 + $0xd0] sm:$0xff]  ;;  %15707 = vst [vmem:[#allocation11_spill] sm:$0xff] %v10815_v62 }
  0x6b   : > { %2550 = vmatprep.mubr.f32.mxu1 %v15372_v8  ;;  %9457 = vmatpush3.bf16.msra.mxu1 %v9456_v1  ;;  %v10695_v25 = vcombine.high %v10674_v3, %v10674_v3 }
  0x6c   : > { %7803 = vmatmul.mubr.msk.f32.gmra.mrb[34].mxu0 %vm1268_vm3, %v1199_v12  ;;  %v7903_v12 = vld [vmem:[%s15365_s4 + $0x1d8] sm:$0xff]  ;;  %9459 = vmatprep.subr.bf16.mxu1 %v9458_v10 }
  0x6d   : > { %1492 = vmatprep.mubr.f32.mxu0 %v15372_v8  ;;  %v9422_v18 = vpack.c.bf16 %v7903_v12, %v7902_v11 }
  0x6e   : > { %7832 = vmatmul.mubr.msk.f32.gmra.mrb[40].mxu1 %vm1268_vm3, %v2260_v40  ;;  %v7906_v40 = vld [vmem:[%s15365_s4 + $0x1f0] sm:$0xff] }
  0x6f   : > { %2556 = vmatprep.mubr.f32.mxu1 %v15372_v8  ;;  %9423 = vmatprep.subr.bf16.mxu0 %v9422_v18  ;;  %v10684_v18 = vcombine.high %v10667_v7, %v10667_v7 }
  0x70   : > { %7804 = vmatmul.mubr.msk.f32.gmra.mrb[36].mxu0 %vm1268_vm3, %v1216_v24  ;;  %v9424_v24 = vpack.c.bf16 %v7887_v21, %v7886_v17  ;;  %9461 = vmatpush3.bf16.msra.mxu1 %v9460_v20  ;;  %v2124_v17 = vcombine.low %v10576_v14, %v10579_v15  ;;  %v10725_v14 = vld [vmem:[%s15365_s4 + $0x200] sm:$0xff]  ;;  %v10730_v15 = vld [vmem:[%s15365_s4 + $0x208] sm:$0xff] }
  0x71   : > { %1498 = vmatprep.mubr.f32.mxu0 %v15372_v8  ;;  %9463 = vmatprep.subr.bf16.mxu1 %v9462_v27 }
  0x72   : > { %7833 = vmatmul.mubr.msk.f32.gmra.mrb[42].mxu1 %vm1268_vm3, %v2261_v44  ;;  %9425 = vmatpush3.bf16.msra.mxu0 %v9424_v24  ;;  %v7891_v44 = vld [vmem:[%s15365_s4 + $0x178] sm:$0xff] }
  0x73   : > { %2562 = vmatprep.mubr.f32.mxu1 %v15372_v8  ;;  %9427 = vmatprep.subr.bf16.mxu0 %v9426_v31 }
  0x74   : > { %7805 = vmatmul.mubr.msk.f32.gmra.mrb[38].mxu0 %vm1268_vm3, %v1233_v35  ;;  %v9464_v35 = vpack.c.bf16 %v2936_v32, %v2935_v30  ;;  %v10706_v30 = vrot.slane %v2125_v22, %v10161_v36  ;;  %v10735_v22 = vld [vmem:[%s15365_s4 + $0x290] sm:$0xff] }
  0x75   : > { %1504 = vmatprep.mubr.f32.mxu0 %v15372_v8 }
  0x76   : > { %7834 = vmatmul.mubr.msk.f32.gmra.mrb[44].mxu1 %vm1268_vm3, %v2262_v51  ;;  %9429 = vmatpush3.bf16.msra.mxu0 %v9428_v38  ;;  %v2077_v51 = vmul.f32 %v7808_v49, %v10555_v4 }
  0x77   : > { %2568 = vmatprep.mubr.f32.mxu1 %v15372_v8  ;;  %9465 = vmatpush3.bf16.msra.mxu1 %v9464_v35 }
  0x78   : > { %7806 = vmatmul.mubr.msk.f32.gmra.mrb[40].mxu0 %vm1268_vm3, %v1250_v41  ;;  %v7907_v41 = vld [vmem:[%s15365_s4 + $0x1f8] sm:$0xff]  ;;  %v2088_v55 = vcombine.low %v2076_v50, %v2077_v51  ;;  %9499 = vmatprep.subr.bf16.mxu1 %v9498_v54 }
  0x79   : > { %1510 = vmatprep.mubr.f32.mxu0 %v15372_v8  ;;  %v9430_v42 = vpack.c.bf16 %v7907_v41, %v7906_v40  ;;  %v10744_v41 = vld [vmem:[%s15365_s4 + $0x298] sm:$0xff] }
  0x7a   : > { %7835 = vmatmul.mubr.msk.f32.gmra.mrb[46].mxu1 %vm1268_vm3, %v2263_v56  ;;  %v2089_v56 = vcombine.high %v2076_v50, %v2077_v51  ;;  %v10657_v61 = vrot.slane %v2088_v55, %v10161_v36  ;;  %v10785_v51 = vld [vmem:[%s15365_s4 + $0x220] sm:$0xff] }
  0x7b   : > { %2574 = vmatprep.mubr.f32.mxu1 %v15372_v8  ;;  %9431 = vmatprep.subr.bf16.mxu0 %v9430_v42  ;;  %v10749_v42 = vld [vmem:[%s15365_s4 + $0x210] sm:$0xff] }
  0x7c   : > { %7807 = vmatmul.mubr.msk.f32.gmra.mrb[42].mxu0 %vm1268_vm3, %v1267_v45  ;;  %v9432_v45 = vpack.c.bf16 %v7891_v44, %v7890_v43  ;;  %v10662_v1 = vrot.slane %v2089_v56, %v10161_v36  ;;  %v10671_v9 = vcombine.high %v10657_v61, %v10657_v61  ;;  %v10754_v43 = vld [vmem:[%s15365_s4 + $0x218] sm:$0xff] }
  0x7e   : > { %7836 = vmatmul.mubr.msk.f32.gmra.mrb[48].mxu1 %vm1268_vm3, %v2264_v5  ;;  %9433 = vmatpush3.bf16.msra.mxu0 %v9432_v45  ;;  %v10678_v12 = vcombine.high %v10662_v1, %v10662_v1 }
  0x7f   : > { %2580 = vmatprep.mubr.f32.mxu1 %v15372_v8  ;;  %9467 = vmatprep.subr.bf16.mxu0 %v9466_v48 }
  0x82   : > { %7837 = vmatmul.mubr.msk.f32.gmra.mrb[50].mxu1 %vm1268_vm3, %v2265_v23 }
  0x83   : > { %2586 = vmatprep.mubr.f32.mxu1 %v15372_v8 }
  0x86   : > { %7838 = vmatmul.mubr.msk.f32.gmra.mrb[52].mxu1 %vm1268_vm3, %v2266_v34  ;;  %v10712_v34 = vrot.slane %v2124_v17, %v10161_v36 }
  0x87   : > { %2592 = vmatprep.mubr.f32.mxu1 %v15372_v8 }
  0x88   : > { %v10780_v50 = vcombine.high %v10712_v34, %v10712_v34 }
  0x8a   : > { %7839 = vmatmul.mubr.msk.f32.gmra.mrb[54].mxu1 %vm1268_vm3, %v2267_v39  ;;  %15706 = vst [vmem:[#allocation10_spill] sm:$0xff] %v10780_v50 }
  0xfb   : > { %v1386_v59 = vpop.f32.mrb[0].mxu0 }
  0xfc   : > { %v1388_v60 = vpop.f32.mrb[1].mxu0 }
  0xfd   : > { %v1561_v63 = vcombine.low %v1386_v59, %v1388_v60  ;;  %v1562_v0 = vcombine.high %v1386_v59, %v1388_v60  ;;  %v10810_v60 = vld [vmem:[%s15365_s4 + $0x2b8] sm:$0xff] }
  0xff   : > { %v1569_v2 = vrot.slane %v1561_v63, %v10161_v36  ;;  %v1576_v5 = vrot.slane %v1562_v0, %v10161_v36  ;;  %v1392_v6 = vpop.f32.mrb[2].mxu0  ;;  %v10820_v63 = vld [vmem:[%s15365_s4 + $0x238] sm:$0xff] }
 0x100   : > { %v1394_v10 = vpop.f32.mrb[3].mxu0 }
 0x101   : > { %v1577_v4 = vcombine.high %v1569_v2, %v1569_v2  ;;  %v1578_v11 = vcombine.high %v1576_v5, %v1576_v5  ;;  %v1579_v13 = vcombine.low %v1392_v6, %v1394_v10  ;;  %v1580_v16 = vcombine.high %v1392_v6, %v1394_v10 }
 0x102   : > { %v10709_v31 = vadd.f32 %v10657_v61, %v1569_v2  ;;  %v10715_v35 = vadd.f32 %v10662_v1, %v1576_v5 }
 0x103   : > { %v10686_v20 = vpop.f32.mrb[4].mxu0  ;;  %v10689_v21 = vadd.f32 %v10671_v9, %v1577_v4  ;;  %v1587_v23 = vrot.slane %v1579_v13, %v10161_v36  ;;  %v1594_v24 = vrot.slane %v1580_v16, %v10161_v36  ;;  %v10698_v27 = vadd.f32 %v10678_v12, %v1578_v11  ;;  %v7940_v4 = vld [vmem:[%s15365_s4 + $0x300] sm:$0xff]  ;;  %v7941_v11 = vld [vmem:[%s15365_s4 + $0x308] sm:$0xff]  ;;  %v7958_v13 = vld [vmem:[%s15365_s4 + $0x390] sm:$0xff] }
 0x104   : > { %v1400_v26 = vpop.f32.mrb[5].mxu0  ;;  %15702 = vst [vmem:[#allocation6_spill] sm:$0xff] %v10715_v35  ;;  %v7868_v19 = vrot.slane %v10709_v31, 9 }
 0x105   : > { %15700 = vst [vmem:[#allocation4_spill] sm:$0xff] %v10689_v21  ;;  %15701 = vst [vmem:[#allocation5_spill] sm:$0xff] %v10698_v27  ;;  %v1597_v28 = vcombine.low %v10686_v20, %v1400_v26  ;;  %v1598_v29 = vcombine.high %v10686_v20, %v1400_v26  ;;  %v1595_v32 = vcombine.high %v1587_v23, %v1587_v23  ;;  %v7942_v26 = vld [vmem:[%s15365_s4 + $0x310] sm:$0xff] }
 0x106   : > { %v1596_v33 = vcombine.high %v1594_v24, %v1594_v24  ;;  %v3730_v40 = vcombine.low %v10709_v31, %v10689_v21  ;;  %v3731_v45 = vcombine.low %v10715_v35, %v10698_v27  ;;  %v10823_v0 = vadd.f32 %v10667_v7, %v1587_v23 }
 0x107   : > { %v10718_v37 = vrot.slane %v1598_v29, %v10161_v36  ;;  %v10720_v38 = vpop.f32.mrb[6].mxu0  ;;  %v10773_v48 = vadd.f32 %v10684_v18, %v1595_v32  ;;  %v10826_v2 = vadd.f32 %v10674_v3, %v1594_v24  ;;  %v7959_v24 = vld [vmem:[%s15365_s4 + $0x398] sm:$0xff]  ;;  %v10861_v32 = vrot.slane %v1597_v28, %v10161_v36 }
 0x108   : > { %v10737_v39 = vpop.f32.mrb[7].mxu0  ;;  %v10776_v49 = vadd.f32 %v10695_v25, %v1596_v33  ;;  %15708 = vst [vmem:[#allocation12_spill] sm:$0xff] %v10823_v0  ;;  %v3738_v6 = vrot.slane %v3730_v40, %v10161_v36  ;;  %v10843_v16 = vrot.slane %v3731_v45, %v10161_v36  ;;  %v7943_v29 = vld [vmem:[%s15365_s4 + $0x318] sm:$0xff]  ;;  %v9500_v28 = vpack.c.bf16 %v7941_v11, %v7940_v4 }
 0x109   : > { %v10758_v44 = vadd.f32 %v10706_v30, %v10718_v37  ;;  %15704 = vst [vmem:[#allocation8_spill] sm:$0xff] %v10773_v48  ;;  %v1615_v54 = vcombine.low %v10720_v38, %v10737_v39  ;;  %15709 = vst [vmem:[#allocation13_spill] sm:$0xff] %v10826_v2  ;;  %v1616_v5 = vcombine.high %v10720_v38, %v10737_v39  ;;  %v3040_v39 = vrot.slane %v10698_v27, 7 }
 0x10a   : > { %15705 = vst [vmem:[#allocation9_spill] sm:$0xff] %v10776_v49  ;;  %15710 = vst [vmem:[#allocation14_spill] sm:$0xff] %v10843_v16  ;;  %v3748_v33 = vcombine.low %v10823_v0, %v10773_v48  ;;  %v3749_v38 = vcombine.low %v10826_v2, %v10776_v49  ;;  %v3746_v40 = vcombine.low %v3738_v6, %v10843_v16  ;;  %v3046_v11 = vrot.slane %v10773_v48, 7 }
 0x10b   : > { %15703 = vst [vmem:[#allocation7_spill] sm:$0xff] %v10758_v44  ;;  %v10799_v55 = vpop.f32.mrb[8].mxu0  ;;  %v3747_v45 = vcombine.high %v3738_v6, %v10843_v16  ;;  %v1630_v8 = vrot.slane %v1616_v5, %v10161_v36  ;;  %v9502_v59 = vpack.c.bf16 %v7959_v24, %v7958_v13  ;;  %v9504_v56 = vpack.c.bf16 %v7943_v29, %v7942_v26 }
 0x10c   : > { %v10831_v10 = vpop.f32.mrb[9].mxu0  ;;  %v10882_v6 = vrot.slane %v3748_v33, %v10161_v36  ;;  %v10885_v57 = vrot.slane %v3749_v38, %v10161_v36  ;;  %v3043_v5 = vrot.slane %v10823_v0, 7  ;;  %v3049_v13 = vrot.slane %v10826_v2, 7 }
 0x10d   : > { %v1633_v17 = vcombine.low %v10799_v55, %v10831_v10  ;;  %v1634_v20 = vcombine.high %v10799_v55, %v10831_v10  ;;  %4114 = vmatprep.mubr.f32.mxu1 %v3747_v45  ;;  %v10896_v24 = vadd.f32 %v10712_v34, %v10861_v32  ;;  %v3052_v26 = vrot.slane %v10776_v49, 7 }
 0x10e   : > { %15711 = vst [vmem:[#allocation15_spill] sm:$0xff] %v10882_v6  ;;  %15712 = vst [vmem:[#allocation16_spill] sm:$0xff] %v10885_v57  ;;  %4115 = vmatmul.mubr.f32.vlgmr.msra.gmra.mrb[56].mxu1 %v3746_v40  ;;  %v1623_v29 = vrot.slane %v1615_v54, %v10161_v36  ;;  %v3765_v33 = vcombine.high %v10882_v6, %v10885_v57  ;;  %v1632_v10 = vcombine.high %v1630_v8, %v1630_v8 }
 0x10f   : > { %v10871_v55 = vpop.f32.mrb[10].mxu0  ;;  %15713 = vst [vmem:[#allocation17_spill] sm:$0xff] %v10896_v24  ;;  %9501 = vmatpush3.bf16.msra.mxu1 %v9500_v28  ;;  %v3034_v40 = vrot.slane %v10689_v21, 7  ;;  %v3037_v54 = vrot.slane %v10715_v35, 7  ;;  %v3042_v44 = vrot.slane %v3040_v39, 2  ;;  %v1614_v38 = vcombine.high %v10718_v37, %v10718_v37 }
 0x110   : > { %v10876_v23 = vpop.f32.mrb[11].mxu0  ;;  %9503 = vmatprep.subr.bf16.mxu1 %v9502_v59  ;;  %v10919_v28 = vadd.f32 %v10678_v12, %v1630_v8  ;;  %4119 = vmatprep.mubr.f32.mxu1 %v3765_v33  ;;  %v3045_v49 = vrot.slane %v3043_v5, 2  ;;  %v3048_v48 = vrot.slane %v3046_v11, 2  ;;  %v3051_v2 = vrot.slane %v3049_v13, 2  ;;  %v8051_v8 = vld [vmem:[%s15365_s4 + $0x678] sm:$0xff] }
 0x111   : > { %v1651_v4 = vcombine.low %v10871_v55, %v10876_v23  ;;  %v3054_v0 = vrot.slane %v3052_v26, 2  ;;  %v1631_v21 = vcombine.high %v1623_v29, %v1623_v29  ;;  %v1641_v59 = vrot.slane %v1633_v17, %v10161_v36 }
 0x112   : > { %15716 = vst [vmem:[#allocation18_spill] sm:$0xff] %v10919_v28  ;;  %v10941_v33 = vadd.f32 %v10667_v7, %v1632_v10  ;;  %v1648_v17 = vrot.slane %v1634_v20, %v10161_v36  ;;  %v3036_v27 = vrot.slane %v3034_v40, 2  ;;  %v3039_v62 = vrot.slane %v3037_v54, 2 }
 0x113   : > { %v10904_v45 = vpop.f32.mrb[12].mxu0  ;;  %v10922_v31 = vrot.slane %v1651_v4, %v10161_v36  ;;  %9505 = vmatpush3.bf16.msra.mxu1 %v9504_v56  ;;  %v10938_v4 = vadd.f32 %v10671_v9, %v1623_v29  ;;  %v10952_v56 = vsel %vm10931_vm12, %v3042_v44, %v3043_v5  ;;  %v3035_v29 = vsel %vm10931_vm12, %v7868_v19, %v3034_v40 }
 0x114   : > { %v10914_v16 = vpop.f32.mrb[13].mxu0  ;;  %15721 = vst [vmem:[#allocation21_spill] sm:$0xff] %v10941_v33  ;;  %15723 = vst [vmem:[#allocation23_spill] sm:$0xff] %v10952_v56  ;;  %v10958_v10 = vsel %vm10931_vm12, %v3036_v27, %v3037_v54  ;;  %v3764_v20 = vcombine.low %v10882_v6, %v10885_v57  ;;  %v1650_v27 = vcombine.high %v1648_v17, %v1648_v17 }
 0x115   : > { %15717 = vst [vmem:[#allocation19_spill] sm:$0xff] %v10922_v31  ;;  %v1667_v35 = vcombine.high %v10922_v31, %v10922_v31  ;;  %15720 = vst [vmem:[#allocation20_spill] sm:$0xff] %v10938_v4  ;;  %v1669_v58 = vcombine.low %v10904_v45, %v10914_v16  ;;  %v3265_v44 = vcombine.low %v3035_v29, %v10958_v10 }
 0x116   : > { %15724 = vst [vmem:[#allocation24_spill] sm:$0xff] %v10958_v10  ;;  %v1670_v19 = vcombine.high %v10904_v45, %v10914_v16  ;;  %4120 = vmatmul.mubr.f32.gmra.mrb[58].mxu1 %v3764_v20  ;;  %v10977_v54 = vsel %vm10931_vm12, %v3045_v49, %v3046_v11  ;;  %v10988_v16 = vsel %vm10931_vm12, %v3051_v2, %v3052_v26  ;;  %v15729_v45 = vrot.slane %v10896_v24, 7 }
 0x117   : > { %v10935_v37 = vpop.f32.mrb[14].mxu0  ;;  %v10948_v50 = vadd.f32 %v10706_v30, %v1667_v35  ;;  %v1649_v35 = vcombine.high %v1641_v59, %v1641_v59  ;;  %15726 = vst [vmem:[#allocation26_spill] sm:$0xff] %v10977_v54  ;;  %v3273_v29 = vrot.slane %v3265_v44, %v10161_v36  ;;  %15728 = vst [vmem:[#allocation28_spill] sm:$0xff] %v10988_v16 }
 0x118   : > { %v10944_v31 = vpop.f32.mrb[15].mxu0  ;;  %v10994_v20 = vsel %vm10931_vm12, %v3054_v0, %v15729_v45  ;;  %v11001_v11 = vadd.f32 %v10662_v1, %v1631_v21  ;;  %v11009_v26 = vadd.f32 %v10684_v18, %v1641_v59  ;;  %v11012_v0 = vadd.f32 %v10695_v25, %v1648_v17 }
 0x119   : > { %15722 = vst [vmem:[#allocation22_spill] sm:$0xff] %v10948_v50  ;;  %v10966_v50 = vsel %vm10931_vm12, %v3039_v62, %v3040_v39  ;;  %v10981_v62 = vsel %vm10931_vm12, %v3048_v48, %v3049_v13  ;;  %15730 = vst [vmem:[#allocation29_spill] sm:$0xff] %v10994_v20  ;;  %v3284_v2 = vcombine.low %v10988_v16, %v10994_v20 }
 0x11a   : > { %15725 = vst [vmem:[#allocation25_spill] sm:$0xff] %v10966_v50  ;;  %v3266_v40 = vcombine.low %v10966_v50, %v10952_v56  ;;  %15727 = vst [vmem:[#allocation27_spill] sm:$0xff] %v10981_v62  ;;  %v3283_v49 = vcombine.low %v10977_v54, %v10981_v62  ;;  %v11018_v45 = vadd.f32 %v10657_v61, %v1614_v38  ;;  %v15749_v10 = vrot.slane %v11009_v26, 7 }
 0x11b   : > { %v10971_v5 = vpop.f32.mrb[16].mxu0  ;;  %15731 = vst [vmem:[#allocation30_spill] sm:$0xff] %v11001_v11  ;;  %15733 = vst [vmem:[#allocation32_spill] sm:$0xff] %v11009_v26  ;;  %v11029_v6 = vrot.slane %v3284_v2, %v10161_v36  ;;  %v11035_v38 = vadd.f32 %v10674_v3, %v1649_v35  ;;  %v11038_v20 = vadd.f32 %v10712_v34, %v1650_v27 }
 0x11c   : > { %v10983_v39 = vpop.f32.mrb[17].mxu0  ;;  %v11004_v13 = vrot.slane %v3266_v40, %v10161_v36  ;;  %15734 = vst [vmem:[#allocation33_spill] sm:$0xff] %v11012_v0  ;;  %v11015_v44 = vrot.slane %v3283_v49, %v10161_v36  ;;  %v15736_v40 = vrot.slane %v10919_v28, 7  ;;  %v1677_v2 = vrot.slane %v1669_v58, %v10161_v36 }
 0x11d   : > { %15737 = vst [vmem:[#allocation35_spill] sm:$0xff] %v11029_v6  ;;  %15738 = vst [vmem:[#allocation36_spill] sm:$0xff] %v11035_v38  ;;  %v3767_v35 = vcombine.low %v11001_v11, %v10919_v28  ;;  %v1684_v27 = vrot.slane %v1670_v19, %v10161_v36  ;;  %v3784_v19 = vcombine.low %v10941_v33, %v11009_v26  ;;  %v3074_v56 = vrot.slane %v11035_v38, 7 }
 0x11e   : > { %15732 = vst [vmem:[#allocation31_spill] sm:$0xff] %v11004_v13  ;;  %15735 = vst [vmem:[#allocation34_spill] sm:$0xff] %v11015_v44  ;;  %v11024_v48 = vrot.slane %v15736_v40, 2  ;;  %v3281_v57 = vcombine.low %v3273_v29, %v11004_v13  ;;  %v3282_v59 = vcombine.high %v3273_v29, %v11004_v13  ;;  %v3766_v40 = vcombine.low %v11018_v45, %v10938_v4 }
 0x11f   : > { %v11020_v21 = vpop.f32.mrb[18].mxu0  ;;  %15739 = vst [vmem:[#allocation37_spill] sm:$0xff] %v11038_v20  ;;  %v15740_v29 = vcombine.high %v10871_v55, %v10876_v23  ;;  %v3300_v49 = vcombine.high %v11015_v44, %v11029_v6  ;;  %v3299_v62 = vcombine.low %v11015_v44, %v11029_v6  ;;  %v1687_v23 = vcombine.low %v10935_v37, %v10944_v31 }
 0x120   : > { %v11031_v17 = vpop.f32.mrb[19].mxu0  ;;  %3649 = vmatprep.mubr.f32.mxu0 %v3282_v59  ;;  %v3774_v16 = vrot.slane %v3766_v40, %v10161_v36  ;;  %v11061_v59 = vrot.slane %v3767_v35, %v10161_v36  ;;  %v15742_v40 = vpack.c.bf16 %v10730_v15, %v10725_v14  ;;  %v15743_v6 = vrot.slane %v10941_v33, 7 }
 0x121   : > { %v1666_v13 = vrot.slane %v15740_v29, %v10161_v36  ;;  %3650 = vmatmul.mubr.f32.vlgmr.msra.gmra.mrb[44].mxu0 %v3281_v57  ;;  %v3785_v35 = vcombine.low %v11035_v38, %v11012_v0  ;;  %v1705_v57 = vcombine.low %v10971_v5, %v10983_v39  ;;  %v15744_v58 = vpack.c.bf16 %v10744_v41, %v10735_v22 }
 0x122   : > { %3654 = vmatprep.mubr.f32.mxu0 %v3300_v49  ;;  %15741 = vst [vmem:[#allocation38_spill] sm:$0xff] %v11061_v59  ;;  %9469 = vmatpush3.bf16.msra.mxu0 %v15742_v40  ;;  %v3070_v44 = vrot.slane %v15743_v6, 2  ;;  %v3077_v49 = vrot.slane %v11012_v0, 7  ;;  %v3783_v14 = vcombine.high %v3774_v16, %v11061_v59  ;;  %v3782_v15 = vcombine.low %v3774_v16, %v11061_v59 }
 0x123   : > { %v11057_v55 = vpop.f32.mrb[20].mxu0  ;;  %9471 = vmatprep.subr.bf16.mxu0 %v15744_v58  ;;  %v1668_v54 = vcombine.high %v1666_v13, %v1666_v13  ;;  %v1685_v6 = vcombine.high %v1677_v2, %v1677_v2  ;;  %v11086_v40 = vrot.slane %v3784_v19, %v10161_v36  ;;  %v11089_v0 = vrot.slane %v3785_v35, %v10161_v36 }
 0x124   : > { %v11067_v29 = vpop.f32.mrb[21].mxu0  ;;  %v1686_v41 = vcombine.high %v1684_v27, %v1684_v27  ;;  %v11096_v58 = vadd.f32 %v10667_v7, %v1684_v27  ;;  %4124 = vmatprep.mubr.f32.mxu1 %v3783_v14  ;;  %v11099_v16 = vrot.slane %v1705_v57, %v10161_v36  ;;  %v15748_v35 = vpack.c.bf16 %v10754_v43, %v10749_v42 }
 0x125   : > { %3655 = vmatmul.mubr.f32.gmra.mrb[46].mxu0 %v3299_v62  ;;  %15745 = vst [vmem:[#allocation39_spill] sm:$0xff] %v11086_v40  ;;  %15746 = vst [vmem:[#allocation40_spill] sm:$0xff] %v11089_v0  ;;  %v3059_v62 = vrot.slane %v10938_v4, 7  ;;  %v3073_v59 = vrot.slane %v15749_v10, 2  ;;  %v11111_v27 = vrot.slane %v1687_v23, %v10161_v36  ;;  %4125 = vmatmul.mubr.f32.gmra.mrb[60].mxu1 %v3782_v15  ;;  %v3076_v4 = vrot.slane %v3074_v56, 2 }
 0x126   : > { %15747 = vst [vmem:[#allocation41_spill] sm:$0xff] %v11096_v58  ;;  %9473 = vmatpush3.bf16.msra.mxu0 %v15748_v35  ;;  %v3801_v57 = vcombine.high %v11086_v40, %v11089_v0  ;;  %v15750_v14 = vpack.c.bf16 %v10770_v47, %v10765_v46  ;;  %v3079_v50 = vrot.slane %v3077_v49, 2  ;;  %v11119_v42 = vadd.f32 %v10657_v61, %v1666_v13 }
 0x127   : > { %v11093_v22 = vpop.f32.mrb[22].mxu0  ;;  %v11123_v43 = vadd.f32 %v10706_v30, %v11099_v16  ;;  %v11126_v10 = vadd.f32 %v10671_v9, %v1668_v54  ;;  %v11129_v23 = vadd.f32 %v10662_v1, %v1677_v2  ;;  %v11132_v15 = vadd.f32 %v10678_v12, %v1685_v6 }
 0x128   : > { %v11102_v19 = vpop.f32.mrb[23].mxu0  ;;  %9475 = vmatprep.subr.bf16.mxu0 %v15750_v14  ;;  %v7869_v46 = vrot.slane %v11018_v45, 9  ;;  %4129 = vmatprep.mubr.f32.mxu1 %v3801_v57  ;;  %v11138_v13 = vadd.f32 %v10684_v18, %v1686_v41  ;;  %v3061_v14 = vrot.slane %v3059_v62, 2  ;;  %v3062_v54 = vrot.slane %v11001_v11, 7 }
 0x129   : > { %15751 = vst [vmem:[#allocation42_spill] sm:$0xff] %v11123_v43  ;;  %15752 = vst [vmem:[#allocation43_spill] sm:$0xff] %v11126_v10  ;;  %v15756_v2 = vpack.c.bf16 %v10790_v52, %v10785_v51  ;;  %v1703_v45 = vcombine.high %v11111_v27, %v11111_v27  ;;  %v15757_v41 = vrot.slane %v10941_v33, 7  ;;  %v3800_v35 = vcombine.low %v11086_v40, %v11089_v0 }
 0x12a   : > { %15753 = vst [vmem:[#allocation44_spill] sm:$0xff] %v11129_v23  ;;  %15754 = vst [vmem:[#allocation45_spill] sm:$0xff] %v11132_v15  ;;  %v3060_v6 = vsel %vm10931_vm12, %v7869_v46, %v3059_v62  ;;  %v15759_v51 = vpack.c.bf16 %v10810_v60, %v10795_v53  ;;  %v11165_v52 = vsel %vm10931_vm12, %v3061_v14, %v3062_v54 }
 0x12b   : > { %v11135_v47 = vpop.f32.mrb[24].mxu0  ;;  %15755 = vst [vmem:[#allocation46_spill] sm:$0xff] %v11138_v13  ;;  %9477 = vmatpush3.bf16.msra.mxu0 %v15756_v2  ;;  %v11156_v57 = vsel %vm10931_vm12, %v11024_v48, %v15757_v41  ;;  %15760 = vst [vmem:[#allocation48_spill] sm:$0xff] %v11165_v52  ;;  %v3064_v2 = vrot.slane %v3062_v54, 2  ;;  %v1723_v62 = vcombine.low %v11020_v21, %v11031_v17  ;;  %4130 = vmatmul.mubr.f32.gmra.mrb[62].mxu1 %v3800_v35 }
 0x12c   : > { %v11142_v38 = vpop.f32.mrb[25].mxu0  ;;  %15758 = vst [vmem:[#allocation47_spill] sm:$0xff] %v11156_v57  ;;  %9479 = vmatprep.subr.bf16.mxu0 %v15759_v51  ;;  %v1724_v46 = vcombine.high %v11020_v21, %v11031_v17  ;;  %v3301_v48 = vcombine.low %v3060_v6, %v11165_v52  ;;  %v15761_v41 = vrot.slane %v11009_v26, 7  ;;  %v11180_v60 = vsel %vm10931_vm12, %v3073_v59, %v3074_v56  ;;  %v15769_v59 = vld [vmem:[#allocation11_spill] sm:$0xff] }
 0x12d   : > { %15763 = vst [vmem:[#allocation50_spill] sm:$0xff] %v11180_v60  ;;  %v11184_v14 = vsel %vm10931_vm12, %v3076_v4, %v3077_v49  ;;  %v15765_v21 = vrot.slane %v10919_v28, 7  ;;  %v1731_v35 = vrot.slane %v1723_v62, %v10161_v36  ;;  %v15767_v6 = vrot.slane %v11038_v20, 7  ;;  %v15793_v52 = vld [vmem:[#allocation19_spill] sm:$0xff] }
 0x12e   : > { %v11176_v53 = vsel %vm10931_vm12, %v3070_v44, %v15761_v41  ;;  %15764 = vst [vmem:[#allocation51_spill] sm:$0xff] %v11184_v14  ;;  %v1738_v44 = vrot.slane %v1724_v46, %v10161_v36  ;;  %v15770_v49 = vpack.c.bf16 %v10820_v63, %v15769_v59  ;;  %v3309_v63 = vrot.slane %v3301_v48, %v10161_v36 }
 0x12f   : > { %15762 = vst [vmem:[#allocation49_spill] sm:$0xff] %v11176_v53  ;;  %v11186_v54 = vpop.f32.mrb[26].mxu0  ;;  %v11192_v17 = vsel %vm10931_vm12, %v3064_v2, %v15765_v21  ;;  %v11200_v56 = vsel %vm10931_vm12, %v3079_v50, %v15767_v6  ;;  %v3319_v62 = vcombine.low %v11176_v53, %v11180_v60  ;;  %v1739_v41 = vcombine.high %v1731_v35, %v1731_v35 }
 0x130   : > { %15766 = vst [vmem:[#allocation52_spill] sm:$0xff] %v11192_v17  ;;  %15768 = vst [vmem:[#allocation53_spill] sm:$0xff] %v11200_v56  ;;  %v11202_v4 = vpop.f32.mrb[27].mxu0  ;;  %9481 = vmatpush3.bf16.msra.mxu0 %v15770_v49  ;;  %v3302_v2 = vcombine.low %v11192_v17, %v11156_v57  ;;  %v3320_v46 = vcombine.low %v11184_v14, %v11200_v56  ;;  %v1740_v21 = vcombine.high %v1738_v44, %v1738_v44 }
 0x131   : > { %v11216_v6 = vadd.f32 %v10684_v18, %v1738_v44  ;;  %v11223_v49 = vrot.slane %v3319_v62, %v10161_v36  ;;  %v11231_v50 = vadd.f32 %v10695_v25, %v1703_v45  ;;  %v11234_v40 = vadd.f32 %v10667_v7, %v1739_v41 }
 0x132   : > { %v11220_v59 = vrot.slane %v3302_v2, %v10161_v36  ;;  %v11226_v51 = vrot.slane %v3320_v46, %v10161_v36  ;;  %v11237_v44 = vadd.f32 %v10674_v3, %v1740_v21  ;;  %v3802_v48 = vcombine.low %v11119_v42, %v11126_v10 }
 0x133   : > { %15771 = vst [vmem:[#allocation11_spill] sm:$0xff] %v11216_v6  ;;  %15773 = vst [vmem:[#allocation55_spill] sm:$0xff] %v11223_v49  ;;  %v11228_v0 = vpop.f32.mrb[28].mxu0  ;;  %v11246_v43 = vadd.f32 %v10678_v12, %v1731_v35  ;;  %v15779_v41 = vcombine.high %v10935_v37, %v10944_v31  ;;  %v11256_v26 = vadd.f32 %v10674_v3, %v11111_v27  ;;  %v15424_v28 = vrot.slane %v11234_v40, 7 }
 0x134   : > { %15772 = vst [vmem:[#allocation54_spill] sm:$0xff] %v11220_v59  ;;  %15774 = vst [vmem:[#allocation56_spill] sm:$0xff] %v11226_v51  ;;  %v11241_v2 = vpop.f32.mrb[29].mxu0  ;;  %v3318_v62 = vcombine.high %v3309_v63, %v11220_v59  ;;  %v3317_v46 = vcombine.low %v3309_v63, %v11220_v59  ;;  %v3336_v45 = vcombine.high %v11223_v49, %v11226_v51  ;;  %v15430_v33 = vrot.slane %v11216_v6, 7 }
 0x135   : > { %15775 = vst [vmem:[#allocation57_spill] sm:$0xff] %v11231_v50  ;;  %15776 = vst [vmem:[#allocation58_spill] sm:$0xff] %v11234_v40  ;;  %v1702_v21 = vrot.slane %v15779_v41, %v10161_v36  ;;  %v3120_v27 = vrot.slane %v15424_v28, 2  ;;  %v3803_v41 = vcombine.low %v11129_v23, %v11132_v15  ;;  %v3810_v63 = vrot.slane %v3802_v48, %v10161_v36 }
 0x136   : > { %15777 = vst [vmem:[#allocation59_spill] sm:$0xff] %v11237_v44  ;;  %15778 = vst [vmem:[#allocation60_spill] sm:$0xff] %v11246_v43  ;;  %3659 = vmatprep.mubr.f32.mxu0 %v3318_v62  ;;  %v3335_v62 = vcombine.low %v11223_v49, %v11226_v51  ;;  %v1741_v31 = vcombine.low %v11057_v55, %v11067_v29  ;;  %v3820_v59 = vcombine.low %v11096_v58, %v11138_v13 }
 0x137   : > { %15780 = vst [vmem:[#allocation61_spill] sm:$0xff] %v11256_v26  ;;  %v11267_v37 = vpop.f32.mrb[30].mxu0  ;;  %3660 = vmatmul.mubr.f32.gmra.mrb[48].mxu0 %v3317_v46  ;;  %v1742_v46 = vcombine.high %v11057_v55, %v11067_v29  ;;  %v3821_v28 = vcombine.low %v11256_v26, %v11231_v50  ;;  %v11290_v48 = vsel %vm10931_vm12, %v3120_v27, %v15430_v33  ;;  %v7870_v14 = vrot.slane %v11119_v42, 9 }
 0x138   : > { %v11276_v35 = vpop.f32.mrb[31].mxu0  ;;  %3664 = vmatprep.mubr.f32.mxu0 %v3336_v45  ;;  %v11293_v45 = vrot.slane %v3803_v41, %v10161_v36  ;;  %v1759_v51 = vcombine.low %v11093_v22, %v11102_v19  ;;  %v1760_v55 = vcombine.high %v11093_v22, %v11102_v19  ;;  %v15782_v29 = vcombine.high %v10971_v5, %v10983_v39 }
 0x139   : > { %v11304_v11 = vrot.slane %v1741_v31, %v10161_v36  ;;  %v11307_v27 = vrot.slane %v1742_v46, %v10161_v36  ;;  %v11310_v41 = vrot.slane %v3821_v28, %v10161_v36  ;;  %v11317_v19 = vrot.slane %v3820_v59, %v10161_v36 }
 0x13a   : > { %15781 = vst [vmem:[#allocation62_spill] sm:$0xff] %v11293_v45  ;;  %v1720_v49 = vrot.slane %v15782_v29, %v10161_v36  ;;  %v3819_v56 = vcombine.high %v3810_v63, %v11293_v45  ;;  %v3818_v22 = vcombine.low %v3810_v63, %v11293_v45  ;;  %v11320_v5 = vrot.slane %v1760_v55, %v10161_v36 }
 0x13b   : > { %15783 = vst [vmem:[#allocation63_spill] sm:$0xff] %v11310_v41  ;;  %v11312_v33 = vpop.f32.mrb[32].mxu0  ;;  %3665 = vmatmul.mubr.f32.gmra.mrb[50].mxu0 %v3335_v62  ;;  %15784 = vst [vmem:[#allocation64_spill] sm:$0xff] %v11317_v19  ;;  %v1704_v31 = vcombine.high %v1702_v21, %v1702_v21  ;;  %v15785_v46 = vrot.slane %v11237_v44, 7  ;;  %v1758_v29 = vcombine.high %v11307_v27, %v11307_v27  ;;  %v3099_v59 = vrot.slane %v11256_v26, 7  ;;  %v15791_v26 = vld [vmem:[#allocation10_spill] sm:$0xff] }
 0x13c   : > { %v11322_v39 = vpop.f32.mrb[33].mxu0  ;;  %v11330_v62 = vadd.f32 %v10695_v25, %v11304_v11  ;;  %v11333_v63 = vadd.f32 %v10712_v34, %v1702_v21  ;;  %4134 = vmatprep.mubr.f32.mxu1 %v3819_v56  ;;  %v3837_v55 = vcombine.high %v11317_v19, %v11310_v41  ;;  %v1776_v45 = vcombine.high %v11320_v5, %v11320_v5 }
 0x13d   : > { %v3126_v28 = vrot.slane %v15785_v46, 2  ;;  %v3102_v46 = vrot.slane %v11231_v50, 7  ;;  %v11342_v60 = vadd.f32 %v10706_v30, %v1758_v29  ;;  %4135 = vmatmul.mubr.f32.gmra.mrb[64].mxu1 %v3818_v22  ;;  %v15790_v56 = vcombine.high %v10861_v32, %v10861_v32 }
 0x13e   : > { %15786 = vst [vmem:[#allocation65_spill] sm:$0xff] %v11330_v62  ;;  %15787 = vst [vmem:[#allocation66_spill] sm:$0xff] %v11333_v63  ;;  %v11357_v50 = vadd.f32 %v15791_v26, %v15793_v52  ;;  %v1722_v29 = vcombine.high %v1720_v49, %v1720_v49  ;;  %4139 = vmatprep.mubr.f32.mxu1 %v3837_v55  ;;  %v15796_v22 = vrot.slane %v11132_v15, 7  ;;  %v15797_v17 = vrot.slane %v11096_v58, 7 }
 0x13f   : > { %15788 = vst [vmem:[#allocation67_spill] sm:$0xff] %v11342_v60  ;;  %v11347_v57 = vpop.f32.mrb[34].mxu0  ;;  %v11353_v53 = vadd.f32 %v15791_v26, %v15790_v56  ;;  %v15798_v32 = vrot.slane %v11330_v62, 7  ;;  %v15800_v52 = vrot.slane %v11138_v13, 7  ;;  %v11375_v55 = vadd.f32 %v15791_v26, %v1704_v31 }
 0x140   : > { %15789 = vst [vmem:[#allocation68_spill] sm:$0xff] %v11347_v57  ;;  %15794 = vst [vmem:[#allocation19_spill] sm:$0xff] %v11357_v50  ;;  %v11359_v60 = vpop.f32.mrb[35].mxu0  ;;  %v3092_v21 = vrot.slane %v15796_v22, 2  ;;  %v3095_v20 = vrot.slane %v15797_v17, 2  ;;  %v3101_v22 = vrot.slane %v3099_v59, 2  ;;  %v11384_v57 = vadd.f32 %v10671_v9, %v1720_v49 }
 0x141   : > { %15792 = vst [vmem:[#allocation10_spill] sm:$0xff] %v11353_v53  ;;  %15795 = vst [vmem:[#allocation69_spill] sm:$0xff] %v11359_v60  ;;  %v11370_v56 = vsel %vm10931_vm12, %v3126_v28, %v15798_v32  ;;  %v3098_v50 = vrot.slane %v15800_v52, 2  ;;  %v11379_v53 = vadd.f32 %v10678_v12, %v1776_v45  ;;  %v3104_v24 = vrot.slane %v3102_v46, 2 }
 0x142   : > { %15799 = vst [vmem:[#allocation70_spill] sm:$0xff] %v11370_v56  ;;  %15801 = vst [vmem:[#allocation71_spill] sm:$0xff] %v11375_v55  ;;  %v11389_v32 = vadd.f32 %v10662_v1, %v1722_v29  ;;  %v3084_v31 = vrot.slane %v11126_v10, 7  ;;  %v3087_v52 = vrot.slane %v11129_v23, 7  ;;  %v3836_v45 = vcombine.low %v11317_v19, %v11310_v41 }
 0x143   : > { %15802 = vst [vmem:[#allocation72_spill] sm:$0xff] %v11379_v53  ;;  %15803 = vst [vmem:[#allocation73_spill] sm:$0xff] %v11384_v57  ;;  %v11386_v28 = vpop.f32.mrb[36].mxu0  ;;  %v11399_v17 = vrot.slane %v1759_v51, %v10161_v36  ;;  %v1777_v49 = vcombine.low %v11135_v47, %v11142_v38  ;;  %v1778_v29 = vcombine.high %v11135_v47, %v11142_v38  ;;  %v15806_v60 = vrot.slane %v11096_v58, 7 }
 0x144   : > { %15804 = vst [vmem:[#allocation74_spill] sm:$0xff] %v11386_v28  ;;  %15805 = vst [vmem:[#allocation75_spill] sm:$0xff] %v11389_v32  ;;  %v11395_v42 = vpop.f32.mrb[37].mxu0  ;;  %v3086_v28 = vrot.slane %v3084_v31, 2  ;;  %v3089_v23 = vrot.slane %v3087_v52, 2  ;;  %4140 = vmatmul.mubr.f32.gmra.mrb[66].mxu1 %v3836_v45  ;;  %v3085_v51 = vsel %vm10931_vm12, %v7870_v14, %v3084_v31  ;;  %v11420_v38 = vsel %vm10931_vm12, %v3098_v50, %v3099_v59 }
 0x145   : > { %v11410_v41 = vsel %vm10931_vm12, %v3092_v21, %v15806_v60  ;;  %v1785_v55 = vrot.slane %v1777_v49, %v10161_v36  ;;  %v11416_v19 = vrot.slane %v1778_v29, %v10161_v36  ;;  %15808 = vst [vmem:[#allocation77_spill] sm:$0xff] %v11420_v38  ;;  %v15810_v60 = vrot.slane %v11132_v15, 7 }
 0x146   : > { %15807 = vst [vmem:[#allocation76_spill] sm:$0xff] %v11410_v41  ;;  %v11426_v10 = vsel %vm10931_vm12, %v3086_v28, %v3087_v52  ;;  %v15812_v21 = vrot.slane %v11138_v13, 7  ;;  %v15814_v50 = vrot.slane %v11333_v63, 7  ;;  %v11453_v49 = vsel %vm10931_vm12, %v3101_v22, %v3102_v46 }
 0x147   : > { %v11422_v47 = vpop.f32.mrb[38].mxu0  ;;  %15809 = vst [vmem:[#allocation78_spill] sm:$0xff] %v11426_v10  ;;  %v11432_v14 = vsel %vm10931_vm12, %v3089_v23, %v15810_v60  ;;  %v3337_v52 = vcombine.low %v3085_v51, %v11426_v10  ;;  %v1793_v45 = vcombine.high %v1785_v55, %v1785_v55  ;;  %15816 = vst [vmem:[#allocation82_spill] sm:$0xff] %v11453_v49 }
 0x148   : > { %15811 = vst [vmem:[#allocation79_spill] sm:$0xff] %v11432_v14  ;;  %v11438_v31 = vsel %vm10931_vm12, %v3095_v20, %v15812_v21  ;;  %v11444_v59 = vsel %vm10931_vm12, %v3104_v24, %v15814_v50  ;;  %v11446_v28 = vpop.f32.mrb[39].mxu0  ;;  %v3338_v23 = vcombine.low %v11432_v14, %v11410_v41  ;;  %v15817_v20 = vrot.slane %v11379_v53, 7 }
 0x149   : > { %15813 = vst [vmem:[#allocation80_spill] sm:$0xff] %v11438_v31  ;;  %15815 = vst [vmem:[#allocation81_spill] sm:$0xff] %v11444_v59  ;;  %v11458_v60 = vadd.f32 %v10667_v7, %v1785_v55  ;;  %v3355_v24 = vcombine.low %v11438_v31, %v11420_v38  ;;  %v3356_v51 = vcombine.low %v11453_v49, %v11444_v59  ;;  %v15825_v41 = vrot.slane %v11216_v6, 7 }
 0x14a   : > { %v3142_v29 = vrot.slane %v15817_v20, 2  ;;  %v3345_v21 = vrot.slane %v3337_v52, %v10161_v36  ;;  %v11466_v50 = vrot.slane %v3338_v23, %v10161_v36  ;;  %v11469_v46 = vadd.f32 %v10684_v18, %v1793_v45 }
 0x14b   : > { %15818 = vst [vmem:[#allocation83_spill] sm:$0xff] %v11458_v60  ;;  %v11473_v22 = vadd.f32 %v10674_v3, %v11416_v19  ;;  %v11475_v55 = vpop.f32.mrb[40].mxu0  ;;  %v3839_v20 = vcombine.low %v11389_v32, %v11246_v43  ;;  %v11483_v23 = vrot.slane %v3356_v51, %v10161_v36  ;;  %v15824_v45 = vrot.slane %v11246_v43, 7 }
 0x14c   : > { %15819 = vst [vmem:[#allocation84_spill] sm:$0xff] %v11466_v50  ;;  %15820 = vst [vmem:[#allocation85_spill] sm:$0xff] %v11469_v46  ;;  %v11485_v15 = vpop.f32.mrb[41].mxu0  ;;  %v3354_v59 = vcombine.high %v3345_v21, %v11466_v50  ;;  %v3353_v38 = vcombine.low %v3345_v21, %v11466_v50  ;;  %v15470_v49 = vrot.slane %v11469_v46, 7  ;;  %v11494_v13 = vrot.slane %v15825_v41, 2 }
 0x14d   : > { %15821 = vst [vmem:[#allocation86_spill] sm:$0xff] %v11473_v22  ;;  %15822 = vst [vmem:[#allocation87_spill] sm:$0xff] %v11475_v55  ;;  %v3117_v58 = vrot.slane %v15824_v45, 2  ;;  %v1757_v52 = vcombine.high %v11304_v11, %v11304_v11  ;;  %v15826_v51 = vrot.slane %v11458_v60, 7  ;;  %v11505_v45 = vrot.slane %v3355_v24, %v10161_v36 }
 0x14e   : > { %15823 = vst [vmem:[#allocation88_spill] sm:$0xff] %v11483_v23  ;;  %v1775_v21 = vcombine.high %v11399_v17, %v11399_v17  ;;  %3669 = vmatprep.mubr.f32.mxu0 %v3354_v59  ;;  %v3148_v41 = vrot.slane %v15470_v49, 2  ;;  %v15832_v11 = vrot.slane %v11473_v22, 7 }
 0x14f   : > { %v11502_v31 = vsel %vm10931_vm12, %v3142_v29, %v15826_v51  ;;  %15828 = vst [vmem:[#allocation90_spill] sm:$0xff] %v11505_v45  ;;  %v11514_v10 = vpop.f32.mrb[42].mxu0  ;;  %v11518_v29 = vadd.f32 %v10657_v61, %v11399_v17  ;;  %3670 = vmatmul.mubr.f32.gmra.mrb[52].mxu0 %v3353_v38  ;;  %v3372_v24 = vcombine.high %v11505_v45, %v11483_v23 }
 0x150   : > { %15827 = vst [vmem:[#allocation89_spill] sm:$0xff] %v11502_v31  ;;  %15829 = vst [vmem:[#allocation91_spill] sm:$0xff] %v11514_v10  ;;  %v3371_v59 = vcombine.low %v11505_v45, %v11483_v23  ;;  %v15830_v51 = vcombine.high %v11099_v16, %v11099_v16  ;;  %v11528_v50 = vpop.f32.mrb[43].mxu0  ;;  %v11534_v17 = vsel %vm10931_vm12, %v3148_v41, %v15832_v11  ;;  %v3109_v41 = vrot.slane %v11384_v57, 7 }
 0x151   : > { %15831 = vst [vmem:[#allocation92_spill] sm:$0xff] %v11528_v50  ;;  %15833 = vst [vmem:[#allocation93_spill] sm:$0xff] %v11534_v17  ;;  %v11537_v38 = vrot.slane %v3839_v20, %v10161_v36  ;;  %v1796_v23 = vcombine.high %v11186_v54, %v11202_v4  ;;  %3674 = vmatprep.mubr.f32.mxu0 %v3372_v24  ;;  %v15835_v45 = vcombine.low %v11237_v44, %v11330_v62 }
 0x152   : > { %v2185_v49 = vadd.f32 %v10657_v61, %v15830_v51  ;;  %v11552_v20 = vadd.f32 %v10712_v34, %v1757_v52  ;;  %v15838_v24 = vcombine.low %v11234_v40, %v11216_v6  ;;  %v11565_v10 = vadd.f32 %v10671_v9, %v1775_v21 }
 0x153   : > { %15834 = vst [vmem:[#allocation94_spill] sm:$0xff] %v11537_v38  ;;  %v11548_v63 = vrot.slane %v15835_v45, %v10161_v36  ;;  %v11555_v11 = vrot.slane %v1796_v23, %v10161_v36  ;;  %v11569_v45 = vadd.f32 %v10662_v1, %v11320_v5  ;;  %3675 = vmatmul.mubr.f32.gmra.mrb[54].mxu0 %v3371_v59  ;;  %v3111_v23 = vrot.slane %v3109_v41, 2 }
 0x154   : > { %v7871_v16 = vrot.slane %v2185_v49, 9  ;;  %v3838_v51 = vcombine.low %v2185_v49, %v11384_v57  ;;  %15837 = vst [vmem:[#allocation96_spill] sm:$0xff] %v11552_v20  ;;  %v11561_v14 = vrot.slane %v15838_v24, %v10161_v36  ;;  %v3112_v49 = vrot.slane %v11389_v32, 7  ;;  %15840 = vst [vmem:[#allocation98_spill] sm:$0xff] %v11565_v10 }
 0x155   : > { %15836 = vst [vmem:[#allocation95_spill] sm:$0xff] %v11548_v63  ;;  %15841 = vst [vmem:[#allocation99_spill] sm:$0xff] %v11569_v45  ;;  %v1794_v57 = vcombine.high %v11416_v19, %v11416_v19  ;;  %v11576_v24 = vadd.f32 %v10706_v30, %v11555_v11  ;;  %v11590_v19 = vadd.f32 %v15791_v26, %v11307_v27 }
 0x156   : > { %15839 = vst [vmem:[#allocation97_spill] sm:$0xff] %v11561_v14  ;;  %v3846_v52 = vrot.slane %v3838_v51, %v10161_v36  ;;  %v3873_v6 = vcombine.high %v11561_v14, %v11548_v63  ;;  %v3110_v21 = vsel %vm10931_vm12, %v7871_v16, %v3109_v41  ;;  %v11586_v51 = vsel %vm10931_vm12, %v3111_v23, %v3112_v49 }
 0x157   : > { %15842 = vst [vmem:[#allocation100_spill] sm:$0xff] %v11576_v24  ;;  %v3114_v32 = vrot.slane %v3112_v49, 2  ;;  %15843 = vst [vmem:[#allocation101_spill] sm:$0xff] %v11590_v19  ;;  %v15844_v24 = vrot.slane %v11330_v62, 7  ;;  %v15845_v16 = vrot.slane %v11234_v40, 7  ;;  %v3874_v27 = vcombine.low %v11518_v29, %v11565_v10 }
 0x158   : > { %v3855_v5 = vcombine.high %v3846_v52, %v11537_v38  ;;  %v3854_v59 = vcombine.low %v3846_v52, %v11537_v38  ;;  %v3373_v23 = vcombine.low %v3110_v21, %v11586_v51  ;;  %v3875_v55 = vcombine.low %v11569_v45, %v11379_v53 }
 0x159   : > { %v3129_v50 = vrot.slane %v15844_v24, 2  ;;  %v11599_v41 = vsel %vm10931_vm12, %v3117_v58, %v15845_v16  ;;  %v15847_v58 = vrot.slane %v11246_v43, 7  ;;  %v3872_v52 = vcombine.low %v11561_v14, %v11548_v63 }
 0x15a   : > { %15846 = vst [vmem:[#allocation102_spill] sm:$0xff] %v11599_v41  ;;  %4144 = vmatprep.mubr.f32.mxu1 %v3855_v5  ;;  %v11620_v5 = vadd.f32 %v10695_v25, %v1794_v57  ;;  %v3381_v24 = vrot.slane %v3373_v23, %v10161_v36  ;;  %v15851_v57 = vrot.slane %v11552_v20, 7 }
 0x15b   : > { %4145 = vmatmul.mubr.f32.gmra.mrb[68].mxu1 %v3854_v59  ;;  %v11614_v16 = vsel %vm10931_vm12, %v3114_v32, %v15847_v58  ;;  %v1813_v59 = vcombine.low %v11228_v0, %v11241_v2  ;;  %v1814_v32 = vcombine.high %v11228_v0, %v11241_v2  ;;  %v15849_v58 = vrot.slane %v11237_v44, 7 }
 0x15c   : > { %15848 = vst [vmem:[#allocation103_spill] sm:$0xff] %v11620_v5  ;;  %4149 = vmatprep.mubr.f32.mxu1 %v3873_v6  ;;  %v3374_v21 = vcombine.low %v11614_v16, %v11599_v41  ;;  %v11640_v6 = vsel %vm10931_vm12, %v3129_v50, %v15851_v57  ;;  %v3882_v2 = vrot.slane %v3874_v27, %v10161_v36  ;;  %v15855_v57 = vrot.slane %v11569_v45, 7 }
 0x15d   : > { %v11634_v49 = vsel %vm10931_vm12, %v11494_v13, %v15849_v58  ;;  %15852 = vst [vmem:[#allocation105_spill] sm:$0xff] %v11640_v6  ;;  %v3392_v0 = vcombine.low %v11370_v56, %v11640_v6  ;;  %v1828_v13 = vrot.slane %v1814_v32, %v10161_v36  ;;  %v11652_v58 = vrot.slane %v3875_v55, %v10161_v36  ;;  %v15878_v6 = vld [vmem:[#allocation68_spill] sm:$0xff] }
 0x15e   : > { %15850 = vst [vmem:[#allocation104_spill] sm:$0xff] %v11634_v49  ;;  %v11643_v63 = vrot.slane %v3374_v21, %v10161_v36  ;;  %v3391_v23 = vcombine.low %v11290_v48, %v11634_v49  ;;  %v1831_v50 = vcombine.low %v11267_v37, %v11276_v35  ;;  %v1832_v21 = vcombine.high %v11267_v37, %v11276_v35 }
 0x15f   : > { %4150 = vmatmul.mubr.f32.gmra.mrb[70].mxu1 %v3872_v52  ;;  %15854 = vst [vmem:[#allocation107_spill] sm:$0xff] %v11652_v58  ;;  %v3139_v38 = vrot.slane %v15855_v57, 2  ;;  %v15856_v27 = vrot.slane %v11458_v60, 7  ;;  %v1830_v55 = vcombine.high %v1828_v13, %v1828_v13  ;;  %v11671_v40 = vrot.slane %v3392_v0, %v10161_v36 }
 0x160   : > { %15853 = vst [vmem:[#allocation106_spill] sm:$0xff] %v11643_v63  ;;  %v3390_v62 = vcombine.high %v3381_v24, %v11643_v63  ;;  %v3389_v52 = vcombine.low %v3381_v24, %v11643_v63  ;;  %v11668_v44 = vrot.slane %v3391_v23, %v10161_v36  ;;  %v15859_v35 = vcombine.low %v11186_v54, %v11202_v4 }
 0x161   : > { %v11665_v32 = vrot.slane %v15856_v27, 2  ;;  %15858 = vst [vmem:[#allocation109_spill] sm:$0xff] %v11671_v40  ;;  %v1821_v24 = vrot.slane %v1813_v59, %v10161_v36  ;;  %v3891_v57 = vcombine.high %v3882_v2, %v11652_v58  ;;  %v1839_v27 = vrot.slane %v1831_v50, %v10161_v36 }
 0x162   : > { %15857 = vst [vmem:[#allocation108_spill] sm:$0xff] %v11668_v44  ;;  %v11677_v37 = vrot.slane %v15859_v35, %v10161_v36  ;;  %3679 = vmatprep.mubr.f32.mxu0 %v3390_v62  ;;  %v11683_v23 = vadd.f32 %v10678_v12, %v1828_v13  ;;  %v11686_v0 = vadd.f32 %v10667_v7, %v1830_v55  ;;  %v15862_v4 = vrot.slane %v11473_v22, 7 }
 0x163   : > { %3680 = vmatmul.mubr.f32.gmra.mrb[56].mxu0 %v3389_v52  ;;  %v3408_v14 = vcombine.high %v11668_v44, %v11671_v40  ;;  %v3407_v54 = vcombine.low %v11668_v44, %v11671_v40  ;;  %v15863_v59 = vrot.slane %v11620_v5, 7  ;;  %v3892_v13 = vcombine.low %v11458_v60, %v11469_v46  ;;  %4154 = vmatprep.mubr.f32.mxu1 %v3891_v57 }
 0x164   : > { %15860 = vst [vmem:[#allocation110_spill] sm:$0xff] %v11683_v23  ;;  %15861 = vst [vmem:[#allocation111_spill] sm:$0xff] %v11686_v0  ;;  %v11694_v62 = vrot.slane %v15862_v4, 2  ;;  %v11701_v52 = vrot.slane %v1832_v21, %v10161_v36  ;;  %v3893_v55 = vcombine.low %v11473_v22, %v11620_v5  ;;  %v15502_v35 = vrot.slane %v11686_v0, 7 }
 0x165   : > { %v3154_v50 = vrot.slane %v15863_v59, 2  ;;  %3684 = vmatprep.mubr.f32.mxu0 %v3408_v14  ;;  %v1847_v4 = vcombine.high %v1839_v27, %v1839_v27  ;;  %v1812_v59 = vcombine.high %v11555_v11, %v11555_v11  ;;  %v11712_v63 = vadd.f32 %v10712_v34, %v11677_v37 }
 0x166   : > { %v1829_v57 = vcombine.high %v1821_v24, %v1821_v24  ;;  %v11715_v21 = vadd.f32 %v10684_v18, %v1839_v27  ;;  %v3170_v44 = vrot.slane %v15502_v35, 2  ;;  %v11724_v14 = vadd.f32 %v10695_v25, %v11701_v52 }
 0x167   : > { %3685 = vmatmul.mubr.f32.gmra.mrb[58].mxu0 %v3407_v54  ;;  %v11720_v22 = vadd.f32 %v10674_v3, %v1847_v4  ;;  %v3890_v11 = vcombine.low %v3882_v2, %v11652_v58  ;;  %v1811_v40 = vcombine.high %v11677_v37, %v11677_v37  ;;  %v11730_v60 = vadd.f32 %v10671_v9, %v1821_v24 }
 0x168   : > { %15864 = vst [vmem:[#allocation112_spill] sm:$0xff] %v11715_v21  ;;  %15866 = vst [vmem:[#allocation114_spill] sm:$0xff] %v11724_v14  ;;  %v15506_v27 = vrot.slane %v11715_v21, 7  ;;  %v11734_v35 = vrot.slane %v3892_v13, %v10161_v36  ;;  %v11744_v37 = vadd.f32 %v10657_v61, %v1812_v59  ;;  %v11748_v13 = vadd.f32 %v10662_v1, %v1829_v57 }
 0x169   : > { %15865 = vst [vmem:[#allocation113_spill] sm:$0xff] %v11720_v22  ;;  %15867 = vst [vmem:[#allocation115_spill] sm:$0xff] %v11730_v60  ;;  %v15507_v54 = vrot.slane %v11720_v22, 7  ;;  %4155 = vmatmul.mubr.f32.gmra.mrb[72].mxu1 %v3890_v11  ;;  %v15509_v2 = vrot.slane %v11724_v14, 7  ;;  %v11760_v11 = vrot.slane %v3893_v55, %v10161_v36  ;;  %v1849_v59 = vcombine.low %v11312_v33, %v11322_v39 }
 0x16a   : > { %15868 = vst [vmem:[#allocation116_spill] sm:$0xff] %v11734_v35  ;;  %15869 = vst [vmem:[#allocation117_spill] sm:$0xff] %v11748_v13  ;;  %v11754_v4 = vsel %vm10931_vm12, %v3170_v44, %v15506_v27  ;;  %v1850_v24 = vcombine.high %v11312_v33, %v11322_v39  ;;  %v15871_v58 = vrot.slane %v11565_v10, 7  ;;  %v15872_v27 = vrot.slane %v11379_v53, 7 }
 0x16b   : > { %v3176_v43 = vrot.slane %v15507_v54, 2  ;;  %15870 = vst [vmem:[#allocation118_spill] sm:$0xff] %v11760_v11  ;;  %v3909_v57 = vcombine.high %v11734_v35, %v11760_v11  ;;  %v11784_v33 = vrot.slane %v1849_v59, %v10161_v36  ;;  %v15875_v53 = vrot.slane %v11569_v45, 7 }
 0x16c   : > { %v3136_v44 = vrot.slane %v15871_v58, 2  ;;  %v11773_v54 = vsel %vm10931_vm12, %v3139_v38, %v15872_v27  ;;  %v15874_v38 = vrot.slane %v11518_v29, 9  ;;  %v3908_v59 = vcombine.low %v11734_v35, %v11760_v11 }
 0x16d   : > { %15873 = vst [vmem:[#allocation119_spill] sm:$0xff] %v11773_v54  ;;  %v11779_v55 = vsel %vm10931_vm12, %v3176_v43, %v15509_v2  ;;  %v3410_v39 = vcombine.low %v11773_v54, %v11502_v31  ;;  %v15877_v2 = vld [vmem:[#allocation69_spill] sm:$0xff]  ;;  %v11804_v31 = vpop.f32.mrb[0].mxu1  ;;  %4159 = vmatprep.mubr.f32.mxu1 %v3909_v57  ;;  %v1865_v29 = vcombine.high %v11784_v33, %v11784_v33 }
 0x16e   : > { %v3135_v27 = vsel %vm10931_vm12, %v15874_v38, %v15871_v58  ;;  %v11798_v43 = vsel %vm10931_vm12, %v3136_v44, %v15875_v53  ;;  %v1867_v49 = vcombine.low %v15878_v6, %v15877_v2  ;;  %15879 = vst [vmem:[#allocation69_spill] sm:$0xff] %v11804_v31  ;;  %v11813_v53 = vpop.f32.mrb[1].mxu1  ;;  %v11816_v44 = vadd.f32 %v15791_v26, %v1811_v40 }
 0x16f   : > { %15876 = vst [vmem:[#allocation120_spill] sm:$0xff] %v11798_v43  ;;  %v3409_v58 = vcombine.low %v3135_v27, %v11798_v43  ;;  %v11811_v38 = vrot.slane %v3410_v39, %v10161_v36  ;;  %15881 = vst [vmem:[#allocation121_spill] sm:$0xff] %v11813_v53  ;;  %4160 = vmatmul.mubr.f32.gmra.mrb[74].mxu1 %v3908_v59  ;;  %v1868_v57 = vcombine.high %v15878_v6, %v15877_v2  ;;  %v11840_v53 = vpop.f32.mrb[2].mxu1 }
 0x170   : > { %15882 = vst [vmem:[#allocation122_spill] sm:$0xff] %v11816_v44  ;;  %v1875_v10 = vrot.slane %v1867_v49, %v10161_v36  ;;  %v15883_v31 = vrot.slane %v11712_v63, 7  ;;  %v11831_v40 = vadd.f32 %v10706_v30, %v1865_v29  ;;  %v15886_v59 = vrot.slane %v11730_v60, 7  ;;  %15887 = vst [vmem:[#allocation125_spill] sm:$0xff] %v11840_v53 }
 0x171   : > { %15880 = vst [vmem:[#allocation68_spill] sm:$0xff] %v11811_v38  ;;  %v3417_v35 = vrot.slane %v3409_v58, %v10161_v36  ;;  %v3165_v6 = vrot.slane %v11683_v23, 7  ;;  %v1882_v49 = vrot.slane %v1868_v57, %v10161_v36  ;;  %v1848_v29 = vcombine.high %v11701_v52, %v11701_v52 }
 0x172   : > { %v11827_v39 = vsel %vm10931_vm12, %v3154_v50, %v15883_v31  ;;  %15885 = vst [vmem:[#allocation124_spill] sm:$0xff] %v11831_v40  ;;  %v11836_v11 = vrot.slane %v15886_v59, 2  ;;  %v1883_v2 = vcombine.high %v1875_v10, %v1875_v10  ;;  %v15888_v31 = vrot.slane %v11748_v13, 7  ;;  %v11848_v40 = vpop.f32.mrb[3].mxu1 }
 0x173   : > { %15884 = vst [vmem:[#allocation123_spill] sm:$0xff] %v11827_v39  ;;  %v3426_v27 = vcombine.high %v3417_v35, %v11811_v38  ;;  %v3425_v58 = vcombine.low %v3417_v35, %v11811_v38  ;;  %15889 = vst [vmem:[#allocation126_spill] sm:$0xff] %v11848_v40  ;;  %v3911_v59 = vcombine.low %v11748_v13, %v11683_v23  ;;  %v15890_v53 = vrot.slane %v11469_v46, 7 }
 0x174   : > { %v3164_v50 = vrot.slane %v15888_v31, 2  ;;  %v1864_v57 = vrot.slane %v1850_v24, %v10161_v36  ;;  %v1884_v45 = vcombine.high %v1882_v49, %v1882_v49  ;;  %v11861_v52 = vadd.f32 %v10678_v12, %v1883_v2 }
 0x175   : > { %v11858_v31 = vsel %vm10931_vm12, %v11665_v32, %v15890_v53  ;;  %3689 = vmatprep.mubr.f32.mxu0 %v3426_v27  ;;  %v11864_v35 = vadd.f32 %v10667_v7, %v1882_v49  ;;  %v15894_v40 = vrot.slane %v11620_v5, 7  ;;  %v11875_v23 = vrot.slane %v3165_v6, 2  ;;  %v11884_v49 = vpop.f32.mrb[4].mxu1 }
 0x176   : > { %15891 = vst [vmem:[#allocation127_spill] sm:$0xff] %v11858_v31  ;;  %15892 = vst [vmem:[#allocation128_spill] sm:$0xff] %v11861_v52  ;;  %v3427_v38 = vcombine.low %v11858_v31, %v11534_v17  ;;  %3690 = vmatmul.mubr.f32.gmra.mrb[60].mxu0 %v3425_v58  ;;  %v11878_v32 = vadd.f32 %v10684_v18, %v1884_v45  ;;  %v3910_v27 = vcombine.low %v11744_v37, %v11730_v60  ;;  %v11896_v58 = vpop.f32.mrb[5].mxu1  ;;  %v15902_v17 = vld [vmem:[#allocation74_spill] sm:$0xff] }
 0x177   : > { %15893 = vst [vmem:[#allocation129_spill] sm:$0xff] %v11864_v35  ;;  %v11871_v24 = vsel %vm10931_vm12, %v11694_v62, %v15894_v40  ;;  %15896 = vst [vmem:[#allocation131_spill] sm:$0xff] %v11884_v49  ;;  %v11888_v62 = vsel %vm10931_vm12, %v3164_v50, %v3165_v6  ;;  %v11891_v40 = vadd.f32 %v10712_v34, %v1848_v29  ;;  %v15529_v2 = vrot.slane %v11861_v52, 7  ;;  %v7932_v50 = vld [vmem:[%s15365_s4 + $0x2c0] sm:$0xff]  ;;  %v7933_v29 = vld [vmem:[%s15365_s4 + $0x2c8] sm:$0xff] }
 0x178   : > { %15895 = vst [vmem:[#allocation130_spill] sm:$0xff] %v11871_v24  ;;  %v3428_v53 = vcombine.low %v11871_v24, %v11827_v39  ;;  %15897 = vst [vmem:[#allocation132_spill] sm:$0xff] %v11888_v62  ;;  %v1866_v5 = vcombine.high %v1864_v57, %v1864_v57  ;;  %v11899_v46 = vadd.f32 %v10657_v61, %v1864_v57  ;;  %v15534_v57 = vrot.slane %v11864_v35, 7 }
 0x179   : > { %15898 = vst [vmem:[#allocation133_spill] sm:$0xff] %v11896_v58  ;;  %v11902_v49 = vadd.f32 %v10662_v1, %v1875_v10  ;;  %v11905_v6 = vrot.slane %v3427_v38, %v10161_v36  ;;  %v3192_v45 = vrot.slane %v15529_v2, 2  ;;  %v3918_v38 = vrot.slane %v3910_v27, %v10161_v36  ;;  %v7916_v2 = vld [vmem:[%s15365_s4 + $0x240] sm:$0xff]  ;;  %v11934_v58 = vpop.f32.mrb[6].mxu1 }
 0x17a   : > { %v11918_v10 = vrot.slane %v3428_v53, %v10161_v36  ;;  %v11922_v39 = vrot.slane %v3911_v59, %v10161_v36  ;;  %v1885_v24 = vcombine.low %v15902_v17, %v11395_v42  ;;  %v1886_v31 = vcombine.high %v15902_v17, %v11395_v42  ;;  %v7917_v53 = vld [vmem:[%s15365_s4 + $0x248] sm:$0xff]  ;;  %15903 = vst [vmem:[#allocation74_spill] sm:$0xff] %v11934_v58  ;;  %v11946_v43 = vpop.f32.mrb[7].mxu1 }
 0x17b   : > { %15899 = vst [vmem:[#allocation134_spill] sm:$0xff] %v11905_v6  ;;  %v11940_v59 = vsel %vm10931_vm12, %v3192_v45, %v15534_v57  ;;  %v9482_v17 = vpack.c.bf16 %v7933_v29, %v7932_v50  ;;  %15904 = vst [vmem:[#allocation137_spill] sm:$0xff] %v11946_v43  ;;  %v11949_v54 = vadd.f32 %v10671_v9, %v1866_v5  ;;  %v11954_v45 = vpop.f32.mrb[8].mxu1  ;;  %v15906_v57 = vrot.slane %v11715_v21, 7 }
 0x17c   : > { %15900 = vst [vmem:[#allocation135_spill] sm:$0xff] %v11918_v10  ;;  %15901 = vst [vmem:[#allocation136_spill] sm:$0xff] %v11922_v39  ;;  %v3444_v27 = vcombine.high %v11905_v6, %v11918_v10  ;;  %v3443_v42 = vcombine.low %v11905_v6, %v11918_v10  ;;  %v3927_v58 = vcombine.high %v3918_v38, %v11922_v39  ;;  %v15915_v10 = vrot.slane %v11724_v14, 7 }
 0x17d   : > { %v1893_v44 = vrot.slane %v1885_v24, %v10161_v36  ;;  %v3926_v56 = vcombine.low %v3918_v38, %v11922_v39  ;;  %15905 = vst [vmem:[#allocation138_spill] sm:$0xff] %v11954_v45  ;;  %v11958_v41 = vrot.slane %v15906_v57, 2  ;;  %9483 = vmatprep.subr.bf16.mxu0 %v9482_v17  ;;  %v15907_v50 = vcombine.low %v11686_v0, %v11715_v21  ;;  %v11972_v45 = vpop.f32.mrb[9].mxu1 }
 0x17e   : > { %3694 = vmatprep.mubr.f32.mxu0 %v3444_v27  ;;  %v15909_v24 = vcombine.low %v11720_v22, %v11724_v14  ;;  %v9484_v38 = vpack.c.bf16 %v7917_v53, %v7916_v2  ;;  %15911 = vst [vmem:[#allocation141_spill] sm:$0xff] %v11972_v45  ;;  %v15912_v57 = vrot.slane %v11878_v32, 7  ;;  %4164 = vmatprep.mubr.f32.mxu1 %v3927_v58  ;;  %v11980_v39 = vpop.f32.mrb[10].mxu1  ;;  %v15935_v6 = vrot.slane %v11949_v54, 7  ;;  %v15936_v14 = vld [vmem:[#allocation17_spill] sm:$0xff] }
 0x17f   : > { %v11964_v5 = vrot.slane %v15907_v50, %v10161_v36  ;;  %3695 = vmatmul.mubr.f32.gmra.mrb[62].mxu0 %v3443_v42  ;;  %v1900_v27 = vrot.slane %v1886_v31, %v10161_v36  ;;  %v1901_v17 = vcombine.high %v1893_v44, %v1893_v44  ;;  %v11978_v50 = vadd.f32 %v10674_v3, %v1893_v44  ;;  %v11991_v58 = vpop.f32.mrb[11].mxu1 }
 0x180   : > { %v11970_v29 = vrot.slane %v15909_v24, %v10161_v36  ;;  %v3198_v43 = vrot.slane %v15912_v57, 2  ;;  %15914 = vst [vmem:[#allocation143_spill] sm:$0xff] %v11980_v39  ;;  %v11984_v24 = vrot.slane %v15915_v10, 2  ;;  %4165 = vmatmul.mubr.f32.gmra.mrb[76].mxu1 %v3926_v56  ;;  %9485 = vmatpush3.bf16.msra.mxu0 %v9484_v38  ;;  %v1903_v31 = vcombine.low %v11422_v47, %v11446_v28  ;;  %v12000_v56 = vpop.f32.mrb[12].mxu1 }
 0x181   : > { %15908 = vst [vmem:[#allocation139_spill] sm:$0xff] %v11964_v5  ;;  %15913 = vst [vmem:[#allocation142_spill] sm:$0xff] %v11978_v50  ;;  %v11995_v42 = vadd.f32 %v10695_v25, %v1901_v17  ;;  %v12006_v2 = vadd.f32 %v15791_v26, %v11784_v33  ;;  %v1904_v44 = vcombine.high %v11422_v47, %v11446_v28  ;;  %v12013_v10 = vpop.f32.mrb[13].mxu1  ;;  %v15920_v38 = vrot.slane %v11978_v50, 7 }
 0x182   : > { %15910 = vst [vmem:[#allocation140_spill] sm:$0xff] %v11970_v29  ;;  %v3945_v53 = vcombine.high %v11964_v5, %v11970_v29  ;;  %15916 = vst [vmem:[#allocation144_spill] sm:$0xff] %v11991_v58  ;;  %v12011_v17 = vrot.slane %v1903_v31, %v10161_v36  ;;  %v1902_v58 = vcombine.high %v1900_v27, %v1900_v27  ;;  %v15922_v28 = vrot.slane %v11902_v49, 7 }
 0x183   : > { %15917 = vst [vmem:[#allocation145_spill] sm:$0xff] %v12000_v56  ;;  %15918 = vst [vmem:[#allocation146_spill] sm:$0xff] %v12006_v2  ;;  %v12021_v33 = vsel %vm10931_vm12, %v3198_v43, %v15920_v38  ;;  %v15925_v47 = vrot.slane %v11730_v60, 7  ;;  %v15927_v57 = vrot.slane %v11748_v13, 7  ;;  %v7960_v43 = vld [vmem:[%s15365_s4 + $0x3a0] sm:$0xff]  ;;  %v15930_v39 = vrot.slane %v11864_v35, 7 }
 0x184   : > { %4169 = vmatprep.mubr.f32.mxu1 %v3945_v53  ;;  %15919 = vst [vmem:[#allocation147_spill] sm:$0xff] %v12013_v10  ;;  %v12023_v53 = vpop.f32.mrb[14].mxu1  ;;  %v12029_v31 = vrot.slane %v15922_v28, 2  ;;  %v12040_v38 = vadd.f32 %v10706_v30, %v12011_v17  ;;  %v15937_v21 = vrot.slane %v15936_v14, 7 }
 0x185   : > { %15921 = vst [vmem:[#allocation148_spill] sm:$0xff] %v12023_v53  ;;  %v12034_v10 = vpop.f32.mrb[15].mxu1  ;;  %v15926_v53 = vrot.slane %v11744_v37, 9  ;;  %v12053_v56 = vsel %vm10931_vm12, %v11836_v11, %v15927_v57  ;;  %v12062_v45 = vrot.slane %v15930_v39, 2  ;;  %v12065_v37 = vadd.f32 %v10712_v34, %v1900_v27  ;;  %v7961_v11 = vld [vmem:[%s15365_s4 + $0x3a8] sm:$0xff]  ;;  %v7944_v57 = vld [vmem:[%s15365_s4 + $0x320] sm:$0xff] }
 0x186   : > { %15923 = vst [vmem:[#allocation149_spill] sm:$0xff] %v12034_v10  ;;  %15924 = vst [vmem:[#allocation150_spill] sm:$0xff] %v12040_v38  ;;  %v12058_v10 = vpop.f32.mrb[16].mxu1  ;;  %v7945_v39 = vld [vmem:[%s15365_s4 + $0x328] sm:$0xff]  ;;  %v12081_v27 = vadd.f32 %v15791_v26, %v1902_v58  ;;  %v12092_v38 = vrot.slane %v15935_v6, 2  ;;  %v12096_v60 = vrot.slane %v15937_v21, 2  ;;  %v1919_v21 = vcombine.high %v12011_v17, %v12011_v17 }
 0x187   : > { %v3160_v28 = vsel %vm10931_vm12, %v15926_v53, %v15925_v47  ;;  %15928 = vst [vmem:[#allocation151_spill] sm:$0xff] %v12053_v56  ;;  %15929 = vst [vmem:[#allocation152_spill] sm:$0xff] %v12058_v10  ;;  %v1918_v53 = vrot.slane %v1904_v44, %v10161_v36  ;;  %v12078_v10 = vpop.f32.mrb[17].mxu1  ;;  %v15933_v44 = vrot.slane %v11686_v0, 7  ;;  %v15939_v58 = vrot.slane %v11995_v42, 7  ;;  %v7934_v17 = vld [vmem:[%s15365_s4 + $0x2d0] sm:$0xff] }
 0x188   : > { %v3445_v47 = vcombine.low %v3160_v28, %v12053_v56  ;;  %15931 = vst [vmem:[#allocation153_spill] sm:$0xff] %v12078_v10  ;;  %15932 = vst [vmem:[#allocation154_spill] sm:$0xff] %v12081_v27  ;;  %v12098_v13 = vpop.f32.mrb[18].mxu1  ;;  %v9506_v0 = vpack.c.bf16 %v7961_v11, %v7960_v43  ;;  %v9508_v56 = vpack.c.bf16 %v7945_v39, %v7944_v57  ;;  %v7935_v43 = vld [vmem:[%s15365_s4 + $0x2d8] sm:$0xff] }
 0x189   : > { %v12088_v28 = vsel %vm10931_vm12, %v11875_v23, %v15933_v44  ;;  %15938 = vst [vmem:[#allocation156_spill] sm:$0xff] %v12098_v13  ;;  %v3204_v10 = vrot.slane %v15939_v58, 2  ;;  %v12108_v6 = vpop.f32.mrb[19].mxu1  ;;  %v3944_v13 = vcombine.low %v11964_v5, %v11970_v29  ;;  %v1920_v2 = vcombine.high %v1918_v53, %v1918_v53 }
 0x18a   : > { %15934 = vst [vmem:[#allocation155_spill] sm:$0xff] %v12088_v28  ;;  %v3446_v44 = vcombine.low %v11888_v62, %v12088_v28  ;;  %15940 = vst [vmem:[#allocation157_spill] sm:$0xff] %v12108_v6  ;;  %v12114_v58 = vpop.f32.mrb[20].mxu1  ;;  %v3453_v27 = vrot.slane %v3445_v47, %v10161_v36  ;;  %v15943_v28 = vld [vmem:[#allocation87_spill] sm:$0xff]  ;;  %v12132_v47 = vadd.f32 %v10671_v9, %v1918_v53  ;;  %9507 = vmatprep.subr.bf16.mxu1 %v9506_v0  ;;  %v7963_v9 = vld [vmem:[%s15365_s4 + $0x3b8] sm:$0xff] }
 0x18b   : > { %15941 = vst [vmem:[#allocation158_spill] sm:$0xff] %v12114_v58  ;;  %v1921_v62 = vcombine.low %v15943_v28, %v11485_v15  ;;  %v12128_v11 = vpop.f32.mrb[21].mxu1  ;;  %4170 = vmatmul.mubr.f32.gmra.mrb[78].mxu1 %v3944_v13  ;;  %v1922_v39 = vcombine.high %v15943_v28, %v11485_v15 }
 0x18c   : > { %v12118_v23 = vrot.slane %v3446_v44, %v10161_v36  ;;  %15944 = vst [vmem:[#allocation87_spill] sm:$0xff] %v12128_v11  ;;  %15945 = vst [vmem:[#allocation160_spill] sm:$0xff] %v12132_v47  ;;  %v15946_v44 = vrot.slane %v11720_v22, 7  ;;  %v7962_v11 = vld [vmem:[%s15365_s4 + $0x3b0] sm:$0xff]  ;;  %v12149_v13 = vpop.f32.mrb[22].mxu1  ;;  %9509 = vmatpush3.bf16.msra.mxu1 %v9508_v56  ;;  %v9486_v56 = vpack.c.bf16 %v7935_v43, %v7934_v17 }
 0x18d   : > { %15947 = vst [vmem:[#allocation161_spill] sm:$0xff] %v12149_v13  ;;  %v1929_v53 = vrot.slane %v1921_v62, %v10161_v36  ;;  %v1936_v57 = vrot.slane %v1922_v39, %v10161_v36  ;;  %v15952_v62 = vrot.slane %v12065_v37, 7 }
 0x18e   : > { %15942 = vst [vmem:[#allocation159_spill] sm:$0xff] %v12118_v23  ;;  %v12141_v58 = vsel %vm10931_vm12, %v11958_v41, %v15946_v44  ;;  %v3462_v0 = vcombine.high %v3453_v27, %v12118_v23  ;;  %v3461_v15 = vcombine.low %v3453_v27, %v12118_v23  ;;  %v15948_v41 = vrot.slane %v11891_v40, 7  ;;  %v12161_v44 = vpop.f32.mrb[23].mxu1  ;;  %9487 = vmatprep.subr.bf16.mxu0 %v9486_v56  ;;  %v7919_v56 = vld [vmem:[%s15365_s4 + $0x258] sm:$0xff]  ;;  %v15972_v23 = vld [vmem:[#allocation91_spill] sm:$0xff] }
 0x18f   : > { %15950 = vst [vmem:[#allocation163_spill] sm:$0xff] %v12161_v44  ;;  %v3463_v13 = vcombine.low %v11754_v4, %v12141_v58  ;;  %v12168_v6 = vpop.f32.mrb[24].mxu1  ;;  %v12174_v29 = vsel %vm10931_vm12, %v3204_v10, %v15952_v62  ;;  %v1937_v39 = vcombine.high %v1929_v53, %v1929_v53  ;;  %v1938_v5 = vcombine.high %v1936_v57, %v1936_v57  ;;  %v7964_v62 = vld [vmem:[%s15365_s4 + $0x3c0] sm:$0xff] }
 0x190   : > { %v12159_v28 = vsel %vm10931_vm12, %v11984_v24, %v15948_v41  ;;  %15951 = vst [vmem:[#allocation164_spill] sm:$0xff] %v12168_v6  ;;  %v12177_v24 = vadd.f32 %v10662_v1, %v1920_v2  ;;  %3699 = vmatprep.mubr.f32.mxu0 %v3462_v0  ;;  %v9510_v41 = vpack.c.bf16 %v7963_v9, %v7962_v11  ;;  %v12179_v44 = vpop.f32.mrb[25].mxu1  ;;  %v15959_v1 = vrot.slane %v11978_v50, 7 }
 0x191   : > { %15949 = vst [vmem:[#allocation162_spill] sm:$0xff] %v12159_v28  ;;  %v3464_v27 = vcombine.low %v11779_v55, %v12159_v28  ;;  %15954 = vst [vmem:[#allocation166_spill] sm:$0xff] %v12179_v44  ;;  %3700 = vmatmul.mubr.f32.gmra.mrb[64].mxu0 %v3461_v15  ;;  %v12182_v17 = vadd.f32 %v10684_v18, %v1936_v57  ;;  %v12185_v43 = vrot.slane %v3463_v13, %v10161_v36  ;;  %v12190_v10 = vpop.f32.mrb[26].mxu1  ;;  %v7946_v13 = vld [vmem:[%s15365_s4 + $0x330] sm:$0xff] }
 0x192   : > { %15953 = vst [vmem:[#allocation165_spill] sm:$0xff] %v12177_v24  ;;  %15958 = vst [vmem:[#allocation170_spill] sm:$0xff] %v12190_v10  ;;  %v12194_v2 = vrot.slane %v15959_v1, 2  ;;  %v12197_v11 = vadd.f32 %v10657_v61, %v1919_v21  ;;  %v12200_v9 = vadd.f32 %v10667_v7, %v1937_v39  ;;  %9511 = vmatprep.subr.bf16.mxu1 %v9510_v41  ;;  %v12211_v0 = vpop.f32.mrb[27].mxu1 }
 0x193   : > { %15955 = vst [vmem:[#allocation167_spill] sm:$0xff] %v12182_v17  ;;  %15956 = vst [vmem:[#allocation168_spill] sm:$0xff] %v12185_v43  ;;  %v12188_v6 = vrot.slane %v3464_v27, %v10161_v36  ;;  %v15961_v18 = vcombine.low %v11902_v49, %v11861_v52  ;;  %v12214_v61 = vadd.f32 %v10678_v12, %v1929_v53  ;;  %v7918_v27 = vld [vmem:[%s15365_s4 + $0x250] sm:$0xff]  ;;  %v7947_v12 = vld [vmem:[%s15365_s4 + $0x338] sm:$0xff]  ;;  %v15975_v22 = vrot.slane %v12182_v17, 7 }
 0x194   : > { %15960 = vst [vmem:[#allocation171_spill] sm:$0xff] %v12200_v9  ;;  %15963 = vst [vmem:[#allocation173_spill] sm:$0xff] %v12211_v0  ;;  %v12217_v7 = vadd.f32 %v10674_v3, %v1938_v5  ;;  %v12232_v3 = vpop.f32.mrb[28].mxu1  ;;  %v15966_v39 = vcombine.low %v11899_v46, %v11949_v54  ;;  %v9512_v0 = vpack.c.bf16 %v7947_v12, %v7946_v13  ;;  %v7949_v5 = vld [vmem:[%s15365_s4 + $0x348] sm:$0xff] }
 0x195   : > { %15957 = vst [vmem:[#allocation169_spill] sm:$0xff] %v12188_v6  ;;  %v12206_v57 = vrot.slane %v15961_v18, %v10161_v36  ;;  %15964 = vst [vmem:[#allocation174_spill] sm:$0xff] %v12214_v61  ;;  %v3480_v21 = vcombine.high %v12185_v43, %v12188_v6  ;;  %v3479_v15 = vcombine.low %v12185_v43, %v12188_v6  ;;  %v12242_v1 = vpop.f32.mrb[29].mxu1  ;;  %v15969_v18 = vrot.slane %v12200_v9, 7  ;;  %v15971_v6 = vld [vmem:[#allocation92_spill] sm:$0xff] }
 0x196   : > { %15965 = vst [vmem:[#allocation175_spill] sm:$0xff] %v12232_v3  ;;  %v3954_v41 = vrot.slane %v15966_v39, %v10161_v36  ;;  %15967 = vst [vmem:[#allocation176_spill] sm:$0xff] %v12242_v1  ;;  %v7965_v39 = vld [vmem:[%s15365_s4 + $0x3c8] sm:$0xff]  ;;  %v12256_v53 = vpop.f32.mrb[30].mxu1  ;;  %v9488_v1 = vpack.c.bf16 %v7919_v56, %v7918_v27  ;;  %v15974_v56 = vrot.slane %v12177_v24, 7  ;;  %v3215_v43 = vrot.slane %v12214_v61, 7  ;;  %9513 = vmatpush3.bf16.msra.mxu1 %v9512_v0 }
 0x197   : > { %15962 = vst [vmem:[#allocation172_spill] sm:$0xff] %v12206_v57  ;;  %3704 = vmatprep.mubr.f32.mxu0 %v3480_v21  ;;  %15968 = vst [vmem:[#allocation177_spill] sm:$0xff] %v12256_v53  ;;  %v3220_v10 = vrot.slane %v15969_v18, 2  ;;  %v7948_v21 = vld [vmem:[%s15365_s4 + $0x340] sm:$0xff]  ;;  %v12267_v44 = vpop.f32.mrb[31].mxu1  ;;  %v1939_v18 = vcombine.low %v15972_v23, %v15971_v6  ;;  %v15981_v0 = vcombine.low %v11864_v35, %v11878_v32 }
 0x198   : > { %3705 = vmatmul.mubr.f32.gmra.mrb[66].mxu0 %v3479_v15  ;;  %v3963_v3 = vcombine.high %v3954_v41, %v12206_v57  ;;  %15970 = vst [vmem:[#allocation178_spill] sm:$0xff] %v12267_v44  ;;  %v1940_v15 = vcombine.high %v15972_v23, %v15971_v6  ;;  %v3962_v13 = vcombine.low %v3954_v41, %v12206_v57  ;;  %v12275_v27 = vpop.f32.mrb[32].mxu1  ;;  %v3214_v12 = vrot.slane %v15974_v56, 2 }
 0x199   : > { %15973 = vst [vmem:[#allocation92_spill] sm:$0xff] %v12275_v27  ;;  %v12284_v53 = vsel %vm10931_vm12, %v3220_v10, %v15975_v22  ;;  %9489 = vmatpush3.bf16.msra.mxu0 %v9488_v1  ;;  %v9514_v44 = vpack.c.bf16 %v7965_v39, %v7964_v62  ;;  %v12286_v28 = vpop.f32.mrb[33].mxu1  ;;  %v1947_v23 = vrot.slane %v1939_v18, %v10161_v36  ;;  %v15980_v22 = vrot.slane %v12217_v7, 7 }
 0x19a   : > { %4174 = vmatprep.mubr.f32.mxu1 %v3963_v3  ;;  %15976 = vst [vmem:[#allocation91_spill] sm:$0xff] %v12286_v28  ;;  %v1954_v6 = vrot.slane %v1940_v15, %v10161_v36  ;;  %v15977_v41 = vcombine.low %v11978_v50, %v11995_v42  ;;  %v9516_v57 = vpack.c.bf16 %v7949_v5, %v7948_v21  ;;  %v12296_v27 = vpop.f32.mrb[34].mxu1  ;;  %v15983_v62 = vrot.slane %v11949_v54, 7  ;;  %v7921_v28 = vld [vmem:[%s15365_s4 + $0x268] sm:$0xff]  ;;  %v7968_v50 = vld [vmem:[%s15365_s4 + $0x3e0] sm:$0xff] }
 0x19b   : > { %15979 = vst [vmem:[#allocation180_spill] sm:$0xff] %v12296_v27  ;;  %v3226_v10 = vrot.slane %v15980_v22, 2  ;;  %4175 = vmatmul.mubr.f32.gmra.mrb[80].mxu1 %v3962_v13  ;;  %9515 = vmatprep.subr.bf16.mxu1 %v9514_v44  ;;  %v12304_v3 = vrot.slane %v15981_v0, %v10161_v36  ;;  %v15984_v1 = vrot.slane %v11899_v46, 9  ;;  %v15985_v39 = vrot.slane %v11902_v49, 7  ;;  %v12319_v44 = vpop.f32.mrb[35].mxu1  ;;  %v7936_v22 = vld [vmem:[%s15365_s4 + $0x2e0] sm:$0xff] }
 0x19c   : > { %v12294_v56 = vrot.slane %v15977_v41, %v10161_v36  ;;  %15986 = vst [vmem:[#allocation182_spill] sm:$0xff] %v12319_v44  ;;  %v1955_v18 = vcombine.high %v1947_v23, %v1947_v23  ;;  %v1956_v15 = vcombine.high %v1954_v6, %v1954_v6  ;;  %v12322_v13 = vadd.f32 %v10695_v25, %v1947_v23  ;;  %v12337_v0 = vpop.f32.mrb[36].mxu1 }
 0x19d   : > { %15982 = vst [vmem:[#allocation181_spill] sm:$0xff] %v12304_v3  ;;  %v3185_v5 = vsel %vm10931_vm12, %v15984_v1, %v15983_v62  ;;  %v12317_v21 = vsel %vm10931_vm12, %v12092_v38, %v15985_v39  ;;  %v15987_v41 = vrot.slane %v11861_v52, 7  ;;  %v7937_v38 = vld [vmem:[%s15365_s4 + $0x2e8] sm:$0xff]  ;;  %15988 = vst [vmem:[#allocation183_spill] sm:$0xff] %v12337_v0  ;;  %v12346_v1 = vpop.f32.mrb[37].mxu1  ;;  %v7875_v39 = vrot.slane %v12197_v11, 9  ;;  %9517 = vmatpush3.bf16.msra.mxu1 %v9516_v57 }
 0x19e   : > { %15978 = vst [vmem:[#allocation179_spill] sm:$0xff] %v12294_v56  ;;  %v3981_v25 = vcombine.high %v12304_v3, %v12294_v56  ;;  %v3481_v23 = vcombine.low %v3185_v5, %v12317_v21  ;;  %15989 = vst [vmem:[#allocation184_spill] sm:$0xff] %v12346_v1  ;;  %v3227_v0 = vrot.slane %v12322_v13, 7  ;;  %v4001_v44 = vcombine.low %v12217_v7, %v12322_v13  ;;  %v7966_v5 = vld [vmem:[%s15365_s4 + $0x3d0] sm:$0xff] }
 0x19f   : > { %v12329_v46 = vsel %vm10931_vm12, %v12029_v31, %v15987_v41  ;;  %v3980_v31 = vcombine.low %v12304_v3, %v12294_v56  ;;  %v12350_v41 = vadd.f32 %v10706_v30, %v1956_v15  ;;  %v7967_v56 = vld [vmem:[%s15365_s4 + $0x3d8] sm:$0xff]  ;;  %v7920_v3 = vld [vmem:[%s15365_s4 + $0x260] sm:$0xff]  ;;  %v12364_v30 = vpop.f32.mrb[38].mxu1  ;;  %v3983_v15 = vcombine.low %v12177_v24, %v12214_v61 }
 0x1a0   : > { %v3482_v62 = vcombine.low %v12329_v46, %v11940_v59  ;;  %15991 = vst [vmem:[#allocation186_spill] sm:$0xff] %v12364_v30  ;;  %4179 = vmatprep.mubr.f32.mxu1 %v3981_v25  ;;  %v3489_v57 = vrot.slane %v3481_v23, %v10161_v36  ;;  %v9490_v27 = vpack.c.bf16 %v7937_v38, %v7936_v22  ;;  %v7951_v30 = vld [vmem:[%s15365_s4 + $0x358] sm:$0xff]  ;;  %v12381_v61 = vpop.f32.mrb[39].mxu1  ;;  %v15994_v25 = vrot.slane %v12132_v47, 7 }
 0x1a1   : > { %15990 = vst [vmem:[#allocation185_spill] sm:$0xff] %v12350_v41  ;;  %v7950_v41 = vld [vmem:[%s15365_s4 + $0x350] sm:$0xff]  ;;  %15993 = vst [vmem:[#allocation188_spill] sm:$0xff] %v12381_v61  ;;  %v12387_v22 = vsel %vm10931_vm12, %v3214_v12, %v3215_v43  ;;  %v3217_v38 = vrot.slane %v3215_v43, 2  ;;  %4180 = vmatmul.mubr.f32.gmra.mrb[82].mxu1 %v3980_v31  ;;  %v12396_v35 = vpop.f32.mrb[40].mxu1  ;;  %v12399_v61 = vadd.f32 %v10712_v34, %v1955_v18  ;;  %v7952_v31 = vld [vmem:[%s15365_s4 + $0x360] sm:$0xff] }
 0x1a2   : > { %v12370_v1 = vrot.slane %v3482_v62, %v10161_v36  ;;  %v3211_v23 = vrot.slane %v15994_v25, 2  ;;  %v12391_v62 = vsel %vm10931_vm12, %v3226_v10, %v3227_v0  ;;  %15995 = vst [vmem:[#allocation189_spill] sm:$0xff] %v12396_v35  ;;  %v12402_v25 = vadd.f32 %v15791_v26, %v1954_v6  ;;  %9491 = vmatprep.subr.bf16.mxu0 %v9490_v27  ;;  %v7969_v10 = vld [vmem:[%s15365_s4 + $0x3e8] sm:$0xff]  ;;  %v12415_v18 = vpop.f32.mrb[41].mxu1 }
 0x1a3   : > { %v7953_v34 = vld [vmem:[%s15365_s4 + $0x368] sm:$0xff]  ;;  %15997 = vst [vmem:[#allocation191_spill] sm:$0xff] %v12415_v18  ;;  %v9518_v26 = vpack.c.bf16 %v7967_v56, %v7966_v5  ;;  %v9492_v6 = vpack.c.bf16 %v7921_v28, %v7920_v3  ;;  %v9520_v35 = vpack.c.bf16 %v7951_v30, %v7950_v41  ;;  %v3982_v56 = vcombine.low %v12197_v11, %v12132_v47 }
 0x1a4   : > { %15992 = vst [vmem:[#allocation187_spill] sm:$0xff] %v12370_v1  ;;  %15996 = vst [vmem:[#allocation190_spill] sm:$0xff] %v12402_v25  ;;  %v3498_v12 = vcombine.high %v3489_v57, %v12370_v1  ;;  %v3497_v43 = vcombine.low %v3489_v57, %v12370_v1  ;;  %v15998_v57 = vrot.slane %v11878_v32, 7  ;;  %v12424_v1 = vpop.f32.mrb[42].mxu1  ;;  %v16000_v25 = vrot.slane %v11995_v42, 7 }
 0x1a5   : > { %15999 = vst [vmem:[#allocation192_spill] sm:$0xff] %v12424_v1  ;;  %v12438_v3 = vrot.slane %v3983_v15, %v10161_v36  ;;  %v16003_v41 = vrot.slane %v12182_v17, 7  ;;  %9519 = vmatprep.subr.bf16.mxu1 %v9518_v26  ;;  %v9522_v30 = vpack.c.bf16 %v7969_v10, %v7968_v50  ;;  %9493 = vmatpush3.bf16.msra.mxu0 %v9492_v6  ;;  %v16011_v10 = vrot.slane %v12177_v24, 7  ;;  %v7970_v6 = vld [vmem:[%s15365_s4 + $0x3f0] sm:$0xff] }
 0x1a6   : > { %v12422_v27 = vsel %vm10931_vm12, %v12062_v45, %v15998_v57  ;;  %3709 = vmatprep.mubr.f32.mxu0 %v3498_v12  ;;  %v12431_v52 = vsel %vm10931_vm12, %v12194_v2, %v16000_v25  ;;  %v12440_v45 = vpop.f32.mrb[43].mxu1  ;;  %v9524_v25 = vpack.c.bf16 %v7953_v34, %v7952_v31  ;;  %v3229_v57 = vrot.slane %v3227_v0, 2  ;;  %9521 = vmatpush3.bf16.msra.mxu1 %v9520_v35  ;;  %v7938_v34 = vld [vmem:[%s15365_s4 + $0x2f0] sm:$0xff] }
 0x1a7   : > { %v3499_v28 = vcombine.low %v12422_v27, %v12021_v33  ;;  %16001 = vst [vmem:[#allocation193_spill] sm:$0xff] %v12438_v3  ;;  %16002 = vst [vmem:[#allocation194_spill] sm:$0xff] %v12440_v45  ;;  %v3223_v5 = vrot.slane %v16003_v41, 2  ;;  %3710 = vmatmul.mubr.f32.gmra.mrb[68].mxu0 %v3497_v43  ;;  %v3500_v2 = vcombine.low %v12431_v52, %v12174_v29  ;;  %v12446_v12 = vpop.f32.mrb[44].mxu1  ;;  %9523 = vmatprep.subr.bf16.mxu1 %v9522_v30  ;;  %v7971_v30 = vld [vmem:[%s15365_s4 + $0x3f8] sm:$0xff] }
 0x1a8   : > { %16004 = vst [vmem:[#allocation195_spill] sm:$0xff] %v12446_v12  ;;  %v3990_v15 = vrot.slane %v3982_v56, %v10161_v36  ;;  %v16006_v43 = vcombine.low %v12200_v9, %v12182_v17  ;;  %v12462_v50 = vrot.slane %v4001_v44, %v10161_v36  ;;  %v16010_v35 = vrot.slane %v12132_v47, 7  ;;  %v7939_v44 = vld [vmem:[%s15365_s4 + $0x2f8] sm:$0xff] }
 0x1a9   : > { %v12449_v11 = vrot.slane %v3499_v28, %v10161_v36  ;;  %v12459_v41 = vrot.slane %v3500_v2, %v10161_v36  ;;  %v12472_v31 = vsel %vm10931_vm12, %v3211_v23, %v16011_v10  ;;  %v16012_v56 = vrot.slane %v12200_v9, 7 }
 0x1aa   : > { %v12456_v26 = vrot.slane %v16006_v43, %v10161_v36  ;;  %16009 = vst [vmem:[#allocation199_spill] sm:$0xff] %v12462_v50  ;;  %v3210_v0 = vsel %vm10931_vm12, %v7875_v39, %v16010_v35  ;;  %v3999_v39 = vcombine.high %v3990_v15, %v12438_v3  ;;  %v3998_v28 = vcombine.low %v3990_v15, %v12438_v3  ;;  %v7922_v43 = vld [vmem:[%s15365_s4 + $0x270] sm:$0xff]  ;;  %v7923_v15 = vld [vmem:[%s15365_s4 + $0x278] sm:$0xff]  ;;  %v12501_v35 = vpop.f32.mrb[45].mxu1 }
 0x1ab   : > { %16005 = vst [vmem:[#allocation196_spill] sm:$0xff] %v12449_v11  ;;  %16008 = vst [vmem:[#allocation198_spill] sm:$0xff] %v12459_v41  ;;  %v12489_v23 = vsel %vm10931_vm12, %v3217_v38, %v16012_v56  ;;  %v3517_v2 = vcombine.low %v3210_v0, %v12472_v31  ;;  %v3516_v38 = vcombine.high %v12449_v11, %v12459_v41  ;;  %v7954_v3 = vld [vmem:[%s15365_s4 + $0x370] sm:$0xff]  ;;  %v12517_v12 = vpop.f32.mrb[46].mxu1  ;;  %9525 = vmatpush3.bf16.msra.mxu1 %v9524_v25 }
 0x1ac   : > { %16007 = vst [vmem:[#allocation197_spill] sm:$0xff] %v12456_v26  ;;  %16013 = vst [vmem:[#allocation200_spill] sm:$0xff] %v12501_v35  ;;  %v3515_v0 = vcombine.low %v12449_v11, %v12459_v41  ;;  %v4017_v10 = vcombine.high %v12456_v26, %v12462_v50  ;;  %v3518_v56 = vcombine.low %v12387_v22, %v12489_v23  ;;  %v7955_v35 = vld [vmem:[%s15365_s4 + $0x378] sm:$0xff]  ;;  %4184 = vmatprep.mubr.f32.mxu1 %v3999_v39  ;;  %v12523_v11 = vpop.f32.mrb[47].mxu1 }
 0x1ad   : > { %16014 = vst [vmem:[#allocation201_spill] sm:$0xff] %v12517_v12  ;;  %v3525_v41 = vrot.slane %v3517_v2, %v10161_v36  ;;  %v4016_v1 = vcombine.low %v12456_v26, %v12462_v50  ;;  %v9494_v18 = vpack.c.bf16 %v7939_v44, %v7938_v34  ;;  %16015 = vst [vmem:[#allocation202_spill] sm:$0xff] %v12523_v11  ;;  %3714 = vmatprep.mubr.f32.mxu0 %v3516_v38  ;;  %v16017_v12 = vld [vmem:[#allocation10_spill] sm:$0xff]  ;;  %v12529_v45 = vpop.f32.mrb[48].mxu1  ;;  %v16019_v39 = vld [vmem:[#allocation25_spill] sm:$0xff] }
 0x1ae   : > { %4185 = vmatmul.mubr.f32.gmra.mrb[84].mxu1 %v3998_v28  ;;  %v12526_v17 = vrot.slane %v3518_v56, %v10161_v36  ;;  %v9526_v9 = vpack.c.bf16 %v7971_v30, %v7970_v6  ;;  %v9496_v47 = vpack.c.bf16 %v7923_v15, %v7922_v43  ;;  %v15593_v24 = vrot.slane %v16017_v12, 7  ;;  %16018 = vst [vmem:[#allocation10_spill] sm:$0xff] %v12529_v45  ;;  %v16020_v2 = vld [vmem:[#allocation24_spill] sm:$0xff]  ;;  %v16021_v34 = vld [vmem:[#allocation26_spill] sm:$0xff]  ;;  %v16022_v44 = vld [vmem:[#allocation23_spill] sm:$0xff] }
 0x1af   : > { %3715 = vmatmul.mubr.f32.gmra.mrb[70].mxu0 %v3515_v0  ;;  %4189 = vmatprep.mubr.f32.mxu1 %v4017_v10  ;;  %v9528_v25 = vpack.c.bf16 %v7955_v35, %v7954_v3  ;;  %v4774_v50 = vcombine.low %v16020_v2, %v16019_v39  ;;  %v4775_v26 = vcombine.low %v16022_v44, %v16021_v34  ;;  %v16023_v30 = vrot.slane %v12217_v7, 7  ;;  %v12553_v0 = vpop.f32.mrb[49].mxu1  ;;  %v16030_v2 = vld [vmem:[#allocation28_spill] sm:$0xff]  ;;  %v16031_v34 = vld [vmem:[#allocation27_spill] sm:$0xff] }
 0x1b0   : > { %16016 = vst [vmem:[#allocation203_spill] sm:$0xff] %v12526_v17  ;;  %v3534_v28 = vcombine.high %v3525_v41, %v12526_v17  ;;  %9495 = vmatprep.subr.bf16.mxu0 %v9494_v18  ;;  %9527 = vmatprep.subr.bf16.mxu1 %v9526_v9  ;;  %v3533_v6 = vcombine.low %v3525_v41, %v12526_v17  ;;  %v16024_v35 = vrot.slane %v12399_v61, 7  ;;  %v16025_v9 = vld [vmem:[#allocation37_spill] sm:$0xff]  ;;  %16027 = vst [vmem:[#allocation25_spill] sm:$0xff] %v12553_v0  ;;  %v12573_v56 = vpop.f32.mrb[50].mxu1  ;;  %v16037_v10 = vld [vmem:[#allocation4_spill] sm:$0xff] }
 0x1b1   : > { %v12541_v43 = vsel %vm10931_vm12, %v3223_v5, %v16023_v30  ;;  %9497 = vmatpush3.bf16.msra.mxu0 %v9496_v47  ;;  %9529 = vmatpush3.bf16.msra.mxu1 %v9528_v25  ;;  %v4782_v3 = vrot.slane %v4774_v50, %v10161_v36  ;;  %v4789_v15 = vrot.slane %v4775_v26, %v10161_v36  ;;  %v16026_v41 = vrot.slane %v16025_v9, 7  ;;  %v7988_v26 = vld [vmem:[%s15365_s4 + $0x480] sm:$0xff]  ;;  %v16028_v50 = vld [vmem:[#allocation19_spill] sm:$0xff]  ;;  %v12579_v30 = vpop.f32.mrb[51].mxu1  ;;  %v16039_v0 = vld [vmem:[#allocation5_spill] sm:$0xff] }
 0x1b2   : > { %v12549_v18 = vsel %vm10931_vm12, %v3229_v57, %v16024_v35  ;;  %3719 = vmatprep.mubr.f32.mxu0 %v3534_v28  ;;  %4190 = vmatmul.mubr.f32.gmra.mrb[86].mxu1 %v4016_v1  ;;  %v3535_v47 = vcombine.low %v12284_v53, %v12541_v43  ;;  %v12564_v57 = vsel %vm10931_vm12, %v12096_v60, %v15593_v24  ;;  %v7989_v1 = vld [vmem:[%s15365_s4 + $0x488] sm:$0xff]  ;;  %v16032_v60 = vld [vmem:[#allocation29_spill] sm:$0xff]  ;;  %v16036_v24 = vld [vmem:[#allocation6_spill] sm:$0xff] }
 0x1b3   : > { %v4720_v38 = vrot.slane %v16026_v41, 2  ;;  %v3536_v5 = vcombine.low %v12391_v62, %v12549_v18  ;;  %16029 = vst [vmem:[#allocation24_spill] sm:$0xff] %v12573_v56  ;;  %3720 = vmatmul.mubr.f32.gmra.mrb[72].mxu0 %v3533_v6  ;;  %v4790_v25 = vcombine.low %v4782_v3, %v4789_v15  ;;  %v4791_v39 = vcombine.high %v4782_v3, %v4789_v15  ;;  %v16038_v6 = vld [vmem:[#allocation12_spill] sm:$0xff]  ;;  %v12591_v15 = vpop.f32.mrb[52].mxu1 }
 0x1b4   : > { %v4792_v44 = vcombine.low %v16031_v34, %v16030_v2  ;;  %v4793_v28 = vcombine.low %v16032_v60, %v12564_v57  ;;  %16033 = vst [vmem:[#allocation26_spill] sm:$0xff] %v12579_v30  ;;  %v12582_v35 = vrot.slane %v3535_v47, %v10161_v36  ;;  %v4228_v56 = vcombine.low %v16037_v10, %v16036_v24  ;;  %v16041_v30 = vld [vmem:[#allocation52_spill] sm:$0xff]  ;;  %v7973_v24 = vld [vmem:[%s15365_s4 + $0x408] sm:$0xff] }
 0x1b5   : > { %v12585_v41 = vrot.slane %v3536_v5, %v10161_v36  ;;  %v4229_v3 = vcombine.low %v16039_v0, %v16038_v6  ;;  %16040 = vst [vmem:[#allocation28_spill] sm:$0xff] %v12591_v15  ;;  %5158 = vmatprep.mubr.f32.mxu1 %v4791_v39  ;;  %v9530_v60 = vpack.c.bf16 %v7989_v1, %v7988_v26  ;;  %v16042_v47 = vld [vmem:[#allocation48_spill] sm:$0xff]  ;;  %v7972_v5 = vld [vmem:[%s15365_s4 + $0x400] sm:$0xff]  ;;  %v12603_v0 = vpop.f32.mrb[53].mxu1  ;;  %v16046_v6 = vld [vmem:[#allocation49_spill] sm:$0xff] }
 0x1b6   : > { %16034 = vst [vmem:[#allocation23_spill] sm:$0xff] %v12582_v35  ;;  %v4800_v2 = vrot.slane %v4792_v44, %v10161_v36  ;;  %v4807_v34 = vrot.slane %v4793_v28, %v10161_v36  ;;  %v4810_v45 = vcombine.low %v16042_v47, %v16041_v30  ;;  %16043 = vst [vmem:[#allocation27_spill] sm:$0xff] %v12603_v0  ;;  %5159 = vmatmul.mubr.f32.vlgmr.msra.gmra.mrb[88].mxu1 %v4790_v25  ;;  %v12613_v44 = vpop.f32.mrb[54].mxu1  ;;  %v16047_v47 = vld [vmem:[#allocation47_spill] sm:$0xff]  ;;  %v16050_v17 = vld [vmem:[#allocation8_spill] sm:$0xff] }
 0x1b7   : > { %16035 = vst [vmem:[#allocation37_spill] sm:$0xff] %v12585_v41  ;;  %v3552_v10 = vcombine.high %v12582_v35, %v12585_v41  ;;  %v3551_v26 = vcombine.low %v12582_v35, %v12585_v41  ;;  %v4236_v1 = vrot.slane %v4228_v56, %v10161_v36  ;;  %v12611_v39 = vrot.slane %v4229_v3, %v10161_v36  ;;  %v12618_v11 = vpop.f32.mrb[55].mxu1  ;;  %v16049_v3 = vld [vmem:[#allocation13_spill] sm:$0xff] }
 0x1b8   : > { %16045 = vst [vmem:[#allocation6_spill] sm:$0xff] %v12613_v44  ;;  %v4809_v28 = vcombine.high %v4800_v2, %v4807_v34  ;;  %v4808_v30 = vcombine.low %v4800_v2, %v4807_v34  ;;  %9531 = vmatprep.subr.bf16.mxu0 %v9530_v60  ;;  %v4811_v0 = vcombine.low %v16047_v47, %v16046_v6  ;;  %16048 = vst [vmem:[#allocation4_spill] sm:$0xff] %v12618_v11  ;;  %v16051_v34 = vld [vmem:[#allocation9_spill] sm:$0xff]  ;;  %v16058_v6 = vld [vmem:[#allocation66_spill] sm:$0xff] }
 0x1b9   : > { %16044 = vst [vmem:[#allocation29_spill] sm:$0xff] %v12611_v39  ;;  %v4818_v15 = vrot.slane %v4810_v45, %v10161_v36  ;;  %3724 = vmatprep.mubr.f32.mxu0 %v3552_v10  ;;  %v4244_v25 = vcombine.low %v4236_v1, %v12611_v39  ;;  %v4245_v56 = vcombine.high %v4236_v1, %v12611_v39  ;;  %v16052_v45 = vrot.slane %v16028_v50, 7  ;;  %v16061_v11 = vld [vmem:[#allocation30_spill] sm:$0xff] }
 0x1ba   : > { %v9532_v41 = vpack.c.bf16 %v7973_v24, %v7972_v5  ;;  %v4246_v35 = vcombine.low %v16050_v17, %v16049_v3  ;;  %3725 = vmatmul.mubr.f32.gmra.mrb[74].mxu0 %v3551_v26  ;;  %5163 = vmatprep.mubr.f32.mxu1 %v4809_v28  ;;  %v4825_v2 = vrot.slane %v4811_v0, %v10161_v36  ;;  %v7990_v5 = vld [vmem:[%s15365_s4 + $0x490] sm:$0xff]  ;;  %v7991_v17 = vld [vmem:[%s15365_s4 + $0x498] sm:$0xff]  ;;  %v16055_v0 = vld [vmem:[#allocation51_spill] sm:$0xff]  ;;  %v16059_v47 = vrot.slane %v16058_v6, 7 }
 0x1bb   : > { %v4247_v60 = vcombine.low %v16051_v34, %v15936_v14  ;;  %v12631_v10 = vsel %vm10931_vm12, %v4720_v38, %v16052_v45  ;;  %4612 = vmatprep.mubr.f32.mxu0 %v4245_v56  ;;  %5164 = vmatmul.mubr.f32.gmra.mrb[90].mxu1 %v4808_v30  ;;  %v16056_v26 = vld [vmem:[#allocation50_spill] sm:$0xff]  ;;  %v16057_v28 = vld [vmem:[#allocation53_spill] sm:$0xff]  ;;  %v16062_v56 = vld [vmem:[#allocation20_spill] sm:$0xff]  ;;  %v9534_v50 = vpack.c.bf16 %v7991_v17, %v7990_v5 }
 0x1bc   : > { %16053 = vst [vmem:[#allocation12_spill] sm:$0xff] %v12631_v10  ;;  %v12640_v24 = vrot.slane %v4246_v35, %v10161_v36  ;;  %v4828_v1 = vcombine.low %v16056_v26, %v16055_v0  ;;  %v4829_v38 = vcombine.low %v16057_v28, %v12631_v10  ;;  %v4723_v3 = vrot.slane %v16059_v47, 2  ;;  %v16063_v14 = vld [vmem:[#allocation21_spill] sm:$0xff]  ;;  %v16064_v0 = vld [vmem:[#allocation18_spill] sm:$0xff]  ;;  %v7974_v28 = vld [vmem:[%s15365_s4 + $0x410] sm:$0xff] }
 0x1bd   : > { %v4827_v34 = vcombine.high %v4818_v15, %v4825_v2  ;;  %v12649_v45 = vrot.slane %v4247_v60, %v10161_v36  ;;  %v4826_v39 = vcombine.low %v4818_v15, %v4825_v2  ;;  %v4264_v30 = vcombine.low %v16062_v56, %v16061_v11  ;;  %v7975_v60 = vld [vmem:[%s15365_s4 + $0x418] sm:$0xff]  ;;  %v16068_v47 = vld [vmem:[#allocation78_spill] sm:$0xff]  ;;  %v16069_v56 = vld [vmem:[#allocation80_spill] sm:$0xff] }
 0x1be   : > { %16054 = vst [vmem:[#allocation5_spill] sm:$0xff] %v12640_v24  ;;  %v4836_v35 = vrot.slane %v4828_v1, %v10161_v36  ;;  %v4843_v44 = vrot.slane %v4829_v38, %v10161_v36  ;;  %v4265_v26 = vcombine.low %v16064_v0, %v16063_v14  ;;  %4613 = vmatmul.mubr.f32.vlgmr.msra.gmra.mrb[76].mxu0 %v4244_v25  ;;  %v16065_v14 = vld [vmem:[#allocation71_spill] sm:$0xff]  ;;  %v16070_v0 = vld [vmem:[#allocation76_spill] sm:$0xff] }
 0x1bf   : > { %16060 = vst [vmem:[#allocation52_spill] sm:$0xff] %v12649_v45  ;;  %5168 = vmatprep.mubr.f32.mxu1 %v4827_v34  ;;  %v4263_v11 = vcombine.high %v12640_v24, %v12649_v45  ;;  %v4272_v2 = vrot.slane %v4264_v30, %v10161_v36  ;;  %9533 = vmatpush3.bf16.msra.mxu0 %v9532_v41  ;;  %v16067_v25 = vld [vmem:[#allocation79_spill] sm:$0xff]  ;;  %v16071_v5 = vld [vmem:[#allocation36_spill] sm:$0xff] }
 0x1c0   : > { %5169 = vmatmul.mubr.f32.gmra.mrb[92].mxu1 %v4826_v39  ;;  %v4262_v17 = vcombine.low %v12640_v24, %v12649_v45  ;;  %v4845_v1 = vcombine.high %v4836_v35, %v4843_v44  ;;  %v12672_v38 = vrot.slane %v4265_v26, %v10161_v36  ;;  %9535 = vmatprep.subr.bf16.mxu0 %v9534_v50  ;;  %v16072_v10 = vld [vmem:[#allocation32_spill] sm:$0xff]  ;;  %v16073_v24 = vld [vmem:[#allocation33_spill] sm:$0xff] }
 0x1c1   : > { %4617 = vmatprep.mubr.f32.mxu0 %v4263_v11  ;;  %v4846_v34 = vcombine.low %v16068_v47, %v16067_v25  ;;  %v4847_v15 = vcombine.low %v16070_v0, %v16069_v56  ;;  %v9536_v30 = vpack.c.bf16 %v7975_v60, %v7974_v28  ;;  %v4844_v39 = vcombine.low %v4836_v35, %v4843_v44  ;;  %v16076_v60 = vld [vmem:[#allocation82_spill] sm:$0xff]  ;;  %v16080_v35 = vld [vmem:[#allocation81_spill] sm:$0xff]  ;;  %v16082_v0 = vld [vmem:[#allocation44_spill] sm:$0xff] }
 0x1c2   : > { %16066 = vst [vmem:[#allocation48_spill] sm:$0xff] %v12672_v38  ;;  %5173 = vmatprep.mubr.f32.mxu1 %v4845_v1  ;;  %v4281_v41 = vcombine.high %v4272_v2, %v12672_v38  ;;  %v4282_v45 = vcombine.low %v16072_v10, %v16071_v5  ;;  %v4283_v26 = vcombine.low %v16073_v24, %v16025_v9  ;;  %v16074_v25 = vrot.slane %v16065_v14, 7  ;;  %v16077_v1 = vld [vmem:[#allocation77_spill] sm:$0xff]  ;;  %v7992_v5 = vld [vmem:[%s15365_s4 + $0x4a0] sm:$0xff] }
 0x1c3   : > { %4618 = vmatmul.mubr.f32.gmra.mrb[78].mxu0 %v4262_v17  ;;  %v4854_v50 = vrot.slane %v4846_v34, %v10161_v36  ;;  %v4861_v11 = vrot.slane %v4847_v15, %v10161_v36  ;;  %v4864_v44 = vcombine.low %v16077_v1, %v16076_v60  ;;  %v16081_v17 = vrot.slane %v11552_v20, 7  ;;  %v16084_v1 = vld [vmem:[#allocation41_spill] sm:$0xff] }
 0x1c4   : > { %v12689_v28 = vsel %vm10931_vm12, %v4723_v3, %v16074_v25  ;;  %4622 = vmatprep.mubr.f32.mxu0 %v4281_v41  ;;  %5174 = vmatmul.mubr.f32.gmra.mrb[94].mxu1 %v4844_v39  ;;  %v12694_v10 = vrot.slane %v4282_v45, %v10161_v36  ;;  %v12697_v24 = vrot.slane %v4283_v26, %v10161_v36  ;;  %v7993_v3 = vld [vmem:[%s15365_s4 + $0x4a8] sm:$0xff] }
 0x1c5   : > { %16075 = vst [vmem:[#allocation49_spill] sm:$0xff] %v12689_v28  ;;  %v4865_v15 = vcombine.low %v16080_v35, %v12689_v28  ;;  %v4726_v47 = vrot.slane %v16081_v17, 2  ;;  %v4280_v45 = vcombine.low %v4272_v2, %v12672_v38  ;;  %v4863_v34 = vcombine.high %v4854_v50, %v4861_v11  ;;  %9537 = vmatpush3.bf16.msra.mxu0 %v9536_v30  ;;  %v16083_v41 = vld [vmem:[#allocation43_spill] sm:$0xff]  ;;  %v16085_v35 = vld [vmem:[#allocation45_spill] sm:$0xff]  ;;  %v7976_v2 = vld [vmem:[%s15365_s4 + $0x420] sm:$0xff] }
 0x1c6   : > { %16078 = vst [vmem:[#allocation47_spill] sm:$0xff] %v12694_v10  ;;  %16079 = vst [vmem:[#allocation13_spill] sm:$0xff] %v12697_v24  ;;  %v4862_v56 = vcombine.low %v4854_v50, %v4861_v11  ;;  %v4300_v39 = vcombine.low %v16083_v41, %v16082_v0  ;;  %v4299_v26 = vcombine.high %v12694_v10, %v12697_v24  ;;  %v7977_v30 = vld [vmem:[%s15365_s4 + $0x428] sm:$0xff]  ;;  %v16086_v17 = vrot.slane %v11712_v63, 7  ;;  %v16089_v50 = vld [vmem:[#allocation61_spill] sm:$0xff] }
 0x1c7   : > { %v4872_v25 = vrot.slane %v4864_v44, %v10161_v36  ;;  %v4879_v60 = vrot.slane %v4865_v15, %v10161_v36  ;;  %v4301_v28 = vcombine.low %v16085_v35, %v16084_v1  ;;  %4623 = vmatmul.mubr.f32.gmra.mrb[80].mxu0 %v4280_v45  ;;  %5178 = vmatprep.mubr.f32.mxu1 %v4863_v34  ;;  %v16088_v34 = vld [vmem:[#allocation102_spill] sm:$0xff] }
 0x1c8   : > { %v4298_v11 = vcombine.low %v12694_v10, %v12697_v24  ;;  %v9538_v44 = vpack.c.bf16 %v7993_v3, %v7992_v5  ;;  %v4882_v15 = vcombine.low %v11586_v51, %v11614_v16  ;;  %v12731_v0 = vrot.slane %v16086_v17, 2  ;;  %4627 = vmatprep.mubr.f32.mxu0 %v4299_v26  ;;  %5179 = vmatmul.mubr.f32.gmra.mrb[96].mxu1 %v4862_v56  ;;  %v16090_v51 = vld [vmem:[#allocation46_spill] sm:$0xff]  ;;  %v16091_v26 = vld [vmem:[#allocation57_spill] sm:$0xff] }
 0x1c9   : > { %v4881_v41 = vcombine.high %v4872_v25, %v4879_v60  ;;  %v4308_v1 = vrot.slane %v4300_v39, %v10161_v36  ;;  %v12735_v35 = vrot.slane %v4301_v28, %v10161_v36  ;;  %v4880_v45 = vcombine.low %v4872_v25, %v4879_v60  ;;  %v8020_v24 = vld [vmem:[%s15365_s4 + $0x580] sm:$0xff] }
 0x1ca   : > { %9539 = vmatprep.subr.bf16.mxu0 %v9538_v44  ;;  %v4883_v5 = vcombine.low %v16088_v34, %v11290_v48  ;;  %v9540_v3 = vpack.c.bf16 %v7977_v30, %v7976_v2  ;;  %v4318_v16 = vcombine.low %v16090_v51, %v16089_v50  ;;  %v4890_v56 = vrot.slane %v4882_v15, %v10161_v36  ;;  %v16095_v2 = vld [vmem:[#allocation70_spill] sm:$0xff]  ;;  %v16096_v30 = vld [vmem:[#allocation104_spill] sm:$0xff]  ;;  %v16097_v44 = vld [vmem:[#allocation105_spill] sm:$0xff] }
 0x1cb   : > { %16087 = vst [vmem:[#allocation8_spill] sm:$0xff] %v12735_v35  ;;  %5183 = vmatprep.mubr.f32.mxu1 %v4881_v41  ;;  %v4317_v17 = vcombine.high %v4308_v1, %v12735_v35  ;;  %v4319_v39 = vcombine.low %v16091_v26, %v16058_v6  ;;  %v16092_v28 = vrot.slane %v11590_v19, 7  ;;  %4628 = vmatmul.mubr.f32.gmra.mrb[82].mxu0 %v4298_v11  ;;  %v7994_v41 = vld [vmem:[%s15365_s4 + $0x4b0] sm:$0xff]  ;;  %v16098_v11 = vld [vmem:[#allocation122_spill] sm:$0xff]  ;;  %v16100_v51 = vld [vmem:[#allocation75_spill] sm:$0xff] }
 0x1cc   : > { %v4897_v48 = vrot.slane %v4883_v5, %v10161_v36  ;;  %v12753_v60 = vrot.slane %v4318_v16, %v10161_v36  ;;  %v4900_v50 = vcombine.low %v16096_v30, %v16095_v2  ;;  %5184 = vmatmul.mubr.f32.gmra.mrb[98].mxu1 %v4880_v45  ;;  %v16101_v16 = vld [vmem:[#allocation73_spill] sm:$0xff]  ;;  %v16103_v2 = vld [vmem:[#allocation58_spill] sm:$0xff]  ;;  %v8021_v45 = vld [vmem:[%s15365_s4 + $0x588] sm:$0xff]  ;;  %9541 = vmatpush3.bf16.msra.mxu0 %v9540_v3 }
 0x1cd   : > { %v12749_v25 = vsel %vm10931_vm12, %v4726_v47, %v16092_v28  ;;  %v7995_v47 = vld [vmem:[%s15365_s4 + $0x4b8] sm:$0xff]  ;;  %4632 = vmatprep.mubr.f32.mxu0 %v4317_v17  ;;  %v12767_v5 = vrot.slane %v4319_v39, %v10161_v36  ;;  %v4336_v26 = vcombine.low %v16101_v16, %v16100_v51  ;;  %v16102_v28 = vld [vmem:[#allocation60_spill] sm:$0xff]  ;;  %v4316_v17 = vcombine.low %v4308_v1, %v12735_v35  ;;  %v8004_v3 = vld [vmem:[%s15365_s4 + $0x500] sm:$0xff] }
 0x1ce   : > { %16093 = vst [vmem:[#allocation9_spill] sm:$0xff] %v12749_v25  ;;  %16094 = vst [vmem:[#allocation51_spill] sm:$0xff] %v12753_v60  ;;  %v4901_v15 = vcombine.low %v16097_v44, %v12749_v25  ;;  %v16104_v30 = vcombine.low %v16102_v28, %v16103_v2  ;;  %v4899_v39 = vcombine.high %v4890_v56, %v4897_v48  ;;  %v7978_v28 = vld [vmem:[%s15365_s4 + $0x430] sm:$0xff]  ;;  %v7979_v1 = vld [vmem:[%s15365_s4 + $0x438] sm:$0xff] }
 0x1cf   : > { %16099 = vst [vmem:[#allocation50_spill] sm:$0xff] %v12767_v5  ;;  %v4908_v51 = vrot.slane %v4900_v50, %v10161_v36  ;;  %v4335_v2 = vcombine.high %v12753_v60, %v12767_v5  ;;  %v4344_v34 = vrot.slane %v4336_v26, %v10161_v36  ;;  %v9542_v38 = vpack.c.bf16 %v7995_v47, %v7994_v41  ;;  %v8005_v50 = vld [vmem:[%s15365_s4 + $0x508] sm:$0xff]  ;;  %v16107_v35 = vld [vmem:[#allocation120_spill] sm:$0xff]  ;;  %v16109_v6 = vld [vmem:[#allocation89_spill] sm:$0xff] }
 0x1d0   : > { %v12775_v44 = vrot.slane %v16104_v30, %v10161_v36  ;;  %v4915_v16 = vrot.slane %v4901_v15, %v10161_v36  ;;  %v4898_v30 = vcombine.low %v4890_v56, %v4897_v48  ;;  %4633 = vmatmul.mubr.f32.gmra.mrb[84].mxu0 %v4316_v17  ;;  %5188 = vmatprep.mubr.f32.mxu1 %v4899_v39  ;;  %v16106_v26 = vld [vmem:[#allocation119_spill] sm:$0xff] }
 0x1d1   : > { %v4334_v56 = vcombine.low %v12753_v60, %v12767_v5  ;;  %v9562_v15 = vpack.c.bf16 %v8021_v45, %v8020_v24  ;;  %4637 = vmatprep.mubr.f32.mxu0 %v4335_v2  ;;  %v4918_v10 = vcombine.low %v16107_v35, %v16106_v26  ;;  %9543 = vmatprep.subr.bf16.mxu0 %v9542_v38  ;;  %v16108_v25 = vld [vmem:[#allocation127_spill] sm:$0xff]  ;;  %v16117_v38 = vrot.slane %v16098_v11, 7 }
 0x1d2   : > { %16105 = vst [vmem:[#allocation53_spill] sm:$0xff] %v12775_v44  ;;  %v4917_v48 = vcombine.high %v4908_v51, %v4915_v16  ;;  %5189 = vmatmul.mubr.f32.gmra.mrb[100].mxu1 %v4898_v30  ;;  %v4353_v41 = vcombine.high %v4344_v34, %v12775_v44  ;;  %v4916_v47 = vcombine.low %v4908_v51, %v4915_v16  ;;  %v16110_v24 = vld [vmem:[#allocation11_spill] sm:$0xff]  ;;  %v16114_v51 = vld [vmem:[#allocation65_spill] sm:$0xff] }
 0x1d3   : > { %v4919_v19 = vcombine.low %v16109_v6, %v16108_v25  ;;  %v9544_v17 = vpack.c.bf16 %v7979_v1, %v7978_v28  ;;  %v9564_v39 = vpack.c.bf16 %v8005_v50, %v8004_v3  ;;  %9563 = vmatprep.subr.bf16.mxu1 %v9562_v15  ;;  %v4926_v5 = vrot.slane %v4918_v10, %v10161_v36  ;;  %v16111_v45 = vld [vmem:[#allocation59_spill] sm:$0xff]  ;;  %v7996_v10 = vld [vmem:[%s15365_s4 + $0x4c0] sm:$0xff]  ;;  %v16120_v1 = vld [vmem:[#allocation93_spill] sm:$0xff] }
 0x1d4   : > { %5193 = vmatprep.mubr.f32.mxu1 %v4917_v48  ;;  %v16112_v2 = vcombine.low %v16110_v24, %v16111_v45  ;;  %v16115_v35 = vcombine.low %v16114_v51, %v11552_v20  ;;  %v12826_v6 = vsel %vm10931_vm12, %v12731_v0, %v16117_v38  ;;  %4638 = vmatmul.mubr.f32.gmra.mrb[86].mxu0 %v4334_v56  ;;  %v16119_v28 = vld [vmem:[#allocation130_spill] sm:$0xff]  ;;  %v16121_v50 = vld [vmem:[#allocation123_spill] sm:$0xff]  ;;  %v8022_v0 = vld [vmem:[%s15365_s4 + $0x590] sm:$0xff] }
 0x1d5   : > { %16118 = vst [vmem:[#allocation21_spill] sm:$0xff] %v12826_v6  ;;  %v4933_v25 = vrot.slane %v4919_v19, %v10161_v36  ;;  %9565 = vmatpush3.bf16.msra.mxu1 %v9564_v39  ;;  %v4936_v3 = vcombine.low %v16120_v1, %v16119_v28  ;;  %v4937_v48 = vcombine.low %v16121_v50, %v12826_v6  ;;  %v7997_v15 = vld [vmem:[%s15365_s4 + $0x4c8] sm:$0xff]  ;;  %v8023_v56 = vld [vmem:[%s15365_s4 + $0x598] sm:$0xff]  ;;  %v16122_v19 = vld [vmem:[#allocation146_spill] sm:$0xff] }
 0x1d6   : > { %v12813_v30 = vrot.slane %v16112_v2, %v10161_v36  ;;  %v12819_v16 = vrot.slane %v16115_v35, %v10161_v36  ;;  %4642 = vmatprep.mubr.f32.mxu0 %v4353_v41  ;;  %5194 = vmatmul.mubr.f32.gmra.mrb[102].mxu1 %v4916_v47  ;;  %v4352_v39 = vcombine.low %v4344_v34, %v12775_v44  ;;  %v16123_v45 = vld [vmem:[#allocation99_spill] sm:$0xff]  ;;  %v16124_v2 = vld [vmem:[#allocation98_spill] sm:$0xff]  ;;  %v16125_v34 = vld [vmem:[#allocation72_spill] sm:$0xff] }
 0x1d7   : > { %v4372_v51 = vcombine.low %v16124_v2, %v16123_v45  ;;  %v4935_v35 = vcombine.high %v4926_v5, %v4933_v25  ;;  %9545 = vmatpush3.bf16.msra.mxu0 %v9544_v17  ;;  %v4934_v38 = vcombine.low %v4926_v5, %v4933_v25  ;;  %v4944_v28 = vrot.slane %v4936_v3, %v10161_v36  ;;  %v7980_v41 = vld [vmem:[%s15365_s4 + $0x440] sm:$0xff]  ;;  %v16126_v50 = vld [vmem:[#allocation83_spill] sm:$0xff]  ;;  %v8006_v17 = vld [vmem:[%s15365_s4 + $0x510] sm:$0xff] }
 0x1d8   : > { %16113 = vst [vmem:[#allocation30_spill] sm:$0xff] %v12813_v30  ;;  %16116 = vst [vmem:[#allocation20_spill] sm:$0xff] %v12819_v16  ;;  %v4371_v24 = vcombine.high %v12813_v30, %v12819_v16  ;;  %v4951_v1 = vrot.slane %v4937_v48, %v10161_v36  ;;  %v16127_v26 = vcombine.low %v16125_v34, %v16126_v50  ;;  %v7981_v5 = vld [vmem:[%s15365_s4 + $0x448] sm:$0xff]  ;;  %v8007_v25 = vld [vmem:[%s15365_s4 + $0x518] sm:$0xff]  ;;  %4643 = vmatmul.mubr.f32.gmra.mrb[88].mxu0 %v4352_v39 }
 0x1d9   : > { %v4380_v47 = vrot.slane %v4372_v51, %v10161_v36  ;;  %v9546_v45 = vpack.c.bf16 %v7997_v15, %v7996_v10  ;;  %v9566_v2 = vpack.c.bf16 %v8023_v56, %v8022_v0  ;;  %5198 = vmatprep.mubr.f32.mxu1 %v4935_v35  ;;  %v4370_v3 = vcombine.low %v12813_v30, %v12819_v16  ;;  %v16129_v10 = vld [vmem:[#allocation132_spill] sm:$0xff]  ;;  %v16130_v15 = vld [vmem:[#allocation151_spill] sm:$0xff]  ;;  %v8024_v56 = vld [vmem:[%s15365_s4 + $0x5a0] sm:$0xff] }
 0x1da   : > { %v12861_v44 = vrot.slane %v16127_v26, %v10161_v36  ;;  %v4953_v48 = vcombine.high %v4944_v28, %v4951_v1  ;;  %v4954_v0 = vcombine.low %v16130_v15, %v16129_v10  ;;  %v8025_v26 = vld [vmem:[%s15365_s4 + $0x5a8] sm:$0xff]  ;;  %v16131_v51 = vrot.slane %v11891_v40, 7  ;;  %4647 = vmatprep.mubr.f32.mxu0 %v4371_v24  ;;  %5199 = vmatmul.mubr.f32.gmra.mrb[104].mxu1 %v4934_v38  ;;  %v8008_v10 = vld [vmem:[%s15365_s4 + $0x520] sm:$0xff] }
 0x1db   : > { %v4952_v35 = vcombine.low %v4944_v28, %v4951_v1  ;;  %v16132_v50 = vld [vmem:[#allocation155_spill] sm:$0xff]  ;;  %9547 = vmatprep.subr.bf16.mxu0 %v9546_v45  ;;  %v9548_v24 = vpack.c.bf16 %v7981_v5, %v7980_v41  ;;  %v9568_v38 = vpack.c.bf16 %v8007_v25, %v8006_v17  ;;  %9567 = vmatprep.subr.bf16.mxu1 %v9566_v2  ;;  %v16133_v1 = vld [vmem:[#allocation85_spill] sm:$0xff]  ;;  %v7998_v41 = vld [vmem:[%s15365_s4 + $0x4d0] sm:$0xff] }
 0x1dc   : > { %16128 = vst [vmem:[#allocation18_spill] sm:$0xff] %v12861_v44  ;;  %v4732_v34 = vrot.slane %v16131_v51, 2  ;;  %v4389_v39 = vcombine.high %v4380_v47, %v12861_v44  ;;  %v4955_v16 = vcombine.low %v16132_v50, %v11754_v4  ;;  %v8009_v15 = vld [vmem:[%s15365_s4 + $0x528] sm:$0xff]  ;;  %5203 = vmatprep.mubr.f32.mxu1 %v4953_v48  ;;  %v4962_v51 = vrot.slane %v4954_v0, %v10161_v36  ;;  %v16134_v4 = vld [vmem:[#allocation86_spill] sm:$0xff]  ;;  %v8027_v25 = vld [vmem:[%s15365_s4 + $0x5b8] sm:$0xff] }
 0x1dd   : > { %v16135_v50 = vcombine.low %v16133_v1, %v16134_v4  ;;  %v16137_v60 = vld [vmem:[#allocation103_spill] sm:$0xff]  ;;  %v9570_v45 = vpack.c.bf16 %v8025_v26, %v8024_v56  ;;  %4648 = vmatmul.mubr.f32.gmra.mrb[90].mxu0 %v4370_v3  ;;  %9569 = vmatpush3.bf16.msra.mxu1 %v9568_v38  ;;  %v4972_v5 = vcombine.low %v12141_v58, %v11779_v55  ;;  %v16141_v58 = vrot.slane %v12065_v37, 7  ;;  %v16142_v26 = vld [vmem:[#allocation162_spill] sm:$0xff] }
 0x1de   : > { %v4969_v28 = vrot.slane %v4955_v16, %v10161_v36  ;;  %v16138_v6 = vcombine.low %v16137_v60, %v11712_v63  ;;  %v16140_v16 = vrot.slane %v16122_v19, 7  ;;  %v9572_v17 = vpack.c.bf16 %v8009_v15, %v8008_v10  ;;  %v7999_v60 = vld [vmem:[%s15365_s4 + $0x4d8] sm:$0xff]  ;;  %4652 = vmatprep.mubr.f32.mxu0 %v4389_v39  ;;  %5204 = vmatmul.mubr.f32.gmra.mrb[106].mxu1 %v4952_v35  ;;  %v7982_v39 = vld [vmem:[%s15365_s4 + $0x450] sm:$0xff]  ;;  %v16144_v15 = vld [vmem:[#allocation115_spill] sm:$0xff] }
 0x1df   : > { %v12899_v30 = vrot.slane %v16135_v50, %v10161_v36  ;;  %v4388_v3 = vcombine.low %v4380_v47, %v12861_v44  ;;  %v4735_v0 = vrot.slane %v16141_v58, 2  ;;  %9549 = vmatpush3.bf16.msra.mxu0 %v9548_v24  ;;  %9571 = vmatprep.subr.bf16.mxu1 %v9570_v45  ;;  %v4980_v10 = vrot.slane %v4972_v5, %v10161_v36  ;;  %v7983_v47 = vld [vmem:[%s15365_s4 + $0x458] sm:$0xff]  ;;  %v16146_v24 = vld [vmem:[#allocation111_spill] sm:$0xff]  ;;  %v8010_v45 = vld [vmem:[%s15365_s4 + $0x530] sm:$0xff] }
 0x1e0   : > { %v12905_v20 = vrot.slane %v16138_v6, %v10161_v36  ;;  %v12914_v2 = vsel %vm10931_vm12, %v4732_v34, %v16140_v16  ;;  %v8026_v6 = vld [vmem:[%s15365_s4 + $0x5b0] sm:$0xff]  ;;  %v4971_v48 = vcombine.high %v4962_v51, %v4969_v28  ;;  %v4970_v56 = vcombine.low %v4962_v51, %v4969_v28  ;;  %v16143_v35 = vld [vmem:[#allocation117_spill] sm:$0xff]  ;;  %v16145_v51 = vld [vmem:[#allocation110_spill] sm:$0xff] }
 0x1e1   : > { %16136 = vst [vmem:[#allocation79_spill] sm:$0xff] %v12899_v30  ;;  %v4973_v34 = vcombine.low %v16142_v26, %v12914_v2  ;;  %v4408_v38 = vcombine.low %v16144_v15, %v16143_v35  ;;  %v16147_v28 = vcombine.low %v16145_v51, %v16146_v24  ;;  %v9550_v4 = vpack.c.bf16 %v7999_v60, %v7998_v41  ;;  %v8011_v16 = vld [vmem:[%s15365_s4 + $0x538] sm:$0xff]  ;;  %v16149_v5 = vld [vmem:[#allocation154_spill] sm:$0xff]  ;;  %v8013_v15 = vld [vmem:[%s15365_s4 + $0x548] sm:$0xff] }
 0x1e2   : > { %16139 = vst [vmem:[#allocation78_spill] sm:$0xff] %v12905_v20  ;;  %v4407_v55 = vcombine.high %v12899_v30, %v12905_v20  ;;  %5208 = vmatprep.mubr.f32.mxu1 %v4971_v48  ;;  %v9574_v50 = vpack.c.bf16 %v8027_v25, %v8026_v6  ;;  %v15634_v48 = vrot.slane %v16149_v5, 7  ;;  %4653 = vmatmul.mubr.f32.gmra.mrb[92].mxu0 %v4388_v3  ;;  %v8028_v3 = vld [vmem:[%s15365_s4 + $0x5c0] sm:$0xff]  ;;  %v16225_v44 = vrot.slane %v16098_v11, 7 }
 0x1e3   : > { %v12947_v1 = vrot.slane %v16147_v28, %v10161_v36  ;;  %v4987_v58 = vrot.slane %v4973_v34, %v10161_v36  ;;  %9573 = vmatpush3.bf16.msra.mxu1 %v9572_v17  ;;  %v4990_v26 = vcombine.low %v12317_v21, %v12329_v46  ;;  %v4991_v41 = vcombine.low %v11940_v59, %v12422_v27  ;;  %v8029_v17 = vld [vmem:[%s15365_s4 + $0x5c8] sm:$0xff]  ;;  %v16150_v34 = vld [vmem:[#allocation112_spill] sm:$0xff] }
 0x1e4   : > { %4657 = vmatprep.mubr.f32.mxu0 %v4407_v55  ;;  %5209 = vmatmul.mubr.f32.gmra.mrb[108].mxu1 %v4970_v56  ;;  %v4406_v60 = vcombine.low %v12899_v30, %v12905_v20  ;;  %v4416_v6 = vrot.slane %v4408_v38, %v10161_v36  ;;  %v9552_v25 = vpack.c.bf16 %v7983_v47, %v7982_v39  ;;  %v16151_v39 = vld [vmem:[#allocation113_spill] sm:$0xff]  ;;  %v16154_v38 = vld [vmem:[#allocation114_spill] sm:$0xff]  ;;  %v6254_v20 = vld [vmem:[%s15369_s8 + $0x8] sm:$0xff]  ;;  %v5597_v30 = vrot.slane %v16225_v44, 2 }
 0x1e5   : > { %16148 = vst [vmem:[#allocation80_spill] sm:$0xff] %v12947_v1  ;;  %v4989_v21 = vcombine.high %v4980_v10, %v4987_v58  ;;  %v4988_v46 = vcombine.low %v4980_v10, %v4987_v58  ;;  %9551 = vmatprep.subr.bf16.mxu0 %v9550_v4  ;;  %9575 = vmatprep.subr.bf16.mxu1 %v9574_v50  ;;  %v8012_v10 = vld [vmem:[%s15365_s4 + $0x540] sm:$0xff] }
 0x1e6   : > { %v9576_v59 = vpack.c.bf16 %v8011_v16, %v8010_v45  ;;  %v4425_v27 = vcombine.high %v4416_v6, %v12947_v1  ;;  %v4998_v55 = vrot.slane %v4990_v26, %v10161_v36  ;;  %v5005_v56 = vrot.slane %v4991_v41, %v10161_v36  ;;  %9553 = vmatpush3.bf16.msra.mxu0 %v9552_v25  ;;  %v8000_v50 = vld [vmem:[%s15365_s4 + $0x4e0] sm:$0xff]  ;;  %v8001_v26 = vld [vmem:[%s15365_s4 + $0x4e8] sm:$0xff]  ;;  %v8031_v41 = vld [vmem:[%s15365_s4 + $0x5d8] sm:$0xff] }
 0x1e7   : > { %v16152_v47 = vcombine.low %v16150_v34, %v16151_v39  ;;  %4658 = vmatmul.mubr.f32.gmra.mrb[94].mxu0 %v4406_v60  ;;  %5213 = vmatprep.mubr.f32.mxu1 %v4989_v21  ;;  %v16155_v51 = vcombine.low %v16154_v38, %v11891_v40  ;;  %v9578_v28 = vpack.c.bf16 %v8029_v17, %v8028_v3  ;;  %v7984_v3 = vld [vmem:[%s15365_s4 + $0x460] sm:$0xff]  ;;  %v7985_v17 = vld [vmem:[%s15365_s4 + $0x468] sm:$0xff] }
 0x1e8   : > { %v12995_v4 = vsel %vm10931_vm12, %v4735_v0, %v15634_v48  ;;  %4662 = vmatprep.mubr.f32.mxu0 %v4425_v27  ;;  %5214 = vmatmul.mubr.f32.gmra.mrb[110].mxu1 %v4988_v46  ;;  %v5007_v45 = vcombine.high %v4998_v55, %v5005_v56  ;;  %v5006_v16 = vcombine.low %v4998_v55, %v5005_v56  ;;  %v8030_v0 = vld [vmem:[%s15365_s4 + $0x5d0] sm:$0xff]  ;;  %v16228_v44 = vld [vmem:[#allocation150_spill] sm:$0xff] }
 0x1e9   : > { %v12977_v35 = vrot.slane %v16152_v47, %v10161_v36  ;;  %v12989_v24 = vrot.slane %v16155_v51, %v10161_v36  ;;  %v5008_v58 = vcombine.low %v12021_v33, %v12431_v52  ;;  %v4424_v60 = vcombine.low %v4416_v6, %v12947_v1  ;;  %9577 = vmatpush3.bf16.msra.mxu1 %v9576_v59  ;;  %v16157_v46 = vld [vmem:[#allocation128_spill] sm:$0xff]  ;;  %v16158_v59 = vld [vmem:[#allocation129_spill] sm:$0xff] }
 0x1ea   : > { %v5009_v52 = vcombine.low %v12174_v29, %v12995_v4  ;;  %v9580_v33 = vpack.c.bf16 %v8013_v15, %v8012_v10  ;;  %5218 = vmatprep.mubr.f32.mxu1 %v5007_v45  ;;  %9579 = vmatprep.subr.bf16.mxu1 %v9578_v28  ;;  %v4444_v21 = vcombine.low %v11949_v54, %v11902_v49  ;;  %v8014_v10 = vld [vmem:[%s15365_s4 + $0x550] sm:$0xff]  ;;  %v8015_v15 = vld [vmem:[%s15365_s4 + $0x558] sm:$0xff]  ;;  %v16161_v51 = vrot.slane %v12399_v61, 7 }
 0x1eb   : > { %16153 = vst [vmem:[#allocation76_spill] sm:$0xff] %v12977_v35  ;;  %16156 = vst [vmem:[#allocation36_spill] sm:$0xff] %v12989_v24  ;;  %v4443_v25 = vcombine.high %v12977_v35, %v12989_v24  ;;  %v5016_v6 = vrot.slane %v5008_v58, %v10161_v36  ;;  %v16159_v29 = vcombine.low %v16157_v46, %v16158_v59  ;;  %4663 = vmatmul.mubr.f32.gmra.mrb[96].mxu0 %v4424_v60  ;;  %v16162_v58 = vld [vmem:[#allocation190_spill] sm:$0xff]  ;;  %v8034_v59 = vld [vmem:[%s15365_s4 + $0x5f0] sm:$0xff] }
 0x1ec   : > { %v5023_v55 = vrot.slane %v5009_v52, %v10161_v36  ;;  %v9554_v56 = vpack.c.bf16 %v8001_v26, %v8000_v50  ;;  %v9582_v34 = vpack.c.bf16 %v8031_v41, %v8030_v0  ;;  %v5026_v39 = vcombine.low %v12472_v31, %v12387_v22  ;;  %5219 = vmatmul.mubr.f32.gmra.mrb[112].mxu1 %v5006_v16  ;;  %v16163_v41 = vld [vmem:[#allocation142_spill] sm:$0xff]  ;;  %v8043_v1 = vld [vmem:[%s15365_s4 + $0x638] sm:$0xff] }
 0x1ed   : > { %v13029_v27 = vrot.slane %v16159_v29, %v10161_v36  ;;  %4667 = vmatprep.mubr.f32.mxu0 %v4443_v25  ;;  %v4452_v47 = vrot.slane %v4444_v21, %v10161_v36  ;;  %v5027_v54 = vcombine.low %v12489_v23, %v12284_v53  ;;  %v9556_v49 = vpack.c.bf16 %v7985_v17, %v7984_v3  ;;  %v8032_v53 = vld [vmem:[%s15365_s4 + $0x5e0] sm:$0xff]  ;;  %v8033_v23 = vld [vmem:[%s15365_s4 + $0x5e8] sm:$0xff]  ;;  %v8035_v29 = vld [vmem:[%s15365_s4 + $0x5f8] sm:$0xff] }
 0x1ee   : > { %v4442_v38 = vcombine.low %v12977_v35, %v12989_v24  ;;  %v5025_v22 = vcombine.high %v5016_v6, %v5023_v55  ;;  %9581 = vmatpush3.bf16.msra.mxu1 %v9580_v33  ;;  %v5024_v31 = vcombine.low %v5016_v6, %v5023_v55  ;;  %9555 = vmatprep.subr.bf16.mxu0 %v9554_v56  ;;  %v4738_v28 = vrot.slane %v16161_v51, 2  ;;  %v8016_v3 = vld [vmem:[%s15365_s4 + $0x560] sm:$0xff]  ;;  %v8017_v17 = vld [vmem:[%s15365_s4 + $0x568] sm:$0xff]  ;;  %v8018_v51 = vld [vmem:[%s15365_s4 + $0x570] sm:$0xff] }
 0x1ef   : > { %16160 = vst [vmem:[#allocation32_spill] sm:$0xff] %v13029_v27  ;;  %v4461_v50 = vcombine.high %v4452_v47, %v13029_v27  ;;  %9583 = vmatprep.subr.bf16.mxu1 %v9582_v34  ;;  %v5034_v45 = vrot.slane %v5026_v39, %v10161_v36  ;;  %v5041_v16 = vrot.slane %v5027_v54, %v10161_v36  ;;  %v15635_v26 = vrot.slane %v16162_v58, 7  ;;  %v6253_v35 = vld [vmem:[%s15369_s8] sm:$0xff] }
 0x1f0   : > { %9557 = vmatpush3.bf16.msra.mxu0 %v9556_v49  ;;  %5223 = vmatprep.mubr.f32.mxu1 %v5025_v22  ;;  %v9584_v0 = vpack.c.bf16 %v8015_v15, %v8014_v10  ;;  %v16164_v60 = vcombine.low %v11878_v32, %v16163_v41  ;;  %v16166_v52 = vcombine.low %v11995_v42, %v12065_v37  ;;  %v8002_v32 = vld [vmem:[%s15365_s4 + $0x4f0] sm:$0xff]  ;;  %v8003_v42 = vld [vmem:[%s15365_s4 + $0x4f8] sm:$0xff] }
 0x1f1   : > { %4668 = vmatmul.mubr.f32.gmra.mrb[98].mxu0 %v4442_v38  ;;  %5224 = vmatmul.mubr.f32.gmra.mrb[114].mxu1 %v5024_v31  ;;  %v5043_v6 = vcombine.high %v5034_v45, %v5041_v16  ;;  %v5042_v21 = vcombine.low %v5034_v45, %v5041_v16  ;;  %v9586_v46 = vpack.c.bf16 %v8033_v23, %v8032_v53  ;;  %v16169_v10 = vld [vmem:[#allocation160_spill] sm:$0xff]  ;;  %v7987_v22 = vld [vmem:[%s15365_s4 + $0x478] sm:$0xff] }
 0x1f2   : > { %v13061_v25 = vrot.slane %v16164_v60, %v10161_v36  ;;  %v13067_v33 = vrot.slane %v16166_v52, %v10161_v36  ;;  %4672 = vmatprep.mubr.f32.mxu0 %v4461_v50  ;;  %v4460_v55 = vcombine.low %v4452_v47, %v13029_v27  ;;  %9585 = vmatpush3.bf16.msra.mxu1 %v9584_v0  ;;  %v16168_v47 = vld [vmem:[#allocation165_spill] sm:$0xff]  ;;  %v7986_v38 = vld [vmem:[%s15365_s4 + $0x470] sm:$0xff]  ;;  %v16174_v50 = vrot.slane %v16017_v12, 7  ;;  %v16175_v60 = vld [vmem:[#allocation7_spill] sm:$0xff] }
 0x1f3   : > { %v13094_v34 = vsel %vm10931_vm12, %v4738_v28, %v15635_v26  ;;  %v5044_v39 = vcombine.low %v12541_v43, %v12391_v62  ;;  %5228 = vmatprep.mubr.f32.mxu1 %v5043_v6  ;;  %9587 = vmatprep.subr.bf16.mxu1 %v9586_v46  ;;  %v9588_v49 = vpack.c.bf16 %v8017_v17, %v8016_v3  ;;  %v16170_v62 = vld [vmem:[#allocation174_spill] sm:$0xff]  ;;  %v16171_v43 = vld [vmem:[#allocation171_spill] sm:$0xff]  ;;  %v8019_v28 = vld [vmem:[%s15365_s4 + $0x578] sm:$0xff]  ;;  %v5586_v52 = vrot.slane %v16175_v60, 7 }
 0x1f4   : > { %16165 = vst [vmem:[#allocation33_spill] sm:$0xff] %v13061_v25  ;;  %16167 = vst [vmem:[#allocation82_spill] sm:$0xff] %v13067_v33  ;;  %v4479_v56 = vcombine.high %v13061_v25, %v13067_v33  ;;  %v5045_v54 = vcombine.low %v12549_v18, %v13094_v34  ;;  %v4480_v15 = vcombine.low %v16169_v10, %v16168_v47  ;;  %v5585_v45 = vrot.slane %v16174_v50, 2  ;;  %v8053_v6 = vld [vmem:[%s15365_s4 + $0x688] sm:$0xff]  ;;  %v16185_v50 = vld [vmem:[#allocation22_spill] sm:$0xff] }
 0x1f5   : > { %4673 = vmatmul.mubr.f32.gmra.mrb[100].mxu0 %v4460_v55  ;;  %v16172_v31 = vcombine.low %v16170_v62, %v16171_v43  ;;  %v9558_v18 = vpack.c.bf16 %v8003_v42, %v8002_v32  ;;  %v9590_v23 = vpack.c.bf16 %v8035_v29, %v8034_v59  ;;  %5229 = vmatmul.mubr.f32.gmra.mrb[116].mxu1 %v5042_v21  ;;  %v8052_v32 = vld [vmem:[%s15365_s4 + $0x680] sm:$0xff]  ;;  %v13134_v21 = vpop.f32.mrb[56].mxu1  ;;  %v16208_v26 = vld [vmem:[#allocation40_spill] sm:$0xff] }
 0x1f6   : > { %4677 = vmatprep.mubr.f32.mxu0 %v4479_v56  ;;  %v5052_v16 = vrot.slane %v5044_v39, %v10161_v36  ;;  %v5059_v0 = vrot.slane %v5045_v54, %v10161_v36  ;;  %v4488_v41 = vrot.slane %v4480_v15, %v10161_v36  ;;  %v4478_v3 = vcombine.low %v13061_v25, %v13067_v33  ;;  %v13137_v55 = vpop.f32.mrb[57].mxu1  ;;  %v16176_v56 = vld [vmem:[#allocation34_spill] sm:$0xff]  ;;  %v16177_v39 = vld [vmem:[#allocation31_spill] sm:$0xff] }
 0x1f7   : > { %v13112_v53 = vrot.slane %v16172_v31, %v10161_v36  ;;  %9589 = vmatpush3.bf16.msra.mxu1 %v9588_v49  ;;  %9559 = vmatprep.subr.bf16.mxu0 %v9558_v18  ;;  %v9560_v17 = vpack.c.bf16 %v7987_v22, %v7986_v38  ;;  %v9592_v29 = vpack.c.bf16 %v8019_v28, %v8018_v51  ;;  %v16180_v15 = vld [vmem:[#allocation167_spill] sm:$0xff]  ;;  %v16218_v33 = vld [vmem:[#allocation62_spill] sm:$0xff] }
 0x1f8   : > { %v5061_v46 = vcombine.high %v5052_v16, %v5059_v0  ;;  %v5060_v59 = vcombine.low %v5052_v16, %v5059_v0  ;;  %9591 = vmatprep.subr.bf16.mxu1 %v9590_v23  ;;  %v5643_v54 = vcombine.high %v16177_v39, %v16176_v56  ;;  %v16178_v49 = vcombine.low %v12322_v13, %v12399_v61  ;;  %v16183_v51 = vld [vmem:[#allocation19_spill] sm:$0xff] }
 0x1f9   : > { %16173 = vst [vmem:[#allocation77_spill] sm:$0xff] %v13112_v53  ;;  %v4497_v42 = vcombine.high %v4488_v41, %v13112_v53  ;;  %4678 = vmatmul.mubr.f32.gmra.mrb[102].mxu0 %v4478_v3  ;;  %v5587_v10 = vsel %vm10931_vm12, %v5585_v45, %v5586_v52  ;;  %v16181_v38 = vcombine.low %v16180_v15, %v12217_v7  ;;  %v13158_v13 = vstv %s10090_s12  ;;  %v16186_v16 = vld [vmem:[#allocation35_spill] sm:$0xff]  ;;  %v8036_v3 = vld [vmem:[%s15365_s4 + $0x600] sm:$0xff]  ;;  %s15281_s12 = scalar_lea.vmem %s15371_s10, %s7783_s30 }
 0x1fa   : > { %v13145_v47 = vrot.slane %v16178_v49, %v10161_v36  ;;  %5233 = vmatprep.mubr.f32.mxu1 %v5061_v46  ;;  %v5644_v62 = vcombine.low %v12564_v57, %v5587_v10  ;;  %v9594_v43 = vpack.c.bf16 %v8053_v6, %v8052_v32  ;;  %v4496_v31 = vcombine.low %v4488_v41, %v13112_v53  ;;  %v16187_v32 = vld [vmem:[#allocation17_spill] sm:$0xff]  ;;  %v16188_v46 = vld [vmem:[#allocation15_spill] sm:$0xff]  ;;  %v16190_v10 = vld [vmem:[#allocation12_spill] sm:$0xff] }
 0x1fb   : > { %4682 = vmatprep.mubr.f32.mxu0 %v4497_v42  ;;  %v13153_v22 = vrot.slane %v16181_v38, %v10161_v36  ;;  %5234 = vmatmul.mubr.f32.gmra.mrb[118].mxu1 %v5060_v59  ;;  %v16184_v7 = vrot.slane %v16183_v51, 7  ;;  %v5589_v45 = vrot.slane %v16185_v50, 7  ;;  %v5642_v57 = vcombine.low %v16177_v39, %v16176_v56  ;;  %v16189_v42 = vld [vmem:[#allocation14_spill] sm:$0xff]  ;;  %v8054_v56 = vld [vmem:[%s15365_s4 + $0x690] sm:$0xff]  ;;  %v8055_v39 = vld [vmem:[%s15365_s4 + $0x698] sm:$0xff]  ;;  %v13193_v38 = vpop.f32.mrb[58].mxu1 }
 0x1fc   : > { %16179 = vst [vmem:[#allocation81_spill] sm:$0xff] %v13145_v47  ;;  %9561 = vmatpush3.bf16.msra.mxu0 %v9560_v17  ;;  %9593 = vmatpush3.bf16.msra.mxu1 %v9592_v29  ;;  %v5651_v23 = vrot.slane %v5644_v62, %v10161_v36  ;;  %v7841_v41 = vadd.s32 4294967293, %v13158_v13  ;;  %v8037_v17 = vld [vmem:[%s15365_s4 + $0x608] sm:$0xff]  ;;  %v5290_v6 = vcombine.low %v16187_v32, %v16017_v12  ;;  %v16195_v32 = vrot.slane %v16065_v14, 7  ;;  %v16209_v53 = vld [vmem:[#allocation66_spill] sm:$0xff] }
 0x1fd   : > { %16182 = vst [vmem:[#allocation44_spill] sm:$0xff] %v13153_v22  ;;  %5834 = vmatprep.mubr.f32.mxu1 %v5643_v54  ;;  %v4515_v18 = vcombine.high %v13153_v22, %v13145_v47  ;;  %v5588_v28 = vrot.slane %v16184_v7, 2  ;;  %4683 = vmatmul.mubr.f32.gmra.mrb[104].mxu0 %v4496_v31  ;;  %v4514_v52 = vcombine.low %v13153_v22, %v13145_v47  ;;  %v16191_v62 = vld [vmem:[#allocation55_spill] sm:$0xff]  ;;  %v13197_v7 = vpop.f32.mrb[59].mxu1 }
 0x1fe   : > { %v5653_v0 = vcombine.high %v16186_v16, %v5651_v23  ;;  %9595 = vmatprep.subr.bf16.mxu0 %v9594_v43  ;;  %v5289_v59 = vcombine.high %v16189_v42, %v16188_v46  ;;  %v5652_v54 = vcombine.low %v16186_v16, %v5651_v23  ;;  %v5297_v49 = vrot.slane %v5290_v6, %v10161_v36  ;;  %v16192_v43 = vld [vmem:[#allocation54_spill] sm:$0xff]  ;;  %v8038_v16 = vld [vmem:[%s15365_s4 + $0x610] sm:$0xff] }
 0x1ff   : > { %4687 = vmatprep.mubr.f32.mxu0 %v4515_v18  ;;  %5835 = vmatmul.mubr.f32.vlgmr.msra.gmra.mrb[120].mxu1 %v5642_v57  ;;  %v5590_v29 = vsel %vm10931_vm12, %v5588_v28, %v5589_v45  ;;  %v5655_v31 = vcombine.high %v16192_v43, %v16191_v62  ;;  %v9596_v18 = vpack.c.bf16 %v8037_v17, %v8036_v3  ;;  %v16193_v28 = vld [vmem:[#allocation42_spill] sm:$0xff]  ;;  %vm2626_vm13 = vcmp.ge.s32.totalorder %v7841_v41, 0 }
 0x200   : > { %5839 = vmatprep.mubr.f32.mxu1 %v5653_v0  ;;  %v5656_v15 = vcombine.low %v16190_v10, %v5590_v29  ;;  %v5592_v45 = vrot.slane %v16193_v28, 7  ;;  %v5288_v23 = vcombine.low %v16189_v42, %v16188_v46  ;;  %v9598_v57 = vpack.c.bf16 %v8055_v39, %v8054_v56  ;;  %v8039_v0 = vld [vmem:[%s15365_s4 + $0x618] sm:$0xff]  ;;  %v8056_v39 = vld [vmem:[%s15365_s4 + $0x6a0] sm:$0xff] }
 0x201   : > { %4688 = vmatmul.mubr.f32.gmra.mrb[106].mxu0 %v4514_v52  ;;  %vm2640_vm14 = vcmp.lt.s32.totalorder %v7841_v41, 16  ;;  %v16194_v52 = vld [vmem:[#allocation16_spill] sm:$0xff]  ;;  %v5591_v6 = vrot.slane %v16195_v32, 2  ;;  %v5654_v46 = vcombine.low %v16192_v43, %v16191_v62  ;;  %v5302_v42 = vcombine.low %v16025_v9, %v16183_v51  ;;  %v16199_v62 = vld [vmem:[#allocation39_spill] sm:$0xff]  ;;  %v16200_v43 = vld [vmem:[#allocation38_spill] sm:$0xff]  ;;  %v13235_v41 = vpop.f32.mrb[44].mxu0 }
 0x202   : > { %5480 = vmatprep.mubr.f32.mxu0 %v5289_v59  ;;  %v5299_v3 = vcombine.high %v16194_v52, %v5297_v49  ;;  %v5663_v17 = vrot.slane %v5656_v15, %v10161_v36  ;;  %v16196_v59 = vld [vmem:[#allocation56_spill] sm:$0xff]  ;;  %v9600_v56 = vpack.c.bf16 %v8039_v0, %v8038_v16  ;;  %vm13224_vm15 = vmand %vm2626_vm13, %vm2640_vm14  ;;  %v2601_v9 = vadd.s32 1, %v13158_v13  ;;  %v16201_v0 = vld [vmem:[#allocation49_spill] sm:$0xff] }
 0x203   : > { %5840 = vmatmul.mubr.f32.gmra.mrb[122].mxu1 %v5652_v54  ;;  %v8057_v54 = vld [vmem:[%s15365_s4 + $0x6a8] sm:$0xff]  ;;  %v5298_v15 = vcombine.low %v16194_v52, %v5297_v49  ;;  %v8040_v49 = vld [vmem:[%s15365_s4 + $0x620] sm:$0xff]  ;;  %v13245_v52 = vpop.f32.mrb[45].mxu0  ;;  %v2607_v10 = vadd.s32 8, %v13158_v13  ;;  %v5314_v22 = vcombine.low %v16209_v53, %v16065_v14 }
 0x204   : > { %5844 = vmatprep.mubr.f32.mxu1 %v5655_v31  ;;  %v5665_v29 = vcombine.high %v16196_v59, %v5663_v17  ;;  %v5301_v31 = vcombine.high %v16200_v43, %v16199_v62  ;;  %v5664_v16 = vcombine.low %v16196_v59, %v5663_v17  ;;  %v9602_v32 = vpack.c.bf16 %v8057_v54, %v8056_v39  ;;  %v13255_v59 = vld [vmem:[%s15368_s7] sm:$0x3]  ;;  %v16206_v39 = vld [vmem:[#allocation84_spill] sm:$0xff]  ;;  %v16226_v51 = vld [vmem:[#allocation63_spill] sm:$0xff] }
 0x205   : > { %5481 = vmatmul.mubr.f32.vlgmr.msra.gmra.mrb[108].mxu0 %v5288_v23  ;;  %v5593_v23 = vsel %vm10931_vm12, %v5591_v6, %v5592_v45 }
 0x206   : > { %9597 = vmatpush3.bf16.msra.mxu0 %v9596_v18  ;;  %5485 = vmatprep.mubr.f32.mxu0 %v5299_v3  ;;  %v5309_v18 = vrot.slane %v5302_v42, %v10161_v36  ;;  %v5668_v3 = vcombine.low %v16201_v0, %v5593_v23  ;;  %v16204_v42 = vmov 0.0   ;;  %v5300_v23 = vcombine.low %v16200_v43, %v16199_v62 }
 0x207   : > { %5845 = vmatmul.mubr.f32.gmra.mrb[124].mxu1 %v5654_v46  ;;  %9599 = vmatprep.subr.bf16.mxu0 %v9598_v57  ;;  %v8041_v57 = vld [vmem:[%s15365_s4 + $0x628] sm:$0xff]  ;;  %v16202_v46 = vld [vmem:[#allocation101_spill] sm:$0xff]  ;;  %v7854_v17 = vsel %vm13224_vm15, 1.0, %v16204_v42 }
 0x208   : > { %5849 = vmatprep.mubr.f32.mxu1 %v5665_v29  ;;  %v16203_v45 = vrot.slane %v16202_v46, 7  ;;  %v16205_v29 = vld [vmem:[#allocation90_spill] sm:$0xff]  ;;  %v5675_v0 = vrot.slane %v5668_v3, %v10161_v36  ;;  %v5311_v47 = vcombine.high %v16208_v26, %v5309_v18  ;;  %v16217_v3 = vld [vmem:[#allocation64_spill] sm:$0xff] }
 0x209   : > { %5486 = vmatmul.mubr.f32.gmra.mrb[110].mxu0 %v5298_v15  ;;  %v5667_v54 = vcombine.high %v16206_v39, %v16205_v29  ;;  %v7842_v15 = vadd.s32 4294967293, %v2601_v9  ;;  %v13270_v9 = vmul.f32 %v7854_v17, %v13255_v59  ;;  %v5666_v62 = vcombine.low %v16206_v39, %v16205_v29  ;;  %v8058_v29 = vld [vmem:[%s15365_s4 + $0x6b0] sm:$0xff]  ;;  %v8059_v39 = vld [vmem:[%s15365_s4 + $0x6b8] sm:$0xff] }
 0x20a   : > { %v5594_v6 = vrot.slane %v16203_v45, 2  ;;  %5490 = vmatprep.mubr.f32.mxu0 %v5301_v31  ;;  %9601 = vmatpush3.bf16.msra.mxu0 %v9600_v56  ;;  %v16207_v45 = vld [vmem:[#allocation67_spill] sm:$0xff]  ;;  %v9604_v31 = vpack.c.bf16 %v8041_v57, %v8040_v49  ;;  %v13267_v56 = vpop.f32.mrb[46].mxu0  ;;  %v16213_v49 = vld [vmem:[#allocation88_spill] sm:$0xff]  ;;  %v13282_v57 = vpop.f32.mrb[60].mxu1  ;;  %v5310_v17 = vcombine.low %v16208_v26, %v5309_v18  ;;  %v5313_v27 = vcombine.high %v16218_v33, %v16217_v3  ;;  %v6269_v18 = vld [vmem:[%s15369_s8 + $0x80] sm:$0xff] }
 0x20b   : > { %5850 = vmatmul.mubr.f32.gmra.mrb[126].mxu1 %v5664_v16  ;;  %9603 = vmatprep.subr.bf16.mxu0 %v9602_v32  ;;  %v5595_v48 = vrot.slane %v16207_v45, 7  ;;  %v13274_v43 = vpop.f32.mrb[47].mxu0  ;;  %v16211_v16 = vld [vmem:[#allocation100_spill] sm:$0xff]  ;;  %v16212_v32 = vrot.slane %v16122_v19, 7  ;;  %v5677_v53 = vcombine.high %v16213_v49, %v5675_v0  ;;  %16214 = vst [vmem:[#allocation41_spill] sm:$0xff] %v13282_v57  ;;  %vm2627_vm0 = vcmp.ge.s32.totalorder %v7842_v15, 0 }
 0x20c   : > { %5854 = vmatprep.mubr.f32.mxu1 %v5667_v54  ;;  %16210 = vst [vmem:[#allocation43_spill] sm:$0xff] %v13274_v43  ;;  %vm2641_vm1 = vcmp.lt.s32.totalorder %v7842_v15, 16  ;;  %v2608_v45 = vadd.s32 9, %v13158_v13  ;;  %v5312_v14 = vcombine.low %v16218_v33, %v16217_v3  ;;  %v16232_v3 = vld [vmem:[#allocation109_spill] sm:$0xff] }
 0x20d   : > { %5491 = vmatmul.mubr.f32.gmra.mrb[112].mxu0 %v5300_v23  ;;  %v13279_v54 = vrot.slane %v16212_v32, 2  ;;  %v7848_v23 = vadd.s32 4294967293, %v2607_v10  ;;  %v16216_v32 = vld [vmem:[#allocation124_spill] sm:$0xff]  ;;  %v5596_v26 = vsel %vm10931_vm12, %v5594_v6, %v5595_v48  ;;  %v6270_v10 = vld [vmem:[%s15369_s8 + $0x88] sm:$0xff]  ;;  %v5676_v48 = vcombine.low %v16213_v49, %v5675_v0  ;;  %v16220_v6 = vld [vmem:[#allocation9_spill] sm:$0xff] }
 0x20e   : > { %5495 = vmatprep.mubr.f32.mxu0 %v5311_v47  ;;  %9605 = vmatpush3.bf16.msra.mxu0 %v9604_v31  ;;  %v13291_v47 = vpop.f32.mrb[61].mxu1  ;;  %v16219_v31 = vld [vmem:[#allocation3_spill] sm:$0xff]  ;;  %v5680_v24 = vcombine.low %v16220_v6, %v5596_v26  ;;  %vm13326_vm2 = vmand %vm2627_vm0, %vm2641_vm1  ;;  %v16223_v0 = vld [vmem:[#allocation108_spill] sm:$0xff]  ;;  %v9606_v6 = vpack.c.bf16 %v8059_v39, %v8058_v29  ;;  %v9626_v28 = vpack.c.bf16 %v6270_v10, %v6269_v18 }
 0x20f   : > { %5855 = vmatmul.mubr.f32.gmra.mrb[128].mxu1 %v5666_v62  ;;  %16215 = vst [vmem:[#allocation45_spill] sm:$0xff] %v13291_v47  ;;  %v5321_v62 = vrot.slane %v5314_v22, %v10161_v36  ;;  %v13310_v25 = vrot.slane %v13270_v9, %v16219_v31  ;;  %v2602_v22 = vadd.s32 2, %v13158_v13  ;;  %v16224_v49 = vld [vmem:[#allocation106_spill] sm:$0xff]  ;;  %vm2634_vm3 = vcmp.ge.s32.totalorder %v7848_v23, 0  ;;  %v13339_v29 = vpop.f32.mrb[62].mxu1  ;;  %v16233_v10 = vld [vmem:[#allocation96_spill] sm:$0xff] }
 0x210   : > { %5859 = vmatprep.mubr.f32.mxu1 %v5677_v53  ;;  %v8042_v53 = vld [vmem:[%s15365_s4 + $0x630] sm:$0xff]  ;;  %v5679_v26 = vcombine.high %v16224_v49, %v16223_v0  ;;  %v5687_v15 = vrot.slane %v5680_v24, %v10161_v36  ;;  %9607 = vmatprep.subr.bf16.mxu0 %v9606_v6  ;;  %v9628_v47 = vpack.c.bf16 %v6254_v20, %v6253_v35  ;;  %vm2648_vm4 = vcmp.lt.s32.totalorder %v7848_v23, 16  ;;  %v16231_v20 = vld [vmem:[#allocation185_spill] sm:$0xff] }
 0x211   : > { %5496 = vmatmul.mubr.f32.gmra.mrb[114].mxu0 %v5310_v17  ;;  %v9608_v50 = vpack.c.bf16 %v8043_v1, %v8042_v53  ;;  %16227 = vst [vmem:[#allocation102_spill] sm:$0xff] %v13339_v29  ;;  %v7855_v24 = vsel %vm13326_vm2, 1.0, %v16204_v42  ;;  %v5678_v33 = vcombine.low %v16224_v49, %v16223_v0  ;;  %9627 = vmatprep.subr.bf16.mxu1 %v9626_v28  ;;  %v13351_v1 = vpop.f32.mrb[63].mxu1  ;;  %v8060_v17 = vld [vmem:[%s15365_s4 + $0x6c0] sm:$0xff]  ;;  %vm13362_vm5 = vmand %vm2634_vm3, %vm2648_vm4  ;;  %v7849_v28 = vadd.s32 4294967293, %v2608_v45  ;;  %v8061_v45 = vld [vmem:[%s15365_s4 + $0x6c8] sm:$0xff] }
 0x212   : > { %5500 = vmatprep.mubr.f32.mxu0 %v5313_v27  ;;  %v5323_v27 = vcombine.high %v16226_v51, %v5321_v62  ;;  %16230 = vst [vmem:[#allocation61_spill] sm:$0xff] %v13351_v1  ;;  %v5689_v18 = vcombine.high %v16232_v3, %v5687_v15  ;;  %v5326_v53 = vcombine.low %v16233_v10, %v16202_v46  ;;  %v16236_v0 = vld [vmem:[#allocation2_spill] sm:$0xff]  ;;  %v16242_v39 = vld [vmem:[#allocation21_spill] sm:$0xff] }
 0x213   : > { %5860 = vmatmul.mubr.f32.gmra.mrb[130].mxu1 %v5676_v48  ;;  %v16229_v48 = vrot.slane %v16162_v58, 7  ;;  %9609 = vmatpush3.bf16.msra.mxu0 %v9608_v50  ;;  %v13368_v49 = vrot.slane %v13270_v9, %v16236_v0  ;;  %v5322_v6 = vcombine.low %v16226_v51, %v5321_v62  ;;  %v6271_v9 = vld [vmem:[%s15369_s8 + $0x90] sm:$0xff]  ;;  %v13391_v51 = vadd.s32 4294967293, %v2602_v22  ;;  %v16240_v62 = vld [vmem:[#allocation97_spill] sm:$0xff] }
 0x214   : > { %5864 = vmatprep.mubr.f32.mxu1 %v5679_v26  ;;  %v16237_v26 = vld [vmem:[#allocation121_spill] sm:$0xff]  ;;  %9629 = vmatpush3.bf16.msra.mxu1 %v9628_v47  ;;  %v7862_v22 = vsel %vm13362_vm5, 1.0, %v16204_v42  ;;  %v9610_v1 = vpack.c.bf16 %v8061_v45, %v8060_v17  ;;  %vm2635_vm6 = vcmp.ge.s32.totalorder %v7849_v28, 0  ;;  %v8045_v17 = vld [vmem:[%s15365_s4 + $0x648] sm:$0xff]  ;;  %v6255_v45 = vld [vmem:[%s15369_s8 + $0x10] sm:$0xff]  ;;  %vm2649_vm7 = vcmp.lt.s32.totalorder %v7849_v28, 16 }
 0x215   : > { %v13344_v57 = vrot.slane %v16229_v48, 2  ;;  %5501 = vmatmul.mubr.f32.gmra.mrb[116].mxu0 %v5312_v14  ;;  %v13372_v50 = vadd.f32 %v13310_v25, %v16237_v26  ;;  %v6272_v48 = vld [vmem:[%s15369_s8 + $0x98] sm:$0xff]  ;;  %v5333_v26 = vrot.slane %v5326_v53, %v10161_v36  ;;  %v8044_v53 = vld [vmem:[%s15365_s4 + $0x640] sm:$0xff]  ;;  %vm2663_vm8 = vmand %vm2635_vm6, %vm2649_vm7  ;;  %vm2628_vm0 = vcmp.ge.s32.totalorder %v13391_v51, 0 }
 0x216   : > { %5505 = vmatprep.mubr.f32.mxu0 %v5323_v27  ;;  %v16238_v27 = vrot.slane %v16211_v16, 7  ;;  %v9630_v47 = vpack.c.bf16 %v6272_v48, %v6271_v9  ;;  %v6256_v9 = vld [vmem:[%s15369_s8 + $0x18] sm:$0xff]  ;;  %9611 = vmatprep.subr.bf16.mxu0 %v9610_v1  ;;  %v16249_v1 = vld [vmem:[#allocation168_spill] sm:$0xff]  ;;  %v9612_v29 = vpack.c.bf16 %v8045_v17, %v8044_v53  ;;  %v6258_v53 = vld [vmem:[%s15369_s8 + $0x28] sm:$0xff]  ;;  %vm2642_vm1 = vcmp.lt.s32.totalorder %v13391_v51, 16 }
 0x217   : > { %5865 = vmatmul.mubr.f32.gmra.mrb[132].mxu1 %v5678_v33  ;;  %v13389_v33 = vmul.f32 %v7855_v24, %v13255_v59  ;;  %v16243_v24 = vld [vmem:[#allocation134_spill] sm:$0xff]  ;;  %v16251_v17 = vld [vmem:[#allocation92_spill] sm:$0xff]  ;;  %vm13702_vm7 = vmand %vm2628_vm0, %vm2642_vm1 }
 0x218   : > { %v5599_v23 = vsel %vm10931_vm12, %v5597_v30, %v16238_v27  ;;  %5869 = vmatprep.mubr.f32.mxu1 %v5689_v18  ;;  %v16241_v30 = vld [vmem:[#allocation94_spill] sm:$0xff]  ;;  %v5688_v27 = vcombine.low %v16232_v3, %v5687_v15  ;;  %v16244_v18 = vld [vmem:[#allocation68_spill] sm:$0xff]  ;;  %v16245_v15 = vld [vmem:[#allocation95_spill] sm:$0xff]  ;;  %9631 = vmatprep.subr.bf16.mxu1 %v9630_v47  ;;  %v5338_v47 = vcombine.low %v11712_v63, %v16098_v11 }
 0x219   : > { %16239 = vst [vmem:[#allocation46_spill] sm:$0xff] %v13389_v33  ;;  %v5325_v10 = vcombine.high %v16241_v30, %v16240_v62  ;;  %5506 = vmatmul.mubr.f32.gmra.mrb[118].mxu0 %v5322_v6  ;;  %v5324_v35 = vcombine.low %v16241_v30, %v16240_v62  ;;  %v5692_v16 = vcombine.low %v16242_v39, %v5599_v23  ;;  %v16246_v6 = vld [vmem:[#allocation116_spill] sm:$0xff]  ;;  %v16247_v23 = vld [vmem:[#allocation107_spill] sm:$0xff] }
 0x21a   : > { %v5691_v46 = vcombine.high %v16244_v18, %v16243_v24  ;;  %v5335_v3 = vcombine.high %v16245_v15, %v5333_v26  ;;  %v5690_v39 = vcombine.low %v16244_v18, %v16243_v24  ;;  %v5337_v62 = vcombine.high %v16247_v23, %v16246_v6  ;;  %v16248_v24 = vld [vmem:[#allocation135_spill] sm:$0xff]  ;;  %9613 = vmatpush3.bf16.msra.mxu0 %v9612_v29 }
 0x21b   : > { %5510 = vmatprep.mubr.f32.mxu0 %v5325_v10  ;;  %5870 = vmatmul.mubr.f32.gmra.mrb[134].mxu1 %v5688_v27  ;;  %v5699_v14 = vrot.slane %v5692_v16, %v10161_v36  ;;  %v5334_v48 = vcombine.low %v16245_v15, %v5333_v26  ;;  %v2705_v16 = vmul.f32 %v7862_v22, %v13255_v59  ;;  %v6273_v10 = vld [vmem:[%s15369_s8 + $0xa0] sm:$0xff]  ;;  %v6274_v27 = vld [vmem:[%s15369_s8 + $0xa8] sm:$0xff]  ;;  %v2609_v15 = vadd.s32 10, %v13158_v13 }
 0x21c   : > { %5874 = vmatprep.mubr.f32.mxu1 %v5691_v46  ;;  %v5336_v30 = vcombine.low %v16247_v23, %v16246_v6  ;;  %v16250_v22 = vld [vmem:[#allocation159_spill] sm:$0xff]  ;;  %v13439_v6 = vpop.f32.mrb[48].mxu0  ;;  %v9632_v33 = vpack.c.bf16 %v6256_v9, %v6255_v45  ;;  %v16255_v9 = vld [vmem:[#allocation180_spill] sm:$0xff] }
 0x21d   : > { %5511 = vmatmul.mubr.f32.gmra.mrb[120].mxu0 %v5324_v35  ;;  %v5701_v46 = vcombine.high %v16248_v24, %v5699_v14  ;;  %v5700_v26 = vcombine.low %v16248_v24, %v5699_v14  ;;  %v5703_v18 = vcombine.high %v16250_v22, %v16249_v1  ;;  %v2792_v23 = vrot.slane %v2705_v16, %v16236_v0  ;;  %v13443_v43 = vpop.f32.mrb[49].mxu0  ;;  %v16253_v63 = vld [vmem:[#allocation91_spill] sm:$0xff] }
 0x21e   : > { %5515 = vmatprep.mubr.f32.mxu0 %v5335_v3  ;;  %v2796_v35 = vrot.slane %v2705_v16, %v16219_v31  ;;  %v5702_v28 = vcombine.low %v16250_v22, %v16249_v1  ;;  %v9634_v14 = vpack.c.bf16 %v6274_v27, %v6273_v10  ;;  %v7863_v24 = vsel %vm2663_vm8, 1.0, %v16204_v42  ;;  %v6257_v3 = vld [vmem:[%s15369_s8 + $0x20] sm:$0xff]  ;;  %v8062_v10 = vld [vmem:[%s15365_s4 + $0x6d0] sm:$0xff]  ;;  %9633 = vmatpush3.bf16.msra.mxu1 %v9632_v33 }
 0x21f   : > { %5875 = vmatmul.mubr.f32.gmra.mrb[136].mxu1 %v5690_v39  ;;  %v13457_v39 = vadd.f32 %v2792_v23, %v16251_v17  ;;  %v13463_v16 = vadd.f32 %v2792_v23, %v16255_v9  ;;  %v7850_v27 = vadd.s32 4294967293, %v2609_v15  ;;  %v5345_v1 = vrot.slane %v5338_v47, %v10161_v36  ;;  %v8063_v17 = vld [vmem:[%s15365_s4 + $0x6d8] sm:$0xff]  ;;  %v6275_v23 = vld [vmem:[%s15369_s8 + $0xb0] sm:$0xff]  ;;  %v13483_v15 = vpop.f32.mrb[50].mxu0 }
 0x220   : > { %5879 = vmatprep.mubr.f32.mxu1 %v5701_v46  ;;  %v13460_v45 = vadd.f32 %v2796_v35, %v16253_v63  ;;  %v16257_v46 = vld [vmem:[#allocation182_spill] sm:$0xff]  ;;  %v2706_v29 = vmul.f32 %v7863_v24, %v13255_v59  ;;  %v2610_v33 = vadd.s32 11, %v13158_v13  ;;  %9635 = vmatprep.subr.bf16.mxu1 %v9634_v14  ;;  %v9636_v24 = vpack.c.bf16 %v6258_v53, %v6257_v3  ;;  %v16260_v63 = vld [vmem:[#allocation139_spill] sm:$0xff]  ;;  %v16261_v9 = vld [vmem:[#allocation136_spill] sm:$0xff] }
 0x221   : > { %16252 = vst [vmem:[#allocation57_spill] sm:$0xff] %v13457_v39  ;;  %16256 = vst [vmem:[#allocation104_spill] sm:$0xff] %v13463_v16  ;;  %5516 = vmatmul.mubr.f32.gmra.mrb[122].mxu0 %v5334_v48  ;;  %v13470_v22 = vadd.f32 %v2796_v35, %v16257_v46  ;;  %v6276_v48 = vld [vmem:[%s15369_s8 + $0xb8] sm:$0xff]  ;;  %v16259_v35 = vrot.slane %v16216_v32, 7  ;;  %v5349_v46 = vcombine.high %v16261_v9, %v16260_v63  ;;  %vm2636_vm9 = vcmp.ge.s32.totalorder %v7850_v27, 0  ;;  %v13492_v16 = vpop.f32.mrb[51].mxu0 }
 0x222   : > { %16254 = vst [vmem:[#allocation70_spill] sm:$0xff] %v13460_v45  ;;  %5520 = vmatprep.mubr.f32.mxu0 %v5337_v62  ;;  %v2800_v45 = vrot.slane %v2706_v29, %v16236_v0  ;;  %v2804_v32 = vrot.slane %v2706_v29, %v16219_v31  ;;  %v9638_v3 = vpack.c.bf16 %v6276_v48, %v6275_v23  ;;  %vm2650_vm10 = vcmp.lt.s32.totalorder %v7850_v27, 16  ;;  %v8046_v53 = vld [vmem:[%s15365_s4 + $0x650] sm:$0xff] }
 0x223   : > { %16258 = vst [vmem:[#allocation105_spill] sm:$0xff] %v13470_v22  ;;  %v5602_v47 = vsel %vm10931_vm12, %v13279_v54, %v16259_v35  ;;  %5880 = vmatmul.mubr.f32.gmra.mrb[138].mxu1 %v5700_v26  ;;  %v16262_v22 = vld [vmem:[#allocation118_spill] sm:$0xff]  ;;  %v9614_v54 = vpack.c.bf16 %v8063_v17, %v8062_v10  ;;  %v8047_v26 = vld [vmem:[%s15365_s4 + $0x658] sm:$0xff]  ;;  %v13505_v35 = vpop.f32.mrb[64].mxu1  ;;  %vm2664_vm11 = vmand %vm2636_vm9, %vm2650_vm10  ;;  %vm2629_vm8 = vcmp.ge.s32.totalorder %v13158_v13, 0  ;;  %vm2643_vm9 = vcmp.lt.s32.totalorder %v13158_v13, 16 }
 0x224   : > { %v5347_v39 = vcombine.high %v16262_v22, %v5345_v1  ;;  %v5346_v62 = vcombine.low %v16262_v22, %v5345_v1  ;;  %v5704_v14 = vcombine.low %v12914_v2, %v5602_v47  ;;  %5884 = vmatprep.mubr.f32.mxu1 %v5703_v18  ;;  %v16263_v1 = vld [vmem:[#allocation183_spill] sm:$0xff]  ;;  %9637 = vmatpush3.bf16.msra.mxu1 %v9636_v24  ;;  %v16265_v18 = vld [vmem:[#allocation186_spill] sm:$0xff]  ;;  %v6259_v29 = vld [vmem:[%s15369_s8 + $0x30] sm:$0xff]  ;;  %v13521_v23 = vpop.f32.mrb[65].mxu1  ;;  %v7864_v27 = vsel %vm2664_vm11, 1.0, %v16204_v42 }
 0x225   : > { %5521 = vmatmul.mubr.f32.gmra.mrb[124].mxu0 %v5336_v30  ;;  %v13508_v22 = vadd.f32 %v2800_v45, %v16263_v1  ;;  %v13512_v10 = vadd.f32 %v2800_v45, %v16265_v18  ;;  %v6260_v17 = vld [vmem:[%s15369_s8 + $0x38] sm:$0xff]  ;;  %v7851_v30 = vadd.s32 4294967293, %v2610_v33  ;;  %v16267_v48 = vld [vmem:[#allocation184_spill] sm:$0xff]  ;;  %9615 = vmatprep.subr.bf16.mxu0 %v9614_v54  ;;  %v6277_v1 = vld [vmem:[%s15369_s8 + $0xc0] sm:$0xff] }
 0x226   : > { %v5711_v2 = vrot.slane %v5704_v14, %v10161_v36  ;;  %5525 = vmatprep.mubr.f32.mxu0 %v5347_v39  ;;  %v13524_v47 = vadd.f32 %v2804_v32, %v16267_v48  ;;  %v16269_v24 = vld [vmem:[#allocation188_spill] sm:$0xff]  ;;  %v5348_v14 = vcombine.low %v16261_v9, %v16260_v63  ;;  %v16271_v33 = vld [vmem:[#allocation169_spill] sm:$0xff]  ;;  %9639 = vmatprep.subr.bf16.mxu1 %v9638_v3  ;;  %v6261_v63 = vld [vmem:[%s15369_s8 + $0x40] sm:$0xff] }
 0x227   : > { %16264 = vst [vmem:[#allocation75_spill] sm:$0xff] %v13508_v22  ;;  %16266 = vst [vmem:[#allocation73_spill] sm:$0xff] %v13512_v10  ;;  %v13527_v45 = vadd.f32 %v2804_v32, %v16269_v24  ;;  %5885 = vmatmul.mubr.f32.gmra.mrb[140].mxu1 %v5702_v28  ;;  %v2707_v48 = vmul.f32 %v7864_v27, %v13255_v59  ;;  %v6278_v32 = vld [vmem:[%s15369_s8 + $0xc8] sm:$0xff]  ;;  %vm2637_vm13 = vcmp.ge.s32.totalorder %v7851_v30, 0  ;;  %v16272_v9 = vld [vmem:[#allocation196_spill] sm:$0xff]  ;;  %vm2651_vm14 = vcmp.lt.s32.totalorder %v7851_v30, 16 }
 0x228   : > { %16268 = vst [vmem:[#allocation60_spill] sm:$0xff] %v13524_v47  ;;  %v5713_v18 = vcombine.high %v16271_v33, %v5711_v2  ;;  %v5712_v39 = vcombine.low %v16271_v33, %v5711_v2  ;;  %v6262_v28 = vld [vmem:[%s15369_s8 + $0x48] sm:$0xff]  ;;  %v9616_v2 = vpack.c.bf16 %v8047_v26, %v8046_v53  ;;  %v9640_v3 = vpack.c.bf16 %v6260_v17, %v6259_v29  ;;  %vm13557_vm15 = vmand %vm2637_vm13, %vm2651_vm14  ;;  %v8064_v29 = vld [vmem:[%s15365_s4 + $0x6e0] sm:$0xff] }
 0x229   : > { %16270 = vst [vmem:[#allocation58_spill] sm:$0xff] %v13527_v45  ;;  %v16273_v54 = vld [vmem:[#allocation187_spill] sm:$0xff]  ;;  %v5350_v27 = vcombine.low %v11891_v40, %v16122_v19  ;;  %5526 = vmatmul.mubr.f32.gmra.mrb[126].mxu0 %v5346_v62  ;;  %v2808_v33 = vrot.slane %v2707_v48, %v16236_v0  ;;  %v2812_v10 = vrot.slane %v2707_v48, %v16219_v31  ;;  %v16276_v40 = vrot.slane %v16149_v5, 7  ;;  %v16277_v17 = vld [vmem:[#allocation189_spill] sm:$0xff]  ;;  %v16281_v30 = vld [vmem:[#allocation192_spill] sm:$0xff] }
 0x22a   : > { %v5715_v24 = vcombine.high %v16273_v54, %v16272_v9  ;;  %5889 = vmatprep.mubr.f32.mxu1 %v5713_v18  ;;  %v5714_v45 = vcombine.low %v16273_v54, %v16272_v9  ;;  %5530 = vmatprep.mubr.f32.mxu0 %v5349_v46  ;;  %v9642_v47 = vpack.c.bf16 %v6278_v32, %v6277_v1  ;;  %v16279_v18 = vld [vmem:[#allocation191_spill] sm:$0xff]  ;;  %v16283_v32 = vld [vmem:[#allocation194_spill] sm:$0xff]  ;;  %v13587_v54 = vpop.f32.mrb[66].mxu1  ;;  %v16287_v53 = vld [vmem:[#allocation181_spill] sm:$0xff] }
 0x22b   : > { %9617 = vmatpush3.bf16.msra.mxu0 %v9616_v2  ;;  %v5357_v22 = vrot.slane %v5350_v27, %v10161_v36  ;;  %v5603_v62 = vrot.slane %v16276_v40, 2  ;;  %v9644_v26 = vpack.c.bf16 %v6262_v28, %v6261_v63  ;;  %5890 = vmatmul.mubr.f32.gmra.mrb[142].mxu1 %v5712_v39  ;;  %v13567_v46 = vadd.f32 %v2808_v33, %v16277_v17  ;;  %v8065_v63 = vld [vmem:[%s15365_s4 + $0x6e8] sm:$0xff]  ;;  %v6279_v39 = vld [vmem:[%s15369_s8 + $0xd0] sm:$0xff]  ;;  %v6280_v28 = vld [vmem:[%s15369_s8 + $0xd8] sm:$0xff] }
 0x22c   : > { %v13570_v48 = vadd.f32 %v2812_v10, %v16279_v18  ;;  %v13573_v1 = vadd.f32 %v2808_v33, %v16281_v30  ;;  %v13576_v9 = vadd.f32 %v2812_v10, %v16283_v32  ;;  %5894 = vmatprep.mubr.f32.mxu1 %v5715_v24  ;;  %9641 = vmatpush3.bf16.msra.mxu1 %v9640_v3  ;;  %v16285_v10 = vld [vmem:[#allocation140_spill] sm:$0xff]  ;;  %v7865_v27 = vsel %vm13557_vm15, 1.0, %v16204_v42  ;;  %v8048_v18 = vld [vmem:[%s15365_s4 + $0x660] sm:$0xff]  ;;  %v13603_v30 = vpop.f32.mrb[67].mxu1  ;;  %vm13776_vm10 = vmand %vm2629_vm8, %vm2643_vm9 }
 0x22d   : > { %16278 = vst [vmem:[#allocation119_spill] sm:$0xff] %v13567_v46  ;;  %v5359_v2 = vcombine.high %v16285_v10, %v5357_v22  ;;  %v5358_v33 = vcombine.low %v16285_v10, %v5357_v22  ;;  %v16286_v40 = vrot.slane %v16228_v44, 7  ;;  %5531 = vmatmul.mubr.f32.gmra.mrb[128].mxu0 %v5348_v14  ;;  %9643 = vmatprep.subr.bf16.mxu1 %v9642_v47  ;;  %v16288_v32 = vld [vmem:[#allocation172_spill] sm:$0xff]  ;;  %v2611_v10 = vadd.s32 12, %v13158_v13  ;;  %v6264_v47 = vld [vmem:[%s15369_s8 + $0x58] sm:$0xff] }
 0x22e   : > { %16280 = vst [vmem:[#allocation120_spill] sm:$0xff] %v13570_v48  ;;  %16282 = vst [vmem:[#allocation127_spill] sm:$0xff] %v13573_v1  ;;  %v2708_v24 = vmul.f32 %v7865_v27, %v13255_v59  ;;  %v5361_v22 = vcombine.high %v16288_v32, %v16287_v53  ;;  %v9618_v14 = vpack.c.bf16 %v8065_v63, %v8064_v29  ;;  %v16290_v1 = vld [vmem:[#allocation203_spill] sm:$0xff]  ;;  %v6281_v63 = vld [vmem:[%s15369_s8 + $0xe0] sm:$0xff] }
 0x22f   : > { %16284 = vst [vmem:[#allocation89_spill] sm:$0xff] %v13576_v9  ;;  %v5605_v17 = vsel %vm10931_vm12, %v5603_v62, %v16286_v40  ;;  %v8049_v62 = vld [vmem:[%s15365_s4 + $0x668] sm:$0xff]  ;;  %v6263_v40 = vld [vmem:[%s15369_s8 + $0x50] sm:$0xff]  ;;  %5535 = vmatprep.mubr.f32.mxu0 %v5359_v2  ;;  %v5360_v27 = vcombine.low %v16288_v32, %v16287_v53  ;;  %5895 = vmatmul.mubr.f32.gmra.mrb[144].mxu1 %v5714_v45  ;;  %v7852_v19 = vadd.s32 4294967293, %v2611_v10  ;;  %v13648_v10 = vld [vmem:[%s15369_s8 + $0x60] sm:$0xff] }
 0x230   : > { %v5716_v3 = vcombine.low %v12995_v4, %v5605_v17  ;;  %v9646_v4 = vpack.c.bf16 %v6280_v28, %v6279_v39  ;;  %v16289_v17 = vld [vmem:[#allocation23_spill] sm:$0xff]  ;;  %v2816_v46 = vrot.slane %v2708_v24, %v16236_v0  ;;  %v2820_v44 = vrot.slane %v2708_v24, %v16219_v31  ;;  %9645 = vmatpush3.bf16.msra.mxu1 %v9644_v26  ;;  %v16293_v26 = vld [vmem:[#allocation198_spill] sm:$0xff] }
 0x231   : > { %v5727_v9 = vcombine.high %v16290_v1, %v16289_v17  ;;  %9619 = vmatprep.subr.bf16.mxu0 %v9618_v14  ;;  %v9620_v11 = vpack.c.bf16 %v8049_v62, %v8048_v18  ;;  %v9648_v2 = vpack.c.bf16 %v6264_v47, %v6263_v40  ;;  %v5362_v29 = vcombine.low %v12065_v37, %v16149_v5  ;;  %v6282_v45 = vld [vmem:[%s15369_s8 + $0xe8] sm:$0xff]  ;;  %v16296_v37 = vld [vmem:[#allocation201_spill] sm:$0xff] }
 0x232   : > { %v5723_v48 = vrot.slane %v5716_v3, %v10161_v36  ;;  %v2612_v39 = vadd.s32 13, %v13158_v13  ;;  %v16291_v28 = vld [vmem:[#allocation195_spill] sm:$0xff]  ;;  %5536 = vmatmul.mubr.f32.gmra.mrb[130].mxu0 %v5358_v33  ;;  %v16294_v3 = vld [vmem:[#allocation200_spill] sm:$0xff]  ;;  %v13643_v32 = vadd.f32 %v2816_v46, %v16296_v37  ;;  %v16298_v33 = vld [vmem:[#allocation202_spill] sm:$0xff]  ;;  %9647 = vmatprep.subr.bf16.mxu1 %v9646_v4  ;;  %vm2638_vm2 = vcmp.ge.s32.totalorder %v7852_v19, 0 }
 0x233   : > { %v13636_v24 = vadd.f32 %v2816_v46, %v16291_v28  ;;  %v13640_v53 = vadd.f32 %v2820_v44, %v16294_v3  ;;  %v13653_v62 = vld [vmem:[%s15369_s8 + $0x68] sm:$0xff]  ;;  %5540 = vmatprep.mubr.f32.mxu0 %v5361_v22  ;;  %v13656_v40 = vadd.f32 %v2820_v44, %v16298_v33  ;;  %vm2652_vm3 = vcmp.lt.s32.totalorder %v7852_v19, 16  ;;  %v8066_v46 = vld [vmem:[%s15365_s4 + $0x6f0] sm:$0xff]  ;;  %v8067_v14 = vld [vmem:[%s15365_s4 + $0x6f8] sm:$0xff]  ;;  %9621 = vmatpush3.bf16.msra.mxu0 %v9620_v11 }
 0x234   : > { %v5725_v18 = vcombine.high %v16293_v26, %v5723_v48  ;;  %16297 = vst [vmem:[#allocation65_spill] sm:$0xff] %v13643_v32  ;;  %v5724_v47 = vcombine.low %v16293_v26, %v5723_v48  ;;  %vm2666_vm4 = vmand %vm2638_vm2, %vm2652_vm3  ;;  %v5369_v22 = vrot.slane %v5362_v29, %v10161_v36  ;;  %v5726_v44 = vcombine.low %v16290_v1, %v16289_v17  ;;  %v6283_v19 = vld [vmem:[%s15369_s8 + $0xf0] sm:$0xff]  ;;  %v6284_v28 = vld [vmem:[%s15369_s8 + $0xf8] sm:$0xff] }
 0x235   : > { %16292 = vst [vmem:[#allocation11_spill] sm:$0xff] %v13636_v24  ;;  %16295 = vst [vmem:[#allocation59_spill] sm:$0xff] %v13640_v53  ;;  %v9650_v48 = vpack.c.bf16 %v6282_v45, %v6281_v63  ;;  %v7853_v4 = vadd.s32 4294967293, %v2612_v39  ;;  %v7866_v26 = vsel %vm2666_vm4, 1.0, %v16204_v42  ;;  %v16300_v11 = vrot.slane %v16231_v20, 7  ;;  %v16301_v17 = vld [vmem:[#allocation197_spill] sm:$0xff]  ;;  %9649 = vmatpush3.bf16.msra.mxu1 %v9648_v2 }
 0x236   : > { %16299 = vst [vmem:[#allocation130_spill] sm:$0xff] %v13656_v40  ;;  %5899 = vmatprep.mubr.f32.mxu1 %v5725_v18  ;;  %v9652_v1 = vpack.c.bf16 %v13653_v62, %v13648_v10  ;;  %v16302_v63 = vld [vmem:[#allocation193_spill] sm:$0xff]  ;;  %v2709_v39 = vmul.f32 %v7866_v26, %v13255_v59  ;;  %5541 = vmatmul.mubr.f32.gmra.mrb[132].mxu0 %v5360_v27  ;;  %v16303_v18 = vld [vmem:[#allocation179_spill] sm:$0xff]  ;;  %v8050_v37 = vld [vmem:[%s15365_s4 + $0x670] sm:$0xff] }
 0x237   : > { %5900 = vmatmul.mubr.f32.gmra.mrb[146].mxu1 %v5724_v47  ;;  %v5608_v29 = vsel %vm10931_vm12, %v13344_v57, %v16300_v11  ;;  %v5373_v45 = vcombine.high %v16302_v63, %v16301_v17  ;;  %v5371_v3 = vcombine.high %v16303_v18, %v5369_v22  ;;  %vm2639_vm5 = vcmp.ge.s32.totalorder %v7853_v4, 0  ;;  %v13692_v57 = vpop.f32.mrb[52].mxu0  ;;  %9651 = vmatprep.subr.bf16.mxu1 %v9650_v48  ;;  %v6268_v48 = vld [vmem:[%s15369_s8 + $0x78] sm:$0xff]  ;;  %v16379_v53 = vld [vmem:[#allocation156_spill] sm:$0xff] }
 0x238   : > { %5904 = vmatprep.mubr.f32.mxu1 %v5727_v9  ;;  %vm2653_vm6 = vcmp.lt.s32.totalorder %v7853_v4, 16  ;;  %v5370_v10 = vcombine.low %v16303_v18, %v5369_v22  ;;  %v5728_v9 = vcombine.low %v13094_v34, %v5608_v29  ;;  %v9622_v27 = vpack.c.bf16 %v8067_v14, %v8066_v46  ;;  %v13696_v33 = vpop.f32.mrb[53].mxu0  ;;  %v16308_v11 = vld [vmem:[#allocation25_spill] sm:$0xff] }
 0x239   : > { %vm2667_vm12 = vmand %vm2639_vm5, %vm2653_vm6  ;;  %v9654_v62 = vpack.c.bf16 %v6284_v28, %v6283_v19  ;;  %v2824_v4 = vrot.slane %v2709_v39, %v16236_v0  ;;  %v2828_v2 = vrot.slane %v2709_v39, %v16219_v31  ;;  %5545 = vmatprep.mubr.f32.mxu0 %v5371_v3  ;;  %v5372_v46 = vcombine.low %v16302_v63, %v16301_v17  ;;  %v6267_v19 = vld [vmem:[%s15369_s8 + $0x70] sm:$0xff]  ;;  %v16306_v28 = vld [vmem:[#allocation10_spill] sm:$0xff]  ;;  %v13732_v18 = vpop.f32.mrb[54].mxu0 }
 0x23a   : > { %v7867_v34 = vsel %vm2667_vm12, 1.0, %v16204_v42  ;;  %v5735_v14 = vrot.slane %v5728_v9, %v10161_v36  ;;  %9623 = vmatprep.subr.bf16.mxu0 %v9622_v27  ;;  %v9624_v22 = vpack.c.bf16 %v8051_v8, %v8050_v37  ;;  %v16312_v63 = vld [vmem:[#allocation26_spill] sm:$0xff]  ;;  %5546 = vmatmul.mubr.f32.gmra.mrb[134].mxu0 %v5370_v10  ;;  %v7856_v3 = vsel %vm13702_vm7, 1.0, %v16204_v42  ;;  %v16314_v8 = vld [vmem:[#allocation37_spill] sm:$0xff] }
 0x23b   : > { %5905 = vmatmul.mubr.f32.gmra.mrb[148].mxu1 %v5726_v44  ;;  %v2710_v51 = vmul.f32 %v7867_v34, %v13255_v59  ;;  %v13721_v26 = vadd.f32 %v2824_v4, %v16306_v28  ;;  %v13724_v29 = vadd.f32 %v2828_v2, %v16308_v11  ;;  %v16310_v44 = vld [vmem:[#allocation24_spill] sm:$0xff]  ;;  %v13730_v39 = vadd.f32 %v2828_v2, %v16312_v63  ;;  %v8084_v34 = vld [vmem:[%s15369_s8 + $0x180] sm:$0xff]  ;;  %v16317_v28 = vld [vmem:[#allocation27_spill] sm:$0xff] }
 0x23c   : > { %v13727_v17 = vadd.f32 %v2824_v4, %v16310_v44  ;;  %v5737_v9 = vcombine.high %v16314_v8, %v5735_v14  ;;  %9653 = vmatpush3.bf16.msra.mxu1 %v9652_v1  ;;  %5550 = vmatprep.mubr.f32.mxu0 %v5373_v45  ;;  %v13740_v4 = vpop.f32.mrb[55].mxu0  ;;  %v5736_v10 = vcombine.low %v16314_v8, %v5735_v14  ;;  %v8085_v1 = vld [vmem:[%s15369_s8 + $0x188] sm:$0xff]  ;;  %v16315_v45 = vld [vmem:[#allocation28_spill] sm:$0xff]  ;;  %v16324_v63 = vld [vmem:[#allocation126_spill] sm:$0xff]  ;;  %vm7635_vm7 = vcmask 64512  }
 0x23d   : > { %16307 = vst [vmem:[#allocation93_spill] sm:$0xff] %v13721_v26  ;;  %16309 = vst [vmem:[#allocation123_spill] sm:$0xff] %v13724_v29  ;;  %v2832_v37 = vrot.slane %v2710_v51, %v16236_v0  ;;  %v2836_v27 = vrot.slane %v2710_v51, %v16219_v31  ;;  %9655 = vmatprep.subr.bf16.mxu1 %v9654_v62  ;;  %9625 = vmatpush3.bf16.msra.mxu0 %v9624_v22  ;;  %v16319_v62 = vld [vmem:[#allocation6_spill] sm:$0xff] }
 0x23e   : > { %16311 = vst [vmem:[#allocation99_spill] sm:$0xff] %v13727_v17  ;;  %16313 = vst [vmem:[#allocation98_spill] sm:$0xff] %v13730_v39  ;;  %v9656_v2 = vpack.c.bf16 %v6268_v48, %v6267_v19  ;;  %v8376_v47 = vadd.f32 %v13137_v55, %v13134_v21  ;;  %5909 = vmatprep.mubr.f32.mxu1 %v5737_v9  ;;  %v16321_v19 = vld [vmem:[#allocation4_spill] sm:$0xff]  ;;  %v16323_v55 = vld [vmem:[#allocation69_spill] sm:$0xff]  ;;  %5551 = vmatmul.mubr.f32.gmra.mrb[136].mxu0 %v5372_v46  ;;  %v13783_v9 = vpop.f32.mrb[68].mxu1 }
 0x23f   : > { %v13753_v51 = vadd.f32 %v2832_v37, %v16315_v45  ;;  %v13756_v14 = vadd.f32 %v2836_v27, %v16317_v28  ;;  %v13759_v22 = vadd.f32 %v2832_v37, %v16319_v62  ;;  %v13762_v21 = vadd.f32 %v2836_v27, %v16321_v19  ;;  %5910 = vmatmul.mubr.f32.gmra.mrb[150].mxu1 %v5736_v10  ;;  %v16327_v27 = vld [vmem:[#allocation43_spill] sm:$0xff]  ;;  %v13791_v45 = vpop.f32.mrb[69].mxu1  ;;  %v16332_v19 = vld [vmem:[#allocation125_spill] sm:$0xff] }
 0x240   : > { %v2865_v48 = vadd.f32 %v13368_v49, %v16323_v55  ;;  %v5374_v11 = vcombine.low %v12399_v61, %v16162_v58  ;;  %v8379_v44 = vadd.f32 %v13197_v7, %v13193_v38  ;;  %v2868_v8 = vadd.f32 %v13310_v25, %v16324_v63  ;;  %9657 = vmatpush3.bf16.msra.mxu1 %v9656_v2  ;;  %v8068_v63 = vld [vmem:[%s15369_s8 + $0x100] sm:$0xff]  ;;  %v8069_v37 = vld [vmem:[%s15369_s8 + $0x108] sm:$0xff] }
 0x241   : > { %16316 = vst [vmem:[#allocation72_spill] sm:$0xff] %v13753_v51  ;;  %16318 = vst [vmem:[#allocation83_spill] sm:$0xff] %v13756_v14  ;;  %6349 = vmatprep.mubr.f32.mxu1 %v13372_v50  ;;  %v8296_v61 = vadd.f32 %v13245_v52, %v13235_v41  ;;  %v9658_v46 = vpack.c.bf16 %v8085_v1, %v8084_v34  ;;  %v2699_v38 = vmul.f32 %v7856_v3, %v13255_v59  ;;  %v16328_v50 = vld [vmem:[#allocation46_spill] sm:$0xff]  ;;  %v16329_v3 = vld [vmem:[#allocation41_spill] sm:$0xff] }
 0x242   : > { %16320 = vst [vmem:[#allocation132_spill] sm:$0xff] %v13759_v22  ;;  %16322 = vst [vmem:[#allocation151_spill] sm:$0xff] %v13762_v21  ;;  %v5381_v25 = vrot.slane %v5374_v11, %v10161_v36  ;;  %v5966_v7 = vcombine.low %v16017_v12, %v16175_v60  ;;  %v8299_v10 = vadd.f32 %v16327_v27, %v13267_v56  ;;  %v16330_v34 = vld [vmem:[#allocation45_spill] sm:$0xff]  ;;  %v7857_v12 = vsel %vm13776_vm10, 1.0, %v16204_v42  ;;  %v16331_v56 = vld [vmem:[#allocation199_spill] sm:$0xff] }
 0x243   : > { %v2736_v2 = vrot.slane %v16328_v50, %v16236_v0  ;;  %v2740_v41 = vrot.slane %v16328_v50, %v16219_v31  ;;  %v13797_v52 = vadd.f32 %v8376_v47, %v8296_v61  ;;  %9659 = vmatprep.subr.bf16.mxu0 %v9658_v46  ;;  %v8382_v1 = vadd.f32 %v16330_v34, %v16329_v3  ;;  %v16333_v61 = vld [vmem:[#allocation102_spill] sm:$0xff]  ;;  %v13820_v46 = vpop.f32.mrb[70].mxu1  ;;  %v16335_v27 = vld [vmem:[#allocation5_spill] sm:$0xff]  ;;  %v8086_v50 = vld [vmem:[%s15369_s8 + $0x190] sm:$0xff] }
 0x244   : > { %v2603_v60 = vadd.s32 4, %v13158_v13  ;;  %v5383_v28 = vcombine.high %v16331_v56, %v5381_v25  ;;  %6350 = vmatmul.mubr.f32.vlgmr.msra.gmra.mrb[152].mxu1 %v2865_v48  ;;  %v13806_v62 = vadd.f32 %v8379_v44, %v8299_v10  ;;  %v2867_v55 = vadd.f32 %v13368_v49, %v16332_v19  ;;  %v16334_v48 = vld [vmem:[#allocation61_spill] sm:$0xff] }
 0x245   : > { %v2604_v47 = vadd.s32 5, %v13158_v13  ;;  %v5382_v11 = vcombine.low %v16331_v56, %v5381_v25  ;;  %6354 = vmatprep.mubr.f32.mxu1 %v2868_v8  ;;  %v8385_v44 = vadd.f32 %v16334_v48, %v16333_v61  ;;  %v13823_v49 = vrot.slane %v2699_v38, %v16236_v0  ;;  %v16336_v25 = vld [vmem:[#allocation29_spill] sm:$0xff]  ;;  %v13838_v56 = vpop.f32.mrb[71].mxu1 }
 0x246   : > { %5555 = vmatprep.mubr.f32.mxu0 %v5383_v28  ;;  %v5965_v8 = vcombine.high %v16336_v25, %v16335_v27  ;;  %v13828_v10 = vrot.slane %v5966_v7, %v10161_v36  ;;  %v8087_v3 = vld [vmem:[%s15369_s8 + $0x198] sm:$0xff]  ;;  %v8302_v34 = vadd.f32 %v13443_v43, %v13439_v6  ;;  %v16337_v28 = vld [vmem:[#allocation131_spill] sm:$0xff]  ;;  %v16339_v7 = vld [vmem:[#allocation74_spill] sm:$0xff]  ;;  %v8305_v21 = vadd.f32 %v13492_v16, %v13483_v15 }
 0x247   : > { %v13841_v19 = vadd.f32 %v2736_v2, %v16337_v28  ;;  %v16338_v61 = vld [vmem:[#allocation133_spill] sm:$0xff]  ;;  %v13847_v22 = vadd.f32 %v2736_v2, %v16339_v7  ;;  %5556 = vmatmul.mubr.f32.gmra.mrb[138].mxu0 %v5382_v11  ;;  %v13851_v51 = vadd.s32 4294967293, %v2603_v60  ;;  %v9660_v43 = vpack.c.bf16 %v8069_v37, %v8068_v63  ;;  %v8070_v6 = vld [vmem:[%s15369_s8 + $0x110] sm:$0xff]  ;;  %v8116_v2 = vld [vmem:[%s15369_s8 + $0x280] sm:$0xff]  ;;  %v8312_v63 = vpop.f32.mrb[56].mxu0 }
 0x248   : > { %v13844_v48 = vadd.f32 %v2740_v41, %v16338_v61  ;;  %6156 = vmatprep.mubr.f32.mxu0 %v5965_v8  ;;  %6355 = vmatmul.mubr.f32.gmra.mrb[154].mxu1 %v2867_v55  ;;  %v13856_v28 = vadd.f32 %v8382_v1, %v8302_v34  ;;  %v8388_v61 = vadd.f32 %v13521_v23, %v13505_v35  ;;  %v8117_v16 = vld [vmem:[%s15369_s8 + $0x288] sm:$0xff]  ;;  %v16340_v15 = vld [vmem:[#allocation137_spill] sm:$0xff]  ;;  %v8100_v11 = vld [vmem:[%s15369_s8 + $0x200] sm:$0xff]  ;;  %v8313_v7 = vpop.f32.mrb[57].mxu0  ;;  %v13907_v39 = vadd.s32 4294967293, %v2604_v47 }
 0x249   : > { %v13867_v60 = vadd.f32 %v2740_v41, %v16340_v15  ;;  %v5964_v55 = vcombine.low %v16336_v25, %v16335_v27  ;;  %v9662_v1 = vpack.c.bf16 %v8087_v3, %v8086_v50  ;;  %v8071_v35 = vld [vmem:[%s15369_s8 + $0x118] sm:$0xff]  ;;  %v13875_v23 = vadd.f32 %v8385_v44, %v8305_v21  ;;  %v8101_v41 = vld [vmem:[%s15369_s8 + $0x208] sm:$0xff]  ;;  %v16341_v37 = vld [vmem:[#allocation52_spill] sm:$0xff] }
 0x24a   : > { %6359 = vmatprep.mubr.f32.mxu1 %v13844_v48  ;;  %v5975_v27 = vcombine.high %v16341_v37, %v13828_v10  ;;  %v16342_v25 = vld [vmem:[#allocation22_spill] sm:$0xff]  ;;  %v16343_v8 = vld [vmem:[#allocation19_spill] sm:$0xff]  ;;  %v8391_v3 = vadd.f32 %v13603_v30, %v13587_v54  ;;  %v8308_v34 = vadd.f32 %v13696_v33, %v13692_v57  ;;  %v9690_v17 = vpack.c.bf16 %v8117_v16, %v8116_v2  ;;  %v16346_v2 = vld [vmem:[#allocation48_spill] sm:$0xff] }
 0x24b   : > { %v5978_v50 = vcombine.low %v16343_v8, %v16342_v25  ;;  %v8088_v21 = vld [vmem:[%s15369_s8 + $0x1a0] sm:$0xff]  ;;  %v8089_v44 = vld [vmem:[%s15369_s8 + $0x1a8] sm:$0xff]  ;;  %v13902_v25 = vrot.slane %v2699_v38, %v16219_v31  ;;  %v13905_v8 = vmul.f32 %v7857_v12, %v13255_v59  ;;  %6157 = vmatmul.mubr.f32.vlgmr.msra.gmra.mrb[140].mxu0 %v5964_v55  ;;  %v9664_v54 = vpack.c.bf16 %v8071_v35, %v8070_v6  ;;  %v8119_v6 = vld [vmem:[%s15369_s8 + $0x298] sm:$0xff] }
 0x24c   : > { %v16344_v15 = vld [vmem:[#allocation138_spill] sm:$0xff]  ;;  %9661 = vmatpush3.bf16.msra.mxu0 %v9660_v43  ;;  %6161 = vmatprep.mubr.f32.mxu0 %v5975_v27  ;;  %v13914_v57 = vadd.f32 %v8388_v61, %v8308_v34  ;;  %v9692_v33 = vpack.c.bf16 %v8101_v41, %v8100_v11  ;;  %vm2630_vm11 = vcmp.ge.s32.totalorder %v13851_v51, 0  ;;  %v5974_v59 = vcombine.low %v16341_v37, %v13828_v10  ;;  %v8073_v12 = vld [vmem:[%s15369_s8 + $0x128] sm:$0xff]  ;;  %v8118_v43 = vld [vmem:[%s15369_s8 + $0x290] sm:$0xff]  ;;  %v8315_v61 = vpop.f32.mrb[58].mxu0 }
 0x24d   : > { %v13899_v14 = vadd.f32 %v13823_v49, %v16344_v15  ;;  %v13912_v30 = vld [vmem:[%s15369_s8 + $0x120] sm:$0xff]  ;;  %6360 = vmatmul.mubr.f32.gmra.mrb[156].mxu1 %v13841_v19  ;;  %9663 = vmatprep.subr.bf16.mxu0 %v9662_v1  ;;  %v9666_v38 = vpack.c.bf16 %v8089_v44, %v8088_v21  ;;  %v8311_v47 = vadd.f32 %v13740_v4, %v13732_v18  ;;  %vm2644_vm13 = vcmp.lt.s32.totalorder %v13851_v51, 16  ;;  %v16345_v10 = vld [vmem:[#allocation47_spill] sm:$0xff]  ;;  %v8090_v18 = vld [vmem:[%s15369_s8 + $0x1b0] sm:$0xff]  ;;  %v8316_v35 = vpop.f32.mrb[59].mxu0 }
 0x24e   : > { %6364 = vmatprep.mubr.f32.mxu1 %v13867_v60  ;;  %v5977_v16 = vcombine.high %v16346_v2, %v16345_v10  ;;  %v13936_v55 = vrot.slane %v5978_v50, %v10161_v36  ;;  %v8091_v4 = vld [vmem:[%s15369_s8 + $0x1b8] sm:$0xff]  ;;  %9691 = vmatprep.subr.bf16.mxu1 %v9690_v17  ;;  %v8394_v1 = vadd.f32 %v13791_v45, %v13783_v9  ;;  %v8102_v50 = vld [vmem:[%s15369_s8 + $0x210] sm:$0xff]  ;;  %v8398_v9 = vpop.f32.mrb[72].mxu1  ;;  %vm13975_vm14 = vmand %vm2630_vm11, %vm2644_vm13  ;;  %vm2631_vm15 = vcmp.ge.s32.totalorder %v13907_v39, 0 }
 0x24f   : > { %v16347_v11 = vld [vmem:[#allocation141_spill] sm:$0xff]  ;;  %6162 = vmatmul.mubr.f32.gmra.mrb[142].mxu0 %v5974_v59  ;;  %9693 = vmatpush3.bf16.msra.mxu1 %v9692_v33  ;;  %v13950_v37 = vadd.f32 %v8391_v3, %v8311_v47  ;;  %v8397_v27 = vadd.f32 %v13838_v56, %v13820_v46  ;;  %v13962_v45 = vrot.slane %v13905_v8, %v16219_v31  ;;  %v8120_v46 = vld [vmem:[%s15369_s8 + $0x2a0] sm:$0xff]  ;;  %v8121_v56 = vld [vmem:[%s15369_s8 + $0x2a8] sm:$0xff]  ;;  %v8399_v3 = vpop.f32.mrb[73].mxu1  ;;  %vm2645_vm0 = vcmp.lt.s32.totalorder %v13907_v39, 16 }
 0x250   : > { %v13948_v41 = vadd.f32 %v13902_v25, %v16347_v11  ;;  %v8103_v17 = vld [vmem:[%s15369_s8 + $0x218] sm:$0xff]  ;;  %6166 = vmatprep.mubr.f32.mxu0 %v5977_v16  ;;  %9665 = vmatpush3.bf16.msra.mxu0 %v9664_v54  ;;  %v9668_v21 = vpack.c.bf16 %v8073_v12, %v13912_v30  ;;  %v9694_v44 = vpack.c.bf16 %v8119_v6, %v8118_v43  ;;  %v8074_v30 = vld [vmem:[%s15369_s8 + $0x130] sm:$0xff]  ;;  %v16351_v47 = vld [vmem:[#allocation42_spill] sm:$0xff] }
 0x251   : > { %6365 = vmatmul.mubr.f32.gmra.mrb[158].mxu1 %v13847_v22  ;;  %v5976_v15 = vcombine.low %v16346_v2, %v16345_v10  ;;  %9667 = vmatprep.subr.bf16.mxu0 %v9666_v38  ;;  %v9670_v54 = vpack.c.bf16 %v8091_v4, %v8090_v18  ;;  %v8075_v33 = vld [vmem:[%s15369_s8 + $0x138] sm:$0xff]  ;;  %v8314_v51 = vadd.f32 %v8313_v7, %v8312_v63  ;;  %v16352_v43 = vld [vmem:[#allocation71_spill] sm:$0xff]  ;;  %v8092_v6 = vld [vmem:[%s15369_s8 + $0x1c0] sm:$0xff] }
 0x252   : > { %6369 = vmatprep.mubr.f32.mxu1 %v13948_v41  ;;  %v16350_v59 = vld [vmem:[#allocation13_spill] sm:$0xff]  ;;  %v5990_v38 = vcombine.low %v16352_v43, %v16351_v47  ;;  %v8093_v10 = vld [vmem:[%s15369_s8 + $0x1c8] sm:$0xff]  ;;  %9695 = vmatprep.subr.bf16.mxu1 %v9694_v44  ;;  %v9696_v63 = vpack.c.bf16 %v8103_v17, %v8102_v50  ;;  %v9698_v2 = vpack.c.bf16 %v8121_v56, %v8120_v46  ;;  %v8104_v18 = vld [vmem:[%s15369_s8 + $0x220] sm:$0xff]  ;;  %v2605_v56 = vadd.s32 6, %v13158_v13 }
 0x253   : > { %v5987_v12 = vcombine.high %v16350_v59, %v13936_v55  ;;  %6167 = vmatmul.mubr.f32.gmra.mrb[144].mxu0 %v5976_v15  ;;  %v14000_v7 = vadd.f32 %v8394_v1, %v8314_v51  ;;  %v8317_v16 = vadd.f32 %v8316_v35, %v8315_v61  ;;  %v8105_v4 = vld [vmem:[%s15369_s8 + $0x228] sm:$0xff]  ;;  %v14008_v11 = vadd.f32 %v8399_v3, %v8398_v9  ;;  %v16354_v50 = vld [vmem:[#allocation144_spill] sm:$0xff]  ;;  %vm14082_vm1 = vmand %vm2631_vm15, %vm2645_vm0 }
 0x254   : > { %v16353_v47 = vld [vmem:[#allocation143_spill] sm:$0xff]  ;;  %v14016_v1 = vadd.f32 %v13902_v25, %v16354_v50  ;;  %v7858_v61 = vsel %vm13975_vm14, 1.0, %v16204_v42  ;;  %9669 = vmatpush3.bf16.msra.mxu0 %v9668_v21  ;;  %v9672_v35 = vpack.c.bf16 %v8075_v33, %v8074_v30  ;;  %v8122_v17 = vld [vmem:[%s15369_s8 + $0x2b0] sm:$0xff]  ;;  %v5986_v25 = vcombine.low %v16350_v59, %v13936_v55  ;;  %v8076_v21 = vld [vmem:[%s15369_s8 + $0x140] sm:$0xff]  ;;  %9697 = vmatpush3.bf16.msra.mxu1 %v9696_v63  ;;  %v8401_v33 = vpop.f32.mrb[74].mxu1 }
 0x255   : > { %v14012_v43 = vadd.f32 %v13823_v49, %v16353_v47  ;;  %6171 = vmatprep.mubr.f32.mxu0 %v5987_v12  ;;  %v8123_v49 = vld [vmem:[%s15369_s8 + $0x2b8] sm:$0xff]  ;;  %6370 = vmatmul.mubr.f32.gmra.mrb[160].mxu1 %v13899_v14  ;;  %v9674_v9 = vpack.c.bf16 %v8093_v10, %v8092_v6  ;;  %v8077_v44 = vld [vmem:[%s15369_s8 + $0x148] sm:$0xff]  ;;  %v14037_v46 = vadd.f32 %v8397_v27, %v8317_v16  ;;  %v16356_v34 = vld [vmem:[#allocation8_spill] sm:$0xff]  ;;  %v8402_v63 = vpop.f32.mrb[75].mxu1  ;;  %v14095_v39 = vadd.s32 4294967293, %v2605_v56 }
 0x256   : > { %9671 = vmatprep.subr.bf16.mxu0 %v9670_v54  ;;  %6374 = vmatprep.mubr.f32.mxu1 %v14016_v1  ;;  %v16355_v3 = vld [vmem:[#allocation51_spill] sm:$0xff]  ;;  %v14044_v55 = vrot.slane %v5990_v38, %v10161_v36  ;;  %v9700_v54 = vpack.c.bf16 %v8105_v4, %v8104_v18  ;;  %v8094_v30 = vld [vmem:[%s15369_s8 + $0x1d0] sm:$0xff]  ;;  %v8095_v27 = vld [vmem:[%s15369_s8 + $0x1d8] sm:$0xff]  ;;  %v2752_v51 = vrot.slane %v13905_v8, %v16236_v0  ;;  %v8404_v32 = vpop.f32.mrb[76].mxu1 }
 0x257   : > { %v5989_v15 = vcombine.high %v16356_v34, %v16355_v3  ;;  %v16357_v59 = vld [vmem:[#allocation147_spill] sm:$0xff]  ;;  %6172 = vmatmul.mubr.f32.gmra.mrb[146].mxu0 %v5986_v25  ;;  %9699 = vmatprep.subr.bf16.mxu1 %v9698_v2  ;;  %v9702_v38 = vpack.c.bf16 %v8123_v49, %v8122_v17  ;;  %v8106_v6 = vld [vmem:[%s15369_s8 + $0x230] sm:$0xff]  ;;  %v8107_v10 = vld [vmem:[%s15369_s8 + $0x238] sm:$0xff]  ;;  %v9676_v2 = vpack.c.bf16 %v8077_v44, %v8076_v21  ;;  %vm2632_vm2 = vcmp.ge.s32.totalorder %v14095_v39, 0 }
 0x258   : > { %v14056_v12 = vadd.f32 %v13962_v45, %v16357_v59  ;;  %v14067_v8 = vld [vmem:[%s15368_s7] sm:$0x3]  ;;  %9673 = vmatpush3.bf16.msra.mxu0 %v9672_v35  ;;  %v14070_v18 = vadd.f32 %v8402_v63, %v8401_v33  ;;  %v8125_v47 = vld [vmem:[%s15369_s8 + $0x2c8] sm:$0xff]  ;;  %v9678_v35 = vpack.c.bf16 %v8095_v27, %v8094_v30  ;;  %v8078_v17 = vld [vmem:[%s15369_s8 + $0x150] sm:$0xff]  ;;  %9701 = vmatpush3.bf16.msra.mxu1 %v9700_v54  ;;  %vm2646_vm3 = vcmp.lt.s32.totalorder %v14095_v39, 16 }
 0x259   : > { %v2701_v16 = vmul.f32 %v14067_v8, %v7858_v61  ;;  %6176 = vmatprep.mubr.f32.mxu0 %v5989_v15  ;;  %v8124_v4 = vld [vmem:[%s15369_s8 + $0x2c0] sm:$0xff]  ;;  %6375 = vmatmul.mubr.f32.gmra.mrb[162].mxu1 %v14012_v43  ;;  %v5988_v61 = vcombine.low %v16356_v34, %v16355_v3  ;;  %v8079_v49 = vld [vmem:[%s15369_s8 + $0x158] sm:$0xff]  ;;  %v16361_v44 = vld [vmem:[#allocation67_spill] sm:$0xff] }
 0x25a   : > { %9675 = vmatprep.subr.bf16.mxu0 %v9674_v9  ;;  %6379 = vmatprep.mubr.f32.mxu1 %v14056_v12  ;;  %v16360_v25 = vld [vmem:[#allocation50_spill] sm:$0xff]  ;;  %v16362_v15 = vld [vmem:[#allocation101_spill] sm:$0xff]  ;;  %v9704_v9 = vpack.c.bf16 %v8107_v10, %v8106_v6  ;;  %v8097_v30 = vld [vmem:[%s15369_s8 + $0x1e8] sm:$0xff]  ;;  %v9706_v63 = vpack.c.bf16 %v8125_v47, %v8124_v4  ;;  %v8318_v4 = vpop.f32.mrb[60].mxu0 }
 0x25b   : > { %v5999_v21 = vcombine.high %v16360_v25, %v14044_v55  ;;  %v6002_v3 = vcombine.low %v16362_v15, %v16361_v44  ;;  %v8096_v34 = vld [vmem:[%s15369_s8 + $0x1e0] sm:$0xff]  ;;  %v16363_v56 = vld [vmem:[#allocation145_spill] sm:$0xff]  ;;  %v16364_v33 = vld [vmem:[#allocation148_spill] sm:$0xff]  ;;  %6177 = vmatmul.mubr.f32.gmra.mrb[148].mxu0 %v5988_v61  ;;  %9703 = vmatprep.subr.bf16.mxu1 %v9702_v38  ;;  %v2764_v15 = vrot.slane %v2701_v16, %v16219_v31 }
 0x25c   : > { %v14109_v27 = vadd.f32 %v2752_v51, %v16363_v56  ;;  %v14112_v59 = vadd.f32 %v2752_v51, %v16364_v33  ;;  %v8108_v54 = vld [vmem:[%s15369_s8 + $0x240] sm:$0xff]  ;;  %v8109_v6 = vld [vmem:[%s15369_s8 + $0x248] sm:$0xff]  ;;  %v16365_v10 = vld [vmem:[#allocation149_spill] sm:$0xff]  ;;  %v7859_v51 = vsel %vm14082_vm1, 1.0, %v16204_v42  ;;  %9677 = vmatpush3.bf16.msra.mxu0 %v9676_v2  ;;  %v9680_v38 = vpack.c.bf16 %v8079_v49, %v8078_v17  ;;  %v8319_v17 = vpop.f32.mrb[61].mxu0  ;;  %9705 = vmatpush3.bf16.msra.mxu1 %v9704_v9 }
 0x25d   : > { %v14122_v44 = vadd.f32 %v13962_v45, %v16365_v10  ;;  %6181 = vmatprep.mubr.f32.mxu0 %v5999_v21  ;;  %v8126_v47 = vld [vmem:[%s15369_s8 + $0x2d0] sm:$0xff]  ;;  %v8127_v61 = vld [vmem:[%s15369_s8 + $0x2d8] sm:$0xff]  ;;  %v2606_v45 = vadd.s32 7, %v13158_v13  ;;  %v5998_v50 = vcombine.low %v16360_v25, %v14044_v55  ;;  %v16366_v56 = vld [vmem:[#allocation30_spill] sm:$0xff]  ;;  %9679 = vmatprep.subr.bf16.mxu0 %v9678_v35  ;;  %v9682_v49 = vpack.c.bf16 %v8097_v30, %v8096_v34  ;;  %v8321_v29 = vpop.f32.mrb[62].mxu0 }
 0x25e   : > { %6380 = vmatmul.mubr.f32.gmra.mrb[164].mxu1 %v14109_v27  ;;  %v16367_v21 = vld [vmem:[#allocation53_spill] sm:$0xff]  ;;  %v8080_v33 = vld [vmem:[%s15369_s8 + $0x160] sm:$0xff]  ;;  %v8081_v10 = vld [vmem:[%s15369_s8 + $0x168] sm:$0xff]  ;;  %v14149_v13 = vrot.slane %v6002_v3, %v10161_v36  ;;  %v8320_v55 = vadd.f32 %v8319_v17, %v8318_v4  ;;  %v9708_v35 = vpack.c.bf16 %v8109_v6, %v8108_v54  ;;  %v2760_v30 = vrot.slane %v2701_v16, %v16236_v0 }
 0x25f   : > { %v6001_v2 = vcombine.high %v16367_v21, %v16366_v56  ;;  %6384 = vmatprep.mubr.f32.mxu1 %v14122_v44  ;;  %v8098_v25 = vld [vmem:[%s15369_s8 + $0x1f0] sm:$0xff]  ;;  %v8099_v34 = vld [vmem:[%s15369_s8 + $0x1f8] sm:$0xff]  ;;  %v2702_v26 = vmul.f32 %v14067_v8, %v7859_v51  ;;  %6182 = vmatmul.mubr.f32.gmra.mrb[150].mxu0 %v5998_v50  ;;  %v9710_v3 = vpack.c.bf16 %v8127_v61, %v8126_v47  ;;  %v8129_v47 = vld [vmem:[%s15369_s8 + $0x2e8] sm:$0xff] }
 0x260   : > { %9707 = vmatprep.subr.bf16.mxu1 %v9706_v63  ;;  %v8110_v9 = vld [vmem:[%s15369_s8 + $0x250] sm:$0xff]  ;;  %v8111_v54 = vld [vmem:[%s15369_s8 + $0x258] sm:$0xff]  ;;  %9681 = vmatpush3.bf16.msra.mxu0 %v9680_v38  ;;  %v14170_v16 = vadd.f32 %v14008_v11, %v8320_v55  ;;  %v9684_v51 = vpack.c.bf16 %v8081_v10, %v8080_v33  ;;  %v8128_v63 = vld [vmem:[%s15369_s8 + $0x2e0] sm:$0xff]  ;;  %v6000_v61 = vcombine.low %v16367_v21, %v16366_v56  ;;  %v7847_v56 = vadd.s32 4294967293, %v2606_v45  ;;  %v8405_v10 = vpop.f32.mrb[77].mxu1 }
 0x261   : > { %v16368_v6 = vld [vmem:[#allocation153_spill] sm:$0xff]  ;;  %6186 = vmatprep.mubr.f32.mxu0 %v6001_v2  ;;  %9683 = vmatprep.subr.bf16.mxu0 %v9682_v49  ;;  %v9686_v50 = vpack.c.bf16 %v8099_v34, %v8098_v25  ;;  %v8082_v11 = vld [vmem:[%s15369_s8 + $0x170] sm:$0xff]  ;;  %v16371_v17 = vld [vmem:[#allocation122_spill] sm:$0xff]  ;;  %v9712_v55 = vpack.c.bf16 %v8111_v54, %v8110_v9  ;;  %v14210_v45 = vrot.slane %v2702_v26, %v16236_v0 }
 0x262   : > { %v14167_v4 = vadd.f32 %v2764_v15, %v16368_v6  ;;  %16369 = vst [vmem:[#allocation155_spill] sm:$0xff] %v14170_v16  ;;  %6385 = vmatmul.mubr.f32.gmra.mrb[166].mxu1 %v14112_v59  ;;  %v8083_v38 = vld [vmem:[%s15369_s8 + $0x178] sm:$0xff]  ;;  %v16370_v2 = vld [vmem:[#allocation100_spill] sm:$0xff]  ;;  %vm14193_vm4 = vmand %vm2632_vm2, %vm2646_vm3  ;;  %vm2633_vm5 = vcmp.ge.s32.totalorder %v7847_v56, 0  ;;  %v14239_v16 = vadd.f32 %v2760_v30, %v16379_v53  ;;  %vm2647_vm6 = vcmp.lt.s32.totalorder %v7847_v56, 16 }
 0x263   : > { %v6014_v33 = vcombine.low %v16371_v17, %v16370_v2  ;;  %v16374_v21 = vld [vmem:[#allocation20_spill] sm:$0xff]  ;;  %9709 = vmatpush3.bf16.msra.mxu1 %v9708_v35  ;;  %v8148_v25 = vld [vmem:[%s15369_s8 + $0x380] sm:$0xff]  ;;  %v8149_v39 = vld [vmem:[%s15369_s8 + $0x388] sm:$0xff]  ;;  %6187 = vmatmul.mubr.f32.gmra.mrb[152].mxu0 %v6000_v61  ;;  %v9714_v2 = vpack.c.bf16 %v8129_v47, %v8128_v63  ;;  %v9688_v47 = vpack.c.bf16 %v8083_v38, %v8082_v11  ;;  %v7860_v61 = vsel %vm14193_vm4, 1.0, %v16204_v42 }
 0x264   : > { %6389 = vmatprep.mubr.f32.mxu1 %v14167_v4  ;;  %v6011_v49 = vcombine.high %v16374_v21, %v14149_v13  ;;  %v16375_v34 = vld [vmem:[#allocation152_spill] sm:$0xff]  ;;  %9711 = vmatprep.subr.bf16.mxu1 %v9710_v3  ;;  %v8112_v35 = vld [vmem:[%s15369_s8 + $0x260] sm:$0xff]  ;;  %v8113_v9 = vld [vmem:[%s15369_s8 + $0x268] sm:$0xff]  ;;  %v9722_v40 = vpack.c.bf16 %v8149_v39, %v8148_v25  ;;  %v2703_v53 = vmul.f32 %v14067_v8, %v7860_v61 }
 0x265   : > { %v14207_v6 = vadd.f32 %v2760_v30, %v16375_v34  ;;  %v16376_v54 = vld [vmem:[#allocation157_spill] sm:$0xff]  ;;  %v2772_v34 = vrot.slane %v2702_v26, %v16219_v31  ;;  %9685 = vmatpush3.bf16.msra.mxu0 %v9684_v51  ;;  %v8130_v3 = vld [vmem:[%s15369_s8 + $0x2f0] sm:$0xff]  ;;  %v6010_v26 = vcombine.low %v16374_v21, %v14149_v13  ;;  %v16378_v51 = vld [vmem:[#allocation18_spill] sm:$0xff]  ;;  %v6021_v11 = vrot.slane %v6014_v33, %v10161_v36 }
 0x266   : > { %v14219_v17 = vadd.f32 %v2764_v15, %v16376_v54  ;;  %6191 = vmatprep.mubr.f32.mxu0 %v6011_v49  ;;  %v8131_v63 = vld [vmem:[%s15369_s8 + $0x2f8] sm:$0xff]  ;;  %v16377_v15 = vld [vmem:[#allocation79_spill] sm:$0xff]  ;;  %v8322_v54 = vpop.f32.mrb[63].mxu0  ;;  %9687 = vmatprep.subr.bf16.mxu0 %v9686_v50  ;;  %v9716_v24 = vpack.c.bf16 %v8113_v9, %v8112_v35  ;;  %v14241_v13 = vadd.f32 %v8405_v10, %v8404_v32  ;;  %v8114_v50 = vld [vmem:[%s15369_s8 + $0x270] sm:$0xff] }
 0x267   : > { %6390 = vmatmul.mubr.f32.gmra.mrb[168].mxu1 %v14207_v6  ;;  %v6013_v49 = vcombine.high %v16378_v51, %v16377_v15  ;;  %v8323_v38 = vadd.f32 %v8322_v54, %v8321_v29  ;;  %6192 = vmatmul.mubr.f32.gmra.mrb[154].mxu0 %v6010_v26  ;;  %v9718_v21 = vpack.c.bf16 %v8131_v63, %v8130_v3  ;;  %v8115_v29 = vld [vmem:[%s15369_s8 + $0x278] sm:$0xff]  ;;  %v16380_v33 = vld [vmem:[#allocation87_spill] sm:$0xff]  ;;  %v8180_v32 = vld [vmem:[%s15369_s8 + $0x480] sm:$0xff] }
 0x268   : > { %6394 = vmatprep.mubr.f32.mxu1 %v14219_v17  ;;  %9713 = vmatpush3.bf16.msra.mxu1 %v9712_v55  ;;  %v14250_v55 = vadd.f32 %v2772_v34, %v16380_v33  ;;  %v8181_v25 = vld [vmem:[%s15369_s8 + $0x488] sm:$0xff]  ;;  %v6012_v39 = vcombine.low %v16378_v51, %v16377_v15  ;;  %vm2661_vm12 = vmand %vm2633_vm5, %vm2647_vm6  ;;  %v16382_v35 = vld [vmem:[#allocation124_spill] sm:$0xff]  ;;  %v9720_v63 = vpack.c.bf16 %v8115_v29, %v8114_v50  ;;  %v8407_v33 = vpop.f32.mrb[78].mxu1 }
 0x269   : > { %9715 = vmatprep.subr.bf16.mxu1 %v9714_v2  ;;  %6196 = vmatprep.mubr.f32.mxu0 %v6013_v49  ;;  %v14254_v30 = vadd.f32 %v14070_v18, %v8323_v38  ;;  %v16381_v18 = vld [vmem:[#allocation78_spill] sm:$0xff]  ;;  %v9754_v26 = vpack.c.bf16 %v8181_v25, %v8180_v32  ;;  %v2780_v56 = vrot.slane %v2703_v53, %v16219_v31  ;;  %v7861_v51 = vsel %vm2661_vm12, 1.0, %v16204_v42  ;;  %v16386_v49 = vld [vmem:[#allocation76_spill] sm:$0xff]  ;;  %v8408_v25 = vpop.f32.mrb[79].mxu1 }
 0x26a   : > { %9689 = vmatpush3.bf16.msra.mxu0 %v9688_v47  ;;  %v6023_v2 = vcombine.high %v16381_v18, %v6021_v11  ;;  %v16383_v9 = vld [vmem:[#allocation146_spill] sm:$0xff]  ;;  %v16387_v54 = vld [vmem:[#allocation80_spill] sm:$0xff]  ;;  %v2776_v50 = vrot.slane %v2703_v53, %v16236_v0 }
 0x26b   : > { %6395 = vmatmul.mubr.f32.gmra.mrb[170].mxu1 %v14239_v16  ;;  %9723 = vmatprep.subr.bf16.mxu0 %v9722_v40  ;;  %v6026_v3 = vcombine.low %v16383_v9, %v16382_v35  ;;  %v16384_v47 = vld [vmem:[#allocation158_spill] sm:$0xff]  ;;  %v16385_v40 = vld [vmem:[#allocation163_spill] sm:$0xff]  ;;  %v6025_v38 = vcombine.high %v16387_v54, %v16386_v49  ;;  %v6024_v32 = vcombine.low %v16387_v54, %v16386_v49  ;;  %v16391_v53 = vld [vmem:[#allocation36_spill] sm:$0xff] }
 0x26c   : > { %6399 = vmatprep.mubr.f32.mxu1 %v14250_v55  ;;  %9717 = vmatpush3.bf16.msra.mxu1 %v9716_v24  ;;  %v14273_v61 = vadd.f32 %v14210_v45, %v16384_v47  ;;  %v14276_v15 = vadd.f32 %v2772_v34, %v16385_v40  ;;  %v6022_v24 = vcombine.low %v16381_v18, %v6021_v11  ;;  %v16389_v42 = vld [vmem:[#allocation166_spill] sm:$0xff]  ;;  %v16392_v35 = vld [vmem:[#allocation164_spill] sm:$0xff]  ;;  %v8324_v47 = vpop.f32.mrb[64].mxu0  ;;  %v16394_v40 = vld [vmem:[#allocation33_spill] sm:$0xff] }
 0x26d   : > { %6197 = vmatmul.mubr.f32.gmra.mrb[156].mxu0 %v6012_v39  ;;  %9719 = vmatprep.subr.bf16.mxu1 %v9718_v21  ;;  %v6033_v10 = vrot.slane %v6026_v3, %v10161_v36  ;;  %v16388_v21 = vld [vmem:[#allocation161_spill] sm:$0xff]  ;;  %v14292_v29 = vadd.f32 %v2780_v56, %v16389_v42  ;;  %v2704_v11 = vmul.f32 %v14067_v8, %v7861_v51  ;;  %v16390_v39 = vld [vmem:[#allocation150_spill] sm:$0xff]  ;;  %v16395_v51 = vld [vmem:[#allocation32_spill] sm:$0xff] }
 0x26e   : > { %6201 = vmatprep.mubr.f32.mxu0 %v6023_v2  ;;  %v14288_v34 = vadd.f32 %v14210_v45, %v16388_v21  ;;  %v6038_v45 = vcombine.low %v16149_v5, %v16390_v39  ;;  %v8409_v2 = vadd.f32 %v8408_v25, %v8407_v33  ;;  %v14303_v9 = vadd.f32 %v2776_v50, %v16392_v35  ;;  %v16393_v8 = vld [vmem:[#allocation173_spill] sm:$0xff]  ;;  %v16397_v21 = vld [vmem:[#allocation176_spill] sm:$0xff] }
 0x26f   : > { %6400 = vmatmul.mubr.f32.gmra.mrb[172].mxu1 %v14273_v61  ;;  %v6035_v18 = vcombine.high %v16391_v53, %v6033_v10  ;;  %v14306_v3 = vadd.f32 %v2780_v56, %v16393_v8  ;;  %v6034_v5 = vcombine.low %v16391_v53, %v6033_v10  ;;  %v6036_v33 = vcombine.low %v16395_v51, %v16394_v40 }
 0x270   : > { %6404 = vmatprep.mubr.f32.mxu1 %v14276_v15  ;;  %9721 = vmatpush3.bf16.msra.mxu1 %v9720_v63  ;;  %v2788_v63 = vrot.slane %v2704_v11, %v16219_v31  ;;  %v6045_v49 = vrot.slane %v6038_v45, %v10161_v36  ;;  %v2784_v31 = vrot.slane %v2704_v11, %v16236_v0  ;;  %v16399_v45 = vld [vmem:[#allocation175_spill] sm:$0xff]  ;;  %v8214_v0 = vld [vmem:[%s15369_s8 + $0x590] sm:$0xff] }
 0x271   : > { %6202 = vmatmul.mubr.f32.gmra.mrb[158].mxu0 %v6022_v24  ;;  %9755 = vmatprep.subr.bf16.mxu1 %v9754_v26  ;;  %v8325_v26 = vpop.f32.mrb[65].mxu0  ;;  %v6037_v24 = vcombine.high %v16395_v51, %v16394_v40  ;;  %v6050_v11 = vcombine.low %v16162_v58, %v16231_v20  ;;  %v16401_v58 = vld [vmem:[#allocation44_spill] sm:$0xff]  ;;  %v16402_v20 = vld [vmem:[#allocation77_spill] sm:$0xff] }
 0x272   : > { %6206 = vmatprep.mubr.f32.mxu0 %v6025_v38  ;;  %v8326_v54 = vadd.f32 %v8325_v26, %v8324_v47  ;;  %v16396_v38 = vld [vmem:[#allocation170_spill] sm:$0xff]  ;;  %v14320_v42 = vadd.f32 %v2788_v63, %v16397_v21  ;;  %v14333_v53 = vadd.f32 %v2784_v31, %v16399_v45  ;;  %v6049_v26 = vcombine.high %v16402_v20, %v16401_v58  ;;  %v16404_v21 = vld [vmem:[#allocation81_spill] sm:$0xff] }
 0x273   : > { %6405 = vmatmul.mubr.f32.gmra.mrb[174].mxu1 %v14288_v34  ;;  %v14316_v56 = vadd.f32 %v2776_v50, %v16396_v38  ;;  %v16398_v50 = vld [vmem:[#allocation82_spill] sm:$0xff]  ;;  %v6057_v40 = vrot.slane %v6050_v11, %v10161_v36  ;;  %v8182_v38 = vld [vmem:[%s15369_s8 + $0x490] sm:$0xff]  ;;  %v8183_v36 = vld [vmem:[%s15369_s8 + $0x498] sm:$0xff] }
 0x274   : > { %6409 = vmatprep.mubr.f32.mxu1 %v14292_v29  ;;  %v14323_v10 = vadd.f32 %v14241_v13, %v8326_v54  ;;  %v6047_v25 = vcombine.high %v16398_v50, %v6045_v49  ;;  %v6046_v8 = vcombine.low %v16398_v50, %v6045_v49  ;;  %v8164_v49 = vld [vmem:[%s15369_s8 + $0x400] sm:$0xff]  ;;  %v9758_v11 = vpack.c.bf16 %v8183_v36, %v8182_v38  ;;  %v8167_v45 = vld [vmem:[%s15369_s8 + $0x418] sm:$0xff]  ;;  %v8169_v36 = vld [vmem:[%s15369_s8 + $0x428] sm:$0xff] }
 0x275   : > { %6207 = vmatmul.mubr.f32.gmra.mrb[160].mxu0 %v6024_v32  ;;  %v8327_v32 = vpop.f32.mrb[66].mxu0  ;;  %v8168_v38 = vld [vmem:[%s15369_s8 + $0x420] sm:$0xff] }
 0x276   : > { %6211 = vmatprep.mubr.f32.mxu0 %v6035_v18  ;;  %v8328_v39 = vpop.f32.mrb[67].mxu0  ;;  %v16400_v18 = vld [vmem:[#allocation178_spill] sm:$0xff] }
 0x277   : > { %6410 = vmatmul.mubr.f32.gmra.mrb[176].mxu1 %v14303_v9  ;;  %v8329_v13 = vadd.f32 %v8328_v39, %v8327_v32  ;;  %v14336_v35 = vadd.f32 %v2788_v63, %v16400_v18  ;;  %v8166_v39 = vld [vmem:[%s15369_s8 + $0x410] sm:$0xff]  ;;  %v8184_v18 = vld [vmem:[%s15369_s8 + $0x4a0] sm:$0xff] }
 0x278   : > { %6414 = vmatprep.mubr.f32.mxu1 %v14306_v3 }
 0x279   : > { %6212 = vmatmul.mubr.f32.gmra.mrb[162].mxu0 %v6034_v5  ;;  %v14340_v47 = vadd.f32 %v8409_v2, %v8329_v13  ;;  %v8410_v5 = vpop.f32.mrb[80].mxu1  ;;  %v8165_v2 = vld [vmem:[%s15369_s8 + $0x408] sm:$0xff] }
 0x27a   : > { %6216 = vmatprep.mubr.f32.mxu0 %v6037_v24  ;;  %v8411_v51 = vpop.f32.mrb[81].mxu1  ;;  %v16403_v24 = vld [vmem:[#allocation177_spill] sm:$0xff]  ;;  %v9756_v50 = vpack.c.bf16 %v8165_v2, %v8164_v49 }
 0x27b   : > { %6415 = vmatmul.mubr.f32.gmra.mrb[178].mxu1 %v14316_v56  ;;  %v14347_v54 = vadd.f32 %v2784_v31, %v16403_v24  ;;  %v8412_v63 = vadd.f32 %v8411_v51, %v8410_v5  ;;  %v6048_v31 = vcombine.low %v16402_v20, %v16401_v58  ;;  %v8413_v32 = vpop.f32.mrb[82].mxu1  ;;  %v6058_v5 = vcombine.low %v16404_v21, %v6057_v40  ;;  %v8132_v58 = vld [vmem:[%s15369_s8 + $0x300] sm:$0xff]  ;;  %v8133_v20 = vld [vmem:[%s15369_s8 + $0x308] sm:$0xff]  ;;  %v8150_v51 = vld [vmem:[%s15369_s8 + $0x390] sm:$0xff] }
 0x27c   : > { %6419 = vmatprep.mubr.f32.mxu1 %v14320_v42  ;;  %v8151_v24 = vld [vmem:[%s15369_s8 + $0x398] sm:$0xff] }
 0x27d   : > { %6217 = vmatmul.mubr.f32.gmra.mrb[164].mxu0 %v6036_v33  ;;  %v6059_v33 = vcombine.high %v16404_v21, %v6057_v40  ;;  %v9760_v40 = vpack.c.bf16 %v8167_v45, %v8166_v39  ;;  %v8152_v39 = vld [vmem:[%s15369_s8 + $0x3a0] sm:$0xff]  ;;  %v8153_v45 = vld [vmem:[%s15369_s8 + $0x3a8] sm:$0xff] }
 0x27e   : > { %6221 = vmatprep.mubr.f32.mxu0 %v6047_v25  ;;  %v8414_v25 = vpop.f32.mrb[83].mxu1 }
 0x27f   : > { %6420 = vmatmul.mubr.f32.gmra.mrb[180].mxu1 %v14333_v53  ;;  %v14372_v13 = vadd.f32 %v8414_v25, %v8413_v32  ;;  %v8187_v32 = vld [vmem:[%s15369_s8 + $0x4b8] sm:$0xff]  ;;  %v8134_v25 = vld [vmem:[%s15369_s8 + $0x310] sm:$0xff] }
 0x280   : > { %6424 = vmatprep.mubr.f32.mxu1 %v14336_v35 }
 0x281   : > { %6222 = vmatmul.mubr.f32.gmra.mrb[166].mxu0 %v6046_v8  ;;  %v8185_v8 = vld [vmem:[%s15369_s8 + $0x4a8] sm:$0xff] }
 0x282   : > { %6226 = vmatprep.mubr.f32.mxu0 %v6049_v26  ;;  %v8330_v26 = vpop.f32.mrb[68].mxu0  ;;  %v9762_v2 = vpack.c.bf16 %v8185_v8, %v8184_v18  ;;  %v9764_v18 = vpack.c.bf16 %v8169_v36, %v8168_v38  ;;  %v8154_v36 = vld [vmem:[%s15369_s8 + $0x3b0] sm:$0xff] }
 0x283   : > { %6425 = vmatmul.mubr.f32.gmra.mrb[182].mxu1 %v14347_v54  ;;  %v8331_v49 = vpop.f32.mrb[69].mxu0 }
 0x284   : > { %6737 = vmatprep.mubr.f32.mxu1 %v13948_v41  ;;  %v8332_v21 = vadd.f32 %v8331_v49, %v8330_v26  ;;  %v8188_v26 = vld [vmem:[%s15369_s8 + $0x4c0] sm:$0xff]  ;;  %v8137_v49 = vld [vmem:[%s15369_s8 + $0x328] sm:$0xff] }
 0x285   : > { %6227 = vmatmul.mubr.f32.gmra.mrb[168].mxu0 %v6048_v31  ;;  %v9724_v31 = vpack.c.bf16 %v8133_v20, %v8132_v58  ;;  %v8416_v58 = vpop.f32.mrb[84].mxu1 }
 0x286   : > { %6231 = vmatprep.mubr.f32.mxu0 %v6059_v33  ;;  %v8186_v33 = vld [vmem:[%s15369_s8 + $0x4b0] sm:$0xff] }
 0x287   : > { %6738 = vmatmul.mubr.f32.vlgmr.msra.gmra.mrb[184].mxu1 %v13899_v14  ;;  %v9766_v8 = vpack.c.bf16 %v8187_v32, %v8186_v33 }
 0x288   : > { %6742 = vmatprep.mubr.f32.mxu1 %v14016_v1  ;;  %9757 = vmatpush3.bf16.msra.mxu1 %v9756_v50  ;;  %v9726_v50 = vpack.c.bf16 %v8151_v24, %v8150_v51  ;;  %v8333_v51 = vpop.f32.mrb[70].mxu0  ;;  %v8417_v24 = vpop.f32.mrb[85].mxu1 }
 0x289   : > { %6232 = vmatmul.mubr.f32.gmra.mrb[170].mxu0 %v6058_v5  ;;  %9759 = vmatprep.subr.bf16.mxu1 %v9758_v11  ;;  %v14416_v11 = vadd.f32 %v8412_v63, %v8332_v21  ;;  %v8170_v5 = vld [vmem:[%s15369_s8 + $0x430] sm:$0xff]  ;;  %v8171_v63 = vld [vmem:[%s15369_s8 + $0x438] sm:$0xff]  ;;  %v8418_v38 = vadd.f32 %v8417_v24, %v8416_v58 }
 0x28a   : > { %6543 = vmatprep.mubr.f32.mxu0 %v13844_v48  ;;  %v8135_v48 = vld [vmem:[%s15369_s8 + $0x318] sm:$0xff]  ;;  %v9768_v21 = vpack.c.bf16 %v8171_v63, %v8170_v5  ;;  %v8138_v63 = vld [vmem:[%s15369_s8 + $0x330] sm:$0xff] }
 0x28b   : > { %6743 = vmatmul.mubr.f32.gmra.mrb[186].mxu1 %v14012_v43  ;;  %v9728_v20 = vpack.c.bf16 %v8135_v48, %v8134_v25  ;;  %v8173_v25 = vld [vmem:[%s15369_s8 + $0x448] sm:$0xff]  ;;  %v8419_v48 = vpop.f32.mrb[86].mxu1  ;;  %v8139_v58 = vld [vmem:[%s15369_s8 + $0x338] sm:$0xff] }
 0x28c   : > { %6747 = vmatprep.mubr.f32.mxu1 %v14056_v12  ;;  %9761 = vmatpush3.bf16.msra.mxu1 %v9760_v40  ;;  %v9730_v40 = vpack.c.bf16 %v8153_v45, %v8152_v39  ;;  %v8191_v45 = vld [vmem:[%s15369_s8 + $0x4d8] sm:$0xff]  ;;  %v8420_v5 = vpop.f32.mrb[87].mxu1 }
 0x28d   : > { %6544 = vmatmul.mubr.f32.vlgmr.msra.gmra.mrb[172].mxu0 %v13841_v19  ;;  %9763 = vmatprep.subr.bf16.mxu1 %v9762_v2  ;;  %v8189_v19 = vld [vmem:[%s15369_s8 + $0x4c8] sm:$0xff]  ;;  %v8334_v2 = vpop.f32.mrb[71].mxu0 }
 0x28e   : > { %9725 = vmatpush3.bf16.msra.mxu0 %v9724_v31  ;;  %6548 = vmatprep.mubr.f32.mxu0 %v13867_v60  ;;  %v8136_v60 = vld [vmem:[%s15369_s8 + $0x320] sm:$0xff]  ;;  %v8155_v31 = vld [vmem:[%s15369_s8 + $0x3b8] sm:$0xff]  ;;  %v8335_v33 = vadd.f32 %v8334_v2, %v8333_v51  ;;  %v9770_v32 = vpack.c.bf16 %v8189_v19, %v8188_v26  ;;  %v8157_v19 = vld [vmem:[%s15369_s8 + $0x3c8] sm:$0xff]  ;;  %v8534_v2 = vpop.f32.mrb[88].mxu1 }
 0x28f   : > { %6748 = vmatmul.mubr.f32.gmra.mrb[188].mxu1 %v14109_v27  ;;  %9727 = vmatprep.subr.bf16.mxu0 %v9726_v50  ;;  %v8172_v50 = vld [vmem:[%s15369_s8 + $0x440] sm:$0xff]  ;;  %v9732_v39 = vpack.c.bf16 %v8137_v49, %v8136_v60  ;;  %v8174_v60 = vld [vmem:[%s15369_s8 + $0x450] sm:$0xff]  ;;  %v8175_v49 = vld [vmem:[%s15369_s8 + $0x458] sm:$0xff] }
 0x290   : > { %6752 = vmatprep.mubr.f32.mxu1 %v14122_v44  ;;  %9765 = vmatpush3.bf16.msra.mxu1 %v9764_v18  ;;  %v14467_v18 = vadd.f32 %v14372_v13, %v8335_v33  ;;  %v8156_v13 = vld [vmem:[%s15369_s8 + $0x3c0] sm:$0xff]  ;;  %v9772_v51 = vpack.c.bf16 %v8173_v25, %v8172_v50  ;;  %v8535_v33 = vpop.f32.mrb[89].mxu1  ;;  %v8141_v50 = vld [vmem:[%s15369_s8 + $0x348] sm:$0xff] }
 0x291   : > { %6549 = vmatmul.mubr.f32.gmra.mrb[174].mxu0 %v13847_v22  ;;  %9767 = vmatprep.subr.bf16.mxu1 %v9766_v8  ;;  %v8190_v22 = vld [vmem:[%s15369_s8 + $0x4d0] sm:$0xff]  ;;  %v8336_v8 = vpop.f32.mrb[72].mxu0  ;;  %v14507_v25 = vadd.f32 %v8535_v33, %v8534_v2  ;;  %v8161_v2 = vld [vmem:[%s15369_s8 + $0x3e8] sm:$0xff] }
 0x292   : > { %6553 = vmatprep.mubr.f32.mxu0 %v13948_v41  ;;  %9729 = vmatpush3.bf16.msra.mxu0 %v9728_v20  ;;  %v9734_v41 = vpack.c.bf16 %v8155_v31, %v8154_v36  ;;  %v8421_v20 = vadd.f32 %v8420_v5, %v8419_v48  ;;  %v8337_v26 = vpop.f32.mrb[73].mxu0  ;;  %v9736_v36 = vpack.c.bf16 %v8139_v58, %v8138_v63  ;;  %v8193_v31 = vld [vmem:[%s15369_s8 + $0x4e8] sm:$0xff]  ;;  %v8159_v48 = vld [vmem:[%s15369_s8 + $0x3d8] sm:$0xff]  ;;  %v8537_v63 = vpop.f32.mrb[90].mxu1 }
 0x293   : > { %6753 = vmatmul.mubr.f32.gmra.mrb[190].mxu1 %v14112_v59  ;;  %9731 = vmatprep.subr.bf16.mxu0 %v9730_v40  ;;  %v8338_v24 = vadd.f32 %v8337_v26, %v8336_v8  ;;  %v9774_v40 = vpack.c.bf16 %v8191_v45, %v8190_v22  ;;  %v8339_v22 = vpop.f32.mrb[74].mxu0  ;;  %v8176_v8 = vld [vmem:[%s15369_s8 + $0x460] sm:$0xff]  ;;  %v8177_v5 = vld [vmem:[%s15369_s8 + $0x468] sm:$0xff]  ;;  %v8195_v26 = vld [vmem:[%s15369_s8 + $0x4f8] sm:$0xff] }
 0x294   : > { %6757 = vmatprep.mubr.f32.mxu1 %v14167_v4  ;;  %9769 = vmatpush3.bf16.msra.mxu1 %v9768_v21 }
 0x295   : > { %6554 = vmatmul.mubr.f32.gmra.mrb[176].mxu0 %v13899_v14  ;;  %9771 = vmatprep.subr.bf16.mxu1 %v9770_v32  ;;  %v8192_v14 = vld [vmem:[%s15369_s8 + $0x4e0] sm:$0xff]  ;;  %v14498_v21 = vadd.f32 %v8418_v38, %v8338_v24  ;;  %v9738_v32 = vpack.c.bf16 %v8157_v19, %v8156_v13  ;;  %v8158_v38 = vld [vmem:[%s15369_s8 + $0x3d0] sm:$0xff]  ;;  %v8538_v19 = vpop.f32.mrb[91].mxu1 }
 0x296   : > { %6558 = vmatprep.mubr.f32.mxu0 %v14016_v1  ;;  %9733 = vmatpush3.bf16.msra.mxu0 %v9732_v39  ;;  %v8140_v1 = vld [vmem:[%s15369_s8 + $0x340] sm:$0xff]  ;;  %v9776_v39 = vpack.c.bf16 %v8175_v49, %v8174_v60  ;;  %v9778_v45 = vpack.c.bf16 %v8193_v31, %v8192_v14  ;;  %v8142_v24 = vld [vmem:[%s15369_s8 + $0x350] sm:$0xff]  ;;  %v14537_v60 = vadd.f32 %v8538_v19, %v8537_v63 }
 0x297   : > { %6758 = vmatmul.mubr.f32.gmra.mrb[192].mxu1 %v14207_v6  ;;  %9735 = vmatprep.subr.bf16.mxu0 %v9734_v41  ;;  %v8340_v41 = vpop.f32.mrb[75].mxu0  ;;  %v9740_v58 = vpack.c.bf16 %v8141_v50, %v8140_v1  ;;  %v8160_v49 = vld [vmem:[%s15369_s8 + $0x3e0] sm:$0xff]  ;;  %v8179_v1 = vld [vmem:[%s15369_s8 + $0x478] sm:$0xff] }
 0x298   : > { %6762 = vmatprep.mubr.f32.mxu1 %v14219_v17  ;;  %9773 = vmatpush3.bf16.msra.mxu1 %v9772_v51  ;;  %v8341_v13 = vadd.f32 %v8340_v41, %v8339_v22  ;;  %v9742_v51 = vpack.c.bf16 %v8159_v48, %v8158_v38  ;;  %v8454_v31 = vpop.f32.mrb[76].mxu0  ;;  %v8540_v38 = vpop.f32.mrb[92].mxu1  ;;  %v8244_v48 = vld [vmem:[%s15369_s8 + $0x680] sm:$0xff]  ;;  %v8145_v41 = vld [vmem:[%s15369_s8 + $0x368] sm:$0xff] }
 0x299   : > { %6559 = vmatmul.mubr.f32.gmra.mrb[178].mxu0 %v14012_v43  ;;  %9775 = vmatprep.subr.bf16.mxu1 %v9774_v40  ;;  %v8194_v43 = vld [vmem:[%s15369_s8 + $0x4f0] sm:$0xff]  ;;  %v8143_v40 = vld [vmem:[%s15369_s8 + $0x358] sm:$0xff]  ;;  %v8455_v50 = vpop.f32.mrb[77].mxu0 }
 0x29a   : > { %6563 = vmatprep.mubr.f32.mxu0 %v14056_v12  ;;  %9737 = vmatpush3.bf16.msra.mxu0 %v9736_v36  ;;  %v9780_v36 = vpack.c.bf16 %v8177_v5, %v8176_v8  ;;  %v14545_v14 = vadd.f32 %v8421_v20, %v8341_v13  ;;  %v9782_v33 = vpack.c.bf16 %v8195_v26, %v8194_v43  ;;  %v8144_v5 = vld [vmem:[%s15369_s8 + $0x360] sm:$0xff]  ;;  %v8163_v43 = vld [vmem:[%s15369_s8 + $0x3f8] sm:$0xff]  ;;  %v8457_v19 = vpop.f32.mrb[78].mxu0 }
 0x29b   : > { %6763 = vmatmul.mubr.f32.gmra.mrb[194].mxu1 %v14239_v16  ;;  %9739 = vmatprep.subr.bf16.mxu0 %v9738_v32  ;;  %v8178_v32 = vld [vmem:[%s15369_s8 + $0x470] sm:$0xff]  ;;  %v9744_v20 = vpack.c.bf16 %v8143_v40, %v8142_v24  ;;  %v8456_v22 = vadd.f32 %v8455_v50, %v8454_v31  ;;  %v9746_v8 = vpack.c.bf16 %v8161_v2, %v8160_v49  ;;  %v8458_v24 = vpop.f32.mrb[79].mxu0  ;;  %v8212_v50 = vld [vmem:[%s15369_s8 + $0x580] sm:$0xff] }
 0x29c   : > { %6767 = vmatprep.mubr.f32.mxu1 %v14250_v55  ;;  %9777 = vmatpush3.bf16.msra.mxu1 %v9776_v39  ;;  %v8245_v39 = vld [vmem:[%s15369_s8 + $0x688] sm:$0xff]  ;;  %v9784_v26 = vpack.c.bf16 %v8179_v1, %v8178_v32  ;;  %v9748_v49 = vpack.c.bf16 %v8145_v41, %v8144_v5  ;;  %v8459_v2 = vadd.f32 %v8458_v24, %v8457_v19 }
 0x29d   : > { %6564 = vmatmul.mubr.f32.gmra.mrb[180].mxu0 %v14109_v27  ;;  %9779 = vmatprep.subr.bf16.mxu1 %v9778_v45  ;;  %v8541_v45 = vpop.f32.mrb[93].mxu1  ;;  %v4693_v13 = vadd.f32 %v8456_v22, %v13797_v52  ;;  %v8146_v52 = vld [vmem:[%s15369_s8 + $0x370] sm:$0xff] }
 0x29e   : > { %6568 = vmatprep.mubr.f32.mxu0 %v14122_v44  ;;  %9741 = vmatpush3.bf16.msra.mxu0 %v9740_v58  ;;  %v8542_v63 = vadd.f32 %v8541_v45, %v8540_v38  ;;  %v8162_v58 = vld [vmem:[%s15369_s8 + $0x3f0] sm:$0xff]  ;;  %v8543_v40 = vpop.f32.mrb[94].mxu1  ;;  %v8213_v38 = vld [vmem:[%s15369_s8 + $0x588] sm:$0xff] }
 0x29f   : > { %6768 = vmatmul.mubr.f32.gmra.mrb[196].mxu1 %v14273_v61  ;;  %9743 = vmatprep.subr.bf16.mxu0 %v9742_v51  ;;  %v14577_v51 = vpack.c.bf16 %v8245_v39, %v8244_v48  ;;  %v9750_v31 = vpack.c.bf16 %v8163_v43, %v8162_v58  ;;  %v14588_v32 = vadd.f32 %v14507_v25, %v4693_v13  ;;  %v8460_v48 = vpop.f32.mrb[80].mxu0 }
 0x2a0   : > { %6772 = vmatprep.mubr.f32.mxu1 %v14276_v15  ;;  %9781 = vmatpush3.bf16.msra.mxu1 %v9780_v36  ;;  %v8544_v36 = vpop.f32.mrb[95].mxu1  ;;  %v8461_v25 = vpop.f32.mrb[81].mxu0  ;;  %v9786_v5 = vpack.c.bf16 %v8213_v38, %v8212_v50 }
 0x2a1   : > { %6569 = vmatmul.mubr.f32.gmra.mrb[182].mxu0 %v14112_v59  ;;  %9783 = vmatprep.subr.bf16.mxu1 %v9782_v33  ;;  %v8147_v33 = vld [vmem:[%s15369_s8 + $0x378] sm:$0xff]  ;;  %v8545_v1 = vadd.f32 %v8544_v36, %v8543_v40  ;;  %v8546_v39 = vpop.f32.mrb[96].mxu1  ;;  %v8462_v45 = vadd.f32 %v8461_v25, %v8460_v48  ;;  %v8463_v43 = vpop.f32.mrb[82].mxu0 }
 0x2a2   : > { %6573 = vmatprep.mubr.f32.mxu0 %v14167_v4  ;;  %9745 = vmatpush3.bf16.msra.mxu0 %v9744_v20  ;;  %v4694_v20 = vadd.f32 %v8459_v2, %v13806_v62  ;;  %v9752_v22 = vpack.c.bf16 %v8147_v33, %v8146_v52 }
 0x2a3   : > { %6773 = vmatmul.mubr.f32.gmra.mrb[198].mxu1 %v14288_v34  ;;  %9747 = vmatprep.subr.bf16.mxu0 %v9746_v8  ;;  %v8547_v8 = vpop.f32.mrb[97].mxu1  ;;  %v4695_v58 = vadd.f32 %v8462_v45, %v13856_v28 }
 0x2a4   : > { %6777 = vmatprep.mubr.f32.mxu1 %v14292_v29  ;;  %9785 = vmatpush3.bf16.msra.mxu1 %v9784_v26  ;;  %v14603_v41 = vadd.f32 %v14537_v60, %v4694_v20  ;;  %v8548_v62 = vadd.f32 %v8547_v8, %v8546_v39  ;;  %v8464_v26 = vpop.f32.mrb[83].mxu0  ;;  %v8549_v13 = vpop.f32.mrb[98].mxu1 }
 0x2a5   : > { %6574 = vmatmul.mubr.f32.gmra.mrb[184].mxu0 %v14207_v6  ;;  %9850 = vmatprep.subr.bf16.mxu1 %v14577_v51  ;;  %v8465_v19 = vadd.f32 %v8464_v26, %v8463_v43  ;;  %v8550_v24 = vpop.f32.mrb[99].mxu1  ;;  %v14610_v60 = vadd.f32 %v8542_v63, %v4695_v58  ;;  %v16406_v58 = vld [vmem:[#allocation57_spill] sm:$0xff] }
 0x2a6   : > { %6578 = vmatprep.mubr.f32.mxu0 %v14219_v17  ;;  %9749 = vmatpush3.bf16.msra.mxu0 %v9748_v49  ;;  %v8551_v40 = vadd.f32 %v8550_v24, %v8549_v13  ;;  %v8466_v49 = vpop.f32.mrb[84].mxu0  ;;  %v8552_v36 = vpop.f32.mrb[100].mxu1 }
 0x2a7   : > { %6778 = vmatmul.mubr.f32.gmra.mrb[200].mxu1 %v14303_v9  ;;  %9751 = vmatprep.subr.bf16.mxu0 %v9750_v31  ;;  %v4696_v28 = vadd.f32 %v8465_v19, %v13875_v23  ;;  %v8467_v2 = vpop.f32.mrb[85].mxu0  ;;  %v8553_v52 = vpop.f32.mrb[101].mxu1 }
 0x2a8   : > { %6782 = vmatprep.mubr.f32.mxu1 %v14306_v3  ;;  %v8468_v31 = vadd.f32 %v8467_v2, %v8466_v49  ;;  %v8554_v63 = vadd.f32 %v8553_v52, %v8552_v36  ;;  %v8469_v23 = vpop.f32.mrb[86].mxu0  ;;  %v16408_v2 = vld [vmem:[#allocation104_spill] sm:$0xff] }
 0x2a9   : > { %6579 = vmatmul.mubr.f32.gmra.mrb[186].mxu0 %v14239_v16  ;;  %v14617_v33 = vadd.f32 %v8545_v1, %v4696_v28  ;;  %v8470_v38 = vpop.f32.mrb[87].mxu0  ;;  %v8555_v20 = vpop.f32.mrb[102].mxu1  ;;  %v16405_v1 = vld [vmem:[#allocation70_spill] sm:$0xff] }
 0x2aa   : > { %6583 = vmatprep.mubr.f32.mxu0 %v14250_v55  ;;  %9753 = vmatpush3.bf16.msra.mxu0 %v9752_v22  ;;  %v4697_v50 = vadd.f32 %v8468_v31, %v13914_v57  ;;  %v8471_v48 = vadd.f32 %v8470_v38, %v8469_v23  ;;  %v8556_v25 = vpop.f32.mrb[103].mxu1 }
 0x2ab   : > { %6783 = vmatmul.mubr.f32.gmra.mrb[202].mxu1 %v14316_v56  ;;  %9787 = vmatprep.subr.bf16.mxu0 %v9786_v5  ;;  %v8557_v22 = vadd.f32 %v8556_v25, %v8555_v20  ;;  %v8472_v57 = vpop.f32.mrb[88].mxu0 }
 0x2ac   : > { %6787 = vmatprep.mubr.f32.mxu1 %v14320_v42  ;;  %v14624_v39 = vadd.f32 %v8548_v62, %v4697_v50  ;;  %v4698_v45 = vadd.f32 %v8471_v48, %v13950_v37  ;;  %v8473_v8 = vpop.f32.mrb[89].mxu0  ;;  %v16407_v62 = vld [vmem:[#allocation105_spill] sm:$0xff]  ;;  %v16410_v48 = vld [vmem:[#allocation75_spill] sm:$0xff] }
 0x2ad   : > { %6584 = vmatmul.mubr.f32.gmra.mrb[188].mxu0 %v14273_v61  ;;  %v8558_v5 = vpop.f32.mrb[104].mxu1  ;;  %v8474_v43 = vadd.f32 %v8473_v8, %v8472_v57 }
 0x2ae   : > { %6588 = vmatprep.mubr.f32.mxu0 %v14276_v15  ;;  %v8559_v26 = vpop.f32.mrb[105].mxu1  ;;  %v14631_v13 = vadd.f32 %v8551_v40, %v4698_v45  ;;  %v16409_v40 = vld [vmem:[#allocation60_spill] sm:$0xff] }
 0x2af   : > { %6788 = vmatmul.mubr.f32.gmra.mrb[204].mxu1 %v14333_v53  ;;  %v8560_v19 = vadd.f32 %v8559_v26, %v8558_v5  ;;  %v4699_v24 = vadd.f32 %v8474_v43, %v14000_v7  ;;  %v16412_v5 = vld [vmem:[#allocation155_spill] sm:$0xff]  ;;  %v8228_v26 = vld [vmem:[%s15369_s8 + $0x600] sm:$0xff] }
 0x2b0   : > { %6792 = vmatprep.mubr.f32.mxu1 %v14336_v35  ;;  %v8475_v37 = vpop.f32.mrb[90].mxu0 }
 0x2b1   : > { %6589 = vmatmul.mubr.f32.gmra.mrb[190].mxu0 %v14288_v34  ;;  %v8476_v28 = vpop.f32.mrb[91].mxu0  ;;  %v8561_v49 = vpop.f32.mrb[106].mxu1  ;;  %v14638_v52 = vadd.f32 %v8554_v63, %v4699_v24  ;;  %v16411_v63 = vld [vmem:[#allocation58_spill] sm:$0xff]  ;;  %v8229_v24 = vld [vmem:[%s15369_s8 + $0x608] sm:$0xff] }
 0x2b2   : > { %6593 = vmatprep.mubr.f32.mxu0 %v14292_v29  ;;  %v8477_v36 = vadd.f32 %v8476_v28, %v8475_v37  ;;  %v8562_v31 = vpop.f32.mrb[107].mxu1  ;;  %v8246_v28 = vld [vmem:[%s15369_s8 + $0x690] sm:$0xff] }
 0x2b3   : > { %6793 = vmatmul.mubr.f32.gmra.mrb[206].mxu1 %v14347_v54  ;;  %v8563_v50 = vadd.f32 %v8562_v31, %v8561_v49  ;;  %v8247_v49 = vld [vmem:[%s15369_s8 + $0x698] sm:$0xff] }
 0x2b4   : > { %6797 = vmatprep.mubr.f32.mxu1 %v16405_v1  ;;  %v4700_v23 = vadd.f32 %v8477_v36, %v14037_v46  ;;  %v16413_v36 = vld [vmem:[#allocation73_spill] sm:$0xff] }
 0x2b5   : > { %6594 = vmatmul.mubr.f32.gmra.mrb[192].mxu0 %v14303_v9  ;;  %v8478_v7 = vpop.f32.mrb[92].mxu0 }
 0x2b6   : > { %6598 = vmatprep.mubr.f32.mxu0 %v14306_v3  ;;  %v8479_v38 = vpop.f32.mrb[93].mxu0  ;;  %v14645_v57 = vadd.f32 %v8557_v22, %v4700_v23 }
 0x2b7   : > { %6798 = vmatmul.mubr.f32.gmra.mrb[208].mxu1 %v16406_v58  ;;  %v8564_v20 = vpop.f32.mrb[108].mxu1  ;;  %v8480_v25 = vadd.f32 %v8479_v38, %v8478_v7 }
 0x2b8   : > { %6802 = vmatprep.mubr.f32.mxu1 %v16407_v62  ;;  %v8565_v45 = vpop.f32.mrb[109].mxu1 }
 0x2b9   : > { %6599 = vmatmul.mubr.f32.gmra.mrb[194].mxu0 %v14316_v56  ;;  %v8566_v8 = vadd.f32 %v8565_v45, %v8564_v20  ;;  %v4701_v43 = vadd.f32 %v8480_v25, %v16412_v5  ;;  %v14669_v20 = vpack.c.bf16 %v8229_v24, %v8228_v26  ;;  %v14673_v5 = vpack.c.bf16 %v8247_v49, %v8246_v28  ;;  %v8249_v24 = vld [vmem:[%s15369_s8 + $0x6a8] sm:$0xff]  ;;  %v8196_v28 = vld [vmem:[%s15369_s8 + $0x500] sm:$0xff] }
 0x2ba   : > { %6603 = vmatprep.mubr.f32.mxu0 %v14320_v42  ;;  %v8481_v46 = vpop.f32.mrb[94].mxu0  ;;  %v8197_v49 = vld [vmem:[%s15369_s8 + $0x508] sm:$0xff] }
 0x2bb   : > { %6803 = vmatmul.mubr.f32.gmra.mrb[210].mxu1 %v16408_v2  ;;  %v8482_v22 = vpop.f32.mrb[95].mxu0  ;;  %v8567_v37 = vpop.f32.mrb[110].mxu1  ;;  %v14664_v7 = vadd.f32 %v8560_v19, %v4701_v43  ;;  %16415 = vst [vmem:[#allocation86_spill] sm:$0xff] %v14669_v20  ;;  %16416 = vst [vmem:[#allocation103_spill] sm:$0xff] %v14673_v5  ;;  %v8231_v19 = vld [vmem:[%s15369_s8 + $0x618] sm:$0xff] }
 0x2bc   : > { %6807 = vmatprep.mubr.f32.mxu1 %v16409_v40  ;;  %v8483_v31 = vadd.f32 %v8482_v22, %v8481_v46  ;;  %v8568_v23 = vpop.f32.mrb[111].mxu1  ;;  %v8230_v46 = vld [vmem:[%s15369_s8 + $0x610] sm:$0xff] }
 0x2bd   : > { %6604 = vmatmul.mubr.f32.gmra.mrb[196].mxu0 %v14333_v53  ;;  %16414 = vst [vmem:[#allocation85_spill] sm:$0xff] %v14664_v7  ;;  %v14667_v38 = vadd.f32 %v8568_v23, %v8567_v37 }
 0x2be   : > { %6608 = vmatprep.mubr.f32.mxu0 %v14336_v35  ;;  %v4702_v25 = vadd.f32 %v8483_v31, %v14254_v30  ;;  %v8484_v45 = vpop.f32.mrb[96].mxu0  ;;  %v8248_v30 = vld [vmem:[%s15369_s8 + $0x6a0] sm:$0xff] }
 0x2bf   : > { %6808 = vmatmul.mubr.f32.gmra.mrb[212].mxu1 %v16410_v48  ;;  %v8485_v43 = vpop.f32.mrb[97].mxu0  ;;  %v8570_v26 = vpop.f32.mrb[112].mxu1 }
 0x2c0   : > { %6812 = vmatprep.mubr.f32.mxu1 %v16411_v63  ;;  %v8486_v22 = vadd.f32 %v8485_v43, %v8484_v45  ;;  %v8571_v37 = vpop.f32.mrb[113].mxu1  ;;  %v14695_v31 = vadd.f32 %v8563_v50, %v4702_v25  ;;  %v8215_v45 = vld [vmem:[%s15369_s8 + $0x598] sm:$0xff]  ;;  %v14707_v43 = vpack.c.bf16 %v8231_v19, %v8230_v46  ;;  %v14712_v25 = vpack.c.bf16 %v8249_v24, %v8248_v30 }
 0x2c1   : > { %6609 = vmatmul.mubr.f32.gmra.mrb[198].mxu0 %v14347_v54  ;;  %v14698_v23 = vadd.f32 %v8571_v37, %v8570_v26  ;;  %v8232_v26 = vld [vmem:[%s15369_s8 + $0x620] sm:$0xff]  ;;  %v8233_v37 = vld [vmem:[%s15369_s8 + $0x628] sm:$0xff]  ;;  %v9788_v19 = vpack.c.bf16 %v8197_v49, %v8196_v28  ;;  %v8251_v30 = vld [vmem:[%s15369_s8 + $0x6b8] sm:$0xff] }
 0x2c2   : > { %6613 = vmatprep.mubr.f32.mxu0 %v16405_v1  ;;  %16417 = vst [vmem:[#allocation162_spill] sm:$0xff] %v14695_v31  ;;  %v4703_v7 = vadd.f32 %v8486_v22, %v14323_v10  ;;  %16418 = vst [vmem:[#allocation117_spill] sm:$0xff] %v14712_v25  ;;  %v8250_v22 = vld [vmem:[%s15369_s8 + $0x6b0] sm:$0xff]  ;;  %v8199_v28 = vld [vmem:[%s15369_s8 + $0x518] sm:$0xff] }
 0x2c3   : > { %6813 = vmatmul.mubr.f32.gmra.mrb[214].mxu1 %v16413_v36 }
 0x2c4   : > { %7125 = vmatprep.mubr.f32.mxu1 %v14167_v4  ;;  %v8487_v50 = vpop.f32.mrb[98].mxu0  ;;  %v8573_v10 = vpop.f32.mrb[114].mxu1  ;;  %v14734_v49 = vadd.f32 %v8566_v8, %v4703_v7  ;;  %v14751_v7 = vpack.c.bf16 %v8251_v30, %v8250_v22  ;;  %v8253_v22 = vld [vmem:[%s15369_s8 + $0x6c8] sm:$0xff] }
 0x2c5   : > { %6614 = vmatmul.mubr.f32.gmra.mrb[200].mxu0 %v16406_v58  ;;  %v8488_v46 = vpop.f32.mrb[99].mxu0 }
 0x2c6   : > { %6618 = vmatprep.mubr.f32.mxu0 %v16407_v62  ;;  %v8489_v24 = vadd.f32 %v8488_v46, %v8487_v50  ;;  %v8216_v50 = vld [vmem:[%s15369_s8 + $0x5a0] sm:$0xff] }
 0x2c7   : > { %7126 = vmatmul.mubr.f32.vlgmr.msra.gmra.mrb[216].mxu1 %v14207_v6 }
 0x2c8   : > { %7130 = vmatprep.mubr.f32.mxu1 %v14219_v17  ;;  %9858 = vmatpush3.bf16.msra.mxu1 %v14669_v20  ;;  %v9790_v20 = vpack.c.bf16 %v8215_v45, %v8214_v0  ;;  %v8217_v0 = vld [vmem:[%s15369_s8 + $0x5a8] sm:$0xff]  ;;  %v14746_v45 = vpack.c.bf16 %v8233_v37, %v8232_v26  ;;  %v4704_v46 = vadd.f32 %v8489_v24, %v14340_v47  ;;  %v8490_v8 = vpop.f32.mrb[100].mxu0 }
 0x2c9   : > { %6619 = vmatmul.mubr.f32.gmra.mrb[202].mxu0 %v16408_v2  ;;  %9851 = vmatprep.subr.bf16.mxu1 %v14673_v5  ;;  %v8574_v5 = vpop.f32.mrb[115].mxu1  ;;  %v8491_v26 = vpop.f32.mrb[101].mxu0 }
 0x2ca   : > { %6931 = vmatprep.mubr.f32.mxu0 %v14056_v12  ;;  %v8198_v12 = vld [vmem:[%s15369_s8 + $0x510] sm:$0xff]  ;;  %v14737_v31 = vadd.f32 %v8574_v5, %v8573_v10  ;;  %v8235_v10 = vld [vmem:[%s15369_s8 + $0x638] sm:$0xff]  ;;  %v8576_v47 = vpop.f32.mrb[116].mxu1  ;;  %v8492_v30 = vadd.f32 %v8491_v26, %v8490_v8  ;;  %v8236_v26 = vld [vmem:[%s15369_s8 + $0x640] sm:$0xff] }
 0x2cb   : > { %7131 = vmatmul.mubr.f32.gmra.mrb[218].mxu1 %v14239_v16  ;;  %v8234_v5 = vld [vmem:[%s15369_s8 + $0x630] sm:$0xff]  ;;  %v9792_v37 = vpack.c.bf16 %v8199_v28, %v8198_v12  ;;  %v8577_v24 = vpop.f32.mrb[117].mxu1  ;;  %v14774_v12 = vadd.f32 %v14667_v38, %v4704_v46 }
 0x2cc   : > { %7135 = vmatprep.mubr.f32.mxu1 %v14250_v55  ;;  %9859 = vmatpush3.bf16.msra.mxu1 %v14707_v43  ;;  %v14777_v28 = vadd.f32 %v8577_v24, %v8576_v47  ;;  %v4705_v8 = vadd.f32 %v8492_v30, %v14416_v11  ;;  %v8493_v38 = vpop.f32.mrb[102].mxu0  ;;  %v8237_v47 = vld [vmem:[%s15369_s8 + $0x648] sm:$0xff] }
 0x2cd   : > { %6932 = vmatmul.mubr.f32.vlgmr.msra.gmra.mrb[204].mxu0 %v14109_v27  ;;  %9852 = vmatprep.subr.bf16.mxu1 %v14712_v25  ;;  %v8252_v27 = vld [vmem:[%s15369_s8 + $0x6c0] sm:$0xff]  ;;  %v9794_v25 = vpack.c.bf16 %v8217_v0, %v8216_v50  ;;  %v8219_v50 = vld [vmem:[%s15369_s8 + $0x5b8] sm:$0xff]  ;;  %v14786_v0 = vpack.c.bf16 %v8235_v10, %v8234_v5  ;;  %v8494_v5 = vpop.f32.mrb[103].mxu0 }
 0x2ce   : > { %9789 = vmatpush3.bf16.msra.mxu0 %v9788_v19  ;;  %6936 = vmatprep.mubr.f32.mxu0 %v14122_v44  ;;  %v8200_v44 = vld [vmem:[%s15369_s8 + $0x520] sm:$0xff]  ;;  %v8201_v19 = vld [vmem:[%s15369_s8 + $0x528] sm:$0xff]  ;;  %v14791_v46 = vpack.c.bf16 %v8253_v22, %v8252_v27  ;;  %v8255_v10 = vld [vmem:[%s15369_s8 + $0x6d8] sm:$0xff]  ;;  %v8495_v27 = vadd.f32 %v8494_v5, %v8493_v38  ;;  %v8579_v22 = vpop.f32.mrb[118].mxu1  ;;  %v14814_v24 = vadd.f32 %v14698_v23, %v4705_v8 }
 0x2cf   : > { %7136 = vmatmul.mubr.f32.gmra.mrb[220].mxu1 %v14273_v61  ;;  %9791 = vmatprep.subr.bf16.mxu0 %v9790_v20  ;;  %v8218_v20 = vld [vmem:[%s15369_s8 + $0x5b0] sm:$0xff]  ;;  %v9796_v11 = vpack.c.bf16 %v8201_v19, %v8200_v44  ;;  %v8580_v44 = vpop.f32.mrb[119].mxu1  ;;  %v8220_v19 = vld [vmem:[%s15369_s8 + $0x5c0] sm:$0xff] }
 0x2d0   : > { %7140 = vmatprep.mubr.f32.mxu1 %v14276_v15  ;;  %9860 = vmatpush3.bf16.msra.mxu1 %v14746_v45  ;;  %v9798_v30 = vpack.c.bf16 %v8219_v50, %v8218_v20  ;;  %v14824_v20 = vpack.c.bf16 %v8237_v47, %v8236_v26  ;;  %v4706_v50 = vadd.f32 %v8495_v27, %v14467_v18  ;;  %v8496_v23 = vpop.f32.mrb[104].mxu0  ;;  %v8238_v5 = vld [vmem:[%s15369_s8 + $0x650] sm:$0xff]  ;;  %v8239_v26 = vld [vmem:[%s15369_s8 + $0x658] sm:$0xff]  ;;  %v8256_v47 = vld [vmem:[%s15369_s8 + $0x6e0] sm:$0xff] }
 0x2d1   : > { %6937 = vmatmul.mubr.f32.gmra.mrb[206].mxu0 %v14112_v59  ;;  %9853 = vmatprep.subr.bf16.mxu1 %v14751_v7  ;;  %v8254_v59 = vld [vmem:[%s15369_s8 + $0x6d0] sm:$0xff]  ;;  %v14828_v8 = vadd.f32 %v8580_v44, %v8579_v22  ;;  %v8497_v18 = vpop.f32.mrb[105].mxu0 }
 0x2d2   : > { %6941 = vmatprep.mubr.f32.mxu0 %v14167_v4  ;;  %9793 = vmatpush3.bf16.msra.mxu0 %v9792_v37  ;;  %v8202_v4 = vld [vmem:[%s15369_s8 + $0x530] sm:$0xff]  ;;  %v8203_v37 = vld [vmem:[%s15369_s8 + $0x538] sm:$0xff]  ;;  %v14831_v38 = vpack.c.bf16 %v8255_v10, %v8254_v59  ;;  %v8257_v59 = vld [vmem:[%s15369_s8 + $0x6e8] sm:$0xff]  ;;  %v8498_v10 = vadd.f32 %v8497_v18, %v8496_v23  ;;  %v8694_v27 = vpop.f32.mrb[120].mxu1 }
 0x2d3   : > { %7141 = vmatmul.mubr.f32.gmra.mrb[222].mxu1 %v14288_v34  ;;  %9795 = vmatprep.subr.bf16.mxu0 %v9794_v25  ;;  %v8221_v25 = vld [vmem:[%s15369_s8 + $0x5c8] sm:$0xff]  ;;  %v8222_v44 = vld [vmem:[%s15369_s8 + $0x5d0] sm:$0xff]  ;;  %v14871_v23 = vpack.c.bf16 %v8257_v59, %v8256_v47  ;;  %v8240_v18 = vld [vmem:[%s15369_s8 + $0x660] sm:$0xff] }
 0x2d4   : > { %7145 = vmatprep.mubr.f32.mxu1 %v14292_v29  ;;  %9861 = vmatpush3.bf16.msra.mxu1 %v14786_v0  ;;  %16419 = vst [vmem:[#allocation115_spill] sm:$0xff] %v14831_v38  ;;  %v9802_v22 = vpack.c.bf16 %v8221_v25, %v8220_v19  ;;  %v14864_v19 = vpack.c.bf16 %v8239_v26, %v8238_v5  ;;  %v8241_v5 = vld [vmem:[%s15369_s8 + $0x668] sm:$0xff]  ;;  %v8258_v26 = vld [vmem:[%s15369_s8 + $0x6f0] sm:$0xff]  ;;  %v8259_v47 = vld [vmem:[%s15369_s8 + $0x6f8] sm:$0xff] }
 0x2d5   : > { %6942 = vmatmul.mubr.f32.gmra.mrb[208].mxu0 %v14207_v6  ;;  %9854 = vmatprep.subr.bf16.mxu1 %v14791_v46  ;;  %v9800_v6 = vpack.c.bf16 %v8203_v37, %v8202_v4  ;;  %v14854_v4 = vadd.f32 %v14737_v31, %v4706_v50  ;;  %v8695_v37 = vpop.f32.mrb[121].mxu1  ;;  %v4707_v25 = vadd.f32 %v8498_v10, %v14498_v21  ;;  %v8499_v31 = vpop.f32.mrb[106].mxu0 }
 0x2d6   : > { %6946 = vmatprep.mubr.f32.mxu0 %v14219_v17  ;;  %9797 = vmatpush3.bf16.msra.mxu0 %v9796_v11  ;;  %v8204_v17 = vld [vmem:[%s15369_s8 + $0x540] sm:$0xff]  ;;  %v8205_v11 = vld [vmem:[%s15369_s8 + $0x548] sm:$0xff]  ;;  %16420 = vst [vmem:[#allocation110_spill] sm:$0xff] %v14864_v19  ;;  %v14868_v50 = vadd.f32 %v8695_v37, %v8694_v27  ;;  %v8500_v21 = vpop.f32.mrb[107].mxu0  ;;  %v8697_v10 = vpop.f32.mrb[122].mxu1  ;;  %v8206_v37 = vld [vmem:[%s15369_s8 + $0x550] sm:$0xff] }
 0x2d7   : > { %7146 = vmatmul.mubr.f32.gmra.mrb[224].mxu1 %v14303_v9  ;;  %9799 = vmatprep.subr.bf16.mxu0 %v9798_v30  ;;  %v8223_v30 = vld [vmem:[%s15369_s8 + $0x5d8] sm:$0xff]  ;;  %v8501_v59 = vadd.f32 %v8500_v21, %v8499_v31  ;;  %v8224_v31 = vld [vmem:[%s15369_s8 + $0x5e0] sm:$0xff]  ;;  %v14909_v21 = vpack.c.bf16 %v8259_v47, %v8258_v26 }
 0x2d8   : > { %7150 = vmatprep.mubr.f32.mxu1 %v14306_v3  ;;  %9862 = vmatpush3.bf16.msra.mxu1 %v14824_v20  ;;  %v9806_v27 = vpack.c.bf16 %v8223_v30, %v8222_v44  ;;  %v14904_v44 = vpack.c.bf16 %v8241_v5, %v8240_v18  ;;  %v8208_v47 = vld [vmem:[%s15369_s8 + $0x560] sm:$0xff] }
 0x2d9   : > { %6947 = vmatmul.mubr.f32.gmra.mrb[210].mxu0 %v14239_v16  ;;  %9855 = vmatprep.subr.bf16.mxu1 %v14831_v38  ;;  %v9804_v16 = vpack.c.bf16 %v8205_v11, %v8204_v17  ;;  %v14894_v17 = vadd.f32 %v14777_v28, %v4707_v25  ;;  %v8698_v11 = vpop.f32.mrb[123].mxu1  ;;  %v4708_v30 = vadd.f32 %v8501_v59, %v14545_v14  ;;  %v8614_v28 = vpop.f32.mrb[108].mxu0  ;;  %v8242_v38 = vld [vmem:[%s15369_s8 + $0x670] sm:$0xff] }
 0x2da   : > { %6951 = vmatprep.mubr.f32.mxu0 %v14250_v55  ;;  %9801 = vmatpush3.bf16.msra.mxu0 %v9800_v6  ;;  %v8207_v6 = vld [vmem:[%s15369_s8 + $0x558] sm:$0xff]  ;;  %16421 = vst [vmem:[#allocation111_spill] sm:$0xff] %v14904_v44  ;;  %v8699_v25 = vadd.f32 %v8698_v11, %v8697_v10  ;;  %v8615_v18 = vpop.f32.mrb[109].mxu0  ;;  %v8700_v59 = vpop.f32.mrb[124].mxu1  ;;  %v8209_v10 = vld [vmem:[%s15369_s8 + $0x568] sm:$0xff] }
 0x2db   : > { %7151 = vmatmul.mubr.f32.gmra.mrb[226].mxu1 %v14316_v56  ;;  %9803 = vmatprep.subr.bf16.mxu0 %v9802_v22  ;;  %v8225_v22 = vld [vmem:[%s15369_s8 + $0x5e8] sm:$0xff]  ;;  %v9808_v14 = vpack.c.bf16 %v8207_v6, %v8206_v37  ;;  %v8616_v5 = vadd.f32 %v8615_v18, %v8614_v28  ;;  %v14926_v11 = vadd.f32 %v14828_v8, %v4708_v30  ;;  %v8227_v37 = vld [vmem:[%s15369_s8 + $0x5f8] sm:$0xff] }
 0x2dc   : > { %7155 = vmatprep.mubr.f32.mxu1 %v14320_v42  ;;  %9863 = vmatpush3.bf16.msra.mxu1 %v14864_v19  ;;  %v8243_v19 = vld [vmem:[%s15369_s8 + $0x678] sm:$0xff]  ;;  %v9810_v26 = vpack.c.bf16 %v8225_v22, %v8224_v31  ;;  %v8617_v8 = vpop.f32.mrb[110].mxu0  ;;  %v9812_v28 = vpack.c.bf16 %v8209_v10, %v8208_v47 }
 0x2dd   : > { %6952 = vmatmul.mubr.f32.gmra.mrb[212].mxu0 %v14273_v61  ;;  %9856 = vmatprep.subr.bf16.mxu1 %v14871_v23  ;;  %v14936_v6 = vpack.c.bf16 %v8243_v19, %v8242_v38  ;;  %v5561_v31 = vadd.f32 %v8616_v5, %v14588_v32  ;;  %v8618_v30 = vpop.f32.mrb[111].mxu0  ;;  %v8210_v32 = vld [vmem:[%s15369_s8 + $0x570] sm:$0xff]  ;;  %v8211_v19 = vld [vmem:[%s15369_s8 + $0x578] sm:$0xff] }
 0x2de   : > { %6956 = vmatprep.mubr.f32.mxu0 %v14276_v15  ;;  %9805 = vmatpush3.bf16.msra.mxu0 %v9804_v16  ;;  %v8701_v16 = vpop.f32.mrb[125].mxu1  ;;  %v8619_v18 = vadd.f32 %v8618_v30, %v8617_v8 }
 0x2df   : > { %7156 = vmatmul.mubr.f32.gmra.mrb[228].mxu1 %v14333_v53  ;;  %9807 = vmatprep.subr.bf16.mxu0 %v9806_v27  ;;  %v8226_v27 = vld [vmem:[%s15369_s8 + $0x5f0] sm:$0xff]  ;;  %v8702_v22 = vadd.f32 %v8701_v16, %v8700_v59  ;;  %v14950_v5 = vadd.f32 %v14868_v50, %v5561_v31  ;;  %v9816_v16 = vpack.c.bf16 %v8211_v19, %v8210_v32 }
 0x2e0   : > { %7160 = vmatprep.mubr.f32.mxu1 %v14336_v35  ;;  %9864 = vmatpush3.bf16.msra.mxu1 %v14904_v44  ;;  %v8703_v44 = vpop.f32.mrb[126].mxu1  ;;  %v9814_v38 = vpack.c.bf16 %v8227_v37, %v8226_v27  ;;  %v5562_v59 = vadd.f32 %v8619_v18, %v14603_v41 }
 0x2e1   : > { %6957 = vmatmul.mubr.f32.gmra.mrb[214].mxu0 %v14288_v34  ;;  %9857 = vmatprep.subr.bf16.mxu1 %v14909_v21 }
 0x2e2   : > { %6961 = vmatprep.mubr.f32.mxu0 %v14292_v29  ;;  %9809 = vmatpush3.bf16.msra.mxu0 %v9808_v14  ;;  %v8704_v14 = vpop.f32.mrb[127].mxu1  ;;  %v14958_v37 = vadd.f32 %v8699_v25, %v5562_v59 }
 0x2e3   : > { %7161 = vmatmul.mubr.f32.gmra.mrb[230].mxu1 %v14347_v54  ;;  %9811 = vmatprep.subr.bf16.mxu0 %v9810_v26  ;;  %v8620_v26 = vpop.f32.mrb[112].mxu0  ;;  %v8705_v47 = vadd.f32 %v8704_v14, %v8703_v44  ;;  %v8706_v27 = vpop.f32.mrb[128].mxu1 }
 0x2e4   : > { %7165 = vmatprep.mubr.f32.mxu1 %v16405_v1  ;;  %9865 = vmatpush3.bf16.msra.mxu1 %v14936_v6  ;;  %v8621_v10 = vpop.f32.mrb[113].mxu0  ;;  %v8707_v31 = vpop.f32.mrb[129].mxu1 }
 0x2e5   : > { %6962 = vmatmul.mubr.f32.gmra.mrb[216].mxu0 %v14303_v9  ;;  %v8622_v50 = vadd.f32 %v8621_v10, %v8620_v26  ;;  %v8623_v44 = vpop.f32.mrb[114].mxu0  ;;  %v8708_v8 = vadd.f32 %v8707_v31, %v8706_v27 }
 0x2e6   : > { %6966 = vmatprep.mubr.f32.mxu0 %v14306_v3  ;;  %9813 = vmatpush3.bf16.msra.mxu0 %v9812_v28  ;;  %v8624_v30 = vpop.f32.mrb[115].mxu0  ;;  %v8709_v18 = vpop.f32.mrb[130].mxu1 }
 0x2e7   : > { %7166 = vmatmul.mubr.f32.gmra.mrb[232].mxu1 %v16406_v58  ;;  %9815 = vmatprep.subr.bf16.mxu0 %v9814_v38  ;;  %v5563_v41 = vadd.f32 %v8622_v50, %v14610_v60  ;;  %v8625_v28 = vadd.f32 %v8624_v30, %v8623_v44  ;;  %v8710_v38 = vpop.f32.mrb[131].mxu1 }
 0x2e8   : > { %7170 = vmatprep.mubr.f32.mxu1 %v16407_v62  ;;  %v8626_v32 = vpop.f32.mrb[116].mxu0  ;;  %v8711_v19 = vadd.f32 %v8710_v38, %v8709_v18  ;;  %v16424_v38 = vld [vmem:[#allocation119_spill] sm:$0xff] }
 0x2e9   : > { %6967 = vmatmul.mubr.f32.gmra.mrb[218].mxu0 %v14316_v56  ;;  %v14966_v25 = vadd.f32 %v8702_v22, %v5563_v41  ;;  %v5564_v60 = vadd.f32 %v8625_v28, %v14617_v33  ;;  %v8627_v14 = vpop.f32.mrb[117].mxu0 }
 0x2ea   : > { %6971 = vmatprep.mubr.f32.mxu0 %v14320_v42  ;;  %9817 = vmatpush3.bf16.msra.mxu0 %v9816_v16  ;;  %v8628_v59 = vadd.f32 %v8627_v14, %v8626_v32  ;;  %v8712_v26 = vpop.f32.mrb[132].mxu1 }
 0x2eb   : > { %7171 = vmatmul.mubr.f32.gmra.mrb[234].mxu1 %v16408_v2  ;;  %9819 = vmatprep.subr.bf16.mxu0 %v14577_v51  ;;  %v14973_v10 = vadd.f32 %v8705_v47, %v5564_v60  ;;  %v8713_v51 = vpop.f32.mrb[133].mxu1  ;;  %v16423_v47 = vld [vmem:[#allocation120_spill] sm:$0xff] }
 0x2ec   : > { %7175 = vmatprep.mubr.f32.mxu1 %v16409_v40  ;;  %v5565_v22 = vadd.f32 %v8628_v59, %v14624_v39  ;;  %v8629_v33 = vpop.f32.mrb[118].mxu0  ;;  %v8714_v16 = vadd.f32 %v8713_v51, %v8712_v26 }
 0x2ed   : > { %6972 = vmatmul.mubr.f32.gmra.mrb[220].mxu0 %v14333_v53  ;;  %v8630_v50 = vpop.f32.mrb[119].mxu0 }
 0x2ee   : > { %6976 = vmatprep.mubr.f32.mxu0 %v14336_v35  ;;  %v8631_v27 = vadd.f32 %v8630_v50, %v8629_v33  ;;  %v8715_v31 = vpop.f32.mrb[134].mxu1  ;;  %v14980_v41 = vadd.f32 %v8708_v8, %v5565_v22  ;;  %v16426_v8 = vld [vmem:[#allocation89_spill] sm:$0xff]  ;;  %v16427_v33 = vld [vmem:[#allocation127_spill] sm:$0xff] }
 0x2ef   : > { %7176 = vmatmul.mubr.f32.gmra.mrb[236].mxu1 %v16410_v48  ;;  %v8716_v44 = vpop.f32.mrb[135].mxu1 }
 0x2f0   : > { %7180 = vmatprep.mubr.f32.mxu1 %v16411_v63  ;;  %16422 = vst [vmem:[#allocation154_spill] sm:$0xff] %v14980_v41  ;;  %v5566_v30 = vadd.f32 %v8631_v27, %v14631_v13  ;;  %v8632_v39 = vpop.f32.mrb[120].mxu0  ;;  %v8717_v28 = vadd.f32 %v8716_v44, %v8715_v31 }
 0x2f1   : > { %6977 = vmatmul.mubr.f32.gmra.mrb[222].mxu0 %v14347_v54  ;;  %v8633_v18 = vpop.f32.mrb[121].mxu0 }
 0x2f2   : > { %6981 = vmatprep.mubr.f32.mxu0 %v16405_v1  ;;  %v8634_v60 = vadd.f32 %v8633_v18, %v8632_v39  ;;  %v8718_v32 = vpop.f32.mrb[136].mxu1  ;;  %v14987_v14 = vadd.f32 %v8711_v19, %v5566_v30  ;;  %v16429_v19 = vld [vmem:[#allocation59_spill] sm:$0xff] }
 0x2f3   : > { %7181 = vmatmul.mubr.f32.gmra.mrb[238].mxu1 %v16413_v36  ;;  %v8719_v59 = vpop.f32.mrb[137].mxu1 }
 0x2f4   : > { %7185 = vmatprep.mubr.f32.mxu1 %v16423_v47  ;;  %16425 = vst [vmem:[#allocation112_spill] sm:$0xff] %v14987_v14  ;;  %v5567_v26 = vadd.f32 %v8634_v60, %v14638_v52  ;;  %v8635_v13 = vpop.f32.mrb[122].mxu0  ;;  %v8720_v51 = vadd.f32 %v8719_v59, %v8718_v32  ;;  %v16430_v60 = vld [vmem:[#allocation11_spill] sm:$0xff] }
 0x2f5   : > { %6982 = vmatmul.mubr.f32.gmra.mrb[224].mxu0 %v16406_v58  ;;  %v8636_v22 = vpop.f32.mrb[123].mxu0 }
 0x2f6   : > { %6986 = vmatprep.mubr.f32.mxu0 %v16407_v62  ;;  %v8637_v50 = vadd.f32 %v8636_v22, %v8635_v13  ;;  %v8721_v27 = vpop.f32.mrb[138].mxu1  ;;  %v14994_v31 = vadd.f32 %v8714_v16, %v5567_v26  ;;  %v16432_v16 = vld [vmem:[#allocation130_spill] sm:$0xff]  ;;  %v16433_v22 = vld [vmem:[#allocation85_spill] sm:$0xff] }
 0x2f7   : > { %7186 = vmatmul.mubr.f32.gmra.mrb[240].mxu1 %v16424_v38  ;;  %v8722_v44 = vpop.f32.mrb[139].mxu1 }
 0x2f8   : > { %7190 = vmatprep.mubr.f32.mxu1 %v16426_v8  ;;  %16428 = vst [vmem:[#allocation113_spill] sm:$0xff] %v14994_v31  ;;  %v5568_v30 = vadd.f32 %v8637_v50, %v14645_v57  ;;  %v8638_v52 = vpop.f32.mrb[124].mxu0  ;;  %v8723_v39 = vadd.f32 %v8722_v44, %v8721_v27  ;;  %v16434_v44 = vld [vmem:[#allocation65_spill] sm:$0xff] }
 0x2f9   : > { %6987 = vmatmul.mubr.f32.gmra.mrb[226].mxu0 %v16408_v2  ;;  %v8639_v18 = vpop.f32.mrb[125].mxu0 }
 0x2fa   : > { %6991 = vmatprep.mubr.f32.mxu0 %v16409_v40  ;;  %v8640_v32 = vadd.f32 %v8639_v18, %v8638_v52  ;;  %v8724_v59 = vpop.f32.mrb[140].mxu1  ;;  %v15001_v13 = vadd.f32 %v8717_v28, %v5568_v30  ;;  %v16435_v30 = vld [vmem:[#allocation162_spill] sm:$0xff] }
 0x2fb   : > { %7191 = vmatmul.mubr.f32.gmra.mrb[242].mxu1 %v16427_v33  ;;  %v8725_v26 = vpop.f32.mrb[141].mxu1 }
 0x2fc   : > { %7195 = vmatprep.mubr.f32.mxu1 %v16429_v19  ;;  %16431 = vst [vmem:[#allocation114_spill] sm:$0xff] %v15001_v13  ;;  %v5569_v31 = vadd.f32 %v8640_v32, %v16433_v22  ;;  %v8641_v57 = vpop.f32.mrb[126].mxu0  ;;  %v8726_v50 = vadd.f32 %v8725_v26, %v8724_v59 }
 0x2fd   : > { %6992 = vmatmul.mubr.f32.gmra.mrb[228].mxu0 %v16410_v48  ;;  %v8642_v27 = vpop.f32.mrb[127].mxu0 }
 0x2fe   : > { %6996 = vmatprep.mubr.f32.mxu0 %v16411_v63  ;;  %v8643_v14 = vadd.f32 %v8642_v27, %v8641_v57  ;;  %v8727_v41 = vpop.f32.mrb[142].mxu1  ;;  %v15008_v52 = vadd.f32 %v8720_v51, %v5569_v31 }
 0x2ff   : > { %7196 = vmatmul.mubr.f32.gmra.mrb[244].mxu1 %v16430_v60  ;;  %v8728_v28 = vpop.f32.mrb[143].mxu1 }
 0x300   : > { %7200 = vmatprep.mubr.f32.mxu1 %v16432_v16  ;;  %v5570_v18 = vadd.f32 %v8643_v14, %v16435_v30  ;;  %v8644_v32 = vpop.f32.mrb[128].mxu0  ;;  %v8729_v22 = vadd.f32 %v8728_v28, %v8727_v41 }
 0x301   : > { %6997 = vmatmul.mubr.f32.gmra.mrb[230].mxu0 %v16413_v36  ;;  %v8645_v59 = vpop.f32.mrb[129].mxu0 }
 0x302   : > { %7001 = vmatprep.mubr.f32.mxu0 %v16423_v47  ;;  %v8646_v26 = vadd.f32 %v8645_v59, %v8644_v32  ;;  %v8730_v13 = vpop.f32.mrb[144].mxu1  ;;  %v15015_v57 = vadd.f32 %v8723_v39, %v5570_v18  ;;  %v16436_v59 = vld [vmem:[#allocation86_spill] sm:$0xff] }
 0x303   : > { %7201 = vmatmul.mubr.f32.gmra.mrb[246].mxu1 %v16434_v44  ;;  %v8731_v51 = vpop.f32.mrb[145].mxu1 }
 0x304   : > { %7528 = vmatprep.mubr.f32.mxu1 %v14336_v35  ;;  %v5571_v31 = vadd.f32 %v8646_v26, %v14734_v49  ;;  %v8732_v27 = vadd.f32 %v8731_v51, %v8730_v13 }
 0x305   : > { %7002 = vmatmul.mubr.f32.gmra.mrb[232].mxu0 %v16424_v38  ;;  %v8647_v14 = vpop.f32.mrb[130].mxu0 }
 0x306   : > { %7006 = vmatprep.mubr.f32.mxu0 %v16426_v8  ;;  %v8648_v41 = vpop.f32.mrb[131].mxu0  ;;  %v15022_v30 = vadd.f32 %v8726_v50, %v5571_v31  ;;  %v16437_v50 = vld [vmem:[#allocation103_spill] sm:$0xff] }
 0x307   : > { %7529 = vmatmul.mubr.f32.vlgmr.msra.gmra.mrb[248].mxu1 %v14347_v54  ;;  %v8649_v28 = vadd.f32 %v8648_v41, %v8647_v14 }
 0x308   : > { %7533 = vmatprep.mubr.f32.mxu1 %v16405_v1 }
 0x309   : > { %7007 = vmatmul.mubr.f32.gmra.mrb[234].mxu0 %v16427_v33  ;;  %v5572_v18 = vadd.f32 %v8649_v28, %v14774_v12  ;;  %v8650_v49 = vpop.f32.mrb[132].mxu0 }
 0x30a   : > { %7319 = vmatprep.mubr.f32.mxu0 %v14250_v55  ;;  %v8733_v39 = vpop.f32.mrb[146].mxu1  ;;  %v8651_v13 = vpop.f32.mrb[133].mxu0 }
 0x30b   : > { %7534 = vmatmul.mubr.f32.gmra.mrb[250].mxu1 %v16406_v58  ;;  %v8734_v32 = vpop.f32.mrb[147].mxu1  ;;  %v8652_v26 = vadd.f32 %v8651_v13, %v8650_v49  ;;  %v15031_v51 = vadd.f32 %v8729_v22, %v5572_v18  ;;  %v16438_v22 = vld [vmem:[#allocation117_spill] sm:$0xff] }
 0x30c   : > { %7538 = vmatprep.mubr.f32.mxu1 %v16407_v62  ;;  %v8735_v55 = vadd.f32 %v8734_v32, %v8733_v39 }
 0x30d   : > { %7320 = vmatmul.mubr.f32.vlgmr.msra.gmra.mrb[236].mxu0 %v14273_v61  ;;  %v5573_v61 = vadd.f32 %v8652_v26, %v14814_v24  ;;  %v8653_v31 = vpop.f32.mrb[134].mxu0 }
 0x30e   : > { %9821 = vmatpush3.bf16.msra.mxu0 %v16436_v59  ;;  %7324 = vmatprep.mubr.f32.mxu0 %v14276_v15  ;;  %v8736_v12 = vpop.f32.mrb[148].mxu1  ;;  %v8654_v41 = vpop.f32.mrb[135].mxu0 }
 0x30f   : > { %7539 = vmatmul.mubr.f32.gmra.mrb[252].mxu1 %v16408_v2  ;;  %9823 = vmatprep.subr.bf16.mxu0 %v16437_v50  ;;  %v8737_v14 = vpop.f32.mrb[149].mxu1  ;;  %v8655_v28 = vadd.f32 %v8654_v41, %v8653_v31  ;;  %v15040_v39 = vadd.f32 %v8732_v27, %v5573_v61  ;;  %v16439_v31 = vld [vmem:[#allocation115_spill] sm:$0xff] }
 0x310   : > { %7543 = vmatprep.mubr.f32.mxu1 %v16409_v40  ;;  %v8738_v15 = vadd.f32 %v8737_v14, %v8736_v12 }
 0x311   : > { %7325 = vmatmul.mubr.f32.gmra.mrb[238].mxu0 %v14288_v34  ;;  %v5574_v24 = vadd.f32 %v8655_v28, %v14854_v4  ;;  %v8656_v18 = vpop.f32.mrb[136].mxu0  ;;  %v16440_v28 = vld [vmem:[#allocation110_spill] sm:$0xff] }
 0x312   : > { %7329 = vmatprep.mubr.f32.mxu0 %v14292_v29  ;;  %9825 = vmatpush3.bf16.msra.mxu0 %v14707_v43  ;;  %v8739_v34 = vpop.f32.mrb[150].mxu1  ;;  %v8657_v32 = vpop.f32.mrb[137].mxu0 }
 0x313   : > { %7544 = vmatmul.mubr.f32.gmra.mrb[254].mxu1 %v16410_v48  ;;  %9827 = vmatprep.subr.bf16.mxu0 %v16438_v22  ;;  %v8740_v49 = vpop.f32.mrb[151].mxu1  ;;  %v8658_v59 = vadd.f32 %v8657_v32, %v8656_v18  ;;  %v15049_v27 = vadd.f32 %v8735_v55, %v5574_v24 }
 0x314   : > { %7548 = vmatprep.mubr.f32.mxu1 %v16411_v63  ;;  %v8741_v43 = vadd.f32 %v8740_v49, %v8739_v34  ;;  %v16441_v49 = vld [vmem:[#allocation111_spill] sm:$0xff] }
 0x315   : > { %7330 = vmatmul.mubr.f32.gmra.mrb[240].mxu0 %v14303_v9  ;;  %v5575_v4 = vadd.f32 %v8658_v59, %v14894_v17 }
 0x316   : > { %7334 = vmatprep.mubr.f32.mxu0 %v14306_v3  ;;  %9829 = vmatpush3.bf16.msra.mxu0 %v14746_v45 }
 0x317   : > { %7549 = vmatmul.mubr.f32.gmra.mrb[0].mxu1 %v16413_v36  ;;  %9831 = vmatprep.subr.bf16.mxu0 %v14751_v7  ;;  %v8854_v13 = vpop.f32.mrb[152].mxu1  ;;  %v15058_v7 = vadd.f32 %v8738_v15, %v5575_v4  ;;  %v16442_v4 = vld [vmem:[#allocation123_spill] sm:$0xff] }
 0x318   : > { %7553 = vmatprep.mubr.f32.mxu1 %v16423_v47  ;;  %v8855_v26 = vpop.f32.mrb[153].mxu1 }
 0x319   : > { %7335 = vmatmul.mubr.f32.gmra.mrb[242].mxu0 %v14316_v56  ;;  %v8856_v45 = vadd.f32 %v8855_v26, %v8854_v13 }
 0x31a   : > { %7339 = vmatprep.mubr.f32.mxu0 %v14320_v42  ;;  %9833 = vmatpush3.bf16.msra.mxu0 %v14786_v0  ;;  %v8659_v55 = vpop.f32.mrb[138].mxu0 }
 0x31b   : > { %7554 = vmatmul.mubr.f32.gmra.mrb[2].mxu1 %v16424_v38  ;;  %9835 = vmatprep.subr.bf16.mxu0 %v14791_v46  ;;  %v8660_v50 = vpop.f32.mrb[139].mxu0  ;;  %v8857_v17 = vpop.f32.mrb[154].mxu1 }
 0x31c   : > { %7558 = vmatprep.mubr.f32.mxu1 %v16426_v8  ;;  %v8661_v12 = vadd.f32 %v8660_v50, %v8659_v55  ;;  %v8858_v61 = vpop.f32.mrb[155].mxu1  ;;  %v16443_v55 = vld [vmem:[#allocation93_spill] sm:$0xff] }
 0x31d   : > { %7340 = vmatmul.mubr.f32.gmra.mrb[244].mxu0 %v14333_v53  ;;  %v8859_v0 = vadd.f32 %v8858_v61, %v8857_v17  ;;  %v16444_v17 = vld [vmem:[#allocation98_spill] sm:$0xff] }
 0x31e   : > { %7344 = vmatprep.mubr.f32.mxu0 %v14336_v35  ;;  %9837 = vmatpush3.bf16.msra.mxu0 %v14824_v20  ;;  %v5576_v46 = vadd.f32 %v8661_v12, %v14926_v11  ;;  %v8774_v14 = vpop.f32.mrb[140].mxu0 }
 0x31f   : > { %7559 = vmatmul.mubr.f32.gmra.mrb[4].mxu1 %v16427_v33  ;;  %9839 = vmatprep.subr.bf16.mxu0 %v16439_v31  ;;  %v8775_v15 = vpop.f32.mrb[141].mxu0 }
 0x320   : > { %7563 = vmatprep.mubr.f32.mxu1 %v16429_v19  ;;  %v8776_v41 = vadd.f32 %v8775_v15, %v8774_v14  ;;  %v8860_v35 = vpop.f32.mrb[156].mxu1  ;;  %v15071_v20 = vadd.f32 %v8741_v43, %v5576_v46  ;;  %v16446_v14 = vld [vmem:[#allocation83_spill] sm:$0xff] }
 0x321   : > { %7345 = vmatmul.mubr.f32.gmra.mrb[246].mxu0 %v14347_v54  ;;  %v8861_v22 = vpop.f32.mrb[157].mxu1 }
 0x322   : > { %7349 = vmatprep.mubr.f32.mxu0 %v16405_v1  ;;  %9841 = vmatpush3.bf16.msra.mxu0 %v16440_v28  ;;  %v6237_v11 = vadd.f32 %v8776_v41, %v14950_v5  ;;  %v8777_v24 = vpop.f32.mrb[142].mxu0  ;;  %v8862_v34 = vadd.f32 %v8861_v22, %v8860_v35  ;;  %v16447_v28 = vld [vmem:[#allocation72_spill] sm:$0xff]  ;;  %v16448_v22 = vld [vmem:[#allocation154_spill] sm:$0xff] }
 0x323   : > { %7564 = vmatmul.mubr.f32.gmra.mrb[6].mxu1 %v16430_v60  ;;  %9843 = vmatprep.subr.bf16.mxu0 %v14871_v23  ;;  %v8778_v54 = vpop.f32.mrb[143].mxu0 }
 0x324   : > { %7568 = vmatprep.mubr.f32.mxu1 %v16432_v16  ;;  %v8779_v1 = vadd.f32 %v8778_v54, %v8777_v24  ;;  %v8863_v18 = vpop.f32.mrb[158].mxu1  ;;  %v15080_v32 = vadd.f32 %v8856_v45, %v6237_v11 }
 0x325   : > { %7350 = vmatmul.mubr.f32.gmra.mrb[248].mxu0 %v16406_v58  ;;  %v8864_v43 = vpop.f32.mrb[159].mxu1 }
 0x326   : > { %7354 = vmatprep.mubr.f32.mxu0 %v16407_v62  ;;  %9845 = vmatpush3.bf16.msra.mxu0 %v16441_v49  ;;  %v6238_v23 = vadd.f32 %v8779_v1, %v14958_v37  ;;  %v8780_v5 = vpop.f32.mrb[144].mxu0  ;;  %v8865_v59 = vadd.f32 %v8864_v43, %v8863_v18  ;;  %v16450_v49 = vld [vmem:[#allocation132_spill] sm:$0xff] }
 0x327   : > { %7569 = vmatmul.mubr.f32.gmra.mrb[8].mxu1 %v16434_v44  ;;  %9847 = vmatprep.subr.bf16.mxu0 %v14909_v21  ;;  %v8781_v58 = vpop.f32.mrb[145].mxu0  ;;  %v16451_v43 = vld [vmem:[#allocation112_spill] sm:$0xff] }
 0x328   : > { %7573 = vmatprep.mubr.f32.mxu1 %v16442_v4  ;;  %v8782_v62 = vadd.f32 %v8781_v58, %v8780_v5  ;;  %v8866_v13 = vpop.f32.mrb[160].mxu1  ;;  %v15089_v26 = vadd.f32 %v8859_v0, %v6238_v23  ;;  %v16445_v0 = vld [vmem:[#allocation99_spill] sm:$0xff] }
 0x329   : > { %7355 = vmatmul.mubr.f32.gmra.mrb[250].mxu0 %v16408_v2  ;;  %v8867_v45 = vpop.f32.mrb[161].mxu1 }
 0x32a   : > { %7359 = vmatprep.mubr.f32.mxu0 %v16409_v40  ;;  %9849 = vmatpush3.bf16.msra.mxu0 %v14936_v6  ;;  %v6239_v21 = vadd.f32 %v8782_v62, %v14966_v25  ;;  %v8783_v37 = vpop.f32.mrb[146].mxu0  ;;  %v8868_v50 = vadd.f32 %v8867_v45, %v8866_v13  ;;  %v16452_v45 = vld [vmem:[#allocation113_spill] sm:$0xff] }
 0x32b   : > { %7574 = vmatmul.mubr.f32.gmra.mrb[10].mxu1 %v16443_v55  ;;  %v8784_v12 = vpop.f32.mrb[147].mxu0 }
 0x32c   : > { %7578 = vmatprep.mubr.f32.mxu1 %v16444_v17  ;;  %v8785_v2 = vadd.f32 %v8784_v12, %v8783_v37  ;;  %v8869_v40 = vpop.f32.mrb[162].mxu1  ;;  %v15096_v61 = vadd.f32 %v8862_v34, %v6239_v21  ;;  %v16449_v34 = vld [vmem:[#allocation151_spill] sm:$0xff] }
 0x32d   : > { %7360 = vmatmul.mubr.f32.gmra.mrb[252].mxu0 %v16410_v48  ;;  %v8870_v6 = vpop.f32.mrb[163].mxu1 }
 0x32e   : > { %7364 = vmatprep.mubr.f32.mxu0 %v16411_v63  ;;  %v6240_v31 = vadd.f32 %v8785_v2, %v14973_v10  ;;  %v8786_v46 = vpop.f32.mrb[148].mxu0  ;;  %v8871_v25 = vadd.f32 %v8870_v6, %v8869_v40 }
 0x32f   : > { %7579 = vmatmul.mubr.f32.gmra.mrb[12].mxu1 %v16445_v0  ;;  %v8787_v15 = vpop.f32.mrb[149].mxu0 }
 0x330   : > { %7583 = vmatprep.mubr.f32.mxu1 %v16446_v14  ;;  %v8788_v41 = vadd.f32 %v8787_v15, %v8786_v46  ;;  %v15103_v63 = vadd.f32 %v8865_v59, %v6240_v31  ;;  %v16453_v31 = vld [vmem:[#allocation114_spill] sm:$0xff] }
 0x331   : > { %7365 = vmatmul.mubr.f32.gmra.mrb[254].mxu0 %v16413_v36  ;;  %v8872_v48 = vpop.f32.mrb[164].mxu1 }
 0x332   : > { %7369 = vmatprep.mubr.f32.mxu0 %v16423_v47  ;;  %v8873_v35 = vpop.f32.mrb[165].mxu1  ;;  %v6241_v11 = vadd.f32 %v8788_v41, %v16448_v22  ;;  %v8789_v24 = vpop.f32.mrb[150].mxu0 }
 0x333   : > { %7584 = vmatmul.mubr.f32.gmra.mrb[14].mxu1 %v16447_v28  ;;  %v8874_v10 = vadd.f32 %v8873_v35, %v8872_v48  ;;  %v8790_v54 = vpop.f32.mrb[151].mxu0 }
 0x334   : > { %7588 = vmatprep.mubr.f32.mxu1 %v16449_v34  ;;  %v8791_v1 = vadd.f32 %v8790_v54, %v8789_v24  ;;  %v15110_v47 = vadd.f32 %v8868_v50, %v6241_v11 }
 0x335   : > { %7370 = vmatmul.mubr.f32.gmra.mrb[0].mxu0 %v16424_v38  ;;  %v8875_v36 = vpop.f32.mrb[166].mxu1 }
 0x336   : > { %7374 = vmatprep.mubr.f32.mxu0 %v16426_v8  ;;  %v8876_v18 = vpop.f32.mrb[167].mxu1  ;;  %v6242_v23 = vadd.f32 %v8791_v1, %v16451_v43  ;;  %v8792_v5 = vpop.f32.mrb[152].mxu0 }
 0x337   : > { %7589 = vmatmul.mubr.f32.gmra.mrb[16].mxu1 %v16450_v49  ;;  %v8877_v59 = vadd.f32 %v8876_v18, %v8875_v36  ;;  %v8793_v58 = vpop.f32.mrb[153].mxu0 }
 0x338   : > { %v8794_v62 = vadd.f32 %v8793_v58, %v8792_v5  ;;  %v15116_v13 = vadd.f32 %v8871_v25, %v6242_v23 }
 0x339   : > { %7375 = vmatmul.mubr.f32.gmra.mrb[2].mxu0 %v16427_v33 }
 0x33a   : > { %7379 = vmatprep.mubr.f32.mxu0 %v16429_v19  ;;  %v8878_v38 = vpop.f32.mrb[168].mxu1  ;;  %v6243_v21 = vadd.f32 %v8794_v62, %v16452_v45  ;;  %v8795_v37 = vpop.f32.mrb[154].mxu0 }
 0x33b   : > { %v8879_v8 = vpop.f32.mrb[169].mxu1  ;;  %v8796_v12 = vpop.f32.mrb[155].mxu0 }
 0x33c   : > { %v8880_v50 = vadd.f32 %v8879_v8, %v8878_v38  ;;  %v8797_v2 = vadd.f32 %v8796_v12, %v8795_v37  ;;  %v15121_v6 = vadd.f32 %v8874_v10, %v6243_v21 }
 0x33d   : > { %7380 = vmatmul.mubr.f32.gmra.mrb[4].mxu0 %v16430_v60 }
 0x33e   : > { %7384 = vmatprep.mubr.f32.mxu0 %v16432_v16  ;;  %v8881_v40 = vpop.f32.mrb[170].mxu1  ;;  %v6244_v19 = vadd.f32 %v8797_v2, %v16453_v31 }
 0x33f   : > { %v8882_v33 = vpop.f32.mrb[171].mxu1 }
 0x340   : > { %v8798_v46 = vpop.f32.mrb[156].mxu0  ;;  %v8883_v25 = vadd.f32 %v8882_v33, %v8881_v40  ;;  %v15126_v48 = vadd.f32 %v8877_v59, %v6244_v19 }
 0x341   : > { %v8799_v14 = vpop.f32.mrb[157].mxu0  ;;  %7385 = vmatmul.mubr.f32.gmra.mrb[6].mxu0 %v16434_v44 }
 0x342   : > { %v8800_v15 = vadd.f32 %v8799_v14, %v8798_v46  ;;  %7389 = vmatprep.mubr.f32.mxu0 %v16442_v4  ;;  %v8884_v41 = vpop.f32.mrb[172].mxu1 }
 0x343   : > { %v8885_v60 = vpop.f32.mrb[173].mxu1 }
 0x344   : > { %v6245_v16 = vadd.f32 %v8800_v15, %v15008_v52  ;;  %v8801_v35 = vpop.f32.mrb[158].mxu0  ;;  %v8886_v28 = vadd.f32 %v8885_v60, %v8884_v41 }
 0x345   : > { %v8802_v22 = vpop.f32.mrb[159].mxu0  ;;  %7390 = vmatmul.mubr.f32.gmra.mrb[8].mxu0 %v16443_v55 }
 0x346   : > { %v8803_v11 = vadd.f32 %v8802_v22, %v8801_v35  ;;  %7394 = vmatprep.mubr.f32.mxu0 %v16444_v17  ;;  %v8887_v24 = vpop.f32.mrb[174].mxu1  ;;  %v15131_v10 = vadd.f32 %v8880_v50, %v6245_v16 }
 0x347   : > { %v8888_v44 = vpop.f32.mrb[175].mxu1 }
 0x348   : > { %v6246_v4 = vadd.f32 %v8803_v11, %v15015_v57  ;;  %v8804_v34 = vpop.f32.mrb[160].mxu0  ;;  %v8889_v54 = vadd.f32 %v8888_v44, %v8887_v24 }
 0x349   : > { %v8805_v1 = vpop.f32.mrb[161].mxu0  ;;  %7395 = vmatmul.mubr.f32.gmra.mrb[10].mxu0 %v16445_v0 }
 0x34a   : > { %v8806_v52 = vadd.f32 %v8805_v1, %v8804_v34  ;;  %7513 = vmatprep.mubr.f32.mxu0 %v14292_v29  ;;  %v8890_v36 = vpop.f32.mrb[176].mxu1  ;;  %v15136_v18 = vadd.f32 %v8883_v25, %v6246_v4 }
 0x34b   : > { %v8891_v55 = vpop.f32.mrb[177].mxu1 }
 0x34c   : > { %v6247_v17 = vadd.f32 %v8806_v52, %v15022_v30  ;;  %v8807_v49 = vpop.f32.mrb[162].mxu0  ;;  %v8892_v43 = vadd.f32 %v8891_v55, %v8890_v36 }
 0x34d   : > { %v8808_v23 = vpop.f32.mrb[163].mxu0  ;;  %7514 = vmatmul.mubr.f32.vlgmr.msra.gmra.mrb[12].mxu0 %v14303_v9 }
 0x34e   : > { %v8809_v57 = vadd.f32 %v8808_v23, %v8807_v49  ;;  %7518 = vmatprep.mubr.f32.mxu0 %v14306_v3  ;;  %v8893_v5 = vpop.f32.mrb[178].mxu1  ;;  %v15141_v59 = vadd.f32 %v8886_v28, %v6247_v17 }
 0x34f   : > { %v8894_v0 = vpop.f32.mrb[179].mxu1 }
 0x350   : > { %v6248_v29 = vadd.f32 %v8809_v57, %v15031_v51  ;;  %v8810_v58 = vpop.f32.mrb[164].mxu0  ;;  %v8895_v62 = vadd.f32 %v8894_v0, %v8893_v5 }
 0x351   : > { %v8811_v38 = vpop.f32.mrb[165].mxu0  ;;  %7519 = vmatmul.mubr.f32.gmra.mrb[14].mxu0 %v14316_v56 }
 0x352   : > { %v8812_v30 = vadd.f32 %v8811_v38, %v8810_v58  ;;  %7523 = vmatprep.mubr.f32.mxu0 %v14320_v42  ;;  %v8896_v8 = vpop.f32.mrb[180].mxu1  ;;  %v15146_v45 = vadd.f32 %v8889_v54, %v6248_v29 }
 0x353   : > { %v8897_v9 = vpop.f32.mrb[181].mxu1 }
 0x354   : > { %v6249_v3 = vadd.f32 %v8812_v30, %v15040_v39  ;;  %v8813_v21 = vpop.f32.mrb[166].mxu0  ;;  %v8898_v37 = vadd.f32 %v8897_v9, %v8896_v8 }
 0x355   : > { %v8814_v50 = vpop.f32.mrb[167].mxu0  ;;  %7524 = vmatmul.mubr.f32.gmra.mrb[16].mxu0 %v14333_v53 }
 0x356   : > { %v8815_v51 = vadd.f32 %v8814_v50, %v8813_v21  ;;  %v8899_v12 = vpop.f32.mrb[182].mxu1  ;;  %v15150_v2 = vadd.f32 %v8892_v43, %v6249_v3 }
 0x357   : > { %v8900_v40 = vpop.f32.mrb[183].mxu1 }
 0x358   : > { %v6250_v56 = vadd.f32 %v8815_v51, %v15049_v27  ;;  %v8816_v33 = vpop.f32.mrb[168].mxu0  ;;  %v8901_v42 = vadd.f32 %v8900_v40, %v8899_v12 }
 0x359   : > { %v8817_v31 = vpop.f32.mrb[169].mxu0 }
 0x35a   : > { %v8818_v19 = vadd.f32 %v8817_v31, %v8816_v33  ;;  %v9014_v46 = vpop.f32.mrb[184].mxu1  ;;  %v15153_v25 = vadd.f32 %v8895_v62, %v6250_v56 }
 0x35b   : > { %v9015_v39 = vpop.f32.mrb[185].mxu1 }
 0x35c   : > { %v6251_v14 = vadd.f32 %v8818_v19, %v15058_v7  ;;  %v8819_v15 = vpop.f32.mrb[170].mxu0  ;;  %v9016_v41 = vadd.f32 %v9015_v39, %v9014_v46 }
 0x35d   : > { %v8820_v53 = vpop.f32.mrb[171].mxu0 }
 0x35e   : > { %v8821_v60 = vadd.f32 %v8820_v53, %v8819_v15  ;;  %v9017_v16 = vpop.f32.mrb[186].mxu1  ;;  %v15156_v35 = vadd.f32 %v8898_v37, %v6251_v14 }
 0x35f   : > { %v9018_v28 = vpop.f32.mrb[187].mxu1 }
 0x360   : > { %v6252_v27 = vadd.f32 %v8821_v60, %v15071_v20  ;;  %v8934_v22 = vpop.f32.mrb[172].mxu0  ;;  %v9019_v11 = vadd.f32 %v9018_v28, %v9017_v16 }
 0x361   : > { %v8935_v24 = vpop.f32.mrb[173].mxu0 }
 0x362   : > { %v8936_v44 = vadd.f32 %v8935_v24, %v8934_v22  ;;  %v9020_v4 = vpop.f32.mrb[188].mxu1  ;;  %v15159_v34 = vadd.f32 %v8901_v42, %v6252_v27 }
 0x363   : > { %v9021_v54 = vpop.f32.mrb[189].mxu1 }
 0x364   : > { %v6624_v7 = vadd.f32 %v8936_v44, %v15080_v32  ;;  %v8937_v1 = vpop.f32.mrb[174].mxu0  ;;  %v9022_v52 = vadd.f32 %v9021_v54, %v9020_v4 }
 0x365   : > { %v8938_v36 = vpop.f32.mrb[175].mxu0 }
 0x366   : > { %v8939_v55 = vadd.f32 %v8938_v36, %v8937_v1  ;;  %v9023_v17 = vpop.f32.mrb[190].mxu1  ;;  %v15162_v49 = vadd.f32 %v9016_v41, %v6624_v7 }
 0x367   : > { %v9024_v43 = vpop.f32.mrb[191].mxu1 }
 0x368   : > { %v6625_v20 = vadd.f32 %v8939_v55, %v15089_v26  ;;  %v8940_v23 = vpop.f32.mrb[176].mxu0  ;;  %v9025_v57 = vadd.f32 %v9024_v43, %v9023_v17 }
 0x369   : > { %v8941_v5 = vpop.f32.mrb[177].mxu0 }
 0x36a   : > { %v8942_v0 = vadd.f32 %v8941_v5, %v8940_v23  ;;  %v9026_v29 = vpop.f32.mrb[192].mxu1  ;;  %v15165_v58 = vadd.f32 %v9019_v11, %v6625_v20 }
 0x36b   : > { %v9027_v62 = vpop.f32.mrb[193].mxu1 }
 0x36c   : > { %v6626_v32 = vadd.f32 %v8942_v0, %v15096_v61  ;;  %v8943_v38 = vpop.f32.mrb[178].mxu0  ;;  %v9028_v30 = vadd.f32 %v9027_v62, %v9026_v29 }
 0x36d   : > { %v8944_v8 = vpop.f32.mrb[179].mxu0 }
 0x36e   : > { %v8945_v9 = vadd.f32 %v8944_v8, %v8943_v38  ;;  %v9029_v3 = vpop.f32.mrb[194].mxu1  ;;  %v15168_v21 = vadd.f32 %v9022_v52, %v6626_v32 }
 0x36f   : > { %v9030_v37 = vpop.f32.mrb[195].mxu1 }
 0x370   : > { %v6627_v26 = vadd.f32 %v8945_v9, %v15103_v63  ;;  %v8946_v50 = vpop.f32.mrb[180].mxu0  ;;  %v9031_v51 = vadd.f32 %v9030_v37, %v9029_v3 }
 0x371   : > { %v8947_v12 = vpop.f32.mrb[181].mxu0 }
 0x372   : > { %v8948_v40 = vadd.f32 %v8947_v12, %v8946_v50  ;;  %v9032_v56 = vpop.f32.mrb[196].mxu1  ;;  %v15171_v33 = vadd.f32 %v9025_v57, %v6627_v26 }
 0x373   : > { %v9033_v42 = vpop.f32.mrb[197].mxu1 }
 0x374   : > { %v6628_v61 = vadd.f32 %v8948_v40, %v15110_v47  ;;  %v8949_v31 = vpop.f32.mrb[182].mxu0  ;;  %v9034_v19 = vadd.f32 %v9033_v42, %v9032_v56 }
 0x375   : > { %v8950_v46 = vpop.f32.mrb[183].mxu0 }
 0x376   : > { %v8951_v39 = vadd.f32 %v8950_v46, %v8949_v31  ;;  %v9035_v14 = vpop.f32.mrb[198].mxu1  ;;  %v15174_v15 = vadd.f32 %v9028_v30, %v6628_v61 }
 0x377   : > { %v9036_v41 = vpop.f32.mrb[199].mxu1 }
 0x378   : > { %v6629_v63 = vadd.f32 %v8951_v39, %v15116_v13  ;;  %v8952_v53 = vpop.f32.mrb[184].mxu0  ;;  %v9037_v60 = vadd.f32 %v9036_v41, %v9035_v14 }
 0x379   : > { %v8953_v16 = vpop.f32.mrb[185].mxu0 }
 0x37a   : > { %v8954_v28 = vadd.f32 %v8953_v16, %v8952_v53  ;;  %v9038_v27 = vpop.f32.mrb[200].mxu1  ;;  %v15177_v22 = vadd.f32 %v9031_v51, %v6629_v63 }
 0x37b   : > { %v9039_v11 = vpop.f32.mrb[201].mxu1 }
 0x37c   : > { %v6630_v47 = vadd.f32 %v8954_v28, %v15121_v6  ;;  %v8955_v24 = vpop.f32.mrb[186].mxu0  ;;  %v9040_v44 = vadd.f32 %v9039_v11, %v9038_v27 }
 0x37d   : > { %v8956_v4 = vpop.f32.mrb[187].mxu0 }
 0x37e   : > { %v8957_v54 = vadd.f32 %v8956_v4, %v8955_v24  ;;  %v9041_v7 = vpop.f32.mrb[202].mxu1  ;;  %v15180_v1 = vadd.f32 %v9034_v19, %v6630_v47 }
 0x37f   : > { %v9042_v52 = vpop.f32.mrb[203].mxu1 }
 0x380   : > { %v6631_v13 = vadd.f32 %v8957_v54, %v15126_v48  ;;  %v8958_v36 = vpop.f32.mrb[188].mxu0  ;;  %v9043_v55 = vadd.f32 %v9042_v52, %v9041_v7 }
 0x381   : > { %v8959_v17 = vpop.f32.mrb[189].mxu0 }
 0x382   : > { %v8960_v43 = vadd.f32 %v8959_v17, %v8958_v36  ;;  %v9044_v20 = vpop.f32.mrb[204].mxu1  ;;  %v15183_v23 = vadd.f32 %v9037_v60, %v6631_v13 }
 0x383   : > { %v9045_v57 = vpop.f32.mrb[205].mxu1 }
 0x384   : > { %v6632_v6 = vadd.f32 %v8960_v43, %v15131_v10  ;;  %v8961_v5 = vpop.f32.mrb[190].mxu0  ;;  %v9046_v0 = vadd.f32 %v9045_v57, %v9044_v20 }
 0x385   : > { %v8962_v29 = vpop.f32.mrb[191].mxu0 }
 0x386   : > { %v8963_v62 = vadd.f32 %v8962_v29, %v8961_v5  ;;  %v9047_v32 = vpop.f32.mrb[206].mxu1  ;;  %v15186_v38 = vadd.f32 %v9040_v44, %v6632_v6 }
 0x387   : > { %v9048_v30 = vpop.f32.mrb[207].mxu1 }
 0x388   : > { %v6633_v48 = vadd.f32 %v8963_v62, %v15136_v18  ;;  %v8964_v8 = vpop.f32.mrb[192].mxu0  ;;  %v9049_v9 = vadd.f32 %v9048_v30, %v9047_v32 }
 0x389   : > { %v8965_v3 = vpop.f32.mrb[193].mxu0 }
 0x38a   : > { %v8966_v37 = vadd.f32 %v8965_v3, %v8964_v8  ;;  %v9050_v26 = vpop.f32.mrb[208].mxu1  ;;  %v15189_v50 = vadd.f32 %v9043_v55, %v6633_v48 }
 0x38b   : > { %v9051_v51 = vpop.f32.mrb[209].mxu1 }
 0x38c   : > { %v6634_v10 = vadd.f32 %v8966_v37, %v15141_v59  ;;  %v8967_v12 = vpop.f32.mrb[194].mxu0  ;;  %v9052_v40 = vadd.f32 %v9051_v51, %v9050_v26 }
 0x38d   : > { %v8968_v56 = vpop.f32.mrb[195].mxu0 }
 0x38e   : > { %v8969_v42 = vadd.f32 %v8968_v56, %v8967_v12  ;;  %v9053_v61 = vpop.f32.mrb[210].mxu1  ;;  %v15192_v31 = vadd.f32 %v9046_v0, %v6634_v10 }
 0x38f   : > { %v9054_v19 = vpop.f32.mrb[211].mxu1 }
 0x390   : > { %v6635_v18 = vadd.f32 %v8969_v42, %v15146_v45  ;;  %v8970_v46 = vpop.f32.mrb[196].mxu0  ;;  %v9055_v39 = vadd.f32 %v9054_v19, %v9053_v61 }
 0x391   : > { %v8971_v14 = vpop.f32.mrb[197].mxu0 }
 0x392   : > { %v8972_v41 = vadd.f32 %v8971_v14, %v8970_v46  ;;  %v9056_v63 = vpop.f32.mrb[212].mxu1  ;;  %v15195_v53 = vadd.f32 %v9049_v9, %v6635_v18 }
 0x393   : > { %v9057_v60 = vpop.f32.mrb[213].mxu1 }
 0x394   : > { %v6636_v59 = vadd.f32 %v8972_v41, %v15150_v2  ;;  %v8973_v16 = vpop.f32.mrb[198].mxu0  ;;  %v9058_v28 = vadd.f32 %v9057_v60, %v9056_v63 }
 0x395   : > { %v8974_v27 = vpop.f32.mrb[199].mxu0 }
 0x396   : > { %v8975_v11 = vadd.f32 %v8974_v27, %v8973_v16  ;;  %v9059_v47 = vpop.f32.mrb[214].mxu1  ;;  %v15198_v24 = vadd.f32 %v9052_v40, %v6636_v59 }
 0x397   : > { %v9060_v44 = vpop.f32.mrb[215].mxu1 }
 0x398   : > { %v6637_v45 = vadd.f32 %v8975_v11, %v15153_v25  ;;  %v8976_v4 = vpop.f32.mrb[200].mxu0  ;;  %v9061_v54 = vadd.f32 %v9060_v44, %v9059_v47 }
 0x399   : > { %v8977_v7 = vpop.f32.mrb[201].mxu0 }
 0x39a   : > { %v8978_v52 = vadd.f32 %v8977_v7, %v8976_v4  ;;  %v9174_v13 = vpop.f32.mrb[216].mxu1  ;;  %v15201_v36 = vadd.f32 %v9055_v39, %v6637_v45 }
 0x39b   : > { %v9175_v55 = vpop.f32.mrb[217].mxu1 }
 0x39c   : > { %v6638_v2 = vadd.f32 %v8978_v52, %v15156_v35  ;;  %v8979_v17 = vpop.f32.mrb[202].mxu0  ;;  %v9176_v43 = vadd.f32 %v9175_v55, %v9174_v13 }
 0x39d   : > { %v8980_v20 = vpop.f32.mrb[203].mxu0 }
 0x39e   : > { %v8981_v57 = vadd.f32 %v8980_v20, %v8979_v17  ;;  %v9177_v6 = vpop.f32.mrb[218].mxu1  ;;  %v15204_v5 = vadd.f32 %v9058_v28, %v6638_v2 }
 0x39f   : > { %v9178_v0 = vpop.f32.mrb[219].mxu1 }
 0x3a0   : > { %v6639_v25 = vadd.f32 %v8981_v57, %v15159_v34  ;;  %v9094_v29 = vpop.f32.mrb[204].mxu0  ;;  %v9179_v62 = vadd.f32 %v9178_v0, %v9177_v6 }
 0x3a1   : > { %v9095_v32 = vpop.f32.mrb[205].mxu0 }
 0x3a2   : > { %v9096_v30 = vadd.f32 %v9095_v32, %v9094_v29  ;;  %v9180_v48 = vpop.f32.mrb[220].mxu1  ;;  %v15207_v8 = vadd.f32 %v9061_v54, %v6639_v25 }
 0x3a3   : > { %v9181_v9 = vpop.f32.mrb[221].mxu1 }
 0x3a4   : > { %v7012_v35 = vadd.f32 %v9096_v30, %v15162_v49  ;;  %v9097_v3 = vpop.f32.mrb[206].mxu0  ;;  %v9182_v37 = vadd.f32 %v9181_v9, %v9180_v48 }
 0x3a5   : > { %v9098_v26 = vpop.f32.mrb[207].mxu0 }
 0x3a6   : > { %v9099_v51 = vadd.f32 %v9098_v26, %v9097_v3  ;;  %v9183_v10 = vpop.f32.mrb[222].mxu1  ;;  %v15210_v12 = vadd.f32 %v9176_v43, %v7012_v35 }
 0x3a7   : > { %v9184_v40 = vpop.f32.mrb[223].mxu1 }
 0x3a8   : > { %v7013_v34 = vadd.f32 %v9099_v51, %v15165_v58  ;;  %v9100_v56 = vpop.f32.mrb[208].mxu0  ;;  %v9185_v42 = vadd.f32 %v9184_v40, %v9183_v10 }
 0x3a9   : > { %v9101_v61 = vpop.f32.mrb[209].mxu0 }
 0x3aa   : > { %v9102_v19 = vadd.f32 %v9101_v61, %v9100_v56  ;;  %v9186_v18 = vpop.f32.mrb[224].mxu1  ;;  %v15213_v46 = vadd.f32 %v9179_v62, %v7013_v34 }
 0x3ab   : > { %v9187_v39 = vpop.f32.mrb[225].mxu1 }
 0x3ac   : > { %v7014_v49 = vadd.f32 %v9102_v19, %v15168_v21  ;;  %v9103_v14 = vpop.f32.mrb[210].mxu0  ;;  %v9188_v41 = vadd.f32 %v9187_v39, %v9186_v18 }
 0x3ad   : > { %v9104_v63 = vpop.f32.mrb[211].mxu0 }
 0x3ae   : > { %v9105_v60 = vadd.f32 %v9104_v63, %v9103_v14  ;;  %v9189_v59 = vpop.f32.mrb[226].mxu1  ;;  %v15216_v16 = vadd.f32 %v9182_v37, %v7014_v49 }
 0x3af   : > { %v9190_v28 = vpop.f32.mrb[227].mxu1 }
 0x3b0   : > { %v7015_v58 = vadd.f32 %v9105_v60, %v15171_v33  ;;  %v9106_v27 = vpop.f32.mrb[212].mxu0  ;;  %v9191_v11 = vadd.f32 %v9190_v28, %v9189_v59 }
 0x3b1   : > { %v9107_v47 = vpop.f32.mrb[213].mxu0 }
 0x3b2   : > { %v9108_v44 = vadd.f32 %v9107_v47, %v9106_v27  ;;  %v9192_v45 = vpop.f32.mrb[228].mxu1  ;;  %v15219_v4 = vadd.f32 %v9185_v42, %v7015_v58 }
 0x3b3   : > { %v9193_v54 = vpop.f32.mrb[229].mxu1 }
 0x3b4   : > { %v7016_v21 = vadd.f32 %v9108_v44, %v15174_v15  ;;  %v9109_v7 = vpop.f32.mrb[214].mxu0  ;;  %v9194_v52 = vadd.f32 %v9193_v54, %v9192_v45 }
 0x3b5   : > { %v9110_v13 = vpop.f32.mrb[215].mxu0 }
 0x3b6   : > { %v9111_v55 = vadd.f32 %v9110_v13, %v9109_v7  ;;  %v9195_v2 = vpop.f32.mrb[230].mxu1  ;;  %v15222_v17 = vadd.f32 %v9188_v41, %v7016_v21 }
 0x3b7   : > { %v9196_v43 = vpop.f32.mrb[231].mxu1 }
 0x3b8   : > { %v7017_v33 = vadd.f32 %v9111_v55, %v15177_v22  ;;  %v9112_v20 = vpop.f32.mrb[216].mxu0  ;;  %v9197_v57 = vadd.f32 %v9196_v43, %v9195_v2 }
 0x3b9   : > { %v9113_v6 = vpop.f32.mrb[217].mxu0 }
 0x3ba   : > { %v9114_v0 = vadd.f32 %v9113_v6, %v9112_v20  ;;  %v9198_v25 = vpop.f32.mrb[232].mxu1  ;;  %v15225_v29 = vadd.f32 %v9191_v11, %v7017_v33 }
 0x3bb   : > { %v9199_v62 = vpop.f32.mrb[233].mxu1 }
 0x3bc   : > { %v7018_v15 = vadd.f32 %v9114_v0, %v15180_v1  ;;  %v9115_v32 = vpop.f32.mrb[218].mxu0  ;;  %v9200_v30 = vadd.f32 %v9199_v62, %v9198_v25 }
 0x3bd   : > { %v9116_v48 = vpop.f32.mrb[219].mxu0 }
 0x3be   : > { %v9117_v9 = vadd.f32 %v9116_v48, %v9115_v32  ;;  %v9201_v35 = vpop.f32.mrb[234].mxu1  ;;  %v15228_v3 = vadd.f32 %v9194_v52, %v7018_v15 }
 0x3bf   : > { %v9202_v37 = vpop.f32.mrb[235].mxu1 }
 0x3c0   : > { %v7019_v22 = vadd.f32 %v9117_v9, %v15183_v23  ;;  %v9118_v26 = vpop.f32.mrb[220].mxu0  ;;  %v9203_v51 = vadd.f32 %v9202_v37, %v9201_v35 }
 0x3c1   : > { %v9119_v10 = vpop.f32.mrb[221].mxu0 }
 0x3c2   : > { %v9120_v40 = vadd.f32 %v9119_v10, %v9118_v26  ;;  %v9204_v34 = vpop.f32.mrb[236].mxu1  ;;  %v15231_v56 = vadd.f32 %v9197_v57, %v7019_v22 }
 0x3c3   : > { %v9205_v42 = vpop.f32.mrb[237].mxu1 }
 0x3c4   : > { %v7020_v1 = vadd.f32 %v9120_v40, %v15186_v38  ;;  %v9121_v61 = vpop.f32.mrb[222].mxu0  ;;  %v9206_v19 = vadd.f32 %v9205_v42, %v9204_v34 }
 0x3c5   : > { %v9122_v18 = vpop.f32.mrb[223].mxu0 }
 0x3c6   : > { %v9123_v39 = vadd.f32 %v9122_v18, %v9121_v61  ;;  %v9207_v49 = vpop.f32.mrb[238].mxu1  ;;  %v15234_v14 = vadd.f32 %v9200_v30, %v7020_v1 }
 0x3c7   : > { %v9208_v41 = vpop.f32.mrb[239].mxu1 }
 0x3c8   : > { %v7021_v23 = vadd.f32 %v9123_v39, %v15189_v50  ;;  %v9124_v63 = vpop.f32.mrb[224].mxu0  ;;  %v9209_v60 = vadd.f32 %v9208_v41, %v9207_v49 }
 0x3c9   : > { %v9125_v59 = vpop.f32.mrb[225].mxu0 }
 0x3ca   : > { %v9126_v28 = vadd.f32 %v9125_v59, %v9124_v63  ;;  %v9210_v58 = vpop.f32.mrb[240].mxu1  ;;  %v15237_v27 = vadd.f32 %v9203_v51, %v7021_v23 }
 0x3cb   : > { %v9211_v11 = vpop.f32.mrb[241].mxu1 }
 0x3cc   : > { %v7022_v38 = vadd.f32 %v9126_v28, %v15192_v31  ;;  %v9127_v47 = vpop.f32.mrb[226].mxu0  ;;  %v9212_v44 = vadd.f32 %v9211_v11, %v9210_v58 }
 0x3cd   : > { %v9128_v45 = vpop.f32.mrb[227].mxu0 }
 0x3ce   : > { %v9129_v54 = vadd.f32 %v9128_v45, %v9127_v47  ;;  %v9213_v21 = vpop.f32.mrb[242].mxu1  ;;  %v15240_v7 = vadd.f32 %v9206_v19, %v7022_v38 }
 0x3cf   : > { %v9214_v52 = vpop.f32.mrb[243].mxu1 }
 0x3d0   : > { %v7023_v50 = vadd.f32 %v9129_v54, %v15195_v53  ;;  %v9130_v13 = vpop.f32.mrb[228].mxu0  ;;  %v9215_v55 = vadd.f32 %v9214_v52, %v9213_v21  ;;  %v7610_v21 = vld [vmem:[%s15366_s5] sm:$0x1] }
 0x3d1   : > { %v9131_v2 = vpop.f32.mrb[229].mxu0 }
 0x3d2   : > { %v9132_v43 = vadd.f32 %v9131_v2, %v9130_v13  ;;  %v9216_v33 = vpop.f32.mrb[244].mxu1  ;;  %v15243_v20 = vadd.f32 %v9209_v60, %v7023_v50 }
 0x3d3   : > { %v9217_v57 = vpop.f32.mrb[245].mxu1 }
 0x3d4   : > { %v7024_v31 = vadd.f32 %v9132_v43, %v15198_v24  ;;  %v9133_v6 = vpop.f32.mrb[230].mxu0  ;;  %v9218_v0 = vadd.f32 %v9217_v57, %v9216_v33 }
 0x3d5   : > { %v9134_v25 = vpop.f32.mrb[231].mxu0 }
 0x3d6   : > { %v9135_v62 = vadd.f32 %v9134_v25, %v9133_v6  ;;  %v9219_v15 = vpop.f32.mrb[246].mxu1  ;;  %v15246_v32 = vadd.f32 %v9212_v44, %v7024_v31  ;;  %v16454_v25 = vld [vmem:[#allocation2_spill] sm:$0xff] }
 0x3d7   : > { %v9220_v30 = vpop.f32.mrb[247].mxu1 }
 0x3d8   : > { %v7025_v53 = vadd.f32 %v9135_v62, %v15201_v36  ;;  %v9136_v48 = vpop.f32.mrb[232].mxu0  ;;  %v9221_v9 = vadd.f32 %v9220_v30, %v9219_v15 }
 0x3d9   : > { %v9137_v35 = vpop.f32.mrb[233].mxu0 }
 0x3da   : > { %v9138_v37 = vadd.f32 %v9137_v35, %v9136_v48  ;;  %v9343_v22 = vpop.f32.mrb[248].mxu1  ;;  %v15249_v26 = vadd.f32 %v9215_v55, %v7025_v53 }
 0x3db   : > { %v9344_v51 = vpop.f32.mrb[249].mxu1 }
 0x3dc   : > { %v7026_v24 = vadd.f32 %v9138_v37, %v15204_v5  ;;  %v9139_v10 = vpop.f32.mrb[234].mxu0  ;;  %v9345_v40 = vadd.f32 %v9344_v51, %v9343_v22 }
 0x3dd   : > { %v9140_v34 = vpop.f32.mrb[235].mxu0 }
 0x3de   : > { %v9141_v42 = vadd.f32 %v9140_v34, %v9139_v10  ;;  %v9346_v1 = vpop.f32.mrb[250].mxu1  ;;  %v15252_v61 = vadd.f32 %v9218_v0, %v7026_v24 }
 0x3df   : > { %v9347_v19 = vpop.f32.mrb[251].mxu1 }
 0x3e0   : > { %v7027_v36 = vadd.f32 %v9141_v42, %v15207_v8  ;;  %v9254_v18 = vpop.f32.mrb[236].mxu0  ;;  %v9348_v39 = vadd.f32 %v9347_v19, %v9346_v1 }
 0x3e1   : > { %v9255_v49 = vpop.f32.mrb[237].mxu0 }
 0x3e2   : > { %v9256_v41 = vadd.f32 %v9255_v49, %v9254_v18  ;;  %v9349_v23 = vpop.f32.mrb[252].mxu1  ;;  %v15255_v63 = vadd.f32 %v9221_v9, %v7027_v36 }
 0x3e3   : > { %v9350_v60 = vpop.f32.mrb[253].mxu1 }
 0x3e4   : > { %v15258_v5 = vadd.f32 %v9256_v41, %v15210_v12  ;;  %v9257_v59 = vpop.f32.mrb[238].mxu0  ;;  %v9351_v28 = vadd.f32 %v9350_v60, %v9349_v23  ;;  %v7611_v12 = vld [vmem:[%s15370_s9] sm:$0x1] }
 0x3e5   : > { %v9258_v58 = vpop.f32.mrb[239].mxu0  ;;  %v7612_v43 = vadd.f32 %v7611_v12, %v7610_v21 }
 0x3e6   : > { %v9259_v11 = vadd.f32 %v9258_v58, %v9257_v59  ;;  %v9352_v38 = vpop.f32.mrb[254].mxu1 }
 0x3e7   : > { %v9353_v47 = vpop.f32.mrb[255].mxu1  ;;  %v15276_v62 = vrot.slane %v7612_v43, %v16454_v25 }
 0x3e8   : > { %v15261_v8 = vadd.f32 %v9259_v11, %v15213_v46  ;;  %v9260_v44 = vpop.f32.mrb[240].mxu0  ;;  %v9354_v45 = vadd.f32 %v9353_v47, %v9352_v38 }
 0x3e9   : > { %v9261_v54 = vpop.f32.mrb[241].mxu0 }
 0x3ea   : > { %v9262_v52 = vadd.f32 %v9261_v54, %v9260_v44  ;;  %v9355_v50 = vpop.f32.mrb[0].mxu1 }
 0x3eb   : > { %v9356_v13 = vpop.f32.mrb[1].mxu1 }
 0x3ec   : > { %v15272_v55 = vadd.f32 %v9262_v52, %v15216_v16  ;;  %v9263_v46 = vpop.f32.mrb[242].mxu0  ;;  %v9357_v2 = vadd.f32 %v9356_v13, %v9355_v50 }
 0x3ed   : > { %v9264_v33 = vpop.f32.mrb[243].mxu0 }
 0x3ee   : > { %v9265_v57 = vadd.f32 %v9264_v33, %v9263_v46  ;;  %v9358_v31 = vpop.f32.mrb[2].mxu1 }
 0x3ef   : > { %v9359_v6 = vpop.f32.mrb[3].mxu1 }
 0x3f0   : > { %v7403_v0 = vadd.f32 %v9265_v57, %v15219_v4  ;;  %v9266_v15 = vpop.f32.mrb[244].mxu0  ;;  %v9360_v30 = vadd.f32 %v9359_v6, %v9358_v31 }
 0x3f1   : > { %v9267_v53 = vpop.f32.mrb[245].mxu0 }
 0x3f2   : > { %v7597_v48 = vadd.f32 %v9345_v40, %v7403_v0  ;;  %v9268_v16 = vadd.f32 %v9267_v53, %v9266_v15  ;;  %v9361_v9 = vpop.f32.mrb[4].mxu1 }
 0x3f3   : > { %v9362_v35 = vpop.f32.mrb[5].mxu1 }
 0x3f4   : > { %v7622_v4 = vadd.f32 %v15276_v62, %v7597_v48  ;;  %v7404_v37 = vadd.f32 %v9268_v16, %v15222_v17  ;;  %v9269_v22 = vpop.f32.mrb[246].mxu0  ;;  %v9363_v51 = vadd.f32 %v9362_v35, %v9361_v9 }
 0x3f5   : > { %v9270_v24 = vpop.f32.mrb[247].mxu0 }
 0x3f6   : > { %7639 = vst.msk [vmem:[%s15281_s12 + $0x18] sm:$0xff] %vm7635_vm7, %v7622_v4  ;;  %v7598_v10 = vadd.f32 %v9348_v39, %v7404_v37  ;;  %v9271_v40 = vadd.f32 %v9270_v24, %v9269_v22  ;;  %v9364_v34 = vpop.f32.mrb[6].mxu1 }
 0x3f7   : > { %v9365_v42 = vpop.f32.mrb[7].mxu1 }
 0x3f8   : > { %v7623_v1 = vadd.f32 %v15276_v62, %v7598_v10  ;;  %v7405_v19 = vadd.f32 %v9271_v40, %v15225_v29  ;;  %v9272_v36 = vpop.f32.mrb[248].mxu0  ;;  %v9366_v18 = vadd.f32 %v9365_v42, %v9364_v34 }
 0x3f9   : > { %v9273_v49 = vpop.f32.mrb[249].mxu0 }
 0x3fa   : > { %7640 = vst.msk [vmem:[%s15281_s12 + $0x20] sm:$0xff] %vm7635_vm7, %v7623_v1  ;;  %v7599_v17 = vadd.f32 %v9351_v28, %v7405_v19  ;;  %v9274_v41 = vadd.f32 %v9273_v49, %v9272_v36  ;;  %v9367_v23 = vpop.f32.mrb[8].mxu1 }
 0x3fb   : > { %v9368_v60 = vpop.f32.mrb[9].mxu1 }
 0x3fc   : > { %v7624_v39 = vadd.f32 %v15276_v62, %v7599_v17  ;;  %v7406_v59 = vadd.f32 %v9274_v41, %v15228_v3  ;;  %v9275_v58 = vpop.f32.mrb[250].mxu0  ;;  %v9369_v11 = vadd.f32 %v9368_v60, %v9367_v23 }
 0x3fd   : > { %v9276_v38 = vpop.f32.mrb[251].mxu0 }
 0x3fe   : > { %7641 = vst.msk [vmem:[%s15281_s12 + $0x28] sm:$0xff] %vm7635_vm7, %v7624_v39  ;;  %v7600_v29 = vadd.f32 %v9354_v45, %v7406_v59  ;;  %v9277_v47 = vadd.f32 %v9276_v38, %v9275_v58  ;;  %v9370_v44 = vpop.f32.mrb[10].mxu1 }
 0x3ff   : > { %v9371_v54 = vpop.f32.mrb[11].mxu1 }
 0x400   : > { %v7625_v28 = vadd.f32 %v15276_v62, %v7600_v29  ;;  %v7407_v21 = vadd.f32 %v9277_v47, %v15231_v56  ;;  %v9278_v12 = vpop.f32.mrb[252].mxu0  ;;  %v9372_v52 = vadd.f32 %v9371_v54, %v9370_v44 }
 0x401   : > { %v9279_v50 = vpop.f32.mrb[253].mxu0 }
 0x402   : > { %7642 = vst.msk [vmem:[%s15281_s12 + $0x30] sm:$0xff] %vm7635_vm7, %v7625_v28  ;;  %v7601_v3 = vadd.f32 %v9357_v2, %v7407_v21  ;;  %v9280_v13 = vadd.f32 %v9279_v50, %v9278_v12  ;;  %v9373_v46 = vpop.f32.mrb[12].mxu1 }
 0x403   : > { %v9374_v43 = vpop.f32.mrb[13].mxu1 }
 0x404   : > { %v7626_v45 = vadd.f32 %v15276_v62, %v7601_v3  ;;  %v7408_v33 = vadd.f32 %v9280_v13, %v15234_v14  ;;  %v9281_v57 = vpop.f32.mrb[254].mxu0  ;;  %v9375_v31 = vadd.f32 %v9374_v43, %v9373_v46 }
 0x405   : > { %v9282_v6 = vpop.f32.mrb[255].mxu0 }
 0x406   : > { %7643 = vst.msk [vmem:[%s15281_s12 + $0x38] sm:$0xff] %vm7635_vm7, %v7626_v45  ;;  %v7602_v56 = vadd.f32 %v9360_v30, %v7408_v33  ;;  %v9283_v0 = vadd.f32 %v9282_v6, %v9281_v57  ;;  %v9376_v25 = vpop.f32.mrb[14].mxu1 }
 0x407   : > { %v9377_v15 = vpop.f32.mrb[15].mxu1 }
 0x408   : > { %v7627_v2 = vadd.f32 %v15276_v62, %v7602_v56  ;;  %v7409_v53 = vadd.f32 %v9283_v0, %v15237_v27  ;;  %v9284_v48 = vpop.f32.mrb[0].mxu0  ;;  %v9378_v16 = vadd.f32 %v9377_v15, %v9376_v25 }
 0x409   : > { %v9285_v9 = vpop.f32.mrb[1].mxu0 }
 0x40a   : > { %7644 = vst.msk [vmem:[%s15281_s12 + $0x40] sm:$0xff] %vm7635_vm7, %v7627_v2  ;;  %v7603_v14 = vadd.f32 %v9363_v51, %v7409_v53  ;;  %v9286_v35 = vadd.f32 %v9285_v9, %v9284_v48  ;;  %v9379_v4 = vpop.f32.mrb[16].mxu1 }
 0x40b   : > { %v9380_v37 = vpop.f32.mrb[17].mxu1 }
 0x40c   : > { %v7628_v30 = vadd.f32 %v15276_v62, %v7603_v14  ;;  %v7410_v22 = vadd.f32 %v9286_v35, %v15240_v7  ;;  %v9287_v24 = vpop.f32.mrb[2].mxu0  ;;  %v9381_v10 = vadd.f32 %v9380_v37, %v9379_v4 }
 0x40d   : > { %v9288_v40 = vpop.f32.mrb[3].mxu0 }
 0x40e   : > { %7645 = vst.msk [vmem:[%s15281_s12 + $0x48] sm:$0xff] %vm7635_vm7, %v7628_v30  ;;  %v7604_v27 = vadd.f32 %v9366_v18, %v7410_v22  ;;  %v9289_v34 = vadd.f32 %v9288_v40, %v9287_v24 }
 0x410   : > { %v7629_v42 = vadd.f32 %v15276_v62, %v7604_v27  ;;  %v7411_v51 = vadd.f32 %v9289_v34, %v15243_v20  ;;  %v9290_v1 = vpop.f32.mrb[4].mxu0 }
 0x411   : > { %v9291_v19 = vpop.f32.mrb[5].mxu0 }
 0x412   : > { %7646 = vst.msk [vmem:[%s15281_s12 + $0x50] sm:$0xff] %vm7635_vm7, %v7629_v42  ;;  %v7605_v36 = vadd.f32 %v9369_v11, %v7411_v51  ;;  %v9292_v49 = vadd.f32 %v9291_v19, %v9290_v1 }
 0x414   : > { %v7630_v7 = vadd.f32 %v15276_v62, %v7605_v36  ;;  %v7412_v17 = vadd.f32 %v9292_v49, %v15246_v32  ;;  %v9293_v41 = vpop.f32.mrb[6].mxu0 }
 0x415   : > { %v9294_v23 = vpop.f32.mrb[7].mxu0 }
 0x416   : > { %7647 = vst.msk [vmem:[%s15281_s12 + $0x58] sm:$0xff] %vm7635_vm7, %v7630_v7  ;;  %v7606_v18 = vadd.f32 %v9372_v52, %v7412_v17  ;;  %v9295_v60 = vadd.f32 %v9294_v23, %v9293_v41 }
 0x418   : > { %v7631_v20 = vadd.f32 %v15276_v62, %v7606_v18  ;;  %v7413_v39 = vadd.f32 %v9295_v60, %v15249_v26  ;;  %v9296_v59 = vpop.f32.mrb[8].mxu0 }
 0x419   : > { %v9297_v58 = vpop.f32.mrb[9].mxu0 }
 0x41a   : > { %7648 = vst.msk [vmem:[%s15281_s12 + $0x60] sm:$0xff] %vm7635_vm7, %v7631_v20  ;;  %v7607_v11 = vadd.f32 %v9375_v31, %v7413_v39  ;;  %v9298_v38 = vadd.f32 %v9297_v58, %v9296_v59 }
 0x41c   : > { %v7632_v32 = vadd.f32 %v15276_v62, %v7607_v11  ;;  %v7414_v29 = vadd.f32 %v9298_v38, %v15252_v61  ;;  %v9299_v47 = vpop.f32.mrb[10].mxu0 }
 0x41d   : > { %v9300_v44 = vpop.f32.mrb[11].mxu0 }
 0x41e   : > { %7649 = vst.msk [vmem:[%s15281_s12 + $0x68] sm:$0xff] %vm7635_vm7, %v7632_v32  ;;  %v7608_v54 = vadd.f32 %v9378_v16, %v7414_v29  ;;  %v9301_v28 = vadd.f32 %v9300_v44, %v9299_v47 }
 0x420   : > { %v7633_v26 = vadd.f32 %v15276_v62, %v7608_v54  ;;  %v7415_v21 = vadd.f32 %v9301_v28, %v15255_v63  ;;  %v9334_v12 = vpop.f32.mrb[12].mxu0 }
 0x421   : > { %v9335_v52 = vpop.f32.mrb[13].mxu0 }
 0x422   : > { %7650 = vst.msk [vmem:[%s15281_s12 + $0x70] sm:$0xff] %vm7635_vm7, %v7633_v26  ;;  %v7609_v50 = vadd.f32 %v9381_v10, %v7415_v21  ;;  %v9336_v3 = vadd.f32 %v9335_v52, %v9334_v12 }
 0x424   : > { %v7634_v61 = vadd.f32 %v15276_v62, %v7609_v50  ;;  %v7594_v13 = vadd.f32 %v9336_v3, %v15258_v5  ;;  %v9337_v46 = vpop.f32.mrb[14].mxu0 }
 0x425   : > { %v9338_v43 = vpop.f32.mrb[15].mxu0 }
 0x426   : > { %7651 = vst.msk [vmem:[%s15281_s12 + $0x78] sm:$0xff] %vm7635_vm7, %v7634_v61  ;;  %v7619_v45 = vadd.f32 %v15276_v62, %v7594_v13  ;;  %v9339_v33 = vadd.f32 %v9338_v43, %v9337_v46 }
 0x428   : > { %7636 = vst.msk [vmem:[%s15281_s12] sm:$0xff] %vm7635_vm7, %v7619_v45  ;;  %v7595_v63 = vadd.f32 %v9339_v33, %v15261_v8  ;;  %v9340_v57 = vpop.f32.mrb[16].mxu0 }
 0x429   : > { %v9341_v31 = vpop.f32.mrb[17].mxu0 }
 0x42a   : > { %v7620_v6 = vadd.f32 %v15276_v62, %v7595_v63  ;;  %v9342_v56 = vadd.f32 %v9341_v31, %v9340_v57 }
 0x42c   : > { %7637 = vst.msk [vmem:[%s15281_s12 + $0x8] sm:$0xff] %vm7635_vm7, %v7620_v6  ;;  %v7596_v5 = vadd.f32 %v9342_v56, %v15272_v55 }
 0x42e   : > { %v7621_v0 = vadd.f32 %v15276_v62, %v7596_v5 }
 0x430   : > { %7638 = vst.msk [vmem:[%s15281_s12 + $0x10] sm:$0xff] %vm7635_vm7, %v7621_v0 }
 0x431 PF: > { %s20_s17 = sadd.s32 1, %s9976_s17   ;;  %s16455_s13 = smov %s9968_s15 }
 0x432   : > { %p17_p8 = scmp.ge.s32.totalorder %s20_s17, 6   ;;  %s16456_s14 = smov %s9972_s16 }
 0x433   : > { %s16457_s15 = smov %s16460_s18  ;;  %s16458_s16 = smov %s16464_s19 }
 0x434   :  { %19 = sbr.rel (!%p17_p8) target bundleno = 3 (0x3), region = 105 }

</bundles_post_ra>
